<compile_context>
chip_gen: v5e
topology: v5e:2x2
jax: 0.10.0
libtpu: 0.0.40
codegen_flags: <defaults>
</compile_context>

<pallas_src>
import functools

import jax
import jax.numpy as jnp
import numpy as np
from jax import lax
from jax.experimental import pallas as pl
from jax.experimental.pallas import tpu as pltpu


def _relu6_f32(v):
    return jnp.minimum(jnp.maximum(v, 0.0), 6.0)


def _default_act_dtype():
    # v5e/v5p VPU has no bf16 path -> keep activations f32 there.
    try:
        kind = jax.devices()[0].device_kind.lower()
    except Exception:
        return jnp.bfloat16
    return jnp.float32 if "v5" in kind else jnp.bfloat16


# -----------------------------------------------------------------------------
# Fused kernel: left branch (1x1 -> (f1,1) -> (1,f2) same-width -> (f3,1)) plus
# right branch ((f4,1)) and the channel concat, all in one body.
# Refs (inputs): x (1, chIn, S0) f32 channels-first; w0p (128, C0) f32;
#   b0 (1,C0); w1 (f1*C0, C1) act; b1; w2 (f2*C1, C2) act; b2; w3 (f3*C2, C3)
#   act; b3; wrp (f4*128, CR) bf16 (zero-padded channels); br (1, CR).
# Output: o (1, S3, C3+CR) f32, lane-dense.  Scratch: a1 halo'd width-conv buf.
# -----------------------------------------------------------------------------
def _google_reduce_kernel(x_ref, w0p_ref, b0_ref, w1_ref, b1_ref,
                          w2_ref, b2_ref, w3_ref, b3_ref, wrp_ref, br_ref,
                          o_ref, a1_ref,
                          *, H, W, chIn, f1, f2, f3, f4, padr, cpad, act_dtype):
    S0 = H * W
    H1 = H - f1 + 1
    S1 = H1 * W
    H3 = H1 - f3 + 1
    S3 = H3 * W
    pad = f2 // 2
    C0 = w0p_ref.shape[1]
    C1 = w1_ref.shape[1]
    C2 = w2_ref.shape[1]
    C3 = w3_ref.shape[1]
    CR = br_ref.shape[1]

    # --- channels-first x -> spatial-major (S0, 128) with zero-padded chans ---
    # Inflate chIn -> cpad rows with a tiny identity-selector matmul (MXU is
    # idle) so the one transpose is fully (8,128)-aligned on both sides.
    x_cf = x_ref[0]                                            # (chIn, S0) f32
    r_i = lax.broadcasted_iota(jnp.int32, (cpad, chIn), 0)
    c_i = lax.broadcasted_iota(jnp.int32, (cpad, chIn), 1)
    sel = (r_i == c_i).astype(jnp.float32)                     # (cpad, chIn)
    xt = jnp.transpose(
        jnp.dot(sel, x_cf, preferred_element_type=jnp.float32))  # (S0, cpad)
    xt_b = xt.astype(jnp.bfloat16)                             # convR operand

    # ---- convL[0]: 1x1 conv chIn->C0 (+bias, ReLU6); stays a value ----------
    acc0 = jnp.dot(xt, w0p_ref[...], preferred_element_type=jnp.float32)
    a0 = _relu6_f32(acc0 + b0_ref[...]).astype(act_dtype)      # (S0, C0)

    # ---- convL[1]: (f1,1) conv C0->C1, taps stacked into K=f1*C0 ------------
    # i*W row offsets are sublane-packing aligned (W multiple of 16/8).
    lhs1 = jnp.concatenate([a0[i * W:i * W + S1, :] for i in range(f1)],
                           axis=-1)
    acc1 = jnp.dot(lhs1, w1_ref[...], preferred_element_type=jnp.float32)
    y1 = _relu6_f32(acc1 + b1_ref[...]).astype(act_dtype)      # (S1, C1)

    # Halo'd scratch for the width conv; halos zeroed once, y1 stored at the
    # sublane-packing-aligned offset padr.
    @pl.when(pl.program_id(0) == 0)
    def _zero_halo():
        a1_ref[pl.ds(0, padr), :] = jnp.zeros((padr, C1), act_dtype)
        a1_ref[pl.ds(padr + S1, padr), :] = jnp.zeros((padr, C1), act_dtype)

    a1_ref[pl.ds(padr, S1), :] = y1

    # ---- convL[2]: (1,f2) 'same' width conv: shifted loads + row-wrap mask --
    col = lax.broadcasted_iota(jnp.int32, (S1, 1), 0)
    if (W & (W - 1)) == 0:
        col = jnp.bitwise_and(col, W - 1)                      # s mod W
    else:
        col = col % W
    taps = []
    for j in range(f2):
        d = j - pad
        patch = a1_ref[pl.ds(padr + d, S1), :]                 # (S1, C1)
        valid = jnp.logical_and(col + d >= 0, col + d < W)
        taps.append(jnp.where(valid, patch, jnp.zeros_like(patch)))
    lhs2 = jnp.concatenate(taps, axis=-1)                      # (S1, f2*C1)
    acc2 = jnp.dot(lhs2, w2_ref[...], preferred_element_type=jnp.float32)
    a2 = _relu6_f32(acc2 + b2_ref[...]).astype(act_dtype)      # (S1, C2)

    # ---- convL[3]: (f3,1) conv C2->C3, taps stacked -> out chans [0:C3) -----
    lhs3 = jnp.concatenate([a2[i * W:i * W + S3, :] for i in range(f3)],
                           axis=-1)
    acc3 = jnp.dot(lhs3, w3_ref[...], preferred_element_type=jnp.float32)
    o_ref[0, :, pl.ds(0, C3)] = _relu6_f32(acc3 + b3_ref[...]).astype(o_ref.dtype)

    # ---- convR: (f4,1) conv chIn->CR, ONE tap-stacked bf16 dot --------------
    lhs_r = jnp.concatenate([xt_b[i * W:i * W + S3, :] for i in range(f4)],
                            axis=-1)                           # (S3, f4*cpad)
    accr = jnp.dot(lhs_r, wrp_ref[...], preferred_element_type=jnp.float32)
    o_ref[0, :, pl.ds(C3, CR)] = _relu6_f32(accr + br_ref[...]).astype(o_ref.dtype)


# -----------------------------------------------------------------------------
# Wrapper: one pallas_call for the whole module.
# -----------------------------------------------------------------------------
def google_reduce(x_nchw, params, f1, f2, f3, f4, act_dtype=None):
    N, chIn, H, W = x_nchw.shape
    assert f2 % 2 == 1, "width kernel must be odd for 'same' width padding"
    assert f4 == f1 + f3 - 1, "branch output heights must match for the concat"
    assert chIn <= 128

    if act_dtype is None:
        act_dtype = _default_act_dtype()
    # i*W value-slice offsets are sublane-aligned only when W is a multiple of
    # the activation packing (16 rows for bf16, 8 for f32); fall back to f32.
    if act_dtype == jnp.bfloat16 and W % 16 != 0:
        act_dtype = jnp.float32

    pad = f2 // 2
    padr = max(16, ((pad + 15) // 16) * 16)       # bf16-packing-aligned halo
    H1 = H - f1 + 1
    H3 = H1 - f3 + 1
    S0, S1, S3 = H * W, H1 * W, H3 * W
    CPAD = 128                                    # padded input-channel width
    f32 = jnp.float32

    C0 = params["l0_w"].shape[-1]
    C1 = params["l1_w"].shape[-1]
    C2 = params["l2_w"].shape[-1]
    C3 = params["l3_w"].shape[-1]
    CR = params["r0_w"].shape[-1]

    # Pure reshape of NCHW -> (N, chIn, S0): no wrapper-side transpose.
    x = x_nchw.reshape(N, chIn, S0)

    # Weight prep (tiny, wrapper-side): pad chIn-facing weights to CPAD rows,
    # tap-stack the 128-channel conv weights into the contraction dim.
    w0p = jnp.zeros((CPAD, C0), f32).at[:chIn].set(
        params["l0_w"].reshape(chIn, C0))
    w1 = params["l1_w"].reshape(f1 * C0, C1).astype(act_dtype)
    w2 = params["l2_w"].reshape(f2 * C1, C2).astype(act_dtype)
    w3 = params["l3_w"].reshape(f3 * C2, C3).astype(act_dtype)
    wrp = (jnp.zeros((f4, CPAD, CR), f32).at[:, :chIn, :]
           .set(params["r0_w"]).reshape(f4 * CPAD, CR).astype(jnp.bfloat16))
    b0 = params["l0_b"].reshape(1, C0)
    b1 = params["l1_b"].reshape(1, C1)
    b2 = params["l2_b"].reshape(1, C2)
    b3 = params["l3_b"].reshape(1, C3)
    br = params["r0_b"].reshape(1, CR)

    kernel = functools.partial(_google_reduce_kernel, H=H, W=W, chIn=chIn,
                               f1=f1, f2=f2, f3=f3, f4=f4, padr=padr,
                               cpad=CPAD, act_dtype=act_dtype)
    rep2 = lambda n: (0, 0)

    out = pl.pallas_call(
        kernel,
        out_shape=jax.ShapeDtypeStruct((N, S3, C3 + CR), jnp.float32),
        grid=(N,),
        in_specs=[
            pl.BlockSpec((1, chIn, S0), lambda n: (n, 0, 0)),   # x (chans first)
            pl.BlockSpec((CPAD, C0), rep2),                     # w0 (padded)
            pl.BlockSpec((1, C0), rep2),                        # b0
            pl.BlockSpec((f1 * C0, C1), rep2),                  # w1 (stacked)
            pl.BlockSpec((1, C1), rep2),                        # b1
            pl.BlockSpec((f2 * C1, C2), rep2),                  # w2 (stacked)
            pl.BlockSpec((1, C2), rep2),                        # b2
            pl.BlockSpec((f3 * C2, C3), rep2),                  # w3 (stacked)
            pl.BlockSpec((1, C3), rep2),                        # b3
            pl.BlockSpec((f4 * CPAD, CR), rep2),                # wr (stacked/pad)
            pl.BlockSpec((1, CR), rep2),                        # br
        ],
        out_specs=pl.BlockSpec((1, S3, C3 + CR), lambda n: (n, 0, 0)),
        scratch_shapes=[
            pltpu.VMEM((2 * padr + S1, C1), act_dtype),         # width-conv buf
        ],
        compiler_params=pltpu.CompilerParams(
            dimension_semantics=("parallel",)),
    )(x, w0p, b0, w1, b1, w2, b2, w3, b3, wrp, br)

    out = out.reshape(N, H3, W, C3 + CR)
    # Keep NCHW output to match the PyTorch module; drop this transpose (and
    # emit bf16) if a downstream consumer can take NHWC directly.
    return jnp.transpose(out, (0, 3, 1, 2))


# -----------------------------------------------------------------------------
# Parameter init (layout: (ktap, Cin, Cout) + bias).
# -----------------------------------------------------------------------------
def init_params(key, chIn, f1, f2, f3, f4):
    ks = jax.random.split(key, 10)
    s = 0.05
    return {
        "l0_w": s * jax.random.normal(ks[0], (1, chIn, 128), jnp.float32),
        "l0_b": s * jax.random.normal(ks[1], (128,), jnp.float32),
        "l1_w": s * jax.random.normal(ks[2], (f1, 128, 128), jnp.float32),
        "l1_b": s * jax.random.normal(ks[3], (128,), jnp.float32),
        "l2_w": s * jax.random.normal(ks[4], (f2, 128, 128), jnp.float32),
        "l2_b": s * jax.random.normal(ks[5], (128,), jnp.float32),
        "l3_w": s * jax.random.normal(ks[6], (f3, 128, 256), jnp.float32),
        "l3_b": s * jax.random.normal(ks[7], (256,), jnp.float32),
        "r0_w": s * jax.random.normal(ks[8], (f4, chIn, 256), jnp.float32),
        "r0_b": s * jax.random.normal(ks[9], (256,), jnp.float32),
    }


# -----------------------------------------------------------------------------
# Pure-JAX f32 reference (lax.conv) for correctness check.
# -----------------------------------------------------------------------------
def _conv_ref(x_nchw, w_tap, b, kernel_hw, pad_hw):
    kh, kw = kernel_hw
    if kw == 1:
        w_oihw = jnp.transpose(w_tap, (2, 1, 0))[:, :, :, None]   # (O,I,kh,1)
    else:
        w_oihw = jnp.transpose(w_tap, (2, 1, 0))[:, :, None, :]   # (O,I,1,kw)
    y = lax.conv_general_dilated(
        x_nchw, w_oihw, window_strides=(1, 1),
        padding=((pad_hw[0], pad_hw[0]), (pad_hw[1], pad_hw[1])),
        dimension_numbers=("NCHW", "OIHW", "NCHW"))
    return _relu6_f32(y + b[None, :, None, None])


def google_reduce_ref(x, p, f1, f2, f3, f4):
    y = _conv_ref(x, p["l0_w"], p["l0_b"], (1, 1), (0, 0))
    y = _conv_ref(y, p["l1_w"], p["l1_b"], (f1, 1), (0, 0))
    y = _conv_ref(y, p["l2_w"], p["l2_b"], (1, f2), (0, f2 // 2))
    y = _conv_ref(y, p["l3_w"], p["l3_b"], (f3, 1), (0, 0))
    z = _conv_ref(x, p["r0_w"], p["r0_b"], (f4, 1), (0, 0))
    return jnp.concatenate([y, z], axis=1)


if __name__ == "__main__":
    chIn, f1, f2, f3, f4 = 4, 3, 3, 3, 5      # f4 == f1 + f3 - 1, f2 odd
    N, H, W = 2, 16, 16

    key = jax.random.PRNGKey(0)
    kx, kp = jax.random.split(key)
    x = jax.random.normal(kx, (N, chIn, H, W), jnp.float32)
    params = init_params(kp, chIn, f1, f2, f3, f4)

    fwd = jax.jit(functools.partial(google_reduce, f1=f1, f2=f2, f3=f3, f4=f4))
    out = jax.block_until_ready(fwd(x, params))

    ref = jax.block_until_ready(google_reduce_ref(x, params, f1, f2, f3, f4))

    assert out.shape == (N, 512, H - (f4 - 1), W), out.shape
    # bf16 matmuls (f32 accumulation) -> relaxed tolerance vs f32 reference.
    np.testing.assert_allclose(np.asarray(out), np.asarray(ref),
                               rtol=2e-2, atol=2e-2)
    print("KERNEL_OK")
</pallas_src>

<mosaic_0001>
module attributes {stable_mosaic.version = 11 : i64} {
  func.func @_google_reduce_kernel(%arg0: i32, %arg1: memref<1x4x256xf32, #tpu.memory_space<vmem>>, %arg2: memref<128x128xf32, #tpu.memory_space<vmem>>, %arg3: memref<1x128xf32, #tpu.memory_space<vmem>>, %arg4: memref<384x128xbf16, #tpu.memory_space<vmem>>, %arg5: memref<1x128xf32, #tpu.memory_space<vmem>>, %arg6: memref<384x128xbf16, #tpu.memory_space<vmem>>, %arg7: memref<1x128xf32, #tpu.memory_space<vmem>>, %arg8: memref<384x256xbf16, #tpu.memory_space<vmem>>, %arg9: memref<1x256xf32, #tpu.memory_space<vmem>>, %arg10: memref<640x256xbf16, #tpu.memory_space<vmem>>, %arg11: memref<1x256xf32, #tpu.memory_space<vmem>>, %arg12: memref<1x192x512xf32, #tpu.memory_space<vmem>>, %arg13: memref<256x128xbf16, #tpu.memory_space<vmem>>) attributes {dimension_semantics = [#tpu.dimension_semantics<parallel>], iteration_bounds = array<i64: 2>, scalar_prefetch = 0 : i64, scratch_operands = 1 : i64, tpu.core_type = #tpu.core_type<tc>, window_params = [{transform_indices = @transform_0, window_bounds = array<i64: 1, 4, 256>}, {pipeline_mode = #tpu.pipeline_mode<synchronous>, transform_indices = @transform_1, window_bounds = array<i64: 128, 128>}, {pipeline_mode = #tpu.pipeline_mode<synchronous>, transform_indices = @transform_2, window_bounds = array<i64: 1, 128>}, {pipeline_mode = #tpu.pipeline_mode<synchronous>, transform_indices = @transform_3, window_bounds = array<i64: 384, 128>}, {pipeline_mode = #tpu.pipeline_mode<synchronous>, transform_indices = @transform_4, window_bounds = array<i64: 1, 128>}, {pipeline_mode = #tpu.pipeline_mode<synchronous>, transform_indices = @transform_5, window_bounds = array<i64: 384, 128>}, {pipeline_mode = #tpu.pipeline_mode<synchronous>, transform_indices = @transform_6, window_bounds = array<i64: 1, 128>}, {pipeline_mode = #tpu.pipeline_mode<synchronous>, transform_indices = @transform_7, window_bounds = array<i64: 384, 256>}, {pipeline_mode = #tpu.pipeline_mode<synchronous>, transform_indices = @transform_8, window_bounds = array<i64: 1, 256>}, {pipeline_mode = #tpu.pipeline_mode<synchronous>, transform_indices = @transform_9, window_bounds = array<i64: 640, 256>}, {pipeline_mode = #tpu.pipeline_mode<synchronous>, transform_indices = @transform_10, window_bounds = array<i64: 1, 256>}, {transform_indices = @transform_11, window_bounds = array<i64: 1, 192, 512>}]} {
    %c0 = arith.constant 0 : index
    %c0_0 = arith.constant 0 : index
    %c0_1 = arith.constant 0 : index
    %0 = vector.load %arg1[%c0, %c0_0, %c0_1] : memref<1x4x256xf32, #tpu.memory_space<vmem>>, vector<1x4x256xf32>
    %1 = vector.shape_cast %0 : vector<1x4x256xf32> to vector<4x256xf32>
    %2 = tpu.iota {dimensions = array<i32: 0>} : vector<128x4xi32>
    %3 = tpu.iota {dimensions = array<i32: 1>} : vector<128x4xi32>
    %4 = arith.cmpi eq, %2, %3 : vector<128x4xi32>
    %5 = arith.extui %4 : vector<128x4xi1> to vector<128x4xi32>
    %6 = arith.sitofp %5 : vector<128x4xi32> to vector<128x4xf32>
    %cst = arith.constant dense<0.000000e+00> : vector<128x256xf32>
    %7 = tpu.matmul %6, %1, %cst {dimension_numbers = #tpu.dot_dimension_numbers<[1], [0], [0], [1], [0, 0, 1, 1], [], []>} : vector<128x4xf32>, vector<4x256xf32>, vector<128x256xf32> -> vector<128x256xf32>
    %8 = tpu.transpose %7, [1, 0] : vector<128x256xf32> -> vector<256x128xf32>
    %9 = arith.truncf %8 : vector<256x128xf32> to vector<256x128xbf16>
    %c0_2 = arith.constant 0 : index
    %c0_3 = arith.constant 0 : index
    %10 = vector.load %arg2[%c0_2, %c0_3] : memref<128x128xf32, #tpu.memory_space<vmem>>, vector<128x128xf32>
    %cst_4 = arith.constant dense<0.000000e+00> : vector<256x128xf32>
    %11 = tpu.matmul %8, %10, %cst_4 {dimension_numbers = #tpu.dot_dimension_numbers<[1], [0], [0], [1], [0, 0, 1, 1], [], []>} : vector<256x128xf32>, vector<128x128xf32>, vector<256x128xf32> -> vector<256x128xf32>
    %c0_5 = arith.constant 0 : index
    %c0_6 = arith.constant 0 : index
    %12 = vector.load %arg3[%c0_5, %c0_6] : memref<1x128xf32, #tpu.memory_space<vmem>>, vector<1x128xf32>
    %13 = vector.broadcast %12 : vector<1x128xf32> to vector<256x128xf32>
    %14 = arith.addf %11, %13 : vector<256x128xf32>
    %cst_7 = arith.constant 0.000000e+00 : f32
    %15 = vector.broadcast %cst_7 : f32 to vector<256x128xf32>
    %16 = arith.maximumf %14, %15 : vector<256x128xf32>
    %cst_8 = arith.constant 6.000000e+00 : f32
    %17 = vector.broadcast %cst_8 : f32 to vector<256x128xf32>
    %18 = arith.minimumf %16, %17 : vector<256x128xf32>
    %19 = arith.truncf %18 : vector<256x128xf32> to vector<256x128xbf16>
    %20 = vector.extract_strided_slice %19 {offsets = [0, 0], sizes = [224, 128], strides = [1, 1]} : vector<256x128xbf16> to vector<224x128xbf16>
    %21 = vector.extract_strided_slice %19 {offsets = [16, 0], sizes = [224, 128], strides = [1, 1]} : vector<256x128xbf16> to vector<224x128xbf16>
    %22 = vector.extract_strided_slice %19 {offsets = [32, 0], sizes = [224, 128], strides = [1, 1]} : vector<256x128xbf16> to vector<224x128xbf16>
    %23 = tpu.concatenate %20, %21, %22 in 1 : vector<224x128xbf16>, vector<224x128xbf16>, vector<224x128xbf16> -> vector<224x384xbf16>
    %c0_9 = arith.constant 0 : index
    %c0_10 = arith.constant 0 : index
    %24 = vector.load %arg4[%c0_9, %c0_10] : memref<384x128xbf16, #tpu.memory_space<vmem>>, vector<384x128xbf16>
    %cst_11 = arith.constant dense<0.000000e+00> : vector<224x128xf32>
    %25 = tpu.matmul %23, %24, %cst_11 {dimension_numbers = #tpu.dot_dimension_numbers<[1], [0], [0], [1], [0, 0, 1, 1], [], []>} : vector<224x384xbf16>, vector<384x128xbf16>, vector<224x128xf32> -> vector<224x128xf32>
    %c0_12 = arith.constant 0 : index
    %c0_13 = arith.constant 0 : index
    %26 = vector.load %arg5[%c0_12, %c0_13] : memref<1x128xf32, #tpu.memory_space<vmem>>, vector<1x128xf32>
    %27 = vector.broadcast %26 : vector<1x128xf32> to vector<224x128xf32>
    %28 = arith.addf %25, %27 : vector<224x128xf32>
    %cst_14 = arith.constant 0.000000e+00 : f32
    %29 = vector.broadcast %cst_14 : f32 to vector<224x128xf32>
    %30 = arith.maximumf %28, %29 : vector<224x128xf32>
    %cst_15 = arith.constant 6.000000e+00 : f32
    %31 = vector.broadcast %cst_15 : f32 to vector<224x128xf32>
    %32 = arith.minimumf %30, %31 : vector<224x128xf32>
    %33 = arith.truncf %32 : vector<224x128xf32> to vector<224x128xbf16>
    %c0_i32 = arith.constant 0 : i32
    %34 = arith.cmpi eq, %arg0, %c0_i32 : i32
    %35 = arith.extui %34 : i1 to i32
    %c0_i32_16 = arith.constant 0 : i32
    %36 = arith.cmpi ne, %35, %c0_i32_16 : i32
    scf.if %36 {
      %cst_60 = arith.constant 0.000000e+00 : bf16
      %128 = vector.broadcast %cst_60 : bf16 to vector<16x128xbf16>
      %c0_61 = arith.constant 0 : index
      %c0_62 = arith.constant 0 : index
      %129 = vector.load %arg13[%c0_61, %c0_62] : memref<256x128xbf16, #tpu.memory_space<vmem>>, vector<16x128xbf16>
      tpu.vector_store %arg13[%c0_61, %c0_62], %128 {strides = array<i32>} : memref<256x128xbf16, #tpu.memory_space<vmem>>, vector<16x128xbf16>,
      %cst_63 = arith.constant 0.000000e+00 : bf16
      %130 = vector.broadcast %cst_63 : bf16 to vector<16x128xbf16>
      %c240 = arith.constant 240 : index
      %c0_64 = arith.constant 0 : index
      %131 = vector.load %arg13[%c240, %c0_64] : memref<256x128xbf16, #tpu.memory_space<vmem>>, vector<16x128xbf16>
      tpu.vector_store %arg13[%c240, %c0_64], %130 {strides = array<i32>} : memref<256x128xbf16, #tpu.memory_space<vmem>>, vector<16x128xbf16>,
    } else {
    }
    %c16 = arith.constant 16 : index
    %c0_17 = arith.constant 0 : index
    %37 = vector.load %arg13[%c16, %c0_17] : memref<256x128xbf16, #tpu.memory_space<vmem>>, vector<224x128xbf16>
    tpu.vector_store %arg13[%c16, %c0_17], %33 {strides = array<i32>} : memref<256x128xbf16, #tpu.memory_space<vmem>>, vector<224x128xbf16>,
    %38 = tpu.iota {dimensions = array<i32: 0>} : vector<224x1xi32>
    %c15_i32 = arith.constant 15 : i32
    %39 = vector.broadcast %c15_i32 : i32 to vector<224x1xi32>
    %40 = arith.andi %38, %39 : vector<224x1xi32>
    %c15 = arith.constant 15 : index
    %c0_18 = arith.constant 0 : index
    %41 = vector.load %arg13[%c15, %c0_18] : memref<256x128xbf16, #tpu.memory_space<vmem>>, vector<224x128xbf16>
    %c-1_i32 = arith.constant -1 : i32
    %42 = vector.broadcast %c-1_i32 : i32 to vector<224x1xi32>
    %43 = arith.addi %40, %42 : vector<224x1xi32>
    %c0_i32_19 = arith.constant 0 : i32
    %44 = vector.broadcast %c0_i32_19 : i32 to vector<224x1xi32>
    %45 = arith.cmpi sge, %43, %44 : vector<224x1xi32>
    %c-1_i32_20 = arith.constant -1 : i32
    %46 = vector.broadcast %c-1_i32_20 : i32 to vector<224x1xi32>
    %47 = arith.addi %40, %46 : vector<224x1xi32>
    %c16_i32 = arith.constant 16 : i32
    %48 = vector.broadcast %c16_i32 : i32 to vector<224x1xi32>
    %49 = arith.cmpi slt, %47, %48 : vector<224x1xi32>
    %50 = arith.andi %45, %49 : vector<224x1xi1>
    %cst_21 = arith.constant 0.000000e+00 : bf16
    %51 = vector.broadcast %cst_21 : bf16 to vector<224x128xbf16>
    %52 = vector.shape_cast %50 : vector<224x1xi1> to vector<224x1xi1>
    %53 = vector.broadcast %52 : vector<224x1xi1> to vector<224x128xi1>
    %54 = arith.select %53, %41, %51 : vector<224x128xi1>, vector<224x128xbf16>
    %c16_22 = arith.constant 16 : index
    %c0_23 = arith.constant 0 : index
    %55 = vector.load %arg13[%c16_22, %c0_23] : memref<256x128xbf16, #tpu.memory_space<vmem>>, vector<224x128xbf16>
    %c0_i32_24 = arith.constant 0 : i32
    %56 = vector.broadcast %c0_i32_24 : i32 to vector<224x1xi32>
    %57 = arith.addi %40, %56 : vector<224x1xi32>
    %c0_i32_25 = arith.constant 0 : i32
    %58 = vector.broadcast %c0_i32_25 : i32 to vector<224x1xi32>
    %59 = arith.cmpi sge, %57, %58 : vector<224x1xi32>
    %c0_i32_26 = arith.constant 0 : i32
    %60 = vector.broadcast %c0_i32_26 : i32 to vector<224x1xi32>
    %61 = arith.addi %40, %60 : vector<224x1xi32>
    %c16_i32_27 = arith.constant 16 : i32
    %62 = vector.broadcast %c16_i32_27 : i32 to vector<224x1xi32>
    %63 = arith.cmpi slt, %61, %62 : vector<224x1xi32>
    %64 = arith.andi %59, %63 : vector<224x1xi1>
    %cst_28 = arith.constant 0.000000e+00 : bf16
    %65 = vector.broadcast %cst_28 : bf16 to vector<224x128xbf16>
    %66 = vector.shape_cast %64 : vector<224x1xi1> to vector<224x1xi1>
    %67 = vector.broadcast %66 : vector<224x1xi1> to vector<224x128xi1>
    %68 = arith.select %67, %55, %65 : vector<224x128xi1>, vector<224x128xbf16>
    %c17 = arith.constant 17 : index
    %c0_29 = arith.constant 0 : index
    %69 = vector.load %arg13[%c17, %c0_29] : memref<256x128xbf16, #tpu.memory_space<vmem>>, vector<224x128xbf16>
    %c1_i32 = arith.constant 1 : i32
    %70 = vector.broadcast %c1_i32 : i32 to vector<224x1xi32>
    %71 = arith.addi %40, %70 : vector<224x1xi32>
    %c0_i32_30 = arith.constant 0 : i32
    %72 = vector.broadcast %c0_i32_30 : i32 to vector<224x1xi32>
    %73 = arith.cmpi sge, %71, %72 : vector<224x1xi32>
    %c1_i32_31 = arith.constant 1 : i32
    %74 = vector.broadcast %c1_i32_31 : i32 to vector<224x1xi32>
    %75 = arith.addi %40, %74 : vector<224x1xi32>
    %c16_i32_32 = arith.constant 16 : i32
    %76 = vector.broadcast %c16_i32_32 : i32 to vector<224x1xi32>
    %77 = arith.cmpi slt, %75, %76 : vector<224x1xi32>
    %78 = arith.andi %73, %77 : vector<224x1xi1>
    %cst_33 = arith.constant 0.000000e+00 : bf16
    %79 = vector.broadcast %cst_33 : bf16 to vector<224x128xbf16>
    %80 = vector.shape_cast %78 : vector<224x1xi1> to vector<224x1xi1>
    %81 = vector.broadcast %80 : vector<224x1xi1> to vector<224x128xi1>
    %82 = arith.select %81, %69, %79 : vector<224x128xi1>, vector<224x128xbf16>
    %83 = tpu.concatenate %54, %68, %82 in 1 : vector<224x128xbf16>, vector<224x128xbf16>, vector<224x128xbf16> -> vector<224x384xbf16>
    %c0_34 = arith.constant 0 : index
    %c0_35 = arith.constant 0 : index
    %84 = vector.load %arg6[%c0_34, %c0_35] : memref<384x128xbf16, #tpu.memory_space<vmem>>, vector<384x128xbf16>
    %cst_36 = arith.constant dense<0.000000e+00> : vector<224x128xf32>
    %85 = tpu.matmul %83, %84, %cst_36 {dimension_numbers = #tpu.dot_dimension_numbers<[1], [0], [0], [1], [0, 0, 1, 1], [], []>} : vector<224x384xbf16>, vector<384x128xbf16>, vector<224x128xf32> -> vector<224x128xf32>
    %c0_37 = arith.constant 0 : index
    %c0_38 = arith.constant 0 : index
    %86 = vector.load %arg7[%c0_37, %c0_38] : memref<1x128xf32, #tpu.memory_space<vmem>>, vector<1x128xf32>
    %87 = vector.broadcast %86 : vector<1x128xf32> to vector<224x128xf32>
    %88 = arith.addf %85, %87 : vector<224x128xf32>
    %cst_39 = arith.constant 0.000000e+00 : f32
    %89 = vector.broadcast %cst_39 : f32 to vector<224x128xf32>
    %90 = arith.maximumf %88, %89 : vector<224x128xf32>
    %cst_40 = arith.constant 6.000000e+00 : f32
    %91 = vector.broadcast %cst_40 : f32 to vector<224x128xf32>
    %92 = arith.minimumf %90, %91 : vector<224x128xf32>
    %93 = arith.truncf %92 : vector<224x128xf32> to vector<224x128xbf16>
    %94 = vector.extract_strided_slice %93 {offsets = [0, 0], sizes = [192, 128], strides = [1, 1]} : vector<224x128xbf16> to vector<192x128xbf16>
    %95 = vector.extract_strided_slice %93 {offsets = [16, 0], sizes = [192, 128], strides = [1, 1]} : vector<224x128xbf16> to vector<192x128xbf16>
    %96 = vector.extract_strided_slice %93 {offsets = [32, 0], sizes = [192, 128], strides = [1, 1]} : vector<224x128xbf16> to vector<192x128xbf16>
    %97 = tpu.concatenate %94, %95, %96 in 1 : vector<192x128xbf16>, vector<192x128xbf16>, vector<192x128xbf16> -> vector<192x384xbf16>
    %c0_41 = arith.constant 0 : index
    %c0_42 = arith.constant 0 : index
    %98 = vector.load %arg8[%c0_41, %c0_42] : memref<384x256xbf16, #tpu.memory_space<vmem>>, vector<384x256xbf16>
    %cst_43 = arith.constant dense<0.000000e+00> : vector<192x256xf32>
    %99 = tpu.matmul %97, %98, %cst_43 {dimension_numbers = #tpu.dot_dimension_numbers<[1], [0], [0], [1], [0, 0, 1, 1], [], []>} : vector<192x384xbf16>, vector<384x256xbf16>, vector<192x256xf32> -> vector<192x256xf32>
    %c0_44 = arith.constant 0 : index
    %c0_45 = arith.constant 0 : index
    %100 = vector.load %arg9[%c0_44, %c0_45] : memref<1x256xf32, #tpu.memory_space<vmem>>, vector<1x256xf32>
    %101 = vector.broadcast %100 : vector<1x256xf32> to vector<192x256xf32>
    %102 = arith.addf %99, %101 : vector<192x256xf32>
    %cst_46 = arith.constant 0.000000e+00 : f32
    %103 = vector.broadcast %cst_46 : f32 to vector<192x256xf32>
    %104 = arith.maximumf %102, %103 : vector<192x256xf32>
    %cst_47 = arith.constant 6.000000e+00 : f32
    %105 = vector.broadcast %cst_47 : f32 to vector<192x256xf32>
    %106 = arith.minimumf %104, %105 : vector<192x256xf32>
    %c0_48 = arith.constant 0 : index
    %c0_49 = arith.constant 0 : index
    %c0_50 = arith.constant 0 : index
    %107 = vector.load %arg12[%c0_48, %c0_49, %c0_50] : memref<1x192x512xf32, #tpu.memory_space<vmem>>, vector<1x192x256xf32>
    %108 = vector.shape_cast %107 : vector<1x192x256xf32> to vector<192x256xf32>
    %109 = vector.shape_cast %106 : vector<192x256xf32> to vector<1x192x256xf32>
    tpu.vector_store %arg12[%c0_48, %c0_49, %c0_50], %109 {strides = array<i32>} : memref<1x192x512xf32, #tpu.memory_space<vmem>>, vector<1x192x256xf32>,
    %110 = vector.extract_strided_slice %9 {offsets = [0, 0], sizes = [192, 128], strides = [1, 1]} : vector<256x128xbf16> to vector<192x128xbf16>
    %111 = vector.extract_strided_slice %9 {offsets = [16, 0], sizes = [192, 128], strides = [1, 1]} : vector<256x128xbf16> to vector<192x128xbf16>
    %112 = vector.extract_strided_slice %9 {offsets = [32, 0], sizes = [192, 128], strides = [1, 1]} : vector<256x128xbf16> to vector<192x128xbf16>
    %113 = vector.extract_strided_slice %9 {offsets = [48, 0], sizes = [192, 128], strides = [1, 1]} : vector<256x128xbf16> to vector<192x128xbf16>
    %114 = vector.extract_strided_slice %9 {offsets = [64, 0], sizes = [192, 128], strides = [1, 1]} : vector<256x128xbf16> to vector<192x128xbf16>
    %115 = tpu.concatenate %110, %111, %112, %113, %114 in 1 : vector<192x128xbf16>, vector<192x128xbf16>, vector<192x128xbf16>, vector<192x128xbf16>, vector<192x128xbf16> -> vector<192x640xbf16>
    %c0_51 = arith.constant 0 : index
    %c0_52 = arith.constant 0 : index
    %116 = vector.load %arg10[%c0_51, %c0_52] : memref<640x256xbf16, #tpu.memory_space<vmem>>, vector<640x256xbf16>
    %cst_53 = arith.constant dense<0.000000e+00> : vector<192x256xf32>
    %117 = tpu.matmul %115, %116, %cst_53 {dimension_numbers = #tpu.dot_dimension_numbers<[1], [0], [0], [1], [0, 0, 1, 1], [], []>} : vector<192x640xbf16>, vector<640x256xbf16>, vector<192x256xf32> -> vector<192x256xf32>
    %c0_54 = arith.constant 0 : index
    %c0_55 = arith.constant 0 : index
    %118 = vector.load %arg11[%c0_54, %c0_55] : memref<1x256xf32, #tpu.memory_space<vmem>>, vector<1x256xf32>
    %119 = vector.broadcast %118 : vector<1x256xf32> to vector<192x256xf32>
    %120 = arith.addf %117, %119 : vector<192x256xf32>
    %cst_56 = arith.constant 0.000000e+00 : f32
    %121 = vector.broadcast %cst_56 : f32 to vector<192x256xf32>
    %122 = arith.maximumf %120, %121 : vector<192x256xf32>
    %cst_57 = arith.constant 6.000000e+00 : f32
    %123 = vector.broadcast %cst_57 : f32 to vector<192x256xf32>
    %124 = arith.minimumf %122, %123 : vector<192x256xf32>
    %c0_58 = arith.constant 0 : index
    %c0_59 = arith.constant 0 : index
    %c256 = arith.constant 256 : index
    %125 = vector.load %arg12[%c0_58, %c0_59, %c256] : memref<1x192x512xf32, #tpu.memory_space<vmem>>, vector<1x192x256xf32>
    %126 = vector.shape_cast %125 : vector<1x192x256xf32> to vector<192x256xf32>
    %127 = vector.shape_cast %124 : vector<192x256xf32> to vector<1x192x256xf32>
    tpu.vector_store %arg12[%c0_58, %c0_59, %c256], %127 {strides = array<i32>} : memref<1x192x512xf32, #tpu.memory_space<vmem>>, vector<1x192x256xf32>,
    return
  }
  func.func @transform_0(%arg0: i32) -> (i32, i32, i32) {
    %c0_i32 = arith.constant 0 : i32
    %c0_i32_0 = arith.constant 0 : i32
    %c0_i32_1 = arith.constant 0 : i32
    return %arg0, %c0_i32, %c0_i32_0 : i32, i32, i32
  }
  func.func @transform_1(%arg0: i32) -> (i32, i32) {
    %c0_i32 = arith.constant 0 : i32
    %c0_i32_0 = arith.constant 0 : i32
    %c0_i32_1 = arith.constant 0 : i32
    return %c0_i32, %c0_i32_0 : i32, i32
  }
  func.func @transform_2(%arg0: i32) -> (i32, i32) {
    %c0_i32 = arith.constant 0 : i32
    %c0_i32_0 = arith.constant 0 : i32
    %c0_i32_1 = arith.constant 0 : i32
    return %c0_i32, %c0_i32_0 : i32, i32
  }
  func.func @transform_3(%arg0: i32) -> (i32, i32) {
    %c0_i32 = arith.constant 0 : i32
    %c0_i32_0 = arith.constant 0 : i32
    %c0_i32_1 = arith.constant 0 : i32
    return %c0_i32, %c0_i32_0 : i32, i32
  }
  func.func @transform_4(%arg0: i32) -> (i32, i32) {
    %c0_i32 = arith.constant 0 : i32
    %c0_i32_0 = arith.constant 0 : i32
    %c0_i32_1 = arith.constant 0 : i32
    return %c0_i32, %c0_i32_0 : i32, i32
  }
  func.func @transform_5(%arg0: i32) -> (i32, i32) {
    %c0_i32 = arith.constant 0 : i32
    %c0_i32_0 = arith.constant 0 : i32
    %c0_i32_1 = arith.constant 0 : i32
    return %c0_i32, %c0_i32_0 : i32, i32
  }
  func.func @transform_6(%arg0: i32) -> (i32, i32) {
    %c0_i32 = arith.constant 0 : i32
    %c0_i32_0 = arith.constant 0 : i32
    %c0_i32_1 = arith.constant 0 : i32
    return %c0_i32, %c0_i32_0 : i32, i32
  }
  func.func @transform_7(%arg0: i32) -> (i32, i32) {
    %c0_i32 = arith.constant 0 : i32
    %c0_i32_0 = arith.constant 0 : i32
    %c0_i32_1 = arith.constant 0 : i32
    return %c0_i32, %c0_i32_0 : i32, i32
  }
  func.func @transform_8(%arg0: i32) -> (i32, i32) {
    %c0_i32 = arith.constant 0 : i32
    %c0_i32_0 = arith.constant 0 : i32
    %c0_i32_1 = arith.constant 0 : i32
    return %c0_i32, %c0_i32_0 : i32, i32
  }
  func.func @transform_9(%arg0: i32) -> (i32, i32) {
    %c0_i32 = arith.constant 0 : i32
    %c0_i32_0 = arith.constant 0 : i32
    %c0_i32_1 = arith.constant 0 : i32
    return %c0_i32, %c0_i32_0 : i32, i32
  }
  func.func @transform_10(%arg0: i32) -> (i32, i32) {
    %c0_i32 = arith.constant 0 : i32
    %c0_i32_0 = arith.constant 0 : i32
    %c0_i32_1 = arith.constant 0 : i32
    return %c0_i32, %c0_i32_0 : i32, i32
  }
  func.func @transform_11(%arg0: i32) -> (i32, i32, i32) {
    %c0_i32 = arith.constant 0 : i32
    %c0_i32_0 = arith.constant 0 : i32
    %c0_i32_1 = arith.constant 0 : i32
    return %arg0, %c0_i32, %c0_i32_0 : i32, i32, i32
  }
}

</mosaic_0001>

<bundles_post_ra>
// kernel: google_reduce.1
= control target key start
LH: loop header
LB: loop body
LE: loop exit
PB: predicated region body
PF: predicated region fallthrough
CT: control target
= control target key end

     0   :  { %s12206_s0 = inlined_call_operand.vmem [shape: f32[2,4,256], index: 0, kind: input, shape index: {}]   ;;  %s12207_s1 = inlined_call_operand.vmem [shape: f32[128,128], index: 1, kind: input, shape index: {}]   ;;  %s12208_s2 = inlined_call_operand.vmem [shape: f32[1,128], index: 2, kind: input, shape index: {}]   ;;  %s12209_s3 = inlined_call_operand.vmem [shape: bf16[384,128], index: 3, kind: input, shape index: {}]   ;;  %s12210_s4 = inlined_call_operand.vmem [shape: f32[1,128], index: 4, kind: input, shape index: {}]   ;;  %s12211_s5 = inlined_call_operand.vmem [shape: bf16[384,128], index: 5, kind: input, shape index: {}]   ;;  %s12212_s6 = inlined_call_operand.vmem [shape: f32[1,128], index: 6, kind: input, shape index: {}]   ;;  %s12213_s7 = inlined_call_operand.vmem [shape: bf16[384,256], index: 7, kind: input, shape index: {}]   ;;  %s12214_s8 = inlined_call_operand.vmem [shape: f32[1,256], index: 8, kind: input, shape index: {}]   ;;  %s12215_s9 = inlined_call_operand.vmem [shape: bf16[640,256], index: 9, kind: input, shape index: {}]   ;;  %s12216_s10 = inlined_call_operand.vmem [shape: f32[1,256], index: 10, kind: input, shape index: {}]   ;;  %s12217_s11 = inlined_call_operand.hbm [shape: f32[2,192,512], index: 11, kind: output, shape index: {}]  }
   0x1   :  { %12291 = sst [smem:[#allocation50_spill]] %s12206_s0 }
   0x2   :  { %16 = vsyncpa [#allocation4], 0 }
   0x3   :  { %18 = vsyncpa [#allocation4 + $0x1], 0  ;;  %s8303_s17 = smov 0   ;;  %s8305_s18 = smov 0  }
   0x4   :  { %s8307_s19 = smov 0   ;;  %s8309_s20 = smov 0  }
   0x5 LB: > { %s8324_s21 = sadd.s32 4294967295, %s8235_s20   ;;  %s7095_s22 = sadd.s32 4294967294, %s8235_s20   ;;  %s8235_s20 = sphi %s8309_s20, %s12494_s20   ;;  %s8231_s19 = sphi %s8307_s19, %s12493_s19   ;;  %s8227_s18 = sphi %s8305_s18, %s12492_s18   ;;  %s8223_s17 = sphi %s8303_s17, %s12491_s17  }
   0x6   : > { %s8328_s23 = sadd.s32 1, %s8235_s20   ;;  %s267_s24 = sadd.s32 1, %s8231_s19 }
   0x7   : > { %s264_s25 = ssub.s32 %s8235_s20, %s8328_s23  ;;  %p277_p0 = scmp.ne.s32.totalorder %s8231_s19, %s8227_s18 }
   0x8   : > { %p265_p1 = scmp.eq.s32.totalorder %s264_s25, 0  ;;  %p278_p2 = scmp.eq.s32.totalorder %s8324_s21, 1 }
   0x9   : > { %p283_p3 = scmp.ne.s32.totalorder %s8227_s18, %s8223_s17  ;;  %p284_p4 = scmp.eq.s32.totalorder %s7095_s22, 1 }
   0xa   : > { %s8339_s26 = scalar_select %p265_p1, %s8231_s19, %s267_s24  }
   0xb   : > { %p8341_p5 = por %p278_p2, %p277_p0  ;;  %p8345_p6 = por %p284_p4, %p283_p3 }
   0xc   : > { %p7098_p7 = scmp.ge.s32.totalorder %s8235_s20, 1  ;;  %p340_p8 = scmp.lt.s32.totalorder %s8235_s20, 3 }
   0xe   : > { %p341_p9 = pnand %p7098_p7, %p340_p8 }
  0x10   : > { %344 = sbr.rel (%p341_p9) target bundleno = 2228 (0x8b4), region = 64 }
  0x15   : > { %s12218_s29 = sand.u32 1, %s8227_s18   ;;  %p380_p10 = scmp.lt.s32.totalorder %s8324_s21, 1  ;;  %v389_v0 = vlaneseq  ;;  %vm509_vm1 = vcmask 1043456   ;;  %v8237_v4 = vmov 0.0   ;;  %vm460_vm2 = vcmask 31744   ;;  %v755_v51 = vld [vmem:[%s12207_s1 + $0x78] sm:$0xff] }
  0x16   : > { %s8355_s30 = smul.u32 768, %s12218_s29  ;;  %s12294_s0 = sld [smem:[#allocation50_spill]]  ;;  %760 = vmatpush.msra.mxu2 %v755_v51  ;;  %v754_v53 = vld [vmem:[%s12207_s1 + $0x70] sm:$0xff]  ;;  %v753_v54 = vld [vmem:[%s12207_s1 + $0x68] sm:$0xff]  ;;  %v752_v55 = vld [vmem:[%s12207_s1 + $0x60] sm:$0xff] }
  0x17   : > { %s381_s12 = scalar_select %p380_p10, %s8324_s21, 1  ;;  %v8361_v2 = vshrl.u32 %v389_v0, 7  ;;  %v8363_v3 = vand.u32 127, %v389_v0  ;;  %v751_v56 = vld [vmem:[%s12207_s1 + $0x58] sm:$0xff]  ;;  %v750_v58 = vld [vmem:[%s12207_s1 + $0x50] sm:$0xff]  ;;  %v749_v59 = vld [vmem:[%s12207_s1 + $0x48] sm:$0xff] }
  0x18   : > { %761 = vmatpush.msra.mxu2 %v754_v53  ;;  %v748_v60 = vld [vmem:[%s12207_s1 + $0x40] sm:$0xff]  ;;  %v747_v61 = vld [vmem:[%s12207_s1 + $0x38] sm:$0xff]  ;;  %v746_v63 = vld [vmem:[%s12207_s1 + $0x30] sm:$0xff]  ;;  %p7247_p11 = scmp.ne.s32.totalorder %s8324_s21, 0 }
  0x19   : > { %s7859_s13 = sshll.u32 %s381_s12, 3  ;;  %12295 = vst [vmem:[#allocation6_spill] sm:$0xff] %v8361_v2  ;;  %vm408_vm0 = vcmp.eq.s32.totalorder %v8361_v2, %v8363_v3  ;;  %v8371_v6 = vadd.s32 8, %v8361_v2  ;;  %v8381_v10 = vadd.s32 16, %v8361_v2  ;;  %v8391_v12 = vadd.s32 24, %v8361_v2  ;;  %v745_v0 = vld [vmem:[%s12207_s1 + $0x28] sm:$0xff] }
  0x1a   : > { %v8368_v5 = vsel %vm408_vm0, 1.0, %v8237_v4  ;;  %v8401_v14 = vadd.s32 32, %v8361_v2  ;;  %v8411_v16 = vadd.s32 40, %v8361_v2  ;;  %v8421_v18 = vadd.s32 48, %v8361_v2  ;;  %762 = vmatpush.msra.mxu2 %v753_v54  ;;  %s8921_s12 = scalar_lea.vmem [#allocation3], %s8355_s30 }
  0x1b   : > { %vm409_vm3 = vcmp.eq.s32.totalorder %v8371_v6, %v8363_v3  ;;  %vm410_vm4 = vcmp.eq.s32.totalorder %v8381_v10, %v8363_v3  ;;  %vm411_vm5 = vcmp.eq.s32.totalorder %v8391_v12, %v8363_v3  ;;  %v8429_v20 = vadd.s32 56, %v8361_v2 }
  0x1c   : > { %s384_s16 = scalar_lea.vmem %s12294_s0, %s7859_s13  ;;  %v8378_v9 = vsel %vm409_vm3, 1.0, %v8237_v4  ;;  %v8388_v11 = vsel %vm410_vm4, 1.0, %v8237_v4  ;;  %v8398_v13 = vsel %vm411_vm5, 1.0, %v8237_v4  ;;  %vm412_vm6 = vcmp.eq.s32.totalorder %v8401_v14, %v8363_v3  ;;  %763 = vmatpush.msra.mxu2 %v752_v55  ;;  %v7874_v55 = vld [vmem:[%s12209_s3 + $0x70] sm:$0xff] }
  0x1d   : > { %v388_v1 = vld [vmem:[%s384_s16] sm:$0xff]  ;;  %v8408_v15 = vsel %vm412_vm6, 1.0, %v8237_v4  ;;  %vm413_vm7 = vcmp.eq.s32.totalorder %v8411_v16, %v8363_v3  ;;  %vm414_vm8 = vcmp.eq.s32.totalorder %v8421_v18, %v8363_v3  ;;  %vm415_vm9 = vcmp.eq.s32.totalorder %v8429_v20, %v8363_v3 }
  0x1e   : > { %457 = vst [vmem:[#allocation1] ss:$2 sm:$0xff] %v388_v1  ;;  %v8418_v17 = vsel %vm413_vm7, 1.0, %v8237_v4  ;;  %v7107_v19 = vsel %vm414_vm8, 1.0, %v8237_v4  ;;  %v7108_v21 = vsel %vm415_vm9, 1.0, %v8237_v4  ;;  %v8436_v22 = vadd.s32 64, %v8361_v2  ;;  %764 = vmatpush.msra.mxu2 %v751_v56 }
  0x1f   : > { %v8440_v23 = vadd.s32 96, %v8361_v2  ;;  %v8450_v26 = vadd.s32 72, %v8361_v2  ;;  %v8454_v27 = vadd.s32 104, %v8361_v2  ;;  %v8464_v30 = vadd.s32 80, %v8361_v2  ;;  %v744_v1 = vld [vmem:[%s12207_s1 + $0x20] sm:$0xff] }
  0x20   : > { %vm416_vm10 = vcmp.eq.s32.totalorder %v8436_v22, %v8363_v3  ;;  %v8468_v31 = vadd.s32 112, %v8361_v2  ;;  %v8478_v34 = vadd.s32 88, %v8361_v2  ;;  %v8482_v35 = vadd.s32 120, %v8361_v2  ;;  %765 = vmatpush.msra.mxu2 %v750_v58 }
  0x21   : > { %vm420_vm11 = vcmp.eq.s32.totalorder %v8440_v23, %v8363_v3  ;;  %v7109_v25 = vsel %vm416_vm10, 1.0, %v8237_v4  ;;  %vm417_vm12 = vcmp.eq.s32.totalorder %v8450_v26, %v8363_v3  ;;  %vm421_vm13 = vcmp.eq.s32.totalorder %v8454_v27, %v8363_v3 }
  0x22   : > { %v7113_v24 = vsel %vm420_vm11, 1.0, %v8237_v4  ;;  %v7114_v28 = vsel %vm421_vm13, 1.0, %v8237_v4  ;;  %v7110_v29 = vsel %vm417_vm12, 1.0, %v8237_v4  ;;  %vm418_vm14 = vcmp.eq.s32.totalorder %v8464_v30, %v8363_v3  ;;  %766 = vmatpush.msra.mxu2 %v749_v59  ;;  %v7873_v59 = vld [vmem:[%s12209_s3 + $0x68] sm:$0xff] }
  0x23   : > { %vm422_vm15 = vcmp.eq.s32.totalorder %v8468_v31, %v8363_v3  ;;  %v7111_v33 = vsel %vm418_vm14, 1.0, %v8237_v4  ;;  %vm419_vm0 = vcmp.eq.s32.totalorder %v8478_v34, %v8363_v3 }
  0x24   : > { %v7115_v32 = vsel %vm422_vm15, 1.0, %v8237_v4  ;;  %v7112_v37 = vsel %vm419_vm0, 1.0, %v8237_v4  ;;  %767 = vmatpush.msra.mxu2 %v748_v60 }
  0x25   : > { %v458_v7 = vld.sshfl [vmem:[#allocation1] sm:$0xff pattern:$0x75316420]  ;;  %v459_v8 = vld.sshfl [vmem:[#allocation1 + $0x8] sm:$0xff pattern:$0x75316420] }
  0x26   : > { %7117 = vmatpush.msk.msra.mxu0 %vm509_vm1, %v458_v7  ;;  %8120 = vmatpush.msk.msra.mxu1 %vm509_vm1, %v459_v8  ;;  %v741_v7 = vld [vmem:[%s12207_s1 + $0x8] sm:$0xff] }
  0x27   : > { %7118 = vmatmul.msk.f32.vlgmr.msra.gmra.mxu0 %vm460_vm2, %v8368_v5  ;;  %7147 = vmatmul.msk.f32.vlgmr.msra.gmra.mxu1 %vm460_vm2, %v7113_v24 }
  0x28   : > { %7134 = vmatpush.msk.msrb.mxu0 %vm509_vm1, %v459_v8  ;;  %vm423_vm1 = vcmp.eq.s32.totalorder %v8482_v35, %v8363_v3  ;;  %768 = vmatpush.msra.mxu2 %v747_v61  ;;  %v743_v3 = vld [vmem:[%s12207_s1 + $0x18] sm:$0xff]  ;;  %v740_v8 = vld [vmem:[%s12207_s1] sm:$0xff] }
  0x29   : > { %v7116_v36 = vsel %vm423_vm1, 1.0, %v8237_v4 }
  0x2a   : > { %769 = vmatpush.msra.mxu2 %v746_v63 }
  0x2c   : > { %770 = vmatpush.msra.mxu2 %v745_v0  ;;  %v7867_v0 = vld [vmem:[%s12209_s3 + $0x38] sm:$0xff] }
  0x2d   : > { %1261 = vmatpush.bf16.msra.mxu3 %v7867_v0 }
  0x2e   : > { %771 = vmatpush.msra.mxu2 %v744_v1 }
  0x2f   : > { %7119 = vmatmul.msk.f32.gmra.mxu0 %vm460_vm2, %v8378_v9  ;;  %7148 = vmatmul.msk.f32.gmra.mxu1 %vm460_vm2, %v7114_v28 }
  0x30   : > { %772 = vmatpush.msra.mxu2 %v743_v3  ;;  %v7872_v3 = vld [vmem:[%s12209_s3 + $0x60] sm:$0xff] }
  0x37   : > { %7120 = vmatmul.msk.f32.gmra.mxu0 %vm460_vm2, %v8388_v11  ;;  %7149 = vmatmul.msk.f32.gmra.mxu1 %vm460_vm2, %v7115_v32 }
  0x3f   : > { %7121 = vmatmul.msk.f32.gmra.mxu0 %vm460_vm2, %v8398_v13  ;;  %7150 = vmatmul.msk.f32.gmra.mxu1 %vm460_vm2, %v7116_v36 }
  0x47   : > { %7122 = vmatmul.msk.f32.gmra.mxu0 %vm460_vm2, %v8408_v15 }
  0x4f   : > { %7123 = vmatmul.msk.f32.gmra.mxu0 %vm460_vm2, %v8418_v17 }
  0x57   : > { %7124 = vmatmul.msk.f32.gmra.mxu0 %vm460_vm2, %v7107_v19 }
  0x5f   : > { %7125 = vmatmul.msk.f32.gmra.mxu0 %vm460_vm2, %v7108_v21 }
  0x67   : > { %7126 = vmatmul.msk.f32.gmra.mxu0 %vm460_vm2, %v7109_v25 }
  0x6f   : > { %7127 = vmatmul.msk.f32.gmra.mxu0 %vm460_vm2, %v7110_v29 }
  0x77   : > { %7128 = vmatmul.msk.f32.gmra.mxu0 %vm460_vm2, %v7111_v33 }
  0x7f   : > { %7129 = vmatmul.msk.f32.gmra.mxu0 %vm460_vm2, %v7112_v37 }
  0x87   : > { %7130 = vmatmul.msk.f32.gmra.mxu0 %vm460_vm2, %v7113_v24 }
  0x8f   : > { %7131 = vmatmul.msk.f32.gmra.mxu0 %vm460_vm2, %v7114_v28 }
  0x97   : > { %7132 = vmatmul.msk.f32.gmra.mxu0 %vm460_vm2, %v7115_v32 }
  0x9f   : > { %7133 = vmatmul.msk.f32.gmra.mxu0 %vm460_vm2, %v7116_v36 }
  0xa4   : > { %v531_v38 = vpop.f32.mrf.mxu0 }
  0xa5   : > { %644 = vxpose.xlu0.b32.start [1/16] %v531_v38, 128 }
  0xa7   : > { %7135 = vmatmul.msk.f32.vlgmr.msrb.gmra.mxu0 %vm460_vm2, %v8368_v5  ;;  %v742_v5 = vld [vmem:[%s12207_s1 + $0x10] sm:$0xff] }
  0xa8   : > { %773 = vmatpush.msra.mxu2 %v742_v5 }
  0xaa   : > { %774 = vmatpush.msra.mxu2 %v741_v7  ;;  %v7865_v7 = vld [vmem:[%s12209_s3 + $0x28] sm:$0xff] }
  0xac   : > { %v534_v39 = vpop.f32.mrf.mxu0  ;;  %775 = vmatpush.msra.mxu2 %v740_v8 }
  0xad   : > { %645 = vxpose.xlu0.b32.cont [2/16] %v534_v39, 128 }
  0xaf   : > { %7136 = vmatmul.msk.f32.gmra.mxu0 %vm460_vm2, %v8378_v9 }
  0xb4   : > { %v537_v40 = vpop.f32.mrf.mxu0 }
  0xb5   : > { %646 = vxpose.xlu0.b32.cont [3/16] %v537_v40, 128 }
  0xb7   : > { %7137 = vmatmul.msk.f32.gmra.mxu0 %vm460_vm2, %v8388_v11 }
  0xbc   : > { %v540_v41 = vpop.f32.mrf.mxu0 }
  0xbd   : > { %647 = vxpose.xlu0.b32.cont [4/16] %v540_v41, 128 }
  0xbf   : > { %7138 = vmatmul.msk.f32.gmra.mxu0 %vm460_vm2, %v8398_v13 }
  0xc4   : > { %v543_v42 = vpop.f32.mrf.mxu0 }
  0xc5   : > { %648 = vxpose.xlu0.b32.cont [5/16] %v543_v42, 128 }
  0xc7   : > { %7139 = vmatmul.msk.f32.gmra.mxu0 %vm460_vm2, %v8408_v15 }
  0xcc   : > { %v546_v43 = vpop.f32.mrf.mxu0 }
  0xcd   : > { %649 = vxpose.xlu0.b32.cont [6/16] %v546_v43, 128 }
  0xcf   : > { %7140 = vmatmul.msk.f32.gmra.mxu0 %vm460_vm2, %v8418_v17 }
  0xd4   : > { %v549_v44 = vpop.f32.mrf.mxu0 }
  0xd5   : > { %650 = vxpose.xlu0.b32.cont [7/16] %v549_v44, 128 }
  0xd7   : > { %7141 = vmatmul.msk.f32.gmra.mxu0 %vm460_vm2, %v7107_v19 }
  0xdc   : > { %v552_v45 = vpop.f32.mrf.mxu0 }
  0xdd   : > { %651 = vxpose.xlu0.b32.cont [8/16] %v552_v45, 128 }
  0xdf   : > { %7142 = vmatmul.msk.f32.gmra.mxu0 %vm460_vm2, %v7108_v21 }
  0xe4   : > { %v555_v46 = vpop.f32.mrf.mxu0 }
  0xe5   : > { %652 = vxpose.xlu0.b32.cont [9/16] %v555_v46, 128 }
  0xe7   : > { %7143 = vmatmul.msk.f32.gmra.mxu0 %vm460_vm2, %v7109_v25 }
  0xec   : > { %v558_v47 = vpop.f32.mrf.mxu0 }
  0xed   : > { %653 = vxpose.xlu0.b32.cont [10/16] %v558_v47, 128 }
  0xef   : > { %7144 = vmatmul.msk.f32.gmra.mxu0 %vm460_vm2, %v7110_v29 }
  0xf4   : > { %v561_v48 = vpop.f32.mrf.mxu0 }
  0xf5   : > { %654 = vxpose.xlu0.b32.cont [11/16] %v561_v48, 128  ;;  %v632_v48 = vpop.f32.mrf.mxu1 }
  0xf7   : > { %7145 = vmatmul.msk.f32.gmra.mxu0 %vm460_vm2, %v7111_v33 }
  0xfc   : > { %v564_v49 = vpop.f32.mrf.mxu0 }
  0xfd   : > { %655 = vxpose.xlu0.b32.cont [12/16] %v564_v49, 128  ;;  %v7875_v49 = vld [vmem:[%s12209_s3 + $0x78] sm:$0xff] }
  0xfe   : > { %1340 = vmatpush.bf16.msra.mxu0 %v7875_v49  ;;  %v7883_v49 = vld [vmem:[%s12209_s3 + $0xb8] sm:$0xff] }
  0xff   : > { %7146 = vmatmul.msk.f32.gmra.mxu0 %vm460_vm2, %v7112_v37  ;;  %1419 = vmatpush.bf16.msrb.mxu1 %v7883_v49 }
 0x102   : > { %1341 = vmatpush.bf16.msra.mxu0 %v7874_v55  ;;  %v7882_v55 = vld [vmem:[%s12209_s3 + $0xb0] sm:$0xff] }
 0x103   : > { %1420 = vmatpush.bf16.msrb.mxu1 %v7882_v55 }
 0x104   : > { %v567_v50 = vpop.f32.mrf.mxu0 }
 0x105   : > { %656 = vxpose.xlu0.b32.cont [13/16] %v567_v50, 128 }
 0x106   : > { %1342 = vmatpush.bf16.msra.mxu0 %v7873_v59  ;;  %v7869_v59 = vld [vmem:[%s12209_s3 + $0x48] sm:$0xff] }
 0x10a   : > { %1343 = vmatpush.bf16.msra.mxu0 %v7872_v3  ;;  %v8704_v3 = vld [vmem:[%s12208_s2] ss:$0 sm:$0xff] }
 0x10c   : > { %v570_v52 = vpop.f32.mrf.mxu0 }
 0x10d   : > { %657 = vxpose.xlu0.b32.cont [14/16] %v570_v52, 128  ;;  %v635_v52 = vpop.f32.mrf.mxu1 }
 0x114   : > { %v573_v57 = vpop.f32.mrf.mxu0 }
 0x115   : > { %658 = vxpose.xlu0.b32.cont [15/16] %v573_v57, 128  ;;  %v638_v56 = vpop.f32.mrf.mxu1 }
 0x11c   : > { %v576_v62 = vpop.f32.mrf.mxu0 }
 0x11d   : > { %659 = vxpose.xlu0.b32.end [16/16] %v576_v62, 128  ;;  %v641_v62 = vpop.f32.mrf.mxu1 }
 0x124   : > { %v596_v4 = vpop.f32.mrf.mxu0 }
 0x125   : > { %676 = vxpose.xlu1.b32.start [1/16] %v596_v4, 128  ;;  %v7866_v4 = vld [vmem:[%s12209_s3 + $0x30] sm:$0xff] }
 0x126   : > { %1262 = vmatpush.bf16.msra.mxu3 %v7866_v4 }
 0x12a   : > { %1263 = vmatpush.bf16.msra.mxu3 %v7865_v7  ;;  %v7880_v7 = vld [vmem:[%s12209_s3 + $0xa0] sm:$0xff] }
 0x12c   : > { %v599_v9 = vpop.f32.mrf.mxu0 }
 0x12d   : > { %677 = vxpose.xlu1.b32.cont [2/16] %v599_v9, 128  ;;  %v7864_v9 = vld [vmem:[%s12209_s3 + $0x20] sm:$0xff] }
 0x12e   : > { %1264 = vmatpush.bf16.msra.mxu3 %v7864_v9  ;;  %v7868_v9 = vld [vmem:[%s12209_s3 + $0x40] sm:$0xff] }
 0x134   : > { %v602_v11 = vpop.f32.mrf.mxu0 }
 0x135   : > { %678 = vxpose.xlu1.b32.cont [3/16] %v602_v11, 128 }
 0x13c   : > { %v605_v13 = vpop.f32.mrf.mxu0 }
 0x13d   : > { %679 = vxpose.xlu1.b32.cont [4/16] %v605_v13, 128  ;;  %v7863_v13 = vld [vmem:[%s12209_s3 + $0x18] sm:$0xff] }
 0x13e   : > { %1265 = vmatpush.bf16.msra.mxu3 %v7863_v13 }
 0x144   : > { %v608_v15 = vpop.f32.mrf.mxu0 }
 0x145   : > { %680 = vxpose.xlu1.b32.cont [5/16] %v608_v15, 128 }
 0x149   : > { %v8562_v17 = vpop.trf.xlu0 }
 0x14a   : > { %12296 = vst [vmem:[#allocation7_spill] sm:$0xff] %v8562_v17  ;;  %776 = vmatmul.f32.vlgmr.msra.gmra.mxu2 %v8562_v17 }
 0x14c   : > { %v611_v21 = vpop.f32.mrf.mxu0 }
 0x14d   : > { %681 = vxpose.xlu1.b32.cont [6/16] %v611_v21, 128  ;;  %v7871_v21 = vld [vmem:[%s12209_s3 + $0x58] sm:$0xff] }
 0x14e   : > { %1344 = vmatpush.bf16.msra.mxu0 %v7871_v21 }
 0x151   : > { %v8567_v24 = vpop.trf.xlu0 }
 0x152   : > { %12297 = vst [vmem:[#allocation8_spill] sm:$0xff] %v8567_v24  ;;  %779 = vmatmul.f32.gmra.mxu2 %v8567_v24 }
 0x154   : > { %v614_v28 = vpop.f32.mrf.mxu0 }
 0x155   : > { %682 = vxpose.xlu1.b32.cont [7/16] %v614_v28, 128  ;;  %v7862_v28 = vld [vmem:[%s12209_s3 + $0x10] sm:$0xff] }
 0x156   : > { %1266 = vmatpush.bf16.msra.mxu3 %v7862_v28 }
 0x159   : > { %v8572_v29 = vpop.trf.xlu0 }
 0x15a   : > { %12298 = vst [vmem:[#allocation9_spill] sm:$0xff] %v8572_v29  ;;  %782 = vmatmul.f32.gmra.mxu2 %v8572_v29 }
 0x15c   : > { %v617_v33 = vpop.f32.mrf.mxu0 }
 0x15d   : > { %683 = vxpose.xlu1.b32.cont [8/16] %v617_v33, 128 }
 0x161   : > { %v8577_v36 = vpop.trf.xlu0 }
 0x162   : > { %12299 = vst [vmem:[#allocation10_spill] sm:$0xff] %v8577_v36  ;;  %785 = vmatmul.f32.gmra.mxu2 %v8577_v36 }
 0x164   : > { %v620_v38 = vpop.f32.mrf.mxu0 }
 0x165   : > { %684 = vxpose.xlu1.b32.cont [9/16] %v620_v38, 128  ;;  %v7861_v38 = vld [vmem:[%s12209_s3 + $0x8] sm:$0xff] }
 0x166   : > { %1267 = vmatpush.bf16.msra.mxu3 %v7861_v38 }
 0x169   : > { %v8582_v39 = vpop.trf.xlu0 }
 0x16a   : > { %12300 = vst [vmem:[#allocation11_spill] sm:$0xff] %v8582_v39  ;;  %788 = vmatmul.f32.gmra.mxu2 %v8582_v39 }
 0x16c   : > { %v623_v41 = vpop.f32.mrf.mxu0 }
 0x16d   : > { %685 = vxpose.xlu1.b32.cont [10/16] %v623_v41, 128 }
 0x171   : > { %v8587_v42 = vpop.trf.xlu0 }
 0x172   : > { %12301 = vst [vmem:[#allocation12_spill] sm:$0xff] %v8587_v42  ;;  %791 = vmatmul.f32.gmra.mxu2 %v8587_v42 }
 0x174   : > { %v626_v44 = vpop.f32.mrf.mxu0 }
 0x175   : > { %686 = vxpose.xlu1.b32.cont [11/16] %v626_v44, 128  ;;  %v7870_v44 = vld [vmem:[%s12209_s3 + $0x50] sm:$0xff] }
 0x176   : > { %1345 = vmatpush.bf16.msra.mxu0 %v7870_v44  ;;  %v7879_v44 = vld [vmem:[%s12209_s3 + $0x98] sm:$0xff] }
 0x179   : > { %v8592_v45 = vpop.trf.xlu0 }
 0x17a   : > { %12302 = vst [vmem:[#allocation13_spill] sm:$0xff] %v8592_v45  ;;  %794 = vmatmul.f32.gmra.mxu2 %v8592_v45  ;;  %1346 = vmatpush.bf16.msra.mxu0 %v7869_v59  ;;  %v7878_v59 = vld [vmem:[%s12209_s3 + $0x90] sm:$0xff] }
 0x17c   : > { %v629_v47 = vpop.f32.mrf.mxu0 }
 0x17d   : > { %687 = vxpose.xlu1.b32.cont [12/16] %v629_v47, 128  ;;  %v7860_v47 = vld [vmem:[%s12209_s3] sm:$0xff] }
 0x17e   : > { %1268 = vmatpush.bf16.msra.mxu3 %v7860_v47  ;;  %1347 = vmatpush.bf16.msra.mxu0 %v7868_v9 }
 0x181   : > { %v8600_v50 = vpop.trf.xlu0 }
 0x182   : > { %12303 = vst [vmem:[#allocation14_spill] sm:$0xff] %v8600_v50  ;;  %797 = vmatmul.f32.gmra.mxu2 %v8600_v50 }
 0x185   : > { %688 = vxpose.xlu1.b32.cont [13/16] %v632_v48, 128 }
 0x189   : > { %v8605_v53 = vpop.trf.xlu0 }
 0x18a   : > { %12304 = vst [vmem:[#allocation15_spill] sm:$0xff] %v8605_v53  ;;  %800 = vmatmul.f32.gmra.mxu2 %v8605_v53 }
 0x18d   : > { %689 = vxpose.xlu1.b32.cont [14/16] %v635_v52, 128 }
 0x191   : > { %v8613_v57 = vpop.trf.xlu0 }
 0x192   : > { %12305 = vst [vmem:[#allocation16_spill] sm:$0xff] %v8613_v57  ;;  %803 = vmatmul.f32.gmra.mxu2 %v8613_v57 }
 0x195   : > { %690 = vxpose.xlu1.b32.cont [15/16] %v638_v56, 128 }
 0x199   : > { %v8621_v60 = vpop.trf.xlu0 }
 0x19a   : > { %12306 = vst [vmem:[#allocation17_spill] sm:$0xff] %v8621_v60  ;;  %806 = vmatmul.f32.gmra.mxu2 %v8621_v60 }
 0x19d   : > { %691 = vxpose.xlu1.b32.end [16/16] %v641_v62, 128  ;;  %v7881_v62 = vld [vmem:[%s12209_s3 + $0xa8] sm:$0xff] }
 0x19e   : > { %1421 = vmatpush.bf16.msrb.mxu1 %v7881_v62 }
 0x1a1   : > { %v8626_v63 = vpop.trf.xlu0 }
 0x1a2   : > { %12307 = vst [vmem:[#allocation18_spill] sm:$0xff] %v8626_v63  ;;  %809 = vmatmul.f32.gmra.mxu2 %v8626_v63  ;;  %1422 = vmatpush.bf16.msrb.mxu1 %v7880_v7 }
 0x1a6   : > { %1423 = vmatpush.bf16.msrb.mxu1 %v7879_v44 }
 0x1a9   : > { %v8640_v5 = vpop.trf.xlu0 }
 0x1aa   : > { %12308 = vst [vmem:[#allocation19_spill] sm:$0xff] %v8640_v5  ;;  %812 = vmatmul.f32.gmra.mxu2 %v8640_v5  ;;  %1424 = vmatpush.bf16.msrb.mxu1 %v7878_v59 }
 0x1b1   : > { %v8651_v11 = vpop.trf.xlu0 }
 0x1b2   : > { %12309 = vst [vmem:[#allocation20_spill] sm:$0xff] %v8651_v11  ;;  %815 = vmatmul.f32.gmra.mxu2 %v8651_v11 }
 0x1b9   : > { %v8665_v33 = vpop.trf.xlu0 }
 0x1ba   : > { %12310 = vst [vmem:[#allocation21_spill] sm:$0xff] %v8665_v33  ;;  %818 = vmatmul.f32.gmra.mxu2 %v8665_v33 }
 0x1c1   : > { %v8679_v48 = vpop.trf.xlu0 }
 0x1c2   : > { %12311 = vst [vmem:[#allocation22_spill] sm:$0xff] %v8679_v48  ;;  %821 = vmatmul.f32.gmra.mxu2 %v8679_v48 }
 0x1c9   : > { %v8690_v56 = vpop.trf.xlu1 }
 0x1ca   : > { %12312 = vst [vmem:[#allocation23_spill] sm:$0xff] %v8690_v56  ;;  %824 = vmatmul.f32.gmra.mxu2 %v8690_v56 }
 0x1cd   : > { %v777_v4 = vpop.f32.mrf.mxu2 }
 0x1ce   : > { %v778_v13 = vadd.f32 %v8704_v3, %v777_v4 }
 0x1d0   : > { %v873_v28 = vmax.f32 %v778_v13, 0.0 }
 0x1d1   : > { %v8713_v21 = vpop.trf.xlu1 }
 0x1d2   : > { %12313 = vst [vmem:[#allocation24_spill] sm:$0xff] %v8713_v21  ;;  %827 = vmatmul.f32.gmra.mxu2 %v8713_v21  ;;  %v905_v49 = vmin.f32 %v873_v28, 6.0  ;;  %v7877_v28 = vld [vmem:[%s12209_s3 + $0x88] sm:$0xff] }
 0x1d3   : > { %1425 = vmatpush.bf16.msrb.mxu1 %v7877_v28 }
 0x1d4   : > { %v937_v7 = vpack.c.bf16 %v905_v49, %v905_v49  ;;  %v7876_v49 = vld [vmem:[%s12209_s3 + $0x80] sm:$0xff] }
 0x1d5   : > { %v780_v47 = vpop.f32.mrf.mxu2 }
 0x1d6   : > { %v781_v55 = vadd.f32 %v8704_v3, %v780_v47 }
 0x1d7   : > { %1426 = vmatpush.bf16.msrb.mxu1 %v7876_v49 }
 0x1d8   : > { %v874_v62 = vmax.f32 %v781_v55, 0.0  ;;  %v997_v55 = vunpack.c.l.b16 %v937_v7 }
 0x1d9   : > { %v8725_v4 = vpop.trf.xlu1 }
 0x1da   : > { %12314 = vst [vmem:[#allocation25_spill] sm:$0xff] %v8725_v4  ;;  %v906_v9 = vmin.f32 %v874_v62, 6.0  ;;  %830 = vmatmul.f32.gmra.mxu2 %v8725_v4 }
 0x1dc   : > { %v938_v44 = vpack.c.bf16 %v906_v9, %v906_v9 }
 0x1dd   : > { %v783_v47 = vpop.f32.mrf.mxu2 }
 0x1de   : > { %v784_v38 = vadd.f32 %v8704_v3, %v783_v47  ;;  %v998_v59 = vunpack.c.l.b16 %v938_v44 }
 0x1e0   : > { %v1025_v62 = vpack.c.b16 %v998_v59, %v997_v55  ;;  %v875_v0 = vmax.f32 %v784_v38, 0.0 }
 0x1e1   : > { %v8737_v13 = vpop.trf.xlu1 }
 0x1e2   : > { %12315 = vst [vmem:[#allocation26_spill] sm:$0xff] %v8737_v13  ;;  %833 = vmatmul.f32.gmra.mxu2 %v8737_v13  ;;  %1269 = vmatmul.bf16.vlgmr.msra.gmra.mxu3 %v1025_v62  ;;  %v907_v28 = vmin.f32 %v875_v0, 6.0 }
 0x1e4   : > { %v939_v41 = vpack.c.bf16 %v907_v28, %v907_v28 }
 0x1e5   : > { %v786_v9 = vpop.f32.mrf.mxu2 }
 0x1e6   : > { %v787_v7 = vadd.f32 %v8704_v3, %v786_v9  ;;  %v999_v52 = vunpack.c.l.b16 %v939_v41 }
 0x1e8   : > { %v876_v44 = vmax.f32 %v787_v7, 0.0 }
 0x1e9   : > { %v8743_v47 = vpop.trf.xlu1 }
 0x1ea   : > { %12316 = vst [vmem:[#allocation27_spill] sm:$0xff] %v8743_v47  ;;  %v908_v15 = vmin.f32 %v876_v44, 6.0  ;;  %836 = vmatmul.f32.gmra.mxu2 %v8743_v47 }
 0x1ec   : > { %v940_v38 = vpack.c.bf16 %v908_v15, %v908_v15 }
 0x1ed   : > { %v789_v59 = vpop.f32.mrf.mxu2 }
 0x1ee   : > { %v790_v49 = vadd.f32 %v8704_v3, %v789_v59  ;;  %v1000_v62 = vunpack.c.l.b16 %v940_v38 }
 0x1f0   : > { %v1026_v8 = vpack.c.b16 %v1000_v62, %v999_v52  ;;  %v877_v9 = vmax.f32 %v790_v49, 0.0 }
 0x1f1   : > { %v8749_v0 = vpop.trf.xlu1 }
 0x1f2   : > { %12317 = vst [vmem:[#allocation28_spill] sm:$0xff] %v8749_v0  ;;  %839 = vmatmul.f32.gmra.mxu2 %v8749_v0  ;;  %1274 = vmatmul.bf16.gmra.mxu3 %v1026_v8  ;;  %v909_v44 = vmin.f32 %v877_v9, 6.0 }
 0x1f3   : > { %1348 = vmatmul.bf16.vlgmr.msra.gmra.mxu0 %v1026_v8 }
 0x1f4   : > { %v941_v41 = vpack.c.bf16 %v909_v44, %v909_v44 }
 0x1f5   : > { %v792_v28 = vpop.f32.mrf.mxu2 }
 0x1f6   : > { %v793_v15 = vadd.f32 %v8704_v3, %v792_v28  ;;  %v1001_v62 = vunpack.c.l.b16 %v941_v41 }
 0x1f8   : > { %v878_v55 = vmax.f32 %v793_v15, 0.0 }
 0x1f9   : > { %v8755_v1 = vpop.trf.xlu1 }
 0x1fa   : > { %12318 = vst [vmem:[#allocation29_spill] sm:$0xff] %v8755_v1  ;;  %v910_v38 = vmin.f32 %v878_v55, 6.0  ;;  %842 = vmatmul.f32.gmra.mxu2 %v8755_v1 }
 0x1fc   : > { %v942_v59 = vpack.c.bf16 %v910_v38, %v910_v38 }
 0x1fd   : > { %v795_v49 = vpop.f32.mrf.mxu2 }
 0x1fe   : > { %v1002_v7 = vunpack.c.l.b16 %v942_v59  ;;  %v796_v8 = vadd.f32 %v8704_v3, %v795_v49 }
 0x200   : > { %v1027_v61 = vpack.c.b16 %v1002_v7, %v1001_v62  ;;  %v879_v28 = vmax.f32 %v796_v8, 0.0 }
 0x201   : > { %v8761_v9 = vpop.trf.xlu1 }
 0x202   : > { %12319 = vst [vmem:[#allocation30_spill] sm:$0xff] %v8761_v9  ;;  %845 = vmatmul.f32.gmra.mxu2 %v8761_v9  ;;  %1279 = vmatmul.bf16.gmra.mxu3 %v1027_v61  ;;  %v911_v44 = vmin.f32 %v879_v28, 6.0 }
 0x203   : > { %1353 = vmatmul.bf16.gmra.mxu0 %v1027_v61  ;;  %1427 = vmatmul.bf16.vlgmr.msrb.gmra.mxu1 %v1027_v61 }
 0x204   : > { %v943_v49 = vpack.c.bf16 %v911_v44, %v911_v44 }
 0x205   : > { %v798_v55 = vpop.f32.mrf.mxu2 }
 0x206   : > { %v799_v38 = vadd.f32 %v8704_v3, %v798_v55  ;;  %v1003_v52 = vunpack.c.l.b16 %v943_v49 }
 0x208   : > { %v880_v41 = vmax.f32 %v799_v38, 0.0 }
 0x209   : > { %v8767_v59 = vpop.trf.xlu1 }
 0x20a   : > { %12320 = vst [vmem:[#allocation31_spill] sm:$0xff] %v8767_v59  ;;  %v912_v7 = vmin.f32 %v880_v41, 6.0  ;;  %848 = vmatmul.f32.gmra.mxu2 %v8767_v59 }
 0x20c   : > { %v944_v8 = vpack.c.bf16 %v912_v7, %v912_v7 }
 0x20d   : > { %v801_v15 = vpop.f32.mrf.mxu2 }
 0x20e   : > { %v1004_v58 = vunpack.c.l.b16 %v944_v8  ;;  %v802_v61 = vadd.f32 %v8704_v3, %v801_v15 }
 0x210   : > { %v1028_v54 = vpack.c.b16 %v1004_v58, %v1003_v52  ;;  %v881_v55 = vmax.f32 %v802_v61, 0.0 }
 0x211   : > { %v8773_v28 = vpop.trf.xlu1 }
 0x212   : > { %12321 = vst [vmem:[#allocation32_spill] sm:$0xff] %v8773_v28  ;;  %851 = vmatmul.f32.gmra.mxu2 %v8773_v28  ;;  %1284 = vmatmul.bf16.gmra.mxu3 %v1028_v54  ;;  %v913_v41 = vmin.f32 %v881_v55, 6.0 }
 0x213   : > { %1358 = vmatmul.bf16.gmra.mxu0 %v1028_v54  ;;  %1432 = vmatmul.bf16.gmra.mxu1 %v1028_v54 }
 0x214   : > { %v945_v15 = vpack.c.bf16 %v913_v41, %v913_v41 }
 0x215   : > { %v804_v44 = vpop.f32.mrf.mxu2 }
 0x216   : > { %v805_v7 = vadd.f32 %v8704_v3, %v804_v44  ;;  %v1005_v62 = vunpack.c.l.b16 %v945_v15 }
 0x218   : > { %v882_v49 = vmax.f32 %v805_v7, 0.0 }
 0x219   : > { %v8779_v8 = vpop.trf.xlu1 }
 0x21a   : > { %12322 = vst [vmem:[#allocation33_spill] sm:$0xff] %v8779_v8  ;;  %v914_v58 = vmin.f32 %v882_v49, 6.0  ;;  %854 = vmatmul.f32.gmra.mxu2 %v8779_v8 }
 0x21c   : > { %v946_v61 = vpack.c.bf16 %v914_v58, %v914_v58 }
 0x21d   : > { %v807_v38 = vpop.f32.mrf.mxu2 }
 0x21e   : > { %v1006_v51 = vunpack.c.l.b16 %v946_v61  ;;  %v808_v54 = vadd.f32 %v8704_v3, %v807_v38 }
 0x220   : > { %v1029_v46 = vpack.c.b16 %v1006_v51, %v1005_v62  ;;  %v883_v44 = vmax.f32 %v808_v54, 0.0 }
 0x221   : > { %v8785_v55 = vpop.trf.xlu1 }
 0x222   : > { %12323 = vst [vmem:[#allocation34_spill] sm:$0xff] %v8785_v55  ;;  %857 = vmatmul.f32.gmra.mxu2 %v8785_v55  ;;  %1289 = vmatmul.bf16.gmra.mxu3 %v1029_v46  ;;  %v915_v49 = vmin.f32 %v883_v44, 6.0 }
 0x223   : > { %1363 = vmatmul.bf16.gmra.mxu0 %v1029_v46  ;;  %1437 = vmatmul.bf16.gmra.mxu1 %v1029_v46 }
 0x224   : > { %v947_v38 = vpack.c.bf16 %v915_v49, %v915_v49 }
 0x225   : > { %v810_v41 = vpop.f32.mrf.mxu2 }
 0x226   : > { %v811_v58 = vadd.f32 %v8704_v3, %v810_v41  ;;  %v1007_v52 = vunpack.c.l.b16 %v947_v38 }
 0x228   : > { %v884_v15 = vmax.f32 %v811_v58, 0.0 }
 0x229   : > { %v8791_v61 = vpop.trf.xlu1 }
 0x22a   : > { %12324 = vst [vmem:[#allocation35_spill] sm:$0xff] %v8791_v61  ;;  %v916_v51 = vmin.f32 %v884_v15, 6.0  ;;  %860 = vmatmul.f32.gmra.mxu2 %v8791_v61 }
 0x22c   : > { %v948_v54 = vpack.c.bf16 %v916_v51, %v916_v51 }
 0x22d   : > { %v813_v7 = vpop.f32.mrf.mxu2 }
 0x22e   : > { %v1008_v43 = vunpack.c.l.b16 %v948_v54  ;;  %v814_v46 = vadd.f32 %v8704_v3, %v813_v7 }
 0x230   : > { %v1030_v40 = vpack.c.b16 %v1008_v43, %v1007_v52  ;;  %v885_v41 = vmax.f32 %v814_v46, 0.0 }
 0x231   : > { %v8797_v44 = vpop.trf.xlu1 }
 0x232   : > { %12325 = vst [vmem:[#allocation36_spill] sm:$0xff] %v8797_v44  ;;  %863 = vmatmul.f32.gmra.mxu2 %v8797_v44  ;;  %1294 = vmatmul.bf16.gmra.mxu3 %v1030_v40  ;;  %v917_v15 = vmin.f32 %v885_v41, 6.0 }
 0x233   : > { %1368 = vmatmul.bf16.gmra.mxu0 %v1030_v40  ;;  %1442 = vmatmul.bf16.gmra.mxu1 %v1030_v40 }
 0x234   : > { %v949_v7 = vpack.c.bf16 %v917_v15, %v917_v15 }
 0x235   : > { %v816_v49 = vpop.f32.mrf.mxu2 }
 0x236   : > { %v817_v51 = vadd.f32 %v8704_v3, %v816_v49  ;;  %v1009_v62 = vunpack.c.l.b16 %v949_v7 }
 0x238   : > { %v886_v38 = vmax.f32 %v817_v51, 0.0 }
 0x239   : > { %v8803_v54 = vpop.trf.xlu1 }
 0x23a   : > { %12326 = vst [vmem:[#allocation37_spill] sm:$0xff] %v8803_v54  ;;  %v918_v43 = vmin.f32 %v886_v38, 6.0  ;;  %866 = vmatmul.f32.gmra.mxu2 %v8803_v54 }
 0x23c   : > { %v950_v46 = vpack.c.bf16 %v918_v43, %v918_v43 }
 0x23d   : > { %v819_v58 = vpop.f32.mrf.mxu2 }
 0x23e   : > { %v1010_v37 = vunpack.c.l.b16 %v950_v46  ;;  %v820_v40 = vadd.f32 %v8704_v3, %v819_v58 }
 0x240   : > { %v1031_v32 = vpack.c.b16 %v1010_v37, %v1009_v62  ;;  %v887_v49 = vmax.f32 %v820_v40, 0.0 }
 0x241   : > { %v8809_v41 = vpop.trf.xlu1 }
 0x242   : > { %12327 = vst [vmem:[#allocation38_spill] sm:$0xff] %v8809_v41  ;;  %869 = vmatmul.f32.gmra.mxu2 %v8809_v41  ;;  %1299 = vmatmul.bf16.gmra.mxu3 %v1031_v32  ;;  %v919_v38 = vmin.f32 %v887_v49, 6.0 }
 0x243   : > { %1373 = vmatmul.bf16.gmra.mxu0 %v1031_v32  ;;  %1447 = vmatmul.bf16.gmra.mxu1 %v1031_v32 }
 0x244   : > { %v951_v46 = vpack.c.bf16 %v919_v38, %v919_v38 }
 0x245   : > { %v822_v15 = vpop.f32.mrf.mxu2 }
 0x246   : > { %v823_v43 = vadd.f32 %v8704_v3, %v822_v15  ;;  %v1011_v62 = vunpack.c.l.b16 %v951_v46 }
 0x248   : > { %v888_v7 = vmax.f32 %v823_v43, 0.0 }
 0x24a   : > { %v920_v52 = vmin.f32 %v888_v7, 6.0 }
 0x24c   : > { %v952_v58 = vpack.c.bf16 %v920_v52, %v920_v52 }
 0x24d   : > { %v825_v37 = vpop.f32.mrf.mxu2 }
 0x24e   : > { %v1012_v25 = vunpack.c.l.b16 %v952_v58  ;;  %v826_v40 = vadd.f32 %v8704_v3, %v825_v37 }
 0x250   : > { %v1032_v19 = vpack.c.b16 %v1012_v25, %v1011_v62  ;;  %v889_v51 = vmax.f32 %v826_v40, 0.0 }
 0x252   : > { %1304 = vmatmul.bf16.gmra.mxu3 %v1032_v19  ;;  %v921_v32 = vmin.f32 %v889_v51, 6.0 }
 0x253   : > { %1378 = vmatmul.bf16.gmra.mxu0 %v1032_v19  ;;  %1452 = vmatmul.bf16.gmra.mxu1 %v1032_v19 }
 0x254   : > { %v953_v15 = vpack.c.bf16 %v921_v32, %v921_v32 }
 0x255   : > { %v828_v41 = vpop.f32.mrf.mxu2 }
 0x256   : > { %v829_v49 = vadd.f32 %v8704_v3, %v828_v41  ;;  %v1013_v52 = vunpack.c.l.b16 %v953_v15 }
 0x258   : > { %v890_v54 = vmax.f32 %v829_v49, 0.0 }
 0x25a   : > { %v922_v43 = vmin.f32 %v890_v54, 6.0  ;;  %v8822_v54 = vld [vmem:[%s12210_s4] ss:$0 sm:$0xff] }
 0x25c   : > { %v954_v38 = vpack.c.bf16 %v922_v43, %v922_v43 }
 0x25d   : > { %v831_v7 = vpop.f32.mrf.mxu2 }
 0x25e   : > { %v1014_v44 = vunpack.c.l.b16 %v954_v38  ;;  %v832_v46 = vadd.f32 %v8704_v3, %v831_v7 }
 0x260   : > { %v1033_v58 = vpack.c.b16 %v1014_v44, %v1013_v52  ;;  %v891_v37 = vmax.f32 %v832_v46, 0.0 }
 0x262   : > { %1309 = vmatmul.bf16.gmra.mxu3 %v1033_v58  ;;  %v923_v62 = vmin.f32 %v891_v37, 6.0 }
 0x263   : > { %1383 = vmatmul.bf16.gmra.mxu0 %v1033_v58  ;;  %1457 = vmatmul.bf16.gmra.mxu1 %v1033_v58 }
 0x264   : > { %v955_v40 = vpack.c.bf16 %v923_v62, %v923_v62 }
 0x265   : > { %v834_v25 = vpop.f32.mrf.mxu2  ;;  %v1270_v19 = vpop.f32.mrf.mxu3 }
 0x266   : > { %v835_v51 = vadd.f32 %v8704_v3, %v834_v25  ;;  %v1015_v43 = vunpack.c.l.b16 %v955_v40  ;;  %v1271_v52 = vadd.f32 %v8822_v54, %v1270_v19 }
 0x268   : > { %v892_v41 = vmax.f32 %v835_v51, 0.0 }
 0x26a   : > { %v924_v32 = vmin.f32 %v892_v41, 6.0 }
 0x26c   : > { %v956_v49 = vpack.c.bf16 %v924_v32, %v924_v32 }
 0x26d   : > { %v837_v15 = vpop.f32.mrf.mxu2  ;;  %v1272_v44 = vpop.f32.mrf.mxu3 }
 0x26e   : > { %v1016_v38 = vunpack.c.l.b16 %v956_v49  ;;  %v838_v7 = vadd.f32 %v8704_v3, %v837_v15  ;;  %v1273_v61 = vadd.f32 %v8822_v54, %v1272_v44 }
 0x270   : > { %v1349_v46 = vpop.f32.mrf.mxu0  ;;  %v1034_v58 = vpack.c.b16 %v1016_v38, %v1015_v43  ;;  %v893_v25 = vmax.f32 %v838_v7, 0.0 }
 0x271   : > { %v1350_v37 = vadd.f32 %v1349_v46, %v1271_v52 }
 0x272   : > { %1314 = vmatmul.bf16.gmra.mxu3 %v1034_v58  ;;  %v925_v41 = vmin.f32 %v893_v25, 6.0 }
 0x273   : > { %1388 = vmatmul.bf16.gmra.mxu0 %v1034_v58  ;;  %1462 = vmatmul.bf16.gmra.mxu1 %v1034_v58 }
 0x274   : > { %v957_v15 = vpack.c.bf16 %v925_v41, %v925_v41 }
 0x275   : > { %v840_v62 = vpop.f32.mrf.mxu2  ;;  %v1275_v51 = vpop.f32.mrf.mxu3 }
 0x276   : > { %v841_v32 = vadd.f32 %v8704_v3, %v840_v62  ;;  %v1017_v38 = vunpack.c.l.b16 %v957_v15  ;;  %v1276_v46 = vadd.f32 %v8822_v54, %v1275_v51 }
 0x278   : > { %v894_v40 = vmax.f32 %v841_v32, 0.0  ;;  %v1351_v49 = vpop.f32.mrf.mxu0 }
 0x279   : > { %v1352_v55 = vadd.f32 %v1351_v49, %v1273_v61 }
 0x27a   : > { %v926_v8 = vmin.f32 %v894_v40, 6.0 }
 0x27c   : > { %v958_v19 = vpack.c.bf16 %v926_v8, %v926_v8 }
 0x27d   : > { %v843_v28 = vpop.f32.mrf.mxu2  ;;  %v1277_v43 = vpop.f32.mrf.mxu3 }
 0x27e   : > { %v1018_v7 = vunpack.c.l.b16 %v958_v19  ;;  %v844_v52 = vadd.f32 %v8704_v3, %v843_v28  ;;  %v1278_v28 = vadd.f32 %v8822_v54, %v1277_v43 }
 0x280   : > { %v1354_v58 = vpop.f32.mrf.mxu0  ;;  %v1428_v25 = vpop.f32.mrf.mxu1  ;;  %v1035_v59 = vpack.c.b16 %v1018_v7, %v1017_v38  ;;  %v895_v44 = vmax.f32 %v844_v52, 0.0 }
 0x281   : > { %v1355_v62 = vadd.f32 %v1354_v58, %v1276_v46  ;;  %v1429_v9 = vadd.f32 %v1428_v25, %v1350_v37 }
 0x282   : > { %1319 = vmatmul.bf16.gmra.mxu3 %v1035_v59  ;;  %v927_v40 = vmin.f32 %v895_v44, 6.0 }
 0x283   : > { %v1498_v32 = vmax.f32 %v1429_v9, 0.0  ;;  %1393 = vmatmul.bf16.gmra.mxu0 %v1035_v59  ;;  %1467 = vmatmul.bf16.gmra.mxu1 %v1035_v59 }
 0x284   : > { %v959_v37 = vpack.c.bf16 %v927_v40, %v927_v40 }
 0x285   : > { %v8830_v61 = vmin.f32 %v1498_v32, 6.0  ;;  %v846_v8 = vpop.f32.mrf.mxu2  ;;  %v1280_v41 = vpop.f32.mrf.mxu3 }
 0x286   : > { %v847_v49 = vadd.f32 %v8704_v3, %v846_v8  ;;  %v1019_v32 = vunpack.c.l.b16 %v959_v37  ;;  %v1281_v8 = vadd.f32 %v8822_v54, %v1280_v41 }
 0x288   : > { %v896_v51 = vmax.f32 %v847_v49, 0.0  ;;  %v1356_v15 = vpop.f32.mrf.mxu0  ;;  %v1430_v19 = vpop.f32.mrf.mxu1 }
 0x289   : > { %v1357_v38 = vadd.f32 %v1356_v15, %v1278_v28  ;;  %v1431_v7 = vadd.f32 %v1430_v19, %v1352_v55 }
 0x28a   : > { %v928_v52 = vmin.f32 %v896_v51, 6.0 }
 0x28b   : > { %v1499_v46 = vmax.f32 %v1431_v7, 0.0 }
 0x28c   : > { %v960_v9 = vpack.c.bf16 %v928_v52, %v928_v52 }
 0x28d   : > { %v8834_v58 = vmin.f32 %v1499_v46, 6.0  ;;  %v849_v59 = vpop.f32.mrf.mxu2  ;;  %v1282_v25 = vpop.f32.mrf.mxu3 }
 0x28e   : > { %v1020_v1 = vunpack.c.l.b16 %v960_v9  ;;  %v850_v44 = vadd.f32 %v8704_v3, %v849_v59  ;;  %v1283_v52 = vadd.f32 %v8822_v54, %v1282_v25 }
 0x290   : > { %v1359_v43 = vpop.f32.mrf.mxu0  ;;  %v1433_v49 = vpop.f32.mrf.mxu1  ;;  %v1036_v0 = vpack.c.b16 %v1020_v1, %v1019_v32  ;;  %v897_v55 = vmax.f32 %v850_v44, 0.0 }
 0x291   : > { %v1360_v47 = vadd.f32 %v1359_v43, %v1281_v8  ;;  %v1434_v28 = vadd.f32 %v1433_v49, %v1355_v62 }
 0x292   : > { %1324 = vmatmul.bf16.gmra.mxu3 %v1036_v0  ;;  %v929_v7 = vmin.f32 %v897_v55, 6.0 }
 0x293   : > { %v1500_v40 = vmax.f32 %v1434_v28, 0.0  ;;  %1398 = vmatmul.bf16.gmra.mxu0 %v1036_v0  ;;  %1472 = vmatmul.bf16.gmra.mxu1 %v1036_v0 }
 0x294   : > { %v961_v62 = vpack.c.bf16 %v929_v7, %v929_v7 }
 0x295   : > { %v8838_v51 = vmin.f32 %v1500_v40, 6.0  ;;  %v852_v15 = vpop.f32.mrf.mxu2  ;;  %v1285_v19 = vpop.f32.mrf.mxu3 }
 0x296   : > { %v853_v37 = vadd.f32 %v8704_v3, %v852_v15  ;;  %v1021_v28 = vunpack.c.l.b16 %v961_v62  ;;  %v1286_v15 = vadd.f32 %v8822_v54, %v1285_v19 }
 0x298   : > { %v898_v41 = vmax.f32 %v853_v37, 0.0  ;;  %v1361_v46 = vpop.f32.mrf.mxu0  ;;  %v1435_v9 = vpop.f32.mrf.mxu1 }
 0x299   : > { %v1362_v1 = vadd.f32 %v1361_v46, %v1283_v52  ;;  %v1436_v59 = vadd.f32 %v1435_v9, %v1357_v38 }
 0x29a   : > { %v930_v32 = vmin.f32 %v898_v41, 6.0 }
 0x29b   : > { %v1501_v44 = vmax.f32 %v1436_v59, 0.0 }
 0x29c   : > { %v962_v8 = vpack.c.bf16 %v930_v32, %v930_v32 }
 0x29d   : > { %v8842_v43 = vmin.f32 %v1501_v44, 6.0  ;;  %v855_v0 = vpop.f32.mrf.mxu2  ;;  %v1287_v49 = vpop.f32.mrf.mxu3 }
 0x29e   : > { %v1022_v40 = vunpack.c.l.b16 %v962_v8  ;;  %v856_v55 = vadd.f32 %v8704_v3, %v855_v0  ;;  %v1288_v32 = vadd.f32 %v8822_v54, %v1287_v49 }
 0x2a0   : > { %v1364_v25 = vpop.f32.mrf.mxu0  ;;  %v1438_v37 = vpop.f32.mrf.mxu1  ;;  %v1037_v13 = vpack.c.b16 %v1022_v40, %v1021_v28  ;;  %v899_v38 = vmax.f32 %v856_v55, 0.0 }
 0x2a1   : > { %v1365_v4 = vadd.f32 %v1364_v25, %v1286_v15  ;;  %v1439_v52 = vadd.f32 %v1438_v37, %v1360_v47 }
 0x2a2   : > { %1329 = vmatmul.bf16.gmra.mxu3 %v1037_v13  ;;  %v931_v59 = vmin.f32 %v899_v38, 6.0 }
 0x2a3   : > { %v1502_v7 = vmax.f32 %v1439_v52, 0.0  ;;  %1403 = vmatmul.bf16.gmra.mxu0 %v1037_v13  ;;  %1477 = vmatmul.bf16.gmra.mxu1 %v1037_v13 }
 0x2a4   : > { %v963_v47 = vpack.c.bf16 %v931_v59, %v931_v59 }
 0x2a5   : > { %v8846_v41 = vmin.f32 %v1502_v7, 6.0  ;;  %v858_v46 = vpop.f32.mrf.mxu2  ;;  %v1290_v9 = vpop.f32.mrf.mxu3 }
 0x2a6   : > { %v859_v62 = vadd.f32 %v8704_v3, %v858_v46  ;;  %v1023_v52 = vunpack.c.l.b16 %v963_v47  ;;  %v1291_v46 = vadd.f32 %v8822_v54, %v1290_v9 }
 0x2a8   : > { %v900_v19 = vmax.f32 %v859_v62, 0.0  ;;  %v1366_v44 = vpop.f32.mrf.mxu0  ;;  %v1440_v8 = vpop.f32.mrf.mxu1 }
 0x2a9   : > { %v1367_v0 = vadd.f32 %v1366_v44, %v1288_v32  ;;  %v1441_v28 = vadd.f32 %v1440_v8, %v1362_v1 }
 0x2aa   : > { %v932_v40 = vmin.f32 %v900_v19, 6.0 }
 0x2ab   : > { %v1503_v55 = vmax.f32 %v1441_v28, 0.0 }
 0x2ac   : > { %v964_v15 = vpack.c.bf16 %v932_v40, %v932_v40 }
 0x2ad   : > { %v8850_v25 = vmin.f32 %v1503_v55, 6.0  ;;  %v861_v13 = vpop.f32.mrf.mxu2  ;;  %v1292_v37 = vpop.f32.mrf.mxu3 }
 0x2ae   : > { %v1024_v7 = vunpack.c.l.b16 %v964_v15  ;;  %v862_v38 = vadd.f32 %v8704_v3, %v861_v13  ;;  %v1293_v40 = vadd.f32 %v8822_v54, %v1292_v37 }
 0x2b0   : > { %v1369_v49 = vpop.f32.mrf.mxu0  ;;  %v1443_v62 = vpop.f32.mrf.mxu1  ;;  %v1038_v21 = vpack.c.b16 %v1024_v7, %v1023_v52  ;;  %v901_v1 = vmax.f32 %v862_v38, 0.0 }
 0x2b1   : > { %v1370_v56 = vadd.f32 %v1369_v49, %v1291_v46  ;;  %v1444_v32 = vadd.f32 %v1443_v62, %v1365_v4 }
 0x2b2   : > { %1334 = vmatmul.bf16.gmra.mxu3 %v1038_v21  ;;  %v933_v28 = vmin.f32 %v901_v1, 6.0 }
 0x2b3   : > { %v1504_v59 = vmax.f32 %v1444_v32, 0.0  ;;  %1408 = vmatmul.bf16.gmra.mxu0 %v1038_v21  ;;  %1482 = vmatmul.bf16.gmra.mxu1 %v1038_v21 }
 0x2b4   : > { %v965_v4 = vpack.c.bf16 %v933_v28, %v933_v28 }
 0x2b5   : > { %v8854_v19 = vmin.f32 %v1504_v59, 6.0  ;;  %v864_v44 = vpop.f32.mrf.mxu2  ;;  %v1295_v8 = vpop.f32.mrf.mxu3 }
 0x2b6   : > { %v865_v47 = vadd.f32 %v8704_v3, %v864_v44  ;;  %v1055_v32 = vunpack.c.l.b16 %v965_v4  ;;  %v1296_v44 = vadd.f32 %v8822_v54, %v1295_v8 }
 0x2b8   : > { %v902_v9 = vmax.f32 %v865_v47, 0.0  ;;  %v1371_v55 = vpop.f32.mrf.mxu0  ;;  %v1445_v15 = vpop.f32.mrf.mxu1 }
 0x2b9   : > { %v1372_v13 = vadd.f32 %v1371_v55, %v1293_v40  ;;  %v1446_v52 = vadd.f32 %v1445_v15, %v1367_v0 }
 0x2ba   : > { %v934_v7 = vmin.f32 %v902_v9, 6.0 }
 0x2bb   : > { %v1505_v38 = vmax.f32 %v1446_v52, 0.0 }
 0x2bc   : > { %v966_v46 = vpack.c.bf16 %v934_v7, %v934_v7 }
 0x2bd   : > { %v8858_v49 = vmin.f32 %v1505_v38, 6.0  ;;  %v867_v21 = vpop.f32.mrf.mxu2  ;;  %v1297_v62 = vpop.f32.mrf.mxu3 }
 0x2be   : > { %v1056_v59 = vunpack.c.l.b16 %v966_v46  ;;  %v868_v1 = vadd.f32 %v8704_v3, %v867_v21  ;;  %v1298_v7 = vadd.f32 %v8822_v54, %v1297_v62 }
 0x2c0   : > { %v1374_v37 = vpop.f32.mrf.mxu0  ;;  %v1448_v47 = vpop.f32.mrf.mxu1  ;;  %v1057_v48 = vpack.c.b16 %v1056_v59, %v1055_v32  ;;  %v903_v0 = vmax.f32 %v868_v1, 0.0 }
 0x2c1   : > { %v1375_v33 = vadd.f32 %v1374_v37, %v1296_v44  ;;  %v1449_v40 = vadd.f32 %v1448_v47, %v1370_v56 }
 0x2c2   : > { %v935_v52 = vmin.f32 %v903_v0, 6.0 }
 0x2c3   : > { %v1506_v28 = vmax.f32 %v1449_v40, 0.0  ;;  %1413 = vmatmul.bf16.gmra.mxu0 %v1057_v48  ;;  %1487 = vmatmul.bf16.gmra.mxu1 %v1057_v48 }
 0x2c4   : > { %v967_v59 = vpack.c.bf16 %v935_v52, %v935_v52 }
 0x2c5   : > { %v8862_v9 = vmin.f32 %v1506_v28, 6.0  ;;  %v870_v55 = vpop.f32.mrf.mxu2  ;;  %v1300_v15 = vpop.f32.mrf.mxu3 }
 0x2c6   : > { %v871_v4 = vadd.f32 %v8704_v3, %v870_v55  ;;  %v1061_v47 = vunpack.c.l.b16 %v967_v59  ;;  %v1301_v0 = vadd.f32 %v8822_v54, %v1300_v15 }
 0x2c8   : > { %v904_v38 = vmax.f32 %v871_v4, 0.0  ;;  %v1376_v8 = vpop.f32.mrf.mxu0  ;;  %v1450_v46 = vpop.f32.mrf.mxu1 }
 0x2c9   : > { %v1377_v21 = vadd.f32 %v1376_v8, %v1298_v7  ;;  %v1451_v32 = vadd.f32 %v1450_v46, %v1372_v13 }
 0x2ca   : > { %v936_v56 = vmin.f32 %v904_v38, 6.0 }
 0x2cb   : > { %v1507_v1 = vmax.f32 %v1451_v32, 0.0 }
 0x2cc   : > { %v968_v44 = vpack.c.bf16 %v936_v56, %v936_v56 }
 0x2cd   : > { %v8866_v37 = vmin.f32 %v1507_v1, 6.0  ;;  %v1302_v48 = vpop.f32.mrf.mxu3 }
 0x2ce   : > { %v1062_v40 = vunpack.c.l.b16 %v968_v44  ;;  %v1303_v52 = vadd.f32 %v8822_v54, %v1302_v48 }
 0x2d0   : > { %v1379_v28 = vpop.f32.mrf.mxu0  ;;  %v1453_v3 = vpop.f32.mrf.mxu1  ;;  %v1063_v55 = vpack.c.b16 %v1062_v40, %v1061_v47 }
 0x2d1   : > { %v1380_v62 = vadd.f32 %v1379_v28, %v1301_v0  ;;  %v1454_v4 = vadd.f32 %v1453_v3, %v1375_v33 }
 0x2d3   : > { %v1508_v11 = vmax.f32 %v1454_v4, 0.0  ;;  %1492 = vmatmul.bf16.gmra.mxu1 %v1063_v55 }
 0x2d5   : > { %v8869_v7 = vmin.f32 %v1508_v11, 6.0  ;;  %v1305_v13 = vpop.f32.mrf.mxu3 }
 0x2d6   : > { %v1306_v1 = vadd.f32 %v8822_v54, %v1305_v13 }
 0x2d8   : > { %v1381_v38 = vpop.f32.mrf.mxu0  ;;  %v1455_v8 = vpop.f32.mrf.mxu1 }
 0x2d9   : > { %v1382_v46 = vadd.f32 %v1381_v38, %v1303_v52  ;;  %v1456_v32 = vadd.f32 %v1455_v8, %v1377_v21 }
 0x2db   : > { %v1509_v59 = vmax.f32 %v1456_v32, 0.0 }
 0x2dd   : > { %v8872_v56 = vmin.f32 %v1509_v59, 6.0  ;;  %v1307_v15 = vpop.f32.mrf.mxu3 }
 0x2de   : > { %v1308_v48 = vadd.f32 %v8822_v54, %v1307_v15 }
 0x2e0   : > { %v1384_v44 = vpop.f32.mrf.mxu0  ;;  %v1458_v47 = vpop.f32.mrf.mxu1 }
 0x2e1   : > { %v1385_v33 = vadd.f32 %v1384_v44, %v1306_v1  ;;  %v1459_v40 = vadd.f32 %v1458_v47, %v1380_v62 }
 0x2e3   : > { %v1510_v0 = vmax.f32 %v1459_v40, 0.0 }
 0x2e5   : > { %v8875_v11 = vmin.f32 %v1510_v0, 6.0  ;;  %v1310_v28 = vpop.f32.mrf.mxu3 }
 0x2e6   : > { %v1311_v13 = vadd.f32 %v8822_v54, %v1310_v28 }
 0x2e8   : > { %v1386_v3 = vpop.f32.mrf.mxu0  ;;  %v1460_v55 = vpop.f32.mrf.mxu1 }
 0x2e9   : > { %v1387_v4 = vadd.f32 %v1386_v3, %v1308_v48  ;;  %v1461_v21 = vadd.f32 %v1460_v55, %v1382_v46 }
 0x2eb   : > { %v1511_v52 = vmax.f32 %v1461_v21, 0.0 }
 0x2ed   : > { %v8878_v38 = vmin.f32 %v1511_v52, 6.0  ;;  %v1312_v8 = vpop.f32.mrf.mxu3 }
 0x2ee   : > { %v1313_v40 = vadd.f32 %v8822_v54, %v1312_v8 }
 0x2f0   : > { %v1389_v32 = vpop.f32.mrf.mxu0  ;;  %v1463_v59 = vpop.f32.mrf.mxu1 }
 0x2f1   : > { %v1390_v1 = vadd.f32 %v1389_v32, %v1311_v13  ;;  %v1464_v62 = vadd.f32 %v1463_v59, %v1385_v33 }
 0x2f3   : > { %v1512_v44 = vmax.f32 %v1464_v62, 0.0 }
 0x2f5   : > { %v8881_v47 = vmin.f32 %v1512_v44, 6.0  ;;  %v1315_v15 = vpop.f32.mrf.mxu3 }
 0x2f6   : > { %v1316_v21 = vadd.f32 %v8822_v54, %v1315_v15 }
 0x2f8   : > { %v1391_v0 = vpop.f32.mrf.mxu0  ;;  %v1465_v5 = vpop.f32.mrf.mxu1 }
 0x2f9   : > { %v1392_v48 = vadd.f32 %v1391_v0, %v1313_v40  ;;  %v1466_v46 = vadd.f32 %v1465_v5, %v1387_v4 }
 0x2fb   : > { %v1513_v3 = vmax.f32 %v1466_v46, 0.0 }
 0x2fd   : > { %v8884_v55 = vmin.f32 %v1513_v3, 6.0  ;;  %v1317_v33 = vpop.f32.mrf.mxu3 }
 0x2fe   : > { %v1318_v8 = vadd.f32 %v8822_v54, %v1317_v33 }
 0x300   : > { %v1394_v28 = vpop.f32.mrf.mxu0  ;;  %v1468_v52 = vpop.f32.mrf.mxu1 }
 0x301   : > { %v1395_v63 = vadd.f32 %v1394_v28, %v1316_v21  ;;  %v1469_v13 = vadd.f32 %v1468_v52, %v1390_v1 }
 0x303   : > { %v1514_v32 = vmax.f32 %v1469_v13, 0.0 }
 0x305   : > { %v8887_v59 = vmin.f32 %v1514_v32, 6.0  ;;  %v1320_v4 = vpop.f32.mrf.mxu3 }
 0x306   : > { %v1321_v33 = vadd.f32 %v8822_v54, %v1320_v4 }
 0x308   : > { %v1396_v62 = vpop.f32.mrf.mxu0  ;;  %v1470_v44 = vpop.f32.mrf.mxu1 }
 0x309   : > { %v1397_v60 = vadd.f32 %v1396_v62, %v1318_v8  ;;  %v1471_v40 = vadd.f32 %v1470_v44, %v1392_v48 }
 0x30b   : > { %v1515_v5 = vmax.f32 %v1471_v40, 0.0 }
 0x30d   : > { %v8890_v0 = vmin.f32 %v1515_v5, 6.0  ;;  %v1322_v1 = vpop.f32.mrf.mxu3 }
 0x30f   : > { %12328 = vst [vmem:[#allocation39_spill] sm:$0xff] %v8890_v0 }
 0x310   : > { %v1399_v46 = vpop.f32.mrf.mxu0  ;;  %v1473_v15 = vpop.f32.mrf.mxu1 }
 0x311   : > { %v1474_v3 = vadd.f32 %v1473_v15, %v1395_v63  ;;  %v1400_v48 = vadd.f32 %v1399_v46, %v1321_v33  ;;  %v1323_v63 = vadd.f32 %v8822_v54, %v1322_v1 }
 0x313   : > { %v1516_v57 = vmax.f32 %v1474_v3, 0.0 }
 0x315   : > { %v8892_v21 = vmin.f32 %v1516_v57, 6.0  ;;  %v1325_v8 = vpop.f32.mrf.mxu3 }
 0x316   : > { %v1326_v4 = vadd.f32 %v8822_v54, %v1325_v8 }
 0x317   : > { %12329 = vst [vmem:[#allocation40_spill] sm:$0xff] %v8892_v21 }
 0x318   : > { %v1401_v28 = vpop.f32.mrf.mxu0  ;;  %v1475_v52 = vpop.f32.mrf.mxu1 }
 0x319   : > { %v1476_v13 = vadd.f32 %v1475_v52, %v1397_v60  ;;  %v1402_v57 = vadd.f32 %v1401_v28, %v1323_v63 }
 0x31b   : > { %v1517_v32 = vmax.f32 %v1476_v13, 0.0 }
 0x31d   : > { %v8895_v53 = vmin.f32 %v1517_v32, 6.0  ;;  %v1327_v45 = vpop.f32.mrf.mxu3 }
 0x31f   : > { %12330 = vst [vmem:[#allocation41_spill] sm:$0xff] %v8895_v53 }
 0x320   : > { %v1478_v62 = vpop.f32.mrf.mxu1  ;;  %v1404_v40 = vpop.f32.mrf.mxu0 }
 0x321   : > { %v1479_v44 = vadd.f32 %v1478_v62, %v1400_v48  ;;  %v1405_v46 = vadd.f32 %v1404_v40, %v1326_v4 }
 0x323   : > { %v1518_v5 = vmax.f32 %v1479_v44, 0.0  ;;  %v1328_v44 = vadd.f32 %v8822_v54, %v1327_v45 }
 0x325   : > { %v8898_v15 = vmin.f32 %v1518_v5, 6.0  ;;  %v1330_v62 = vpop.f32.mrf.mxu3 }
 0x327   : > { %12331 = vst [vmem:[#allocation42_spill] sm:$0xff] %v8898_v15 }
 0x328   : > { %v1480_v3 = vpop.f32.mrf.mxu1  ;;  %v1406_v52 = vpop.f32.mrf.mxu0 }
 0x329   : > { %v1481_v50 = vadd.f32 %v1480_v3, %v1402_v57  ;;  %v1407_v28 = vadd.f32 %v1406_v52, %v1328_v44 }
 0x32b   : > { %v1519_v60 = vmax.f32 %v1481_v50, 0.0  ;;  %v1331_v50 = vadd.f32 %v8822_v54, %v1330_v62 }
 0x32d   : > { %v8901_v13 = vmin.f32 %v1519_v60, 6.0  ;;  %v1332_v8 = vpop.f32.mrf.mxu3 }
 0x32f   : > { %12332 = vst [vmem:[#allocation43_spill] sm:$0xff] %v8901_v13 }
 0x330   : > { %v1483_v32 = vpop.f32.mrf.mxu1  ;;  %v1409_v5 = vpop.f32.mrf.mxu0 }
 0x331   : > { %v1484_v33 = vadd.f32 %v1483_v32, %v1405_v46  ;;  %v1410_v60 = vadd.f32 %v1409_v5, %v1331_v50 }
 0x333   : > { %v1520_v48 = vmax.f32 %v1484_v33, 0.0  ;;  %v1333_v33 = vadd.f32 %v8822_v54, %v1332_v8 }
 0x335   : > { %v8904_v1 = vmin.f32 %v1520_v48, 6.0  ;;  %v1335_v39 = vpop.f32.mrf.mxu3 }
 0x336   : > { %v1336_v62 = vadd.f32 %v8822_v54, %v1335_v39 }
 0x337   : > { %12333 = vst [vmem:[#allocation44_spill] sm:$0xff] %v8904_v1 }
 0x338   : > { %v1485_v63 = vpop.f32.mrf.mxu1  ;;  %v1411_v40 = vpop.f32.mrf.mxu0 }
 0x339   : > { %v1486_v57 = vadd.f32 %v1485_v63, %v1407_v28  ;;  %v1412_v48 = vadd.f32 %v1411_v40, %v1333_v33 }
 0x33b   : > { %v1521_v3 = vmax.f32 %v1486_v57, 0.0 }
 0x33d   : > { %v8907_v42 = vmin.f32 %v1521_v3, 6.0 }
 0x33f   : > { %12334 = vst [vmem:[#allocation45_spill] sm:$0xff] %v8907_v42 }
 0x340   : > { %v1488_v4 = vpop.f32.mrf.mxu1  ;;  %v1414_v28 = vpop.f32.mrf.mxu0 }
 0x341   : > { %v1489_v46 = vadd.f32 %v1488_v4, %v1410_v60  ;;  %v1415_v5 = vadd.f32 %v1414_v28, %v1336_v62  ;;  %v1337_v60 = vpop.f32.mrf.mxu3 }
 0x342   : > { %v1338_v8 = vadd.f32 %v8822_v54, %v1337_v60 }
 0x343   : > { %v1522_v32 = vmax.f32 %v1489_v46, 0.0 }
 0x345   : > { %v8910_v45 = vmin.f32 %v1522_v32, 6.0 }
 0x347   : > { %12335 = vst [vmem:[#allocation46_spill] sm:$0xff] %v8910_v45 }
 0x348   : > { %v1490_v52 = vpop.f32.mrf.mxu1  ;;  %v1416_v46 = vpop.f32.mrf.mxu0 }
 0x349   : > { %v1491_v44 = vadd.f32 %v1490_v52, %v1412_v48  ;;  %v1417_v40 = vadd.f32 %v1416_v46, %v1338_v8 }
 0x34b   : > { %v1523_v63 = vmax.f32 %v1491_v44, 0.0 }
 0x34d   : > { %v8913_v57 = vmin.f32 %v1523_v63, 6.0 }
 0x34f   : > { %12336 = vst [vmem:[#allocation47_spill] sm:$0xff] %v8913_v57 }
 0x350   : > { %v1493_v3 = vpop.f32.mrf.mxu1 }
 0x351   : > { %v1494_v50 = vadd.f32 %v1493_v3, %v1415_v5 }
 0x353   : > { %v1524_v4 = vmax.f32 %v1494_v50, 0.0 }
 0x355   : > { %v8916_v32 = vmin.f32 %v1524_v4, 6.0 }
 0x357   : > { %12337 = vst [vmem:[#allocation48_spill] sm:$0xff] %v8916_v32 }
 0x358   : > { %v1495_v33 = vpop.f32.mrf.mxu1 }
 0x359   : > { %v1496_v48 = vadd.f32 %v1495_v33, %v1417_v40 }
 0x35b   : > { %v1525_v52 = vmax.f32 %v1496_v48, 0.0  ;;  %1585 = sbr.rel (%p7247_p11) target bundleno = 867 (0x363), region = 68 }
 0x35d   : > { %v8918_v44 = vmin.f32 %v1525_v52, 6.0 }
 0x35f   : > { %12338 = vst [vmem:[#allocation49_spill] sm:$0xff] %v8918_v44 }
 0x360   : > { %v8238_v39 = vmov 0  }
 0x361   : > { %1587 = vst [vmem:[#allocation2 + $0x4] sm:$0xf] %v8238_v39 }
 0x362   : > { %1588 = vst [vmem:[#allocation2 + $0x78] sm:$0xf] %v8238_v39 }
 0x363 PF: > { %v7891_v54 = vld [vmem:[%s12211_s5 + $0x38] sm:$0xff]  ;;  %v8039_v62 = vpack.c.bf16 %v8834_v58, %v8830_v61  ;;  %v8044_v5 = vpack.c.bf16 %v8842_v43, %v8838_v51  ;;  %v1630_v3 = vand.u32 15, %v8361_v2  ;;  %v1632_v50 = vand.u32 15, %v8381_v10  ;;  %v7890_v4 = vld [vmem:[%s12211_s5 + $0x30] sm:$0xff]  ;;  %v7889_v43 = vld [vmem:[%s12211_s5 + $0x28] sm:$0xff]  ;;  %s8122_s14 = smul.u32 768, %s8324_s21 }
 0x364   : > { %v7899_v28 = vld [vmem:[%s12211_s5 + $0x78] sm:$0xff]  ;;  %v1631_v60 = vand.u32 15, %v8371_v6  ;;  %4344 = vmatpush.bf16.msrb.mxu3 %v7891_v54  ;;  %v7898_v46 = vld [vmem:[%s12211_s5 + $0x70] sm:$0xff]  ;;  %v1633_v6 = vand.u32 15, %v8391_v12  ;;  %v7897_v8 = vld [vmem:[%s12211_s5 + $0x68] sm:$0xff]  ;;  %vm8239_vm8 = vmmov 1  }
 0x365   : > { %v7907_v63 = vld [vmem:[%s12211_s5 + $0xb8] sm:$0xff]  ;;  %4423 = vmatpush.bf16.msrb.mxu2 %v7899_v28  ;;  %8106 = vst [vmem:[#allocation2 + $0x8] sm:$0xff] %v8039_v62   ;;  %v1687_v61 = vadd.s32 4294967295, %v1630_v3  ;;  %v7906_v58 = vld [vmem:[%s12211_s5 + $0xb0] sm:$0xff]  ;;  %v1689_v10 = vadd.s32 4294967295, %v1632_v50  ;;  %v7905_v33 = vld [vmem:[%s12211_s5 + $0xa8] sm:$0xff]  ;;  %s7029_s29 = scalar_lea.hbm %s12217_s11, %s8122_s14 }
 0x366   : > { %4502 = vmatpush.bf16.msrb.mxu0 %v7907_v63  ;;  %8107 = vst [vmem:[#allocation2 + $0x10] sm:$0xff] %v8044_v5   ;;  %v2623_v51 = vadd.s32 1, %v1631_v60  ;;  %v2625_v40 = vadd.s32 1, %v1633_v6  ;;  %v7888_v12 = vld [vmem:[%s12211_s5 + $0x20] sm:$0xff]  ;;  %vm1911_vm5 = vsmask.f32 3328  ;;  %vm8969_vm9 = vmpackc.low %vm8239_vm8, %vm8239_vm8 }
 0x367   : > { %vm1715_vm2 = vcmp.ge.s32.totalorder %v1687_v61, 0  ;;  %vm1717_vm3 = vcmp.ge.s32.totalorder %v1689_v10, 0  ;;  %v7896_v48 = vld [vmem:[%s12211_s5 + $0x60] sm:$0xff]  ;;  %vm1912_vm6 = vsmask.f32 7440  ;;  %v12279_v28 = vmov 0  }
 0x368   : > { %4345 = vmatpush.bf16.msrb.mxu3 %v7890_v4  ;;  %vm1855_vm4 = vmpackc.low %vm1715_vm2, %vm1715_vm2  ;;  %vm2679_vm7 = vcmp.lt.s32.totalorder %v2623_v51, 16  ;;  %v8975_v62 = vunpack.c.l.b16 %v12279_v28  ;;  %v8978_v5 = vunpack.c.h.b16 %v12279_v28  ;;  %vm2681_vm10 = vcmp.lt.s32.totalorder %v2625_v40, 16  ;;  %v7904_v61 = vld [vmem:[%s12211_s5 + $0xa0] sm:$0xff]  ;;  %v7468_v54 = vld [vmem:[%s12213_s7 + $0xf8] sm:$0xf0]  ;;  %s7030_s16 = sshll.u32 %s8921_s12, 4  ;;  %s7031_s16 = int_to_ptr.vmem [resolvable:$true] %s7030_s16 }
 0x369   : > { %4424 = vmatpush.bf16.msrb.mxu2 %v7898_v46  ;;  %v1883_v63 = vsel %vm1855_vm4, 65537, %v12279_v28  ;;  %vm1857_vm11 = vmpackc.low %vm1717_vm3, %vm1717_vm3  ;;  %v8987_v50 = vsel %vm8969_vm9, 65537, %v12279_v28  ;;  %vm2846_vm4 = vsmask.f32 256  ;;  %s7032_s22 = sshll.u32 %s7029_s29, 4  ;;  %s12490_s30 = sand.u32 1, %s8227_s18   ;;  %s7033_s22 = int_to_ptr.hbm [resolvable:$true] %s7032_s22 }
 0x36a   : > { %4503 = vmatpush.bf16.msrb.mxu0 %v7906_v58  ;;  %v1915_v60 = vshll.u32 %v1883_v63, 16  ;;  %v1918_v4 = vshrl.u32 %v1883_v63, 16  ;;  %v1885_v58 = vsel %vm1857_vm11, 65537, %v12279_v28  ;;  %v12285_v10 = vshll.u32 %v8987_v50, 16  ;;  %vm9003_vm12 = vmor %vm1911_vm5, %vm1912_vm6  ;;  %s7018_s21 = scalar_lea.sflag [#allocation4], %s12490_s30  ;;  %s8187_s24 = sshra.s32 %s7033_s22, 4  ;;  %s8188_s24 = int_to_ptr.hbm [resolvable:$true] %s8187_s24 }
 0x36b   : > { %v12286_v6 = vshrl.u32 %v8987_v50, 16  ;;  %v1934_v36 = vshll.u32 %v1885_v58, 16  ;;  %v1938_v29 = vshrl.u32 %v1885_v58, 16  ;;  %v7887_v58 = vld [vmem:[%s12211_s5 + $0x18] sm:$0xff]  ;;  %vm9026_vm13 = vmpackc.low %vm2679_vm7, %vm2679_vm7  ;;  %vm2847_vm6 = vsmask.f32 4368  ;;  %p8194_p1 = scmp.lt.s32.totalorder %s8188_s24, %s12217_s11 }
 0x36c   : > { %v8965_v52 = vld [vmem:[#allocation2 + $0x8] sm:$0xf]  ;;  %v8967_v39 = vld [vmem:[#allocation2 + $0xc] sm:$0xf]  ;;  %4346 = vmatpush.bf16.msrb.mxu3 %v7889_v43  ;;  %v1920_v63 = vrot.slane %v1918_v4, 4  ;;  %v9009_v28 = vrot.slane %v12285_v10, 5  ;;  %vm9036_vm14 = vmpackc.low %vm2681_vm10, %vm2681_vm10 }
 0x36d   : > { %4425 = vmatpush.bf16.msrb.mxu2 %v7897_v8  ;;  %v8980_v3 = vld [vmem:[#allocation2 + $0x10] sm:$0xf]  ;;  %v2593_v46 = vsel %vm8969_vm9, %v8965_v52, 0  ;;  %v2594_v43 = vsel %vm8969_vm9, %v8967_v39, 0  ;;  %v1917_v8 = vrot.slane %v1915_v60, 5  ;;  %v1930_v24 = vrot.slane %v12286_v6, 4 }
 0x36e   : > { %4504 = vmatpush.bf16.msrb.mxu0 %v7905_v33  ;;  %v2595_v60 = vsel %vm8969_vm9, %v8980_v3, 0  ;;  %v3433_v4 = vunpack.c.l.b16 %v2593_v46  ;;  %v9016_v17 = vld [vmem:[#allocation2 + $0x14] sm:$0xf]  ;;  %v1936_v32 = vrot.slane %v1934_v36, 5  ;;  %v1940_v6 = vrot.slane %v1938_v29, 4  ;;  %s8189_s25 = scalar_lea.hbm %s8188_s24, 768 }
 0x36f   : > { %v7895_v10 = vld [vmem:[%s12211_s5 + $0x58] sm:$0xff]  ;;  %v1921_v44 = vor.u32 %v1920_v63, %v1917_v8  ;;  %v2193_v57 = vunpack.c.l.b16 %v1917_v8  ;;  %v2194_v45 = vunpack.c.h.b16 %v1917_v8  ;;  %v3434_v42 = vunpack.c.l.b16 %v2594_v43  ;;  %v1658_v36 = vld [vmem:[#allocation2 + $0x4] sm:$0x8]  ;;  %p8190_p12 = scmp.ne.s32.totalorder %s8188_s24, %s8189_s25  ;;  %s8193_s15 = scalar_lea.hbm %s12217_s11, 1536 }
 0x370   : > { %4347 = vmatpush.bf16.msrb.mxu3 %v7888_v12  ;;  %v7903_v12 = vld [vmem:[%s12211_s5 + $0x98] sm:$0xff]  ;;  %v3435_v1 = vunpack.c.l.b16 %v2595_v60  ;;  %v1941_v63 = vor.u32 %v1940_v6, %v1936_v32  ;;  %p8195_p2 = scmp.lt.s32.totalorder %s8193_s15, %s8189_s25 }
 0x371   : > { %4426 = vmatpush.bf16.msrb.mxu2 %v7896_v48  ;;  %v1931_v48 = vor.u32 %v1930_v24, %v9009_v28  ;;  %v1922_v51 = vrot.slane %v1921_v44, 4  ;;  %vm9041_vm15 = vcmp.ne.s32.totalorder %v2193_v57, %v8975_v62  ;;  %v2596_v24 = vsel %vm8969_vm9, %v9016_v17, 0  ;;  %v7886_v57 = vld [vmem:[%s12211_s5 + $0x10] sm:$0xff]  ;;  %p8191_p13 = pnand %p8190_p12, %p8341_p5 }
 0x372   : > { %4505 = vmatpush.bf16.msrb.mxu0 %v7904_v61  ;;  %vm9051_vm0 = vcmp.ne.s32.totalorder %v2194_v45, %v8978_v5  ;;  %v3436_v8 = vunpack.c.l.b16 %v2596_v24  ;;  %v3461_v60 = vpack.c.b16 %v3434_v42, %v3433_v4  ;;  %v7894_v44 = vld [vmem:[%s12211_s5 + $0x50] sm:$0xff]  ;;  %v1942_v45 = vrot.slane %v1941_v63, 4  ;;  %p8196_p3 = por %p8195_p2, %p8194_p1 }
 0x373   : > { %v9048_v43 = vrot.slane %v1931_v48, 4  ;;  %v1927_v6 = vsel %vm9003_vm12, %v1922_v51, %v9009_v28  ;;  %vm2199_vm1 = vmpackc.low %vm9051_vm0, %vm9041_vm15  ;;  %v12351_v42 = vmov 0   ;;  %vm3755_vm0 = vsmask.f32 4352  ;;  %p8192_p0 = pneg %p8191_p13 }
 0x374   : > { %4348 = vmatpush.bf16.msrb.mxu3 %v7887_v58  ;;  %v9076_v4 = vsel %vm9036_vm14, 65537, %v12351_v42  ;;  %v7902_v58 = vld [vmem:[%s12211_s5 + $0x90] sm:$0xff]  ;;  %v2200_v51 = vunpack.c.l.b16 %v1927_v6  ;;  %v2201_v63 = vunpack.c.h.b16 %v1927_v6  ;;  %v2396_v61 = vsel %vm2199_vm1, %v1658_v36, 0  ;;  %v7885_v36 = vld [vmem:[%s12211_s5 + $0x8] sm:$0xff]  ;;  %vm9142_vm1 = vmor %vm2846_vm4, %vm2847_vm6 }
 0x375   : > { %4427 = vmatpush.bf16.msrb.mxu2 %v7895_v10  ;;  %v9071_v10 = vsel %vm9026_vm13, 65537, %v12351_v42  ;;  %v1937_v48 = vsel %vm9003_vm12, %v9048_v43, %v1936_v32  ;;  %v1947_v46 = vsel %vm9003_vm12, %v1942_v45, %v9009_v28  ;;  %v3361_v40 = vunpack.c.l.b16 %v2396_v61  ;;  %v7893_v45 = vld [vmem:[%s12211_s5 + $0x48] sm:$0xff]  ;;  %p8197_p4 = pnand %p8196_p3, %p8192_p0 }
 0x376   : > { %4506 = vmatpush.bf16.msrb.mxu0 %v7903_v12  ;;  %v2207_v24 = vunpack.c.l.b16 %v1937_v48  ;;  %v2208_v29 = vunpack.c.h.b16 %v1937_v48  ;;  %vm9088_vm2 = vcmp.ne.s32.totalorder %v2200_v51, %v8975_v62  ;;  %vm9093_vm3 = vcmp.ne.s32.totalorder %v2201_v63, %v8978_v5  ;;  %v7884_v12 = vld [vmem:[%s12211_s5] sm:$0xff] }
 0x377   : > { %v2214_v32 = vunpack.c.l.b16 %v1947_v46  ;;  %v2215_v6 = vunpack.c.h.b16 %v1947_v46  ;;  %vm2206_vm7 = vmpackc.low %vm9093_vm3, %vm9088_vm2  ;;  %v3462_v48 = vpack.c.b16 %v3436_v8, %v3435_v1  ;;  %v3479_v13 = vshll.u32 %v3461_v60, 16 }
 0x378   : > { %4349 = vmatpush.bf16.msrb.mxu3 %v7886_v57  ;;  %vm2211_vm8 = vcmp.ne.s32.totalorder %v2207_v24, %v8975_v62  ;;  %vm2212_vm10 = vcmp.ne.s32.totalorder %v2208_v29, %v8978_v5  ;;  %v3476_v57 = vshrl.u32 %v3461_v60, 16  ;;  %v2397_v51 = vsel %vm2206_vm7, %v8965_v52, 0  ;;  %v7892_v60 = vld [vmem:[%s12211_s5 + $0x40] sm:$0xff] }
 0x379   : > { %4428 = vmatpush.bf16.msrb.mxu2 %v7894_v44  ;;  %v7901_v44 = vld [vmem:[%s12211_s5 + $0x88] sm:$0xff]  ;;  %vm2213_vm11 = vmpackc.low %vm2212_vm10, %vm2211_vm8  ;;  %vm2218_vm13 = vcmp.ne.s32.totalorder %v2214_v32, %v8975_v62  ;;  %vm2219_vm14 = vcmp.ne.s32.totalorder %v2215_v6, %v8978_v5  ;;  %v3362_v61 = vunpack.c.l.b16 %v2397_v51  ;;  %v3484_v1 = vshrl.u32 %v3462_v48, 16 }
 0x37a   : > { %4507 = vmatpush.bf16.msrb.mxu0 %v7902_v58  ;;  %vm2220_vm15 = vmpackc.low %vm2219_vm14, %vm2218_vm13  ;;  %v2398_v63 = vsel %vm2213_vm11, %v8967_v39, 0  ;;  %v3478_v46 = vrot.slane %v3476_v57, 4  ;;  %v3481_v24 = vrot.slane %v3479_v13, 5  ;;  %v3487_v29 = vshll.u32 %v3462_v48, 16 }
 0x37b   : > { %v2399_v8 = vsel %vm2220_vm15, %v8980_v3, 0  ;;  %v3363_v58 = vunpack.c.l.b16 %v2398_v63  ;;  %v3390_v6 = vpack.c.b16 %v3362_v61, %v3361_v40  ;;  %v3486_v57 = vrot.slane %v3484_v1, 4 }
 0x37c   : > { %4350 = vmatpush.bf16.msrb.mxu3 %v7885_v36  ;;  %v3364_v32 = vunpack.c.l.b16 %v2399_v8  ;;  %v12356_v51 = vshrl.u32 %v8987_v50, 16  ;;  %v7900_v36 = vld [vmem:[%s12211_s5 + $0x80] sm:$0xff]  ;;  %v3489_v48 = vrot.slane %v3487_v29, 5  ;;  %v2858_v13 = vshrl.u32 %v9071_v10, 16 }
 0x37d   : > { %4429 = vmatpush.bf16.msrb.mxu2 %v7893_v45  ;;  %v3482_v45 = vor.u32 %v3481_v24, %v3478_v46  ;;  %v2861_v63 = vshll.u32 %v9071_v10, 16  ;;  %v3757_v21 = vshrl.u32 %v3390_v6, 16  ;;  %v3760_v2 = vshll.u32 %v3390_v6, 16 }
 0x37e   : > { %v2852_v15 = vrot.slane %v12356_v51, 7  ;;  %4508 = vmatpush.bf16.msrb.mxu0 %v7901_v44  ;;  %v3391_v53 = vpack.c.b16 %v3364_v32, %v3363_v58  ;;  %v12357_v40 = vshll.u32 %v8987_v50, 16  ;;  %v9134_v1 = vor.u32 %v3489_v48, %v3486_v57 }
 0x37f   : > { %v3774_v44 = vshrl.u32 %v3482_v45, 16  ;;  %v3777_v8 = vshll.u32 %v3482_v45, 16  ;;  %v3759_v46 = vrot.slane %v3757_v21, 3  ;;  %v3762_v24 = vrot.slane %v3760_v2, 4 }
 0x380   : > { %v9132_v61 = vor.u32 %v2852_v15, %v12357_v40  ;;  %v9136_v51 = vrot.slane %v2852_v15, 4  ;;  %4351 = vmatpush.bf16.msrb.mxu3 %v7884_v12  ;;  %v3765_v29 = vshrl.u32 %v3391_v53, 16  ;;  %v3768_v0 = vshll.u32 %v3391_v53, 16  ;;  %v7452_v15 = vld [vmem:[%s12213_s7 + $0xd8] sm:$0xf0] }
 0x381   : > { %4430 = vmatpush.bf16.msrb.mxu2 %v7892_v60  ;;  %v3491_v10 = vsel %vm1911_vm5, %v3482_v45, %v9134_v1  ;;  %v3776_v58 = vrot.slane %v3774_v44, 3  ;;  %v3779_v50 = vrot.slane %v3777_v8, 4  ;;  %v2860_v32 = vrot.slane %v2858_v13, 7 }
 0x382   : > { %4509 = vmatpush.bf16.msrb.mxu0 %v7900_v36  ;;  %v3763_v6 = vor.u32 %v3762_v24, %v3759_v46  ;;  %v3767_v57 = vrot.slane %v3765_v29, 3  ;;  %v3770_v48 = vrot.slane %v3768_v0, 4  ;;  %v3782_v40 = vshrl.u32 %v3491_v10, 16 }
 0x383   : > { %v3780_v2 = vor.u32 %v3779_v50, %v3776_v58  ;;  %v3785_v21 = vshll.u32 %v3491_v10, 16  ;;  %v2863_v53 = vor.u32 %v2861_v63, %v2860_v32  ;;  %v2865_v12 = vrot.slane %v2860_v32, 4 }
 0x384   : > { %v9146_v60 = vor.u32 %v3770_v48, %v3767_v57  ;;  %v3784_v36 = vrot.slane %v3782_v40, 3  ;;  %v2876_v45 = vshrl.u32 %v9076_v4, 16  ;;  %v2879_v13 = vshll.u32 %v9076_v4, 16 }
 0x385   : > { %v3787_v44 = vrot.slane %v3785_v21, 4  ;;  %v2864_v0 = vsel %vm9142_vm1, %v9136_v51, %v2863_v53  ;;  %v2873_v8 = vsel %vm9142_vm1, %v2865_v12, %v9132_v61  ;;  %v3100_v46 = vunpack.c.l.b16 %v9132_v61 }
 0x386   : > { %v3772_v63 = vsel %vm3755_vm0, %v3763_v6, %v9146_v60  ;;  %v2878_v24 = vrot.slane %v2876_v45, 7  ;;  %v3101_v29 = vunpack.c.h.b16 %v9132_v61  ;;  %v3107_v10 = vunpack.c.l.b16 %v2864_v0 }
 0x387   : > { %4352 = vmatmul.bf16.vlgmr.msrb.gmra.mxu3 %v3772_v63  ;;  %v9160_v4 = vor.u32 %v3787_v44, %v3784_v36  ;;  %vm9163_vm2 = vcmp.ne.s32.totalorder %v3100_v46, %v8975_v62  ;;  %v3108_v50 = vunpack.c.h.b16 %v2864_v0  ;;  %v3114_v32 = vunpack.c.l.b16 %v2873_v8 }
 0x388   : > { %v2881_v57 = vor.u32 %v2879_v13, %v2878_v24  ;;  %vm3105_vm3 = vcmp.ne.s32.totalorder %v3101_v29, %v8978_v5  ;;  %vm9169_vm4 = vcmp.ne.s32.totalorder %v3107_v10, %v8975_v62  ;;  %v3115_v48 = vunpack.c.h.b16 %v2873_v8 }
 0x389   : > { %v3789_v40 = vsel %vm3755_vm0, %v3780_v2, %v9160_v4  ;;  %vm3106_vm6 = vmpackc.low %vm3105_vm3, %vm9163_vm2  ;;  %vm3112_vm7 = vcmp.ne.s32.totalorder %v3108_v50, %v8978_v5  ;;  %vm3118_vm8 = vcmp.ne.s32.totalorder %v3114_v32, %v8975_v62  ;;  %v8049_v2 = vpack.c.bf16 %v8850_v25, %v8846_v41 }
 0x38a   : > { %4431 = vmatmul.bf16.vlgmr.msrb.gmra.mxu2 %v3789_v40  ;;  %v2882_v21 = vsel %vm9142_vm1, %v9136_v51, %v2881_v57  ;;  %vm3113_vm10 = vmpackc.low %vm3112_vm7, %vm9169_vm4  ;;  %vm3119_vm11 = vcmp.ne.s32.totalorder %v3115_v48, %v8978_v5  ;;  %v3303_v53 = vsel %vm3106_vm6, %v8965_v52, 0  ;;  %vm3673_vm14 = vcmask 1042432  }
 0x38b   : > { %vm3120_vm13 = vmpackc.low %vm3119_vm11, %vm3118_vm8  ;;  %v3121_v12 = vunpack.c.l.b16 %v2882_v21  ;;  %v3122_v36 = vunpack.c.h.b16 %v2882_v21  ;;  %v3304_v45 = vsel %vm3113_vm10, %v8967_v39, 0  ;;  %v3629_v13 = vunpack.c.l.b16 %v3303_v53  ;;  %8108 = vst [vmem:[#allocation2 + $0x18] sm:$0xff] %v8049_v2  }
 0x38c   : > { %v3305_v44 = vsel %vm3120_vm13, %v8980_v3, 0  ;;  %v3630_v0 = vunpack.c.l.b16 %v3304_v45  ;;  %v1634_v8 = vand.u32 15, %v8401_v14  ;;  %v1635_v46 = vand.u32 15, %v8411_v16 }
 0x38d   : > { %vm3125_vm15 = vcmp.ne.s32.totalorder %v3121_v12, %v8975_v62  ;;  %vm3126_vm2 = vcmp.ne.s32.totalorder %v3122_v36, %v8978_v5  ;;  %v3631_v41 = vunpack.c.l.b16 %v3305_v44  ;;  %v2883_v25 = vrot.slane %v2878_v24, 4 }
 0x38e   : > { %vm3127_vm3 = vmpackc.low %vm3126_vm2, %vm3125_vm15  ;;  %v3658_v52 = vpack.c.b16 %v3630_v0, %v3629_v13  ;;  %v1691_v63 = vadd.s32 4294967295, %v1634_v8  ;;  %v2627_v39 = vadd.s32 1, %v1635_v46  ;;  %v8054_v29 = vpack.c.bf16 %v8858_v49, %v8854_v19 }
 0x38f   : > { %v3306_v3 = vsel %vm3127_vm3, %v9016_v17, 0  ;;  %v2891_v14 = vsel %vm9142_vm1, %v2883_v25, %v9132_v61  ;;  %v1636_v16 = vand.u32 15, %v8421_v18  ;;  %v1637_v10 = vand.u32 15, %v8429_v20 }
 0x390   : > { %v3632_v58 = vunpack.c.l.b16 %v3306_v3  ;;  %v3674_v50 = vrot.slane %v3658_v52, 5  ;;  %vm1719_vm4 = vcmp.ge.s32.totalorder %v1691_v63, 0  ;;  %vm2683_vm6 = vcmp.lt.s32.totalorder %v2627_v39, 16  ;;  %8109 = vst [vmem:[#allocation2 + $0x20] sm:$0xff] %v8054_v29  }
 0x391   : > { %vm1859_vm7 = vmpackc.low %vm1719_vm4, %vm1719_vm4  ;;  %v3128_v24 = vunpack.c.l.b16 %v2891_v14  ;;  %v3129_v32 = vunpack.c.h.b16 %v2891_v14  ;;  %v9202_v57 = vadd.s32 4294967295, %v1636_v16  ;;  %v9204_v19 = vadd.s32 1, %v1637_v10 }
 0x392   : > { %v9206_v49 = vpack.c.b16 %v3632_v58, %v3631_v41  ;;  %v3791_v6 = vshrl.u32 %v3674_v50, 16  ;;  %v3794_v48 = vshll.u32 %v3674_v50, 16  ;;  %v1887_v18 = vsel %vm1859_vm7, 65537, %v12351_v42  ;;  %v1663_v40 = vld [vmem:[#allocation2 + $0x18] sm:$0xf]  ;;  %vm2795_vm8 = vmpackc.low %vm2683_vm6, %vm2683_vm6 }
 0x393   : > { %v1954_v20 = vshll.u32 %v1887_v18, 16  ;;  %v1958_v21 = vshrl.u32 %v1887_v18, 16  ;;  %v9209_v53 = vld [vmem:[#allocation2 + $0x1c] sm:$0xf]  ;;  %vm9212_vm10 = vcmp.ne.s32.totalorder %v3128_v24, %v8975_v62  ;;  %vm9217_vm11 = vcmp.ne.s32.totalorder %v3129_v32, %v8978_v5 }
 0x394   : > { %v3675_v36 = vrot.slane %v9206_v49, 5  ;;  %v3793_v45 = vrot.slane %v3791_v6, 3  ;;  %v3796_v13 = vrot.slane %v3794_v48, 4  ;;  %v2597_v44 = vsel %vm8969_vm9, %v1663_v40, 0  ;;  %vm3134_vm13 = vmpackc.low %vm9217_vm11, %vm9212_vm10 }
 0x395   : > { %v1956_v0 = vrot.slane %v1954_v20, 5  ;;  %v1960_v8 = vrot.slane %v1958_v21, 4  ;;  %v3437_v46 = vunpack.c.l.b16 %v2597_v44  ;;  %v2598_v41 = vsel %vm8969_vm9, %v9209_v53, 0 }
 0x396   : > { %v3676_v25 = vsel %vm3673_vm14, %v3674_v50, %v3675_v36  ;;  %v3797_v52 = vor.u32 %v3796_v13, %v3793_v45  ;;  %v3438_v63 = vunpack.c.l.b16 %v2598_v41  ;;  %v2823_v39 = vsel %vm2795_vm8, 65537, %v12351_v42 }
 0x397   : > { %v3799_v29 = vshrl.u32 %v3676_v25, 16  ;;  %v3802_v3 = vshll.u32 %v3676_v25, 16  ;;  %v1957_v14 = vsel %vm9003_vm12, %v9048_v43, %v1956_v0  ;;  %v1961_v16 = vor.u32 %v1960_v8, %v1956_v0  ;;  %v9248_v41 = vld [vmem:[#allocation2 + $0x20] sm:$0xf]  ;;  %v9250_v25 = vld [vmem:[#allocation2 + $0x24] sm:$0xf] }
 0x398   : > { %v2221_v10 = vunpack.c.l.b16 %v1957_v14  ;;  %v2222_v58 = vunpack.c.h.b16 %v1957_v14  ;;  %v3463_v24 = vpack.c.b16 %v3438_v63, %v3437_v46  ;;  %v2894_v32 = vshrl.u32 %v2823_v39, 16 }
 0x399   : > { %v3801_v50 = vrot.slane %v3799_v29, 3  ;;  %v3804_v6 = vrot.slane %v3802_v3, 4  ;;  %v1962_v48 = vrot.slane %v1961_v16, 4  ;;  %v2897_v18 = vshll.u32 %v2823_v39, 16 }
 0x39a   : > { %vm2225_vm15 = vcmp.ne.s32.totalorder %v2221_v10, %v8975_v62  ;;  %vm2226_vm2 = vcmp.ne.s32.totalorder %v2222_v58, %v8978_v5  ;;  %v3493_v20 = vshrl.u32 %v3463_v24, 16  ;;  %v3496_v21 = vshll.u32 %v3463_v24, 16 }
 0x39b   : > { %v9240_v45 = vor.u32 %v3804_v6, %v3801_v50  ;;  %v1967_v13 = vsel %vm9003_vm12, %v1962_v48, %v9009_v28  ;;  %vm2227_vm3 = vmpackc.low %vm2226_vm2, %vm2225_vm15  ;;  %v9245_v2 = vrot.slane %v2894_v32, 7  ;;  %v3307_v12 = vsel %vm3134_vm13, %v1663_v40, 0 }
 0x39c   : > { %v2228_v44 = vunpack.c.l.b16 %v1967_v13  ;;  %v2229_v0 = vunpack.c.h.b16 %v1967_v13  ;;  %v2400_v8 = vsel %vm2227_vm3, %v9016_v17, 0  ;;  %v3495_v46 = vrot.slane %v3493_v20, 4 }
 0x39d   : > { %v3806_v63 = vsel %vm3755_vm0, %v3797_v52, %v9240_v45  ;;  %v3365_v39 = vunpack.c.l.b16 %v2400_v8  ;;  %v3498_v29 = vrot.slane %v3496_v21, 5  ;;  %v2899_v3 = vor.u32 %v2897_v18, %v9245_v2 }
 0x39e   : > { %4510 = vmatmul.bf16.vlgmr.msrb.gmra.mxu0 %v3806_v63  ;;  %vm2232_vm4 = vcmp.ne.s32.totalorder %v2228_v44, %v8975_v62  ;;  %vm2233_vm6 = vcmp.ne.s32.totalorder %v2229_v0, %v8978_v5  ;;  %v3633_v14 = vunpack.c.l.b16 %v3307_v12  ;;  %vm1721_vm7 = vcmp.ge.s32.totalorder %v9202_v57, 0 }
 0x39f   : > { %vm2234_vm8 = vmpackc.low %vm2233_vm6, %vm2232_vm4  ;;  %v9258_v17 = vor.u32 %v3498_v29, %v3495_v46  ;;  %v2900_v16 = vsel %vm9142_vm1, %v9136_v51, %v2899_v3  ;;  %v2599_v52 = vsel %vm8969_vm9, %v9248_v41, 0  ;;  %v2600_v10 = vsel %vm8969_vm9, %v9250_v25, 0 }
 0x3a0   : > { %v2401_v58 = vsel %vm2234_vm8, %v1663_v40, 0  ;;  %v3135_v24 = vunpack.c.l.b16 %v2900_v16  ;;  %v3136_v32 = vunpack.c.h.b16 %v2900_v16  ;;  %vm1861_vm10 = vmpackc.low %vm1721_vm7, %vm1721_vm7  ;;  %v3439_v57 = vunpack.c.l.b16 %v2599_v52 }
 0x3a1   : > { %v3366_v50 = vunpack.c.l.b16 %v2401_v58  ;;  %v3500_v6 = vsel %vm1911_vm5, %v9134_v1, %v9258_v17  ;;  %v1889_v48 = vsel %vm1861_vm10, 65537, %v12351_v42  ;;  %v3440_v18 = vunpack.c.l.b16 %v2600_v10 }
 0x3a2   : > { %v3817_v20 = vshrl.u32 %v3500_v6, 16  ;;  %v3820_v21 = vshll.u32 %v3500_v6, 16  ;;  %vm3139_vm11 = vcmp.ne.s32.totalorder %v3135_v24, %v8975_v62  ;;  %vm3140_vm13 = vcmp.ne.s32.totalorder %v3136_v32, %v8978_v5 }
 0x3a3   : > { %v3392_v13 = vpack.c.b16 %v3366_v50, %v3365_v39  ;;  %vm3141_vm15 = vmpackc.low %vm3140_vm13, %vm3139_vm11  ;;  %v1974_v40 = vshll.u32 %v1889_v48, 16  ;;  %v1978_v12 = vshrl.u32 %v1889_v48, 16  ;;  %v3464_v44 = vpack.c.b16 %v3440_v18, %v3439_v57 }
 0x3a4   : > { %v3819_v0 = vrot.slane %v3817_v20, 3  ;;  %v3822_v8 = vrot.slane %v3820_v21, 4  ;;  %v3308_v46 = vsel %vm3141_vm15, %v9209_v53, 0  ;;  %vm2685_vm2 = vcmp.lt.s32.totalorder %v9204_v19, 16 }
 0x3a5   : > { %v3808_v1 = vshrl.u32 %v3392_v13, 16  ;;  %v3811_v63 = vshll.u32 %v3392_v13, 16  ;;  %v3634_v29 = vunpack.c.l.b16 %v3308_v46  ;;  %v1976_v3 = vrot.slane %v1974_v40, 5  ;;  %vm2797_vm3 = vmpackc.low %vm2685_vm2, %vm2685_vm2 }
 0x3a6   : > { %v9277_v16 = vor.u32 %v3822_v8, %v3819_v0  ;;  %v1980_v52 = vrot.slane %v1978_v12, 4  ;;  %v3502_v10 = vshrl.u32 %v3464_v44, 16  ;;  %v3505_v58 = vshll.u32 %v3464_v44, 16 }
 0x3a7   : > { %v3810_v39 = vrot.slane %v3808_v1, 3  ;;  %v3813_v24 = vrot.slane %v3811_v63, 4  ;;  %v9279_v32 = vpack.c.b16 %v3634_v29, %v3633_v14  ;;  %v1977_v57 = vsel %vm9003_vm12, %v9048_v43, %v1976_v3 }
 0x3a8   : > { %v3824_v19 = vsel %vm3755_vm0, %v9160_v4, %v9277_v16  ;;  %v1981_v50 = vor.u32 %v1980_v52, %v1976_v3  ;;  %v2235_v6 = vunpack.c.l.b16 %v1977_v57  ;;  %v2236_v48 = vunpack.c.h.b16 %v1977_v57 }
 0x3a9   : > { %v9287_v18 = vor.u32 %v3813_v24, %v3810_v39  ;;  %4436 = vmatmul.bf16.gmra.mxu2 %v3824_v19  ;;  %v3677_v20 = vrot.slane %v9279_v32, 5  ;;  %v3504_v21 = vrot.slane %v3502_v10, 4  ;;  %v3507_v14 = vrot.slane %v3505_v58, 5 }
 0x3aa   : > { %v1982_v13 = vrot.slane %v1981_v50, 4  ;;  %vm2239_vm4 = vcmp.ne.s32.totalorder %v2235_v6, %v8975_v62  ;;  %vm2240_vm6 = vcmp.ne.s32.totalorder %v2236_v48, %v8978_v5  ;;  %v2825_v40 = vsel %vm2797_vm3, 65537, %v12351_v42 }
 0x3ab   : > { %v3815_v4 = vsel %vm3755_vm0, %v9146_v60, %v9287_v18  ;;  %v3678_v12 = vsel %vm3673_vm14, %v3675_v36, %v3677_v20  ;;  %vm2241_vm7 = vmpackc.low %vm2240_vm6, %vm2239_vm4  ;;  %v9301_v44 = vor.u32 %v3507_v14, %v3504_v21  ;;  %v2901_v0 = vrot.slane %v9245_v2, 4 }
 0x3ac   : > { %4357 = vmatmul.bf16.gmra.mxu3 %v3815_v4  ;;  %v3826_v8 = vshrl.u32 %v3678_v12, 16  ;;  %v3829_v46 = vshll.u32 %v3678_v12, 16  ;;  %v1987_v1 = vsel %vm9003_vm12, %v1982_v13, %v9009_v28  ;;  %v2402_v60 = vsel %vm2241_vm7, %v9209_v53, 0 }
 0x3ad   : > { %v2242_v63 = vunpack.c.l.b16 %v1987_v1  ;;  %v2243_v29 = vunpack.c.h.b16 %v1987_v1  ;;  %v3367_v3 = vunpack.c.l.b16 %v2402_v60  ;;  %v3509_v49 = vsel %vm1911_vm5, %v9258_v17, %v9301_v44 }
 0x3ae   : > { %v3828_v36 = vrot.slane %v3826_v8, 3  ;;  %v3831_v52 = vrot.slane %v3829_v46, 4  ;;  %v3844_v10 = vshrl.u32 %v3509_v49, 16  ;;  %v3847_v2 = vshll.u32 %v3509_v49, 16 }
 0x3af   : > { %vm2246_vm8 = vcmp.ne.s32.totalorder %v2242_v63, %v8975_v62  ;;  %vm2247_vm10 = vcmp.ne.s32.totalorder %v2243_v29, %v8978_v5  ;;  %v2909_v58 = vsel %vm9142_vm1, %v2901_v0, %v9132_v61  ;;  %v2912_v53 = vshrl.u32 %v2825_v40, 16 }
 0x3b0   : > { %v9316_v39 = vor.u32 %v3831_v52, %v3828_v36  ;;  %vm2248_vm11 = vmpackc.low %vm2247_vm10, %vm2246_vm8  ;;  %v3846_v24 = vrot.slane %v3844_v10, 3  ;;  %v3849_v57 = vrot.slane %v3847_v2, 4  ;;  %v2915_v19 = vshll.u32 %v2825_v40, 16 }
 0x3b1   : > { %v2403_v17 = vsel %vm2248_vm11, %v9248_v41, 0  ;;  %v2914_v50 = vrot.slane %v2912_v53, 7  ;;  %v3142_v6 = vunpack.c.l.b16 %v2909_v58  ;;  %v3143_v48 = vunpack.c.h.b16 %v2909_v58 }
 0x3b2   : > { %v3833_v21 = vsel %vm3755_vm0, %v9240_v45, %v9316_v39  ;;  %v3368_v14 = vunpack.c.l.b16 %v2403_v17  ;;  %v9322_v13 = vor.u32 %v3849_v57, %v3846_v24  ;;  %v8059_v4 = vpack.c.bf16 %v8866_v37, %v8862_v9 }
 0x3b3   : > { %4515 = vmatmul.bf16.gmra.mxu0 %v3833_v21  ;;  %v2917_v12 = vor.u32 %v2915_v19, %v2914_v50  ;;  %vm3146_vm13 = vcmp.ne.s32.totalorder %v3142_v6, %v8975_v62  ;;  %vm3147_vm15 = vcmp.ne.s32.totalorder %v3143_v48, %v8978_v5  ;;  %v1638_v40 = vand.u32 15, %v8436_v22 }
 0x3b4   : > { %v3393_v0 = vpack.c.b16 %v3368_v14, %v3367_v3  ;;  %v3851_v8 = vsel %vm3755_vm0, %v9277_v16, %v9322_v13  ;;  %vm3148_vm2 = vmpackc.low %vm3147_vm15, %vm3146_vm13  ;;  %8110 = vst [vmem:[#allocation2 + $0x28] sm:$0xff] %v8059_v4   ;;  %v1639_v45 = vand.u32 15, %v8450_v26  ;;  %v2919_v46 = vrot.slane %v2914_v50, 4 }
 0x3b5   : > { %v2918_v9 = vsel %vm9142_vm1, %v9136_v51, %v2917_v12  ;;  %v3309_v37 = vsel %vm3148_vm2, %v9248_v41, 0  ;;  %v1695_v1 = vadd.s32 4294967295, %v1638_v40  ;;  %v8064_v22 = vpack.c.bf16 %v8872_v56, %v8869_v7 }
 0x3b6   : > { %v3835_v60 = vshrl.u32 %v3393_v0, 16  ;;  %v3838_v63 = vshll.u32 %v3393_v0, 16  ;;  %v3149_v29 = vunpack.c.l.b16 %v2918_v9  ;;  %v3150_v3 = vunpack.c.h.b16 %v2918_v9 }
 0x3b7   : > { %v3635_v16 = vunpack.c.l.b16 %v3309_v37  ;;  %vm1723_vm3 = vcmp.ge.s32.totalorder %v1695_v1, 0  ;;  %v2631_v49 = vadd.s32 1, %v1639_v45  ;;  %v2927_v26 = vsel %vm9142_vm1, %v2919_v46, %v9132_v61  ;;  %8111 = vst [vmem:[#allocation2 + $0x30] sm:$0xff] %v8064_v22  }
 0x3b8   : > { %v3837_v36 = vrot.slane %v3835_v60, 3  ;;  %v3840_v52 = vrot.slane %v3838_v63, 4  ;;  %vm3153_vm4 = vcmp.ne.s32.totalorder %v3149_v29, %v8975_v62  ;;  %vm3154_vm6 = vcmp.ne.s32.totalorder %v3150_v3, %v8978_v5  ;;  %vm1863_vm7 = vmpackc.low %vm1723_vm3, %vm1723_vm3 }
 0x3b9   : > { %4441 = vmatmul.bf16.gmra.mxu2 %v3851_v8  ;;  %vm3155_vm8 = vmpackc.low %vm3154_vm6, %vm3153_vm4  ;;  %v1891_v7 = vsel %vm1863_vm7, 65537, %v12351_v42  ;;  %vm2687_vm10 = vcmp.lt.s32.totalorder %v2631_v49, 16  ;;  %v3156_v56 = vunpack.c.l.b16 %v2927_v26  ;;  %v3157_v41 = vunpack.c.h.b16 %v2927_v26 }
 0x3ba   : > { %v9345_v10 = vor.u32 %v3840_v52, %v3837_v36  ;;  %v3310_v2 = vsel %vm3155_vm8, %v9250_v25, 0  ;;  %v1994_v58 = vshll.u32 %v1891_v7, 16  ;;  %v1998_v53 = vshrl.u32 %v1891_v7, 16  ;;  %vm2799_vm11 = vmpackc.low %vm2687_vm10, %vm2687_vm10 }
 0x3bb   : > { %v3636_v24 = vunpack.c.l.b16 %v3310_v2  ;;  %v1667_v57 = vld [vmem:[#allocation2 + $0x28] sm:$0xf]  ;;  %v9348_v19 = vld [vmem:[#allocation2 + $0x2c] sm:$0xf]  ;;  %v2827_v17 = vsel %vm2799_vm11, 65537, %v12351_v42  ;;  %vm9352_vm13 = vcmp.ne.s32.totalorder %v3156_v56, %v8975_v62  ;;  %vm9357_vm15 = vcmp.ne.s32.totalorder %v3157_v41, %v8978_v5 }
 0x3bc   : > { %v3842_v48 = vsel %vm3755_vm0, %v9287_v18, %v9345_v10  ;;  %v1996_v21 = vrot.slane %v1994_v58, 5  ;;  %v2000_v14 = vrot.slane %v1998_v53, 4  ;;  %v2601_v4 = vsel %vm8969_vm9, %v1667_v57, 0  ;;  %vm3162_vm2 = vmpackc.low %vm9357_vm15, %vm9352_vm13 }
 0x3bd   : > { %4362 = vmatmul.bf16.gmra.mxu3 %v3842_v48  ;;  %v9366_v12 = vpack.c.b16 %v3636_v24, %v3635_v16  ;;  %v3441_v40 = vunpack.c.l.b16 %v2601_v4  ;;  %v2602_v0 = vsel %vm8969_vm9, %v9348_v19, 0  ;;  %v2930_v8 = vshrl.u32 %v2827_v17, 16 }
 0x3be   : > { %v1997_v18 = vsel %vm9003_vm12, %v9048_v43, %v1996_v21  ;;  %v2001_v45 = vor.u32 %v2000_v14, %v1996_v21  ;;  %v3442_v46 = vunpack.c.l.b16 %v2602_v0  ;;  %v2933_v9 = vshll.u32 %v2827_v17, 16  ;;  %v9394_v17 = vld [vmem:[#allocation2 + $0x30] sm:$0xf]  ;;  %v9403_v4 = vld [vmem:[#allocation2 + $0x34] sm:$0xf] }
 0x3bf   : > { %v3679_v37 = vrot.slane %v9366_v12, 5  ;;  %v2249_v1 = vunpack.c.l.b16 %v1997_v18  ;;  %v2250_v22 = vunpack.c.h.b16 %v1997_v18  ;;  %v9379_v60 = vrot.slane %v2930_v8, 7 }
 0x3c0   : > { %v2002_v63 = vrot.slane %v2001_v45, 4  ;;  %v3465_v29 = vpack.c.b16 %v3442_v46, %v3441_v40  ;;  %v3311_v3 = vsel %vm3162_vm2, %v1667_v57, 0  ;;  %v1640_v16 = vand.u32 15, %v8464_v30 }
 0x3c1   : > { %v3680_v49 = vsel %vm3673_vm14, %v3677_v20, %v3679_v37  ;;  %vm2253_vm3 = vcmp.ne.s32.totalorder %v2249_v1, %v8975_v62  ;;  %vm2254_vm4 = vcmp.ne.s32.totalorder %v2250_v22, %v8978_v5  ;;  %v2935_v26 = vor.u32 %v2933_v9, %v9379_v60 }
 0x3c2   : > { %v3853_v36 = vshrl.u32 %v3680_v49, 16  ;;  %v3856_v52 = vshll.u32 %v3680_v49, 16  ;;  %v2007_v7 = vsel %vm9003_vm12, %v2002_v63, %v9009_v28  ;;  %vm2255_vm6 = vmpackc.low %vm2254_vm4, %vm2253_vm3  ;;  %v3511_v30 = vshrl.u32 %v3465_v29, 16 }
 0x3c3   : > { %v2256_v56 = vunpack.c.l.b16 %v2007_v7  ;;  %v2257_v41 = vunpack.c.h.b16 %v2007_v7  ;;  %v2404_v32 = vsel %vm2255_vm6, %v9250_v25, 0  ;;  %v3514_v2 = vshll.u32 %v3465_v29, 16 }
 0x3c4   : > { %v3855_v20 = vrot.slane %v3853_v36, 3  ;;  %v3858_v58 = vrot.slane %v3856_v52, 4  ;;  %v3369_v53 = vunpack.c.l.b16 %v2404_v32  ;;  %v3513_v24 = vrot.slane %v3511_v30, 4 }
 0x3c5   : > { %vm2260_vm7 = vcmp.ne.s32.totalorder %v2256_v56, %v8975_v62  ;;  %vm2261_vm8 = vcmp.ne.s32.totalorder %v2257_v41, %v8978_v5  ;;  %v3516_v50 = vrot.slane %v3514_v2, 5  ;;  %v2936_v6 = vsel %vm9142_vm1, %v9136_v51, %v2935_v26 }
 0x3c6   : > { %v9401_v48 = vor.u32 %v3858_v58, %v3855_v20  ;;  %vm2262_vm10 = vmpackc.low %vm2261_vm8, %vm2260_vm7  ;;  %v3163_v25 = vunpack.c.l.b16 %v2936_v6  ;;  %v3164_v21 = vunpack.c.h.b16 %v2936_v6  ;;  %v3637_v14 = vunpack.c.l.b16 %v3311_v3 }
 0x3c7   : > { %v2405_v40 = vsel %vm2262_vm10, %v1667_v57, 0  ;;  %v9405_v0 = vor.u32 %v3516_v50, %v3513_v24  ;;  %v1697_v8 = vadd.s32 4294967295, %v1640_v16  ;;  %v2603_v18 = vsel %vm8969_vm9, %v9394_v17, 0 }
 0x3c8   : > { %v3860_v45 = vsel %vm3755_vm0, %v9316_v39, %v9401_v48  ;;  %v3370_v46 = vunpack.c.l.b16 %v2405_v40  ;;  %vm3167_vm11 = vcmp.ne.s32.totalorder %v3163_v25, %v8975_v62  ;;  %vm3168_vm13 = vcmp.ne.s32.totalorder %v3164_v21, %v8978_v5 }
 0x3c9   : > { %4520 = vmatmul.bf16.gmra.mxu0 %v3860_v45  ;;  %v3518_v57 = vsel %vm1911_vm5, %v9301_v44, %v9405_v0  ;;  %vm3169_vm15 = vmpackc.low %vm3168_vm13, %vm3167_vm11  ;;  %vm1725_vm2 = vcmp.ge.s32.totalorder %v1697_v8, 0  ;;  %v3443_v9 = vunpack.c.l.b16 %v2603_v18  ;;  %v2604_v1 = vsel %vm8969_vm9, %v9403_v4, 0 }
 0x3ca   : > { %v3394_v22 = vpack.c.b16 %v3370_v46, %v3369_v53  ;;  %v3871_v63 = vshrl.u32 %v3518_v57, 16  ;;  %v3874_v39 = vshll.u32 %v3518_v57, 16  ;;  %v3312_v29 = vsel %vm3169_vm15, %v9348_v19, 0  ;;  %vm1865_vm3 = vmpackc.low %vm1725_vm2, %vm1725_vm2 }
 0x3cb   : > { %v3638_v3 = vunpack.c.l.b16 %v3312_v29  ;;  %v1893_v16 = vsel %vm1865_vm3, 65537, %v12351_v42  ;;  %v3444_v49 = vunpack.c.l.b16 %v2604_v1  ;;  %v1641_v26 = vand.u32 15, %v8478_v34 }
 0x3cc   : > { %v3862_v44 = vshrl.u32 %v3394_v22, 16  ;;  %v3865_v36 = vshll.u32 %v3394_v22, 16  ;;  %v3873_v52 = vrot.slane %v3871_v63, 3  ;;  %v3876_v7 = vrot.slane %v3874_v39, 4 }
 0x3cd   : > { %v9424_v30 = vpack.c.b16 %v3638_v3, %v3637_v14  ;;  %v2014_v56 = vshll.u32 %v1893_v16, 16  ;;  %v2018_v41 = vshrl.u32 %v1893_v16, 16  ;;  %v3466_v32 = vpack.c.b16 %v3444_v49, %v3443_v9 }
 0x3ce   : > { %v3864_v2 = vrot.slane %v3862_v44, 3  ;;  %v3867_v20 = vrot.slane %v3865_v36, 4  ;;  %v9426_v58 = vor.u32 %v3876_v7, %v3873_v52  ;;  %v2633_v53 = vadd.s32 1, %v1641_v26 }
 0x3cf   : > { %v3681_v24 = vrot.slane %v9424_v30, 5  ;;  %v2016_v50 = vrot.slane %v2014_v56, 5  ;;  %v2020_v6 = vrot.slane %v2018_v41, 4  ;;  %v3520_v25 = vshrl.u32 %v3466_v32, 16 }
 0x3d0   : > { %v9429_v34 = vor.u32 %v3867_v20, %v3864_v2  ;;  %v3878_v21 = vsel %vm3755_vm0, %v9322_v13, %v9426_v58  ;;  %v3523_v14 = vshll.u32 %v3466_v32, 16  ;;  %vm2689_vm4 = vcmp.lt.s32.totalorder %v2633_v53, 16 }
 0x3d1   : > { %4446 = vmatmul.bf16.gmra.mxu2 %v3878_v21  ;;  %v3682_v40 = vsel %vm3673_vm14, %v3679_v37, %v3681_v24  ;;  %v2017_v8 = vsel %vm9003_vm12, %v9048_v43, %v2016_v50  ;;  %v2021_v18 = vor.u32 %v2020_v6, %v2016_v50  ;;  %v3522_v45 = vrot.slane %v3520_v25, 4  ;;  %vm2801_vm6 = vmpackc.low %vm2689_vm4, %vm2689_vm4 }
 0x3d2   : > { %v3869_v13 = vsel %vm3755_vm0, %v9345_v10, %v9429_v34  ;;  %v3880_v46 = vshrl.u32 %v3682_v40, 16  ;;  %v3883_v57 = vshll.u32 %v3682_v40, 16  ;;  %v2263_v9 = vunpack.c.l.b16 %v2017_v8 }
 0x3d3   : > { %4367 = vmatmul.bf16.gmra.mxu3 %v3869_v13  ;;  %v2022_v1 = vrot.slane %v2021_v18, 4  ;;  %v2264_v22 = vunpack.c.h.b16 %v2017_v8  ;;  %v3525_v12 = vrot.slane %v3523_v14, 5  ;;  %v2829_v37 = vsel %vm2801_vm6, 65537, %v12351_v42 }
 0x3d4   : > { %v3882_v63 = vrot.slane %v3880_v46, 3  ;;  %v3885_v39 = vrot.slane %v3883_v57, 4  ;;  %vm2267_vm7 = vcmp.ne.s32.totalorder %v2263_v9, %v8975_v62  ;;  %v2937_v29 = vrot.slane %v9379_v60, 4 }
 0x3d5   : > { %v2027_v3 = vsel %vm9003_vm12, %v2022_v1, %v9009_v28  ;;  %vm2268_vm8 = vcmp.ne.s32.totalorder %v2264_v22, %v8978_v5  ;;  %v9452_v10 = vor.u32 %v3525_v12, %v3522_v45  ;;  %v2948_v16 = vshrl.u32 %v2829_v37, 16 }
 0x3d6   : > { %v9454_v49 = vor.u32 %v3885_v39, %v3882_v63  ;;  %vm2269_vm10 = vmpackc.low %vm2268_vm8, %vm2267_vm7  ;;  %v2270_v26 = vunpack.c.l.b16 %v2027_v3  ;;  %v2271_v44 = vunpack.c.h.b16 %v2027_v3  ;;  %v2945_v36 = vsel %vm9142_vm1, %v2937_v29, %v9132_v61 }
 0x3d7   : > { %v2406_v60 = vsel %vm2269_vm10, %v9348_v19, 0  ;;  %v3527_v52 = vsel %vm1911_vm5, %v9405_v0, %v9452_v10  ;;  %v2950_v7 = vrot.slane %v2948_v16, 7  ;;  %v2951_v56 = vshll.u32 %v2829_v37, 16 }
 0x3d8   : > { %v3887_v41 = vsel %vm3755_vm0, %v9401_v48, %v9454_v49  ;;  %vm2274_vm11 = vcmp.ne.s32.totalorder %v2270_v26, %v8975_v62  ;;  %vm2275_vm13 = vcmp.ne.s32.totalorder %v2271_v44, %v8978_v5  ;;  %v3371_v32 = vunpack.c.l.b16 %v2406_v60 }
 0x3d9   : > { %4525 = vmatmul.bf16.gmra.mxu0 %v3887_v41  ;;  %vm2276_vm15 = vmpackc.low %vm2275_vm13, %vm2274_vm11  ;;  %v3898_v2 = vshrl.u32 %v3527_v52, 16  ;;  %v3901_v20 = vshll.u32 %v3527_v52, 16  ;;  %v2953_v19 = vor.u32 %v2951_v56, %v2950_v7  ;;  %v3170_v53 = vunpack.c.l.b16 %v2945_v36 }
 0x3da   : > { %v2407_v50 = vsel %vm2276_vm15, %v9394_v17, 0  ;;  %v3171_v0 = vunpack.c.h.b16 %v2945_v36  ;;  %v8069_v6 = vpack.c.bf16 %v8878_v38, %v8875_v11  ;;  %v1642_v25 = vand.u32 15, %v8440_v23 }
 0x3db   : > { %v3372_v48 = vunpack.c.l.b16 %v2407_v50  ;;  %v3900_v21 = vrot.slane %v3898_v2, 3  ;;  %v3903_v14 = vrot.slane %v3901_v20, 4  ;;  %v2954_v40 = vsel %vm9142_vm1, %v9136_v51, %v2953_v19 }
 0x3dc   : > { %vm3174_vm2 = vcmp.ne.s32.totalorder %v3170_v53, %v8975_v62  ;;  %vm3175_vm3 = vcmp.ne.s32.totalorder %v3171_v0, %v8978_v5  ;;  %v3177_v8 = vunpack.c.l.b16 %v2954_v40  ;;  %v3178_v18 = vunpack.c.h.b16 %v2954_v40  ;;  %8112 = vst [vmem:[#allocation2 + $0x38] sm:$0xff] %v8069_v6  }
 0x3dd   : > { %v3395_v45 = vpack.c.b16 %v3372_v48, %v3371_v32  ;;  %v9477_v13 = vor.u32 %v3903_v14, %v3900_v21  ;;  %vm3176_vm4 = vmpackc.low %vm3175_vm3, %vm3174_vm2  ;;  %v1699_v11 = vadd.s32 4294967295, %v1642_v25  ;;  %v1643_v23 = vand.u32 15, %v8454_v27 }
 0x3de   : > { %vm3181_vm6 = vcmp.ne.s32.totalorder %v3177_v8, %v8975_v62  ;;  %vm3182_vm7 = vcmp.ne.s32.totalorder %v3178_v18, %v8978_v5  ;;  %v3313_v38 = vsel %vm3176_vm4, %v9394_v17, 0  ;;  %v2955_v46 = vrot.slane %v2950_v7, 4 }
 0x3df   : > { %v3889_v57 = vshrl.u32 %v3395_v45, 16  ;;  %v3892_v9 = vshll.u32 %v3395_v45, 16  ;;  %v3905_v1 = vsel %vm3755_vm0, %v9426_v58, %v9477_v13  ;;  %vm3183_vm8 = vmpackc.low %vm3182_vm7, %vm3181_vm6  ;;  %v3639_v22 = vunpack.c.l.b16 %v3313_v38 }
 0x3e0   : > { %v3314_v12 = vsel %vm3183_vm8, %v9403_v4, 0  ;;  %vm1727_vm10 = vcmp.ge.s32.totalorder %v1699_v11, 0  ;;  %v2635_v37 = vadd.s32 1, %v1643_v23  ;;  %v2963_v27 = vsel %vm9142_vm1, %v2955_v46, %v9132_v61 }
 0x3e1   : > { %v3891_v63 = vrot.slane %v3889_v57, 3  ;;  %v3894_v39 = vrot.slane %v3892_v9, 4  ;;  %4451 = vmatmul.bf16.gmra.mxu2 %v3905_v1  ;;  %v3640_v17 = vunpack.c.l.b16 %v3314_v12  ;;  %vm1867_vm11 = vmpackc.low %vm1727_vm10, %vm1727_vm10  ;;  %v3184_v29 = vunpack.c.l.b16 %v2963_v27 }
 0x3e2   : > { %v1895_v3 = vsel %vm1867_vm11, 65537, %v12351_v42  ;;  %vm2691_vm13 = vcmp.lt.s32.totalorder %v2635_v37, 16  ;;  %v3185_v58 = vunpack.c.h.b16 %v2963_v27  ;;  %v8074_v16 = vpack.c.bf16 %v8884_v55, %v8881_v47 }
 0x3e3   : > { %v9493_v26 = vor.u32 %v3894_v39, %v3891_v63  ;;  %v9495_v44 = vpack.c.b16 %v3640_v17, %v3639_v22  ;;  %v1671_v36 = vld [vmem:[#allocation2 + $0x38] sm:$0xf]  ;;  %v2034_v60 = vshll.u32 %v1895_v3, 16  ;;  %v2038_v52 = vshrl.u32 %v1895_v3, 16  ;;  %v9497_v7 = vld [vmem:[#allocation2 + $0x3c] sm:$0xf]  ;;  %vm2803_vm15 = vmpackc.low %vm2691_vm13, %vm2691_vm13 }
 0x3e4   : > { %v2605_v56 = vsel %vm8969_vm9, %v1671_v36, 0  ;;  %v2606_v41 = vsel %vm8969_vm9, %v9497_v7, 0  ;;  %v2831_v32 = vsel %vm2803_vm15, 65537, %v12351_v42  ;;  %vm9506_vm2 = vcmp.ne.s32.totalorder %v3184_v29, %v8975_v62  ;;  %8113 = vst [vmem:[#allocation2 + $0x40] sm:$0xff] %v8074_v16  }
 0x3e5   : > { %v3896_v55 = vsel %vm3755_vm0, %v9429_v34, %v9493_v26  ;;  %v3683_v2 = vrot.slane %v9495_v44, 5  ;;  %v2036_v20 = vrot.slane %v2034_v60, 5  ;;  %v2040_v19 = vrot.slane %v2038_v52, 4 }
 0x3e6   : > { %4372 = vmatmul.bf16.gmra.mxu3 %v3896_v55  ;;  %v3445_v53 = vunpack.c.l.b16 %v2605_v56  ;;  %v3446_v50 = vunpack.c.l.b16 %v2606_v41  ;;  %v2966_v0 = vshrl.u32 %v2831_v32, 16  ;;  %v2969_v6 = vshll.u32 %v2831_v32, 16 }
 0x3e7   : > { %v3684_v25 = vsel %vm3673_vm14, %v3681_v24, %v3683_v2  ;;  %v2037_v48 = vsel %vm9003_vm12, %v9048_v43, %v2036_v20  ;;  %v2041_v34 = vor.u32 %v2040_v19, %v2036_v20  ;;  %vm3189_vm3 = vcmp.ne.s32.totalorder %v3185_v58, %v8978_v5 }
 0x3e8   : > { %v3907_v21 = vshrl.u32 %v3684_v25, 16  ;;  %v3910_v14 = vshll.u32 %v3684_v25, 16  ;;  %v2277_v40 = vunpack.c.l.b16 %v2037_v48  ;;  %v2278_v8 = vunpack.c.h.b16 %v2037_v48  ;;  %vm3190_vm4 = vmpackc.low %vm3189_vm3, %vm9506_vm2 }
 0x3e9   : > { %v2042_v18 = vrot.slane %v2041_v34, 4  ;;  %v3467_v45 = vpack.c.b16 %v3446_v50, %v3445_v53  ;;  %v9525_v11 = vrot.slane %v2966_v0, 7  ;;  %v3315_v30 = vsel %vm3190_vm4, %v1671_v36, 0 }
 0x3ea   : > { %v3909_v24 = vrot.slane %v3907_v21, 3  ;;  %v3912_v23 = vrot.slane %v3910_v14, 4  ;;  %vm2281_vm6 = vcmp.ne.s32.totalorder %v2277_v40, %v8975_v62  ;;  %vm2282_vm7 = vcmp.ne.s32.totalorder %v2278_v8, %v8978_v5 }
 0x3eb   : > { %v2047_v38 = vsel %vm9003_vm12, %v2042_v18, %v9009_v28  ;;  %vm2283_vm8 = vmpackc.low %vm2282_vm7, %vm2281_vm6  ;;  %v3529_v46 = vshrl.u32 %v3467_v45, 16  ;;  %v3532_v57 = vshll.u32 %v3467_v45, 16  ;;  %v2971_v9 = vor.u32 %v2969_v6, %v9525_v11  ;;  %v9539_v29 = vld [vmem:[#allocation2 + $0x40] sm:$0xf]  ;;  %v9541_v3 = vld [vmem:[#allocation2 + $0x44] sm:$0xf] }
 0x3ec   : > { %v9533_v1 = vor.u32 %v3912_v23, %v3909_v24  ;;  %v2284_v22 = vunpack.c.l.b16 %v2047_v38  ;;  %v2285_v12 = vunpack.c.h.b16 %v2047_v38  ;;  %v2408_v37 = vsel %vm2283_vm8, %v9403_v4, 0 }
 0x3ed   : > { %v3373_v27 = vunpack.c.l.b16 %v2408_v37  ;;  %v3531_v63 = vrot.slane %v3529_v46, 4  ;;  %v3534_v39 = vrot.slane %v3532_v57, 5  ;;  %v2972_v17 = vsel %vm9142_vm1, %v9136_v51, %v2971_v9 }
 0x3ee   : > { %v3914_v58 = vsel %vm3755_vm0, %v9454_v49, %v9533_v1  ;;  %vm2288_vm10 = vcmp.ne.s32.totalorder %v2284_v22, %v8975_v62  ;;  %vm2289_vm11 = vcmp.ne.s32.totalorder %v2285_v12, %v8978_v5  ;;  %v3191_v4 = vunpack.c.l.b16 %v2972_v17 }
 0x3ef   : > { %4530 = vmatmul.bf16.gmra.mxu0 %v3914_v58  ;;  %vm2290_vm13 = vmpackc.low %vm2289_vm11, %vm2288_vm10  ;;  %v9548_v16 = vor.u32 %v3534_v39, %v3531_v63  ;;  %v3192_v60 = vunpack.c.h.b16 %v2972_v17  ;;  %v3641_v52 = vunpack.c.l.b16 %v3315_v30  ;;  %v1644_v56 = vand.u32 15, %v8468_v31 }
 0x3f0   : > { %v2409_v41 = vsel %vm2290_vm13, %v1671_v36, 0  ;;  %vm3195_vm15 = vcmp.ne.s32.totalorder %v3191_v4, %v8975_v62  ;;  %v2607_v49 = vsel %vm8969_vm9, %v9539_v29, 0  ;;  %v2608_v32 = vsel %vm8969_vm9, %v9541_v3, 0 }
 0x3f1   : > { %v3374_v47 = vunpack.c.l.b16 %v2409_v41  ;;  %v3536_v55 = vsel %vm1911_vm5, %v9452_v10, %v9548_v16  ;;  %vm3196_vm2 = vcmp.ne.s32.totalorder %v3192_v60, %v8978_v5  ;;  %v1701_v20 = vadd.s32 4294967295, %v1644_v56 }
 0x3f2   : > { %v3925_v31 = vshrl.u32 %v3536_v55, 16  ;;  %v3928_v36 = vshll.u32 %v3536_v55, 16  ;;  %vm3197_vm3 = vmpackc.low %vm3196_vm2, %vm3195_vm15  ;;  %v3447_v19 = vunpack.c.l.b16 %v2607_v49  ;;  %v3448_v53 = vunpack.c.l.b16 %v2608_v32 }
 0x3f3   : > { %v3396_v50 = vpack.c.b16 %v3374_v47, %v3373_v27  ;;  %v3316_v0 = vsel %vm3197_vm3, %v9497_v7, 0  ;;  %vm1729_vm4 = vcmp.ge.s32.totalorder %v1701_v20, 0  ;;  %v1645_v6 = vand.u32 15, %v8482_v35 }
 0x3f4   : > { %v3927_v25 = vrot.slane %v3925_v31, 3  ;;  %v3930_v48 = vrot.slane %v3928_v36, 4  ;;  %v3642_v34 = vunpack.c.l.b16 %v3316_v0  ;;  %vm1869_vm6 = vmpackc.low %vm1729_vm4, %vm1729_vm4  ;;  %v3468_v21 = vpack.c.b16 %v3448_v53, %v3447_v19 }
 0x3f5   : > { %v3916_v10 = vshrl.u32 %v3396_v50, 16  ;;  %v3919_v14 = vshll.u32 %v3396_v50, 16  ;;  %v1897_v40 = vsel %vm1869_vm6, 65537, %v12351_v42  ;;  %v2637_v8 = vadd.s32 1, %v1645_v6 }
 0x3f6   : > { %v9565_v18 = vor.u32 %v3930_v48, %v3927_v25  ;;  %v9567_v45 = vpack.c.b16 %v3642_v34, %v3641_v52  ;;  %v2054_v30 = vshll.u32 %v1897_v40, 16  ;;  %v2058_v24 = vshrl.u32 %v1897_v40, 16 }
 0x3f7   : > { %v3918_v23 = vrot.slane %v3916_v10, 3  ;;  %v3921_v38 = vrot.slane %v3919_v14, 4  ;;  %v3538_v46 = vshrl.u32 %v3468_v21, 16  ;;  %v3541_v35 = vshll.u32 %v3468_v21, 16 }
 0x3f8   : > { %v3932_v57 = vsel %vm3755_vm0, %v9477_v13, %v9565_v18  ;;  %v3685_v9 = vrot.slane %v9567_v45, 5  ;;  %v2056_v22 = vrot.slane %v2054_v30, 5  ;;  %v2060_v12 = vrot.slane %v2058_v24, 4  ;;  %v12375_v24 = vld [vmem:[#allocation6_spill] sm:$0xff] }
 0x3f9   : > { %v9573_v37 = vor.u32 %v3921_v38, %v3918_v23  ;;  %4456 = vmatmul.bf16.gmra.mxu2 %v3932_v57  ;;  %v3540_v27 = vrot.slane %v3538_v46, 4  ;;  %v3543_v63 = vrot.slane %v3541_v35, 5  ;;  %vm2693_vm7 = vcmp.lt.s32.totalorder %v2637_v8, 16  ;;  %v12374_v8 = vld [vmem:[#allocation39_spill] sm:$0xff] }
 0x3fa   : > { %v3686_v39 = vsel %vm3673_vm14, %v3683_v2, %v3685_v9  ;;  %v2057_v13 = vsel %vm9003_vm12, %v9048_v43, %v2056_v22  ;;  %v2061_v17 = vor.u32 %v2060_v12, %v2056_v22  ;;  %vm2805_vm8 = vmpackc.low %vm2693_vm7, %vm2693_vm7  ;;  %v2973_v58 = vrot.slane %v9525_v11, 4 }
 0x3fb   : > { %v3923_v4 = vsel %vm3755_vm0, %v9493_v26, %v9573_v37  ;;  %v3934_v60 = vshrl.u32 %v3686_v39, 16  ;;  %v3937_v52 = vshll.u32 %v3686_v39, 16  ;;  %v2291_v56 = vunpack.c.l.b16 %v2057_v13 }
 0x3fc   : > { %4377 = vmatmul.bf16.gmra.mxu3 %v3923_v4  ;;  %v2062_v41 = vrot.slane %v2061_v17, 4  ;;  %v2292_v44 = vunpack.c.h.b16 %v2057_v13  ;;  %v9587_v49 = vor.u32 %v3543_v63, %v3540_v27  ;;  %v2833_v2 = vsel %vm2805_vm8, 65537, %v12351_v42 }
 0x3fd   : > { %v3936_v32 = vrot.slane %v3934_v60, 3  ;;  %v3939_v47 = vrot.slane %v3937_v52, 4  ;;  %vm2295_vm10 = vcmp.ne.s32.totalorder %v2291_v56, %v8975_v62  ;;  %v2981_v11 = vsel %vm9142_vm1, %v2973_v58, %v9132_v61  ;;  %v12376_v56 = vld [vmem:[#allocation40_spill] sm:$0xff] }
 0x3fe   : > { %v2067_v26 = vsel %vm9003_vm12, %v2062_v41, %v9009_v28  ;;  %vm2296_vm11 = vcmp.ne.s32.totalorder %v2292_v44, %v8978_v5  ;;  %v3545_v55 = vsel %vm1911_vm5, %v9548_v16, %v9587_v49  ;;  %v2984_v20 = vshrl.u32 %v2833_v2, 16  ;;  %v12377_v41 = vld [vmem:[#allocation41_spill] sm:$0xff] }
 0x3ff   : > { %v9601_v31 = vor.u32 %v3939_v47, %v3936_v32  ;;  %vm2297_vm13 = vmpackc.low %vm2296_vm11, %vm2295_vm10  ;;  %v2298_v36 = vunpack.c.l.b16 %v2067_v26  ;;  %v2299_v19 = vunpack.c.h.b16 %v2067_v26  ;;  %v3952_v53 = vshrl.u32 %v3545_v55, 16 }
 0x400   : > { %v2410_v50 = vsel %vm2297_vm13, %v9497_v7, 0  ;;  %v3955_v0 = vshll.u32 %v3545_v55, 16  ;;  %v2986_v6 = vrot.slane %v2984_v20, 7  ;;  %v2987_v25 = vshll.u32 %v2833_v2, 16 }
 0x401   : > { %v3941_v48 = vsel %vm3755_vm0, %v9533_v1, %v9601_v31  ;;  %vm2302_vm15 = vcmp.ne.s32.totalorder %v2298_v36, %v8975_v62  ;;  %vm2303_vm2 = vcmp.ne.s32.totalorder %v2299_v19, %v8978_v5  ;;  %v3375_v16 = vunpack.c.l.b16 %v2410_v50 }
 0x402   : > { %4535 = vmatmul.bf16.gmra.mxu0 %v3941_v48  ;;  %vm2304_vm3 = vmpackc.low %vm2303_vm2, %vm2302_vm15  ;;  %v3954_v34 = vrot.slane %v3952_v53, 3  ;;  %v3957_v21 = vrot.slane %v3955_v0, 4  ;;  %v2989_v10 = vor.u32 %v2987_v25, %v2986_v6  ;;  %v3198_v14 = vunpack.c.l.b16 %v2981_v11 }
 0x403   : > { %v2411_v7 = vsel %vm2304_vm3, %v9539_v29, 0  ;;  %v3199_v40 = vunpack.c.h.b16 %v2981_v11  ;;  %v8079_v30 = vpack.c.bf16 %v12374_v8, %v8887_v59  ;;  %v1618_v23 = vadd.s32 128, %v12375_v24 }
 0x404   : > { %v3376_v1 = vunpack.c.l.b16 %v2411_v7  ;;  %v9613_v38 = vor.u32 %v3957_v21, %v3954_v34  ;;  %v2990_v46 = vsel %vm9142_vm1, %v9136_v51, %v2989_v10  ;;  %vm3202_vm4 = vcmp.ne.s32.totalorder %v3198_v14, %v8975_v62 }
 0x405   : > { %vm3203_vm6 = vcmp.ne.s32.totalorder %v3199_v40, %v8978_v5  ;;  %v3205_v35 = vunpack.c.l.b16 %v2990_v46  ;;  %v3206_v57 = vunpack.c.h.b16 %v2990_v46  ;;  %8114 = vst [vmem:[#allocation2 + $0x48] sm:$0xff] %v8079_v30   ;;  %v1646_v22 = vand.u32 15, %v1618_v23 }
 0x406   : > { %v3397_v12 = vpack.c.b16 %v3376_v1, %v3375_v16  ;;  %v3959_v59 = vsel %vm3755_vm0, %v9565_v18, %v9613_v38  ;;  %vm3204_vm7 = vmpackc.low %vm3203_vm6, %vm3202_vm4  ;;  %v1619_v27 = vadd.s32 136, %v12375_v24  ;;  %v2991_v63 = vrot.slane %v2986_v6, 4 }
 0x407   : > { %vm3209_vm8 = vcmp.ne.s32.totalorder %v3205_v35, %v8975_v62  ;;  %vm3210_vm10 = vcmp.ne.s32.totalorder %v3206_v57, %v8978_v5  ;;  %v3317_v39 = vsel %vm3204_vm7, %v9539_v29, 0  ;;  %v1703_v13 = vadd.s32 4294967295, %v1646_v22 }
 0x408   : > { %v3943_v17 = vshrl.u32 %v3397_v12, 16  ;;  %v3946_v58 = vshll.u32 %v3397_v12, 16  ;;  %vm3211_vm11 = vmpackc.low %vm3210_vm10, %vm3209_vm8  ;;  %v3643_v4 = vunpack.c.l.b16 %v3317_v39  ;;  %v1647_v60 = vand.u32 15, %v1619_v27 }
 0x409   : > { %4461 = vmatmul.bf16.gmra.mxu2 %v3959_v59  ;;  %v3318_v52 = vsel %vm3211_vm11, %v9541_v3, 0  ;;  %vm1731_vm13 = vcmp.ge.s32.totalorder %v1703_v13, 0  ;;  %v2999_v18 = vsel %vm9142_vm1, %v2991_v63, %v9132_v61  ;;  %v8084_v44 = vpack.c.bf16 %v12377_v41, %v12376_v56  ;;  %v7466_v56 = vld [vmem:[%s12213_s7 + $0xf0] sm:$0xf]  ;;  %v7939_v41 = vld [vmem:[%s12213_s7 + $0xf4] sm:$0xf0] }
 0x40a   : > { %v3945_v2 = vrot.slane %v3943_v17, 3  ;;  %v3948_v32 = vrot.slane %v3946_v58, 4  ;;  %v3644_v29 = vunpack.c.l.b16 %v3318_v52  ;;  %vm1871_vm15 = vmpackc.low %vm1731_vm13, %vm1731_vm13  ;;  %v2639_v47 = vadd.s32 1, %v1647_v60 }
 0x40b   : > { %v1899_v11 = vsel %vm1871_vm15, 65537, %v12351_v42  ;;  %v3212_v26 = vunpack.c.l.b16 %v2999_v18  ;;  %v3213_v55 = vunpack.c.h.b16 %v2999_v18  ;;  %8115 = vst [vmem:[#allocation2 + $0x50] sm:$0xff] %v8084_v44  }
 0x40c   : > { %v9634_v20 = vor.u32 %v3948_v32, %v3945_v2  ;;  %v9636_v36 = vpack.c.b16 %v3644_v29, %v3643_v4  ;;  %v9638_v19 = vld [vmem:[#allocation2 + $0x48] sm:$0xf]  ;;  %v2074_v53 = vshll.u32 %v1899_v11, 16  ;;  %v2078_v50 = vshrl.u32 %v1899_v11, 16  ;;  %v9640_v0 = vld [vmem:[#allocation2 + $0x4c] sm:$0xf] }
 0x40d   : > { %v2609_v6 = vsel %vm8969_vm9, %v9638_v19, 0  ;;  %v2610_v25 = vsel %vm8969_vm9, %v9640_v0, 0  ;;  %vm2695_vm2 = vcmp.lt.s32.totalorder %v2639_v47, 16  ;;  %vm9649_vm3 = vcmp.ne.s32.totalorder %v3212_v26, %v8975_v62  ;;  %v7530_v29 = vld [vmem:[%s12213_s7 + $0x170] sm:$0xf] }
 0x40e   : > { %v3950_v16 = vsel %vm3755_vm0, %v9573_v37, %v9634_v20  ;;  %v3687_v34 = vrot.slane %v9636_v36, 5  ;;  %v2076_v21 = vrot.slane %v2074_v53, 5  ;;  %v2080_v10 = vrot.slane %v2078_v50, 4  ;;  %vm2807_vm4 = vmpackc.low %vm2695_vm2, %vm2695_vm2  ;;  %v7955_v47 = vld [vmem:[%s12213_s7 + $0x174] sm:$0xf0] }
 0x40f   : > { %4382 = vmatmul.bf16.gmra.mxu3 %v3950_v16  ;;  %v3449_v14 = vunpack.c.l.b16 %v2609_v6  ;;  %v3450_v7 = vunpack.c.l.b16 %v2610_v25  ;;  %v2835_v40 = vsel %vm2807_vm4, 65537, %v12351_v42  ;;  %vm9659_vm6 = vcmp.ne.s32.totalorder %v3213_v55, %v8978_v5  ;;  %v7402_v55 = vld [vmem:[%s12213_s7 + $0x70] sm:$0xf]  ;;  %v7923_v53 = vld [vmem:[%s12213_s7 + $0x74] sm:$0xf0] }
 0x410   : > { %v3688_v37 = vsel %vm3673_vm14, %v3685_v9, %v3687_v34  ;;  %v2077_v30 = vsel %vm9003_vm12, %v9048_v43, %v2076_v21  ;;  %v2081_v23 = vor.u32 %v2080_v10, %v2076_v21  ;;  %v3002_v1 = vshrl.u32 %v2835_v40, 16  ;;  %vm3218_vm11 = vmpackc.low %vm9659_vm6, %vm9649_vm3  ;;  %v4353_v10 = vpop.f32.mrf.mxu3 }
 0x411   : > { %v3961_v46 = vshrl.u32 %v3688_v37, 16  ;;  %v3964_v35 = vshll.u32 %v3688_v37, 16  ;;  %v2305_v57 = vunpack.c.l.b16 %v2077_v30  ;;  %v2306_v22 = vunpack.c.h.b16 %v2077_v30 }
 0x412   : > { %v2082_v12 = vrot.slane %v2081_v23, 4  ;;  %v3469_v59 = vpack.c.b16 %v3450_v7, %v3449_v14  ;;  %v9671_v27 = vrot.slane %v3002_v1, 7  ;;  %v3005_v63 = vshll.u32 %v2835_v40, 16  ;;  %v9720_v16 = vld [vmem:[#allocation2 + $0x50] sm:$0xf] }
 0x413   : > { %v3963_v39 = vrot.slane %v3961_v46, 3  ;;  %v3966_v13 = vrot.slane %v3964_v35, 4  ;;  %vm2309_vm7 = vcmp.ne.s32.totalorder %v2305_v57, %v8975_v62  ;;  %vm2310_vm8 = vcmp.ne.s32.totalorder %v2306_v22, %v8978_v5  ;;  %v9728_v40 = vld [vmem:[#allocation2 + $0x54] sm:$0xf] }
 0x414   : > { %v2087_v45 = vsel %vm9003_vm12, %v2082_v12, %v9009_v28  ;;  %vm2311_vm10 = vmpackc.low %vm2310_vm8, %vm2309_vm7  ;;  %v3547_v9 = vshrl.u32 %v3469_v59, 16  ;;  %v3550_v17 = vshll.u32 %v3469_v59, 16  ;;  %v3007_v58 = vor.u32 %v3005_v63, %v9671_v27 }
 0x415   : > { %v9679_v4 = vor.u32 %v3966_v13, %v3963_v39  ;;  %v2312_v60 = vunpack.c.l.b16 %v2087_v45  ;;  %v2313_v52 = vunpack.c.h.b16 %v2087_v45  ;;  %v2412_v18 = vsel %vm2311_vm10, %v9541_v3, 0 }
 0x416   : > { %v3377_v44 = vunpack.c.l.b16 %v2412_v18  ;;  %v3549_v2 = vrot.slane %v3547_v9, 4  ;;  %v3552_v32 = vrot.slane %v3550_v17, 5  ;;  %v3008_v3 = vsel %vm9142_vm1, %v9136_v51, %v3007_v58 }
 0x417   : > { %v3968_v11 = vsel %vm3755_vm0, %v9601_v31, %v9679_v4  ;;  %vm2316_vm13 = vcmp.ne.s32.totalorder %v2312_v60, %v8975_v62  ;;  %vm2317_vm15 = vcmp.ne.s32.totalorder %v2313_v52, %v8978_v5  ;;  %v3219_v26 = vunpack.c.l.b16 %v3008_v3 }
 0x418   : > { %4540 = vmatmul.bf16.gmra.mxu0 %v3968_v11  ;;  %vm2318_vm2 = vmpackc.low %vm2317_vm15, %vm2316_vm13  ;;  %v9712_v50 = vor.u32 %v3552_v32, %v3549_v2  ;;  %v3220_v6 = vunpack.c.h.b16 %v3008_v3  ;;  %v3319_v31 = vsel %vm3218_vm11, %v9638_v19, 0  ;;  %v7467_v25 = vor.u32 %v7939_v41, %v7466_v56 }
 0x419   : > { %v2413_v21 = vsel %vm2318_vm2, %v9638_v19, 0  ;;  %vm9724_vm4 = vcmp.ne.s32.totalorder %v3219_v26, %v8975_v62  ;;  %v3645_v14 = vunpack.c.l.b16 %v3319_v31  ;;  %v7531_v7 = vor.u32 %v7955_v47, %v7530_v29 }
 0x41a   : > { %v3378_v37 = vunpack.c.l.b16 %v2413_v21  ;;  %v3554_v48 = vsel %vm1911_vm5, %v9587_v49, %v9712_v50  ;;  %vm3224_vm3 = vcmp.ne.s32.totalorder %v3220_v6, %v8978_v5  ;;  %5112 = vmatpush.bf16.msra.mxu3 %v7467_v25  ;;  %v7403_v8 = vor.u32 %v7923_v53, %v7402_v55 }
 0x41b   : > { %v3979_v30 = vshrl.u32 %v3554_v48, 16  ;;  %v3982_v19 = vshll.u32 %v3554_v48, 16  ;;  %vm3225_vm6 = vmpackc.low %vm3224_vm3, %vm9724_vm4  ;;  %5181 = vmatpush.bf16.msra.mxu2 %v7531_v7  ;;  %v1620_v23 = vadd.s32 144, %v12375_v24  ;;  %v2611_v1 = vsel %vm8969_vm9, %v9720_v16, 0 }
 0x41c   : > { %v3398_v46 = vpack.c.b16 %v3378_v37, %v3377_v44  ;;  %v3320_v35 = vsel %vm3225_vm6, %v9640_v0, 0  ;;  %5043 = vmatpush.bf16.msra.mxu1 %v7403_v8  ;;  %v3451_v49 = vunpack.c.l.b16 %v2611_v1  ;;  %v2612_v57 = vsel %vm8969_vm9, %v9728_v40, 0  ;;  %v7458_v8 = vld [vmem:[%s12213_s7 + $0xe0] sm:$0xf] }
 0x41d   : > { %v3981_v22 = vrot.slane %v3979_v30, 3  ;;  %v3984_v12 = vrot.slane %v3982_v19, 4  ;;  %v3646_v59 = vunpack.c.l.b16 %v3320_v35  ;;  %v1648_v63 = vand.u32 15, %v1620_v23 }
 0x41e   : > { %v3970_v39 = vshrl.u32 %v3398_v46, 16  ;;  %v3973_v13 = vshll.u32 %v3398_v46, 16  ;;  %v3452_v45 = vunpack.c.l.b16 %v2612_v57  ;;  %v1621_v9 = vadd.s32 152, %v12375_v24  ;;  %v4432_v57 = vpop.f32.mrf.mxu2 }
 0x41f   : > { %v9745_v17 = vor.u32 %v3984_v12, %v3981_v22  ;;  %v9747_v58 = vpack.c.b16 %v3646_v59, %v3645_v14  ;;  %v1705_v60 = vadd.s32 4294967295, %v1648_v63  ;;  %v3009_v52 = vrot.slane %v9671_v27, 4 }
 0x420   : > { %v3972_v18 = vrot.slane %v3970_v39, 3  ;;  %v3975_v56 = vrot.slane %v3973_v13, 4  ;;  %v3470_v41 = vpack.c.b16 %v3452_v45, %v3451_v49  ;;  %v1649_v44 = vand.u32 15, %v1621_v9  ;;  %v7394_v39 = vld [vmem:[%s12213_s7 + $0x60] sm:$0xf]  ;;  %v4511_v9 = vpop.f32.mrf.mxu0 }
 0x421   : > { %v3986_v2 = vsel %vm3755_vm0, %v9613_v38, %v9745_v17  ;;  %v3689_v32 = vrot.slane %v9747_v58, 5  ;;  %vm1733_vm7 = vcmp.ge.s32.totalorder %v1705_v60, 0  ;;  %v3017_v3 = vsel %vm9142_vm1, %v3009_v52, %v9132_v61  ;;  %v9799_v13 = vld [vmem:[%s12212_s6] ss:$0 sm:$0xff] }
 0x422   : > { %v9757_v29 = vor.u32 %v3975_v56, %v3972_v18  ;;  %4466 = vmatmul.bf16.gmra.mxu2 %v3986_v2  ;;  %vm1873_vm8 = vmpackc.low %vm1733_vm7, %vm1733_vm7  ;;  %v3556_v27 = vshrl.u32 %v3470_v41, 16  ;;  %v3559_v47 = vshll.u32 %v3470_v41, 16  ;;  %v2641_v11 = vadd.s32 1, %v1649_v44  ;;  %v7386_v41 = vld [vmem:[%s12213_s7 + $0x50] sm:$0xf] }
 0x423   : > { %v3690_v38 = vsel %vm3673_vm14, %v3687_v34, %v3689_v32  ;;  %v1901_v26 = vsel %vm1873_vm8, 65537, %v12351_v42  ;;  %v3226_v55 = vunpack.c.l.b16 %v3017_v3  ;;  %v3227_v53 = vunpack.c.h.b16 %v3017_v3  ;;  %v7919_v44 = vld [vmem:[%s12213_s7 + $0x54] sm:$0xf0] }
 0x424   : > { %v3977_v6 = vsel %vm3755_vm0, %v9634_v20, %v9757_v29  ;;  %v3988_v31 = vshrl.u32 %v3690_v38, 16  ;;  %v3991_v25 = vshll.u32 %v3690_v38, 16  ;;  %v2094_v21 = vshll.u32 %v1901_v26, 16  ;;  %v7917_v38 = vld [vmem:[%s12213_s7 + $0x44] sm:$0xf0] }
 0x425   : > { %4387 = vmatmul.bf16.gmra.mxu3 %v3977_v6  ;;  %v2098_v14 = vshrl.u32 %v1901_v26, 16  ;;  %v3558_v7 = vrot.slane %v3556_v27, 4  ;;  %v3561_v37 = vrot.slane %v3559_v47, 5  ;;  %vm2697_vm10 = vcmp.lt.s32.totalorder %v2641_v11, 16  ;;  %v7378_v11 = vld [vmem:[%s12213_s7 + $0x40] sm:$0xf] }
 0x426   : > { %v3990_v36 = vrot.slane %v3988_v31, 3  ;;  %v3993_v48 = vrot.slane %v3991_v25, 4  ;;  %v2096_v34 = vrot.slane %v2094_v21, 5  ;;  %vm2809_vm11 = vmpackc.low %vm2697_vm10, %vm2697_vm10  ;;  %vm9769_vm13 = vcmp.ne.s32.totalorder %v3226_v55, %v8975_v62 }
 0x427   : > { %v2100_v30 = vrot.slane %v2098_v14, 4  ;;  %v9773_v20 = vor.u32 %v3561_v37, %v3558_v7  ;;  %v2837_v19 = vsel %vm2809_vm11, 65537, %v12351_v42  ;;  %vm9777_vm15 = vcmp.ne.s32.totalorder %v3227_v53, %v8978_v5  ;;  %v4355_v7 = vpop.f32.mrf.mxu3  ;;  %v9843_v37 = vld [vmem:[%s12213_s7 + $0x30] sm:$0xf] }
 0x428   : > { %v9781_v1 = vor.u32 %v3993_v48, %v3990_v36  ;;  %v2097_v46 = vsel %vm9003_vm12, %v9048_v43, %v2096_v34  ;;  %v3020_v35 = vshrl.u32 %v2837_v19, 16  ;;  %v3023_v49 = vshll.u32 %v2837_v19, 16  ;;  %vm3232_vm2 = vmpackc.low %vm9777_vm15, %vm9769_vm13  ;;  %v9848_v36 = vld [vmem:[%s12213_s7 + $0x34] sm:$0xf0] }
 0x429   : > { %v2101_v22 = vor.u32 %v2100_v30, %v2096_v34  ;;  %v2319_v12 = vunpack.c.l.b16 %v2097_v46  ;;  %v2320_v59 = vunpack.c.h.b16 %v2097_v46  ;;  %v3563_v63 = vsel %vm1911_vm5, %v9712_v50, %v9773_v20  ;;  %v7921_v50 = vld [vmem:[%s12213_s7 + $0x64] sm:$0xf0] }
 0x42a   : > { %v3995_v45 = vsel %vm3755_vm0, %v9679_v4, %v9781_v1  ;;  %v4006_v60 = vshrl.u32 %v3563_v63, 16  ;;  %v4009_v52 = vshll.u32 %v3563_v63, 16  ;;  %v9804_v18 = vrot.slane %v3020_v35, 7  ;;  %v7937_v30 = vld [vmem:[%s12213_s7 + $0xe4] sm:$0xf0] }
 0x42b   : > { %4545 = vmatmul.bf16.gmra.mxu0 %v3995_v45  ;;  %v2102_v56 = vrot.slane %v2101_v22, 4  ;;  %vm2323_vm4 = vcmp.ne.s32.totalorder %v2319_v12, %v8975_v62  ;;  %vm2324_vm3 = vcmp.ne.s32.totalorder %v2320_v59, %v8978_v5  ;;  %v9817_v4 = vsel %vm3232_vm2, %v9720_v16, 0  ;;  %v4434_v59 = vpop.f32.mrf.mxu2 }
 0x42c   : > { %vm2325_vm6 = vmpackc.low %vm2324_vm3, %vm2323_vm4  ;;  %v4008_v2 = vrot.slane %v4006_v60, 3  ;;  %v4011_v3 = vrot.slane %v4009_v52, 4  ;;  %v3025_v27 = vor.u32 %v3023_v49, %v9804_v18  ;;  %v3647_v47 = vunpack.c.l.b16 %v9817_v4  ;;  %v7522_v4 = vld [vmem:[%s12213_s7 + $0x160] sm:$0xf] }
 0x42d   : > { %v2107_v26 = vsel %vm9003_vm12, %v2102_v56, %v9009_v28  ;;  %v2414_v55 = vsel %vm2325_vm6, %v9640_v0, 0  ;;  %v7395_v53 = vor.u32 %v7921_v50, %v7394_v39  ;;  %v4354_v6 = vadd.f32 %v9799_v13, %v4353_v10  ;;  %v12391_v39 = vld [vmem:[#allocation43_spill] sm:$0xff] }
 0x42e   : > { %v2326_v31 = vunpack.c.l.b16 %v2107_v26  ;;  %v2327_v25 = vunpack.c.h.b16 %v2107_v26  ;;  %v3379_v21 = vunpack.c.l.b16 %v2414_v55  ;;  %v9838_v14 = vor.u32 %v4011_v3, %v4008_v2  ;;  %v12393_v2 = vld [vmem:[#allocation45_spill] sm:$0xff] }
 0x42f   : > { %v3026_v0 = vsel %vm9142_vm1, %v9136_v51, %v3025_v27  ;;  %5044 = vmatpush.bf16.msra.mxu1 %v7395_v53  ;;  %v4433_v10 = vadd.f32 %v4432_v57, %v4354_v6  ;;  %v7387_v48 = vor.u32 %v7919_v44, %v7386_v41  ;;  %v7379_v34 = vor.u32 %v7917_v38, %v7378_v11  ;;  %v12392_v44 = vld [vmem:[#allocation44_spill] sm:$0xff] }
 0x430   : > { %vm2330_vm7 = vcmp.ne.s32.totalorder %v2326_v31, %v8975_v62  ;;  %vm2331_vm8 = vcmp.ne.s32.totalorder %v2327_v25, %v8978_v5  ;;  %v4013_v19 = vsel %vm3755_vm0, %v9745_v17, %v9838_v14  ;;  %v3233_v23 = vunpack.c.l.b16 %v3026_v0  ;;  %v12390_v17 = vld [vmem:[#allocation42_spill] sm:$0xff] }
 0x431   : > { %vm2332_vm10 = vmpackc.low %vm2331_vm8, %vm2330_vm7  ;;  %v3234_v46 = vunpack.c.h.b16 %v3026_v0  ;;  %v4512_v35 = vadd.f32 %v4511_v9, %v4433_v10  ;;  %v4356_v49 = vadd.f32 %v9799_v13, %v4355_v7  ;;  %v7371_v57 = vor.u32 %v9848_v36, %v9843_v37 }
 0x432   : > { %v2415_v22 = vsel %vm2332_vm10, %v9720_v16, 0  ;;  %4471 = vmatmul.bf16.gmra.mxu2 %v4013_v19  ;;  %vm9869_vm11 = vcmp.ne.s32.totalorder %v3233_v23, %v8975_v62  ;;  %v7459_v63 = vor.u32 %v7937_v30, %v7458_v8  ;;  %v8089_v45 = vpack.c.bf16 %v12391_v39, %v12390_v17  ;;  %v4513_v16 = vpop.f32.mrf.mxu0  ;;  %v7913_v8 = vld [vmem:[%s12213_s7 + $0x24] sm:$0xf0] }
 0x433   : > { %v3380_v60 = vunpack.c.l.b16 %v2415_v22  ;;  %vm3238_vm13 = vcmp.ne.s32.totalorder %v3234_v46, %v8978_v5  ;;  %v4581_v9 = vmax.f32 %v4512_v35, 0.0  ;;  %5045 = vmatpush.bf16.msra.mxu1 %v7387_v48  ;;  %v4435_v52 = vadd.f32 %v4434_v59, %v4356_v49  ;;  %v4358_v46 = vpop.f32.mrf.mxu3 }
 0x434   : > { %vm3239_vm15 = vmpackc.low %vm3238_vm13, %vm9869_vm11  ;;  %5113 = vmatpush.bf16.msra.mxu3 %v7459_v63  ;;  %8116 = vst [vmem:[#allocation2 + $0x58] sm:$0xff] %v8089_v45   ;;  %v1622_v50 = vadd.s32 160, %v12375_v24  ;;  %v1623_v56 = vadd.s32 168, %v12375_v24  ;;  %v3027_v41 = vrot.slane %v9804_v18, 4  ;;  %v8094_v3 = vpack.c.bf16 %v12393_v2, %v12392_v44 }
 0x435   : > { %v3399_v27 = vpack.c.b16 %v3380_v60, %v3379_v21  ;;  %v3322_v11 = vsel %vm3239_vm15, %v9728_v40, 0  ;;  %v9884_v38 = vmin.f32 %v4581_v9, 6.0  ;;  %v4514_v26 = vadd.f32 %v4513_v16, %v4435_v52  ;;  %v7362_v21 = vld [vmem:[%s12213_s7 + $0x20] sm:$0xf] }
 0x436   : > { %v3648_v55 = vunpack.c.l.b16 %v3322_v11  ;;  %v1650_v53 = vand.u32 15, %v1622_v50  ;;  %v1651_v6 = vand.u32 15, %v1623_v56  ;;  %v3035_v31 = vsel %vm9142_vm1, %v3027_v41, %v9132_v61  ;;  %8117 = vst [vmem:[#allocation2 + $0x60] sm:$0xff] %v8094_v3  }
 0x437   : > { %v3997_v25 = vshrl.u32 %v3399_v27, 16  ;;  %v4000_v7 = vshll.u32 %v3399_v27, 16  ;;  %5046 = vmatpush.bf16.msra.mxu1 %v7379_v34  ;;  %v4582_v18 = vmax.f32 %v4514_v26, 0.0  ;;  %v3240_v37 = vunpack.c.l.b16 %v3035_v31 }
 0x438   : > { %v9894_v36 = vpack.c.b16 %v3648_v55, %v3647_v47  ;;  %v1707_v0 = vadd.s32 4294967295, %v1650_v53  ;;  %v2643_v10 = vadd.s32 1, %v1651_v6  ;;  %v3241_v48 = vunpack.c.h.b16 %v3035_v31  ;;  %v7953_v47 = vld [vmem:[%s12213_s7 + $0x164] sm:$0xf0]  ;;  %v4437_v6 = vpop.f32.mrf.mxu2 }
 0x439   : > { %v3999_v30 = vrot.slane %v3997_v25, 3  ;;  %v4002_v19 = vrot.slane %v4000_v7, 4  ;;  %vm9900_vm2 = vcmp.ne.s32.totalorder %v3240_v37, %v8975_v62  ;;  %v7363_v23 = vor.u32 %v7913_v8, %v7362_v21  ;;  %v7354_v8 = vld [vmem:[%s12213_s7 + $0x10] sm:$0xf] }
 0x43a   : > { %v3691_v35 = vrot.slane %v9894_v36, 5  ;;  %vm1735_vm4 = vcmp.ge.s32.totalorder %v1707_v0, 0  ;;  %vm2699_vm3 = vcmp.lt.s32.totalorder %v2643_v10, 16  ;;  %vm9912_vm6 = vcmp.ne.s32.totalorder %v3241_v48, %v8978_v5  ;;  %v4516_v25 = vpop.f32.mrf.mxu0 }
 0x43b   : > { %v9916_v22 = vor.u32 %v4002_v19, %v3999_v30  ;;  %5047 = vmatpush.bf16.msra.mxu1 %v7371_v57  ;;  %v9918_v12 = vld [vmem:[#allocation2 + $0x58] sm:$0xf]  ;;  %vm1875_vm7 = vmpackc.low %vm1735_vm4, %vm1735_vm4  ;;  %v9920_v59 = vld [vmem:[#allocation2 + $0x5c] sm:$0xf]  ;;  %v7523_v63 = vor.u32 %v7953_v47, %v7522_v4  ;;  %v4359_v17 = vadd.f32 %v9799_v13, %v4358_v46  ;;  %v9923_v39 = vmin.f32 %v4582_v18, 6.0 }
 0x43c   : > { %v3692_v45 = vsel %vm3673_vm14, %v3689_v32, %v3691_v35  ;;  %v1903_v60 = vsel %vm1875_vm7, 65537, %v12351_v42  ;;  %v2613_v57 = vsel %vm8969_vm9, %v9918_v12, 0  ;;  %v2614_v9 = vsel %vm8969_vm9, %v9920_v59, 0  ;;  %vm2811_vm8 = vmpackc.low %vm2699_vm3, %vm2699_vm3  ;;  %v7911_v30 = vld [vmem:[%s12213_s7 + $0x14] sm:$0xf0] }
 0x43d   : > { %v4004_v52 = vsel %vm3755_vm0, %v9757_v29, %v9916_v22  ;;  %v4015_v16 = vshrl.u32 %v3692_v45, 16  ;;  %v4018_v50 = vshll.u32 %v3692_v45, 16  ;;  %v2114_v58 = vshll.u32 %v1903_v60, 16  ;;  %vm3246_vm10 = vmpackc.low %vm9912_vm6, %vm9900_vm2  ;;  %5182 = vmatpush.bf16.msra.mxu2 %v7523_v63 }
 0x43e   : > { %4392 = vmatmul.bf16.gmra.mxu3 %v4004_v52  ;;  %v2118_v32 = vshrl.u32 %v1903_v60, 16  ;;  %v3453_v56 = vunpack.c.l.b16 %v2613_v57  ;;  %v3454_v41 = vunpack.c.l.b16 %v2614_v9  ;;  %v2839_v44 = vsel %vm2811_vm8, 65537, %v12351_v42 }
 0x43f   : > { %v4017_v2 = vrot.slane %v4015_v16, 3  ;;  %v4020_v3 = vrot.slane %v4018_v50, 4  ;;  %v2116_v27 = vrot.slane %v2114_v58, 5  ;;  %v3038_v11 = vshrl.u32 %v2839_v44, 16  ;;  %5048 = vmatpush.bf16.msra.mxu1 %v7363_v23  ;;  %v4360_v50 = vpop.f32.mrf.mxu3 }
 0x440   : > { %v2120_v29 = vrot.slane %v2118_v32, 4  ;;  %v3471_v26 = vpack.c.b16 %v3454_v41, %v3453_v56  ;;  %v3041_v55 = vshll.u32 %v2839_v44, 16  ;;  %v9946_v53 = vsel %vm3246_vm10, %v9918_v12, 0 }
 0x441   : > { %v9948_v31 = vor.u32 %v4020_v3, %v4017_v2  ;;  %v2117_v7 = vsel %vm9003_vm12, %v9048_v43, %v2116_v27  ;;  %v9953_v18 = vrot.slane %v3038_v11, 7  ;;  %v3649_v37 = vunpack.c.l.b16 %v9946_v53 }
 0x442   : > { %v2121_v21 = vor.u32 %v2120_v29, %v2116_v27  ;;  %v2333_v0 = vunpack.c.l.b16 %v2117_v7  ;;  %v2334_v10 = vunpack.c.h.b16 %v2117_v7  ;;  %v3565_v48 = vshrl.u32 %v3471_v26, 16 }
 0x443   : > { %v4022_v19 = vsel %vm3755_vm0, %v9781_v1, %v9948_v31  ;;  %v3568_v34 = vshll.u32 %v3471_v26, 16  ;;  %v3043_v4 = vor.u32 %v3041_v55, %v9953_v18  ;;  %v4438_v47 = vadd.f32 %v4437_v6, %v4359_v17  ;;  %v7346_v1 = vld [vmem:[%s12213_s7] sm:$0xf]  ;;  %v7909_v17 = vld [vmem:[%s12213_s7 + $0x4] sm:$0xf0]  ;;  %v4439_v55 = vpop.f32.mrf.mxu2 }
 0x444   : > { %4550 = vmatmul.bf16.gmra.mxu0 %v4022_v19  ;;  %v2122_v23 = vrot.slane %v2121_v21, 4  ;;  %vm2337_vm11 = vcmp.ne.s32.totalorder %v2333_v0, %v8975_v62  ;;  %vm2338_vm13 = vcmp.ne.s32.totalorder %v2334_v10, %v8978_v5  ;;  %v3567_v46 = vrot.slane %v3565_v48, 4  ;;  %v7404_v0 = vld [vmem:[%s12213_s7 + $0x78] sm:$0xf0] }
 0x445   : > { %vm2339_vm15 = vmpackc.low %vm2338_vm13, %vm2337_vm11  ;;  %v3570_v49 = vrot.slane %v3568_v34, 5  ;;  %v3044_v63 = vsel %vm9142_vm1, %v9136_v51, %v3043_v4  ;;  %v4517_v45 = vadd.f32 %v4516_v25, %v4438_v47  ;;  %v7355_v60 = vor.u32 %v7911_v30, %v7354_v8  ;;  %v4518_v25 = vpop.f32.mrf.mxu0 }
 0x446   : > { %v2127_v57 = vsel %vm9003_vm12, %v2122_v23, %v9009_v28  ;;  %v2416_v9 = vsel %vm2339_vm15, %v9728_v40, 0  ;;  %v3247_v52 = vunpack.c.l.b16 %v3044_v63  ;;  %v3248_v16 = vunpack.c.h.b16 %v3044_v63 }
 0x447   : > { %v2340_v58 = vunpack.c.l.b16 %v2127_v57  ;;  %v2341_v32 = vunpack.c.h.b16 %v2127_v57  ;;  %v3381_v56 = vunpack.c.l.b16 %v2416_v9  ;;  %v9981_v41 = vor.u32 %v3570_v49, %v3567_v46  ;;  %5049 = vmatpush.bf16.msra.mxu1 %v7355_v60  ;;  %v10019_v9 = vld [vmem:[#allocation2 + $0x64] sm:$0xf] }
 0x448   : > { %vm3251_vm2 = vcmp.ne.s32.totalorder %v3247_v52, %v8975_v62  ;;  %vm3252_vm4 = vcmp.ne.s32.totalorder %v3248_v16, %v8978_v5  ;;  %v4583_v44 = vmax.f32 %v4517_v45, 0.0  ;;  %v7347_v2 = vor.u32 %v7909_v17, %v7346_v1 }
 0x449   : > { %vm2344_vm3 = vcmp.ne.s32.totalorder %v2340_v58, %v8975_v62  ;;  %vm2345_vm6 = vcmp.ne.s32.totalorder %v2341_v32, %v8978_v5  ;;  %v3572_v40 = vsel %vm1911_vm5, %v9773_v20, %v9981_v41  ;;  %vm3253_vm7 = vmpackc.low %vm3252_vm4, %vm3251_vm2  ;;  %v4361_v3 = vadd.f32 %v9799_v13, %v4360_v50  ;;  %v7922_v20 = vld [vmem:[%s12213_s7 + $0x74] sm:$0xf] }
 0x44a   : > { %vm2346_vm8 = vmpackc.low %vm2345_vm6, %vm2344_vm3  ;;  %v4033_v27 = vshrl.u32 %v3572_v40, 16  ;;  %v4036_v11 = vshll.u32 %v3572_v40, 16  ;;  %v3324_v29 = vsel %vm3253_vm7, %v9920_v59, 0  ;;  %v4611_v26 = vmin.f32 %v4583_v44, 6.0 }
 0x44b   : > { %v2417_v53 = vsel %vm2346_vm8, %v9918_v12, 0  ;;  %v3650_v6 = vunpack.c.l.b16 %v3324_v29  ;;  %5050 = vmatpush.bf16.msra.mxu1 %v7347_v2  ;;  %v4440_v7 = vadd.f32 %v4439_v55, %v4361_v3  ;;  %v4637_v21 = vpack.c.bf16 %v9884_v38, %v9884_v38  ;;  %v10005_v38 = vld [vmem:[#allocation2 + $0x60] sm:$0xf] }
 0x44c   : > { %v3382_v10 = vunpack.c.l.b16 %v2417_v53  ;;  %v4035_v48 = vrot.slane %v4033_v27, 3  ;;  %v4038_v8 = vrot.slane %v4036_v11, 4  ;;  %v4639_v30 = vpack.c.bf16 %v4611_v26, %v4611_v26 }
 0x44d   : > { %v10001_v12 = vpack.c.b16 %v3650_v6, %v3649_v37  ;;  %v4519_v19 = vadd.f32 %v4518_v25, %v4440_v7  ;;  %v4638_v34 = vpack.c.bf16 %v9923_v39, %v9923_v39  ;;  %v4689_v4 = vunpack.c.l.b16 %v4637_v21  ;;  %v10036_v55 = vpop.f32.mrf.mxu0 }
 0x44e   : > { %v3400_v47 = vpack.c.b16 %v3382_v10, %v3381_v56  ;;  %v10007_v23 = vor.u32 %v4038_v8, %v4035_v48  ;;  %v10009_v46 = vunpack.c.l.b16 %v4639_v30  ;;  %v7407_v49 = vor.u32 %v7922_v20, %v7404_v0  ;;  %v12398_v20 = vld [vmem:[#allocation46_spill] sm:$0xff]  ;;  %v12399_v0 = vld [vmem:[#allocation47_spill] sm:$0xff] }
 0x44f   : > { %v3693_v63 = vrot.slane %v10001_v12, 5  ;;  %v4584_v45 = vmax.f32 %v4519_v19, 0.0  ;;  %v4690_v60 = vunpack.c.l.b16 %v4638_v34  ;;  %v1624_v37 = vadd.s32 176, %v12375_v24 }
 0x450   : > { %v4024_v1 = vshrl.u32 %v3400_v47, 16  ;;  %v4027_v17 = vshll.u32 %v3400_v47, 16  ;;  %v4040_v39 = vsel %vm3755_vm0, %v9838_v14, %v10007_v23  ;;  %5250 = vmatpush.bf16.msrb.mxu1 %v7407_v49  ;;  %v2615_v57 = vsel %vm8969_vm9, %v10005_v38, 0  ;;  %v4363_v47 = vpop.f32.mrf.mxu3 }
 0x451   : > { %4476 = vmatmul.bf16.gmra.mxu2 %v4040_v39  ;;  %v3694_v52 = vsel %vm3673_vm14, %v3691_v35, %v3693_v63  ;;  %v4612_v16 = vmin.f32 %v4584_v45, 6.0  ;;  %v10026_v50 = vpack.c.b16 %v4690_v60, %v4689_v4  ;;  %v1652_v58 = vand.u32 15, %v1624_v37 }
 0x452   : > { %v4026_v32 = vrot.slane %v4024_v1, 3  ;;  %v4029_v14 = vrot.slane %v4027_v17, 4  ;;  %v4042_v56 = vshrl.u32 %v3694_v52, 16  ;;  %v4045_v44 = vshll.u32 %v3694_v52, 16  ;;  %v7450_v1 = vld [vmem:[%s12213_s7 + $0xd0] sm:$0xf] }
 0x453   : > { %v4640_v2 = vpack.c.bf16 %v4612_v16, %v4612_v16  ;;  %5051 = vmatmul.bf16.vlgmr.msra.gmra.mxu1 %v10026_v50  ;;  %v1709_v40 = vadd.s32 4294967295, %v1652_v58  ;;  %v3455_v3 = vunpack.c.l.b16 %v2615_v57  ;;  %v2616_v27 = vsel %vm8969_vm9, %v10019_v9, 0  ;;  %v7935_v17 = vld [vmem:[%s12213_s7 + $0xd4] sm:$0xf0] }
 0x454   : > { %v10032_v36 = vor.u32 %v4029_v14, %v4026_v32  ;;  %v4044_v35 = vrot.slane %v4042_v56, 3  ;;  %v4047_v11 = vrot.slane %v4045_v44, 4  ;;  %v3456_v29 = vunpack.c.l.b16 %v2616_v27  ;;  %v4442_v14 = vpop.f32.mrf.mxu2 }
 0x455   : > { %v10034_v26 = vunpack.c.l.b16 %v4640_v2  ;;  %vm1737_vm10 = vcmp.ge.s32.totalorder %v1709_v40, 0  ;;  %v1625_v53 = vadd.s32 184, %v12375_v24  ;;  %v3045_v6 = vrot.slane %v9953_v18, 4 }
 0x456   : > { %v4031_v25 = vsel %vm3755_vm0, %v9916_v22, %v10032_v36  ;;  %v10043_v7 = vor.u32 %v4047_v11, %v4044_v35  ;;  %vm1877_vm11 = vmpackc.low %vm1737_vm10, %vm1737_vm10  ;;  %v3472_v21 = vpack.c.b16 %v3456_v29, %v3455_v3  ;;  %v8099_v10 = vpack.c.bf16 %v12399_v0, %v12398_v20  ;;  %v4523_v0 = vpop.f32.mrf.mxu0 }
 0x457   : > { %4397 = vmatmul.bf16.gmra.mxu3 %v4031_v25  ;;  %v1905_v48 = vsel %vm1877_vm11, 65537, %v12351_v42  ;;  %v1653_v8 = vand.u32 15, %v1625_v53  ;;  %v3053_v30 = vsel %vm9142_vm1, %v3045_v6, %v9132_v61  ;;  %v10052_v18 = vadd.s32 192, %v12375_v24 }
 0x458   : > { %v4049_v22 = vsel %vm3755_vm0, %v9948_v31, %v10043_v7  ;;  %v2134_v19 = vshll.u32 %v1905_v48, 16  ;;  %v2138_v34 = vshrl.u32 %v1905_v48, 16  ;;  %v3574_v4 = vshrl.u32 %v3472_v21, 16  ;;  %8118 = vst [vmem:[#allocation2 + $0x68] sm:$0xff] %v8099_v10  }
 0x459   : > { %4555 = vmatmul.bf16.gmra.mxu0 %v4049_v22  ;;  %v3577_v49 = vshll.u32 %v3472_v21, 16  ;;  %v2645_v45 = vadd.s32 1, %v1653_v8  ;;  %v3254_v60 = vunpack.c.l.b16 %v3053_v30  ;;  %v3255_v37 = vunpack.c.h.b16 %v3053_v30  ;;  %v4365_v22 = vpop.f32.mrf.mxu3 }
 0x45a   : > { %v2136_v39 = vrot.slane %v2134_v19, 5  ;;  %v2140_v31 = vrot.slane %v2138_v34, 4  ;;  %v3576_v57 = vrot.slane %v3574_v4, 4  ;;  %v4364_v52 = vadd.f32 %v9799_v13, %v4363_v47 }
 0x45b   : > { %v3579_v16 = vrot.slane %v3577_v49, 5  ;;  %vm2701_vm13 = vcmp.lt.s32.totalorder %v2645_v45, 16  ;;  %vm10065_vm15 = vcmp.ne.s32.totalorder %v3254_v60, %v8975_v62  ;;  %vm10070_vm2 = vcmp.ne.s32.totalorder %v3255_v37, %v8978_v5  ;;  %v7951_v49 = vld [vmem:[%s12213_s7 + $0x154] sm:$0xf0] }
 0x45c   : > { %v2137_v56 = vsel %vm9003_vm12, %v9048_v43, %v2136_v39  ;;  %v2141_v44 = vor.u32 %v2140_v31, %v2136_v39  ;;  %vm2813_vm4 = vmpackc.low %vm2701_vm13, %vm2701_vm13  ;;  %v4443_v2 = vadd.f32 %v4442_v14, %v4364_v52  ;;  %v7451_v40 = vor.u32 %v7935_v17, %v7450_v1 }
 0x45d   : > { %v2347_v3 = vunpack.c.l.b16 %v2137_v56  ;;  %v2348_v27 = vunpack.c.h.b16 %v2137_v56  ;;  %v10077_v35 = vor.u32 %v3579_v16, %v3576_v57  ;;  %v2841_v11 = vsel %vm2813_vm4, 65537, %v12351_v42  ;;  %vm3260_vm3 = vmpackc.low %vm10070_vm2, %vm10065_vm15  ;;  %v4444_v56 = vpop.f32.mrf.mxu2 }
 0x45e   : > { %v2142_v29 = vrot.slane %v2141_v44, 4  ;;  %v3056_v53 = vshrl.u32 %v2841_v11, 16  ;;  %v3059_v6 = vshll.u32 %v2841_v11, 16  ;;  %v10085_v25 = vsel %vm3260_vm3, %v10005_v38, 0  ;;  %5114 = vmatpush.bf16.msra.mxu3 %v7451_v40 }
 0x45f   : > { %vm2351_vm6 = vcmp.ne.s32.totalorder %v2347_v3, %v8975_v62  ;;  %vm2352_vm7 = vcmp.ne.s32.totalorder %v2348_v27, %v8978_v5  ;;  %v3581_v21 = vsel %vm1911_vm5, %v9981_v41, %v10077_v35  ;;  %v3651_v20 = vunpack.c.l.b16 %v10085_v25  ;;  %v7514_v41 = vld [vmem:[%s12213_s7 + $0x150] sm:$0xf] }
 0x460   : > { %v2147_v10 = vsel %vm9003_vm12, %v2142_v29, %v9009_v28  ;;  %vm2353_vm8 = vmpackc.low %vm2352_vm7, %vm2351_vm6  ;;  %v4060_v48 = vshrl.u32 %v3581_v21, 16  ;;  %v4063_v8 = vshll.u32 %v3581_v21, 16  ;;  %v10096_v30 = vrot.slane %v3056_v53, 7  ;;  %v10119_v52 = vld [vmem:[#allocation2 + $0x68] sm:$0xf] }
 0x461   : > { %v2354_v19 = vunpack.c.l.b16 %v2147_v10  ;;  %v2355_v34 = vunpack.c.h.b16 %v2147_v10  ;;  %v2418_v4 = vsel %vm2353_vm8, %v9920_v59, 0  ;;  %v4522_v47 = vadd.f32 %v10036_v55, %v4443_v2 }
 0x462   : > { %v3383_v45 = vunpack.c.l.b16 %v2418_v4  ;;  %v4062_v60 = vrot.slane %v4060_v48, 3  ;;  %v4065_v37 = vrot.slane %v4063_v8, 4  ;;  %v3061_v1 = vor.u32 %v3059_v6, %v10096_v30  ;;  %v10135_v6 = vpop.f32.mrf.mxu0 }
 0x463   : > { %vm2358_vm10 = vcmp.ne.s32.totalorder %v2354_v19, %v8975_v62  ;;  %vm2359_vm11 = vcmp.ne.s32.totalorder %v2355_v34, %v8978_v5  ;;  %v4585_v59 = vmax.f32 %v4522_v47, 0.0  ;;  %v4366_v55 = vadd.f32 %v9799_v13, %v4365_v22 }
 0x464   : > { %vm2360_vm13 = vmpackc.low %vm2359_vm11, %vm2358_vm10  ;;  %v10110_v17 = vor.u32 %v4065_v37, %v4062_v60  ;;  %v3062_v39 = vsel %vm9142_vm1, %v9136_v51, %v3061_v1  ;;  %v10117_v31 = vpack.c.b16 %v10034_v26, %v10009_v46  ;;  %v7515_v57 = vor.u32 %v7951_v49, %v7514_v41  ;;  %v10127_v26 = vld [vmem:[#allocation2 + $0x6c] sm:$0xf] }
 0x465   : > { %v2419_v16 = vsel %vm2360_vm13, %v10005_v38, 0  ;;  %v3261_v58 = vunpack.c.l.b16 %v3062_v39  ;;  %v3262_v32 = vunpack.c.h.b16 %v3062_v39  ;;  %v4613_v14 = vmin.f32 %v4585_v59, 6.0  ;;  %v4447_v12 = vpop.f32.mrf.mxu2 }
 0x466   : > { %v3384_v44 = vunpack.c.l.b16 %v2419_v16  ;;  %v4067_v2 = vsel %vm3755_vm0, %v10007_v23, %v10110_v17  ;;  %v4445_v40 = vadd.f32 %v4444_v56, %v4366_v55  ;;  %5056 = vmatmul.bf16.gmra.mxu1 %v10117_v31  ;;  %5183 = vmatpush.bf16.msra.mxu2 %v7515_v57  ;;  %v1654_v46 = vand.u32 15, %v10052_v18 }
 0x467   : > { %4481 = vmatmul.bf16.gmra.mxu2 %v4067_v2  ;;  %vm3265_vm15 = vcmp.ne.s32.totalorder %v3261_v58, %v8975_v62  ;;  %vm3266_vm2 = vcmp.ne.s32.totalorder %v3262_v32, %v8978_v5  ;;  %v4641_v38 = vpack.c.bf16 %v4613_v14, %v4613_v14  ;;  %v2617_v3 = vsel %vm8969_vm9, %v10119_v52, 0  ;;  %v4368_v58 = vpop.f32.mrf.mxu3 }
 0x468   : > { %v3401_v27 = vpack.c.b16 %v3384_v44, %v3383_v45  ;;  %vm3267_vm4 = vmpackc.low %vm3266_vm2, %vm3265_vm15  ;;  %v4524_v23 = vadd.f32 %v4523_v0, %v4445_v40  ;;  %v1711_v11 = vadd.s32 4294967295, %v1654_v46  ;;  %v3457_v29 = vunpack.c.l.b16 %v2617_v3 }
 0x469   : > { %v3326_v53 = vsel %vm3267_vm4, %v10019_v9, 0  ;;  %v4693_v18 = vunpack.c.l.b16 %v4641_v38  ;;  %v2618_v21 = vsel %vm8969_vm9, %v10127_v26, 0  ;;  %v1627_v10 = vadd.s32 200, %v12375_v24 }
 0x46a   : > { %v4051_v48 = vshrl.u32 %v3401_v27, 16  ;;  %v4054_v8 = vshll.u32 %v3401_v27, 16  ;;  %v3652_v22 = vunpack.c.l.b16 %v3326_v53  ;;  %v4586_v19 = vmax.f32 %v4524_v23, 0.0 }
 0x46b   : > { %vm1739_vm3 = vcmp.ge.s32.totalorder %v1711_v11, 0  ;;  %v3458_v34 = vunpack.c.l.b16 %v2618_v21  ;;  %v1655_v0 = vand.u32 15, %v1627_v10  ;;  %v3063_v4 = vrot.slane %v10096_v30, 4  ;;  %v10169_v21 = vpop.f32.mrf.mxu0 }
 0x46c   : > { %v4053_v47 = vrot.slane %v4051_v48, 3  ;;  %v4056_v41 = vrot.slane %v4054_v8, 4  ;;  %v10144_v49 = vpack.c.b16 %v3652_v22, %v3651_v20  ;;  %v4614_v45 = vmin.f32 %v4586_v19, 6.0  ;;  %vm1879_vm6 = vmpackc.low %vm1739_vm3, %vm1739_vm3 }
 0x46d   : > { %v1907_v60 = vsel %vm1879_vm6, 65537, %v12351_v42  ;;  %v3473_v37 = vpack.c.b16 %v3458_v34, %v3457_v29  ;;  %v2647_v1 = vadd.s32 1, %v1655_v0  ;;  %v10150_v59 = vsel %vm9142_vm1, %v3063_v4, %v9132_v61 }
 0x46e   : > { %v10152_v55 = vor.u32 %v4056_v41, %v4053_v47  ;;  %v3695_v30 = vrot.slane %v10144_v49, 5  ;;  %v4642_v39 = vpack.c.bf16 %v4614_v45, %v4614_v45  ;;  %v2154_v57 = vshll.u32 %v1907_v60, 16 }
 0x46f   : > { %v2158_v25 = vshrl.u32 %v1907_v60, 16  ;;  %v3583_v20 = vshrl.u32 %v3473_v37, 16  ;;  %v3586_v16 = vshll.u32 %v3473_v37, 16  ;;  %vm2703_vm7 = vcmp.lt.s32.totalorder %v2647_v1, 16 }
 0x470   : > { %v4058_v32 = vsel %vm3755_vm0, %v10032_v36, %v10152_v55  ;;  %v3696_v14 = vsel %vm3673_vm14, %v3693_v63, %v3695_v30  ;;  %v4694_v56 = vunpack.c.l.b16 %v4642_v39  ;;  %v2156_v44 = vrot.slane %v2154_v57, 5  ;;  %vm2815_vm8 = vmpackc.low %vm2703_vm7, %vm2703_vm7 }
 0x471   : > { %4402 = vmatmul.bf16.gmra.mxu3 %v4058_v32  ;;  %v4069_v2 = vshrl.u32 %v3696_v14, 16  ;;  %v4072_v40 = vshll.u32 %v3696_v14, 16  ;;  %v2160_v46 = vrot.slane %v2158_v25, 4  ;;  %v3585_v38 = vrot.slane %v3583_v20, 4  ;;  %v7920_v32 = vld [vmem:[%s12213_s7 + $0x64] sm:$0xf] }
 0x472   : > { %v10163_v3 = vpack.c.b16 %v4694_v56, %v4693_v18  ;;  %v2157_v36 = vsel %vm9003_vm12, %v9048_v43, %v2156_v44  ;;  %v3588_v27 = vrot.slane %v3586_v16, 5  ;;  %v2843_v23 = vsel %vm2815_vm8, 65537, %v12351_v42  ;;  %v7396_v14 = vld [vmem:[%s12213_s7 + $0x68] sm:$0xf0]  ;;  %v4370_v56 = vpop.f32.mrf.mxu3 }
 0x473   : > { %v4071_v11 = vrot.slane %v4069_v2, 3  ;;  %v4074_v63 = vrot.slane %v4072_v40, 4  ;;  %v2161_v29 = vor.u32 %v2160_v46, %v2156_v44  ;;  %v2361_v53 = vunpack.c.l.b16 %v2157_v36 }
 0x474   : > { %v2362_v10 = vunpack.c.h.b16 %v2157_v36  ;;  %v10171_v48 = vor.u32 %v3588_v27, %v3585_v38  ;;  %v3074_v8 = vshrl.u32 %v2843_v23, 16  ;;  %v3077_v18 = vshll.u32 %v2843_v23, 16 }
 0x475   : > { %v10173_v22 = vor.u32 %v4074_v63, %v4071_v11  ;;  %v2162_v19 = vrot.slane %v2161_v29, 4  ;;  %vm10176_vm10 = vcmp.ne.s32.totalorder %v2361_v53, %v8975_v62  ;;  %v3268_v0 = vunpack.c.l.b16 %v10150_v59  ;;  %v4449_v11 = vpop.f32.mrf.mxu2  ;;  %v12410_v63 = vld [vmem:[#allocation48_spill] sm:$0xff]  ;;  %v12411_v29 = vld [vmem:[#allocation49_spill] sm:$0xff] }
 0x476   : > { %vm2366_vm11 = vcmp.ne.s32.totalorder %v2362_v10, %v8978_v5  ;;  %v3590_v4 = vsel %vm1911_vm5, %v10077_v35, %v10171_v48  ;;  %v10185_v47 = vrot.slane %v3074_v8, 7  ;;  %v3269_v41 = vunpack.c.h.b16 %v10150_v59  ;;  %5061 = vmatmul.bf16.gmra.mxu1 %v10163_v3 }
 0x477   : > { %v4076_v45 = vsel %vm3755_vm0, %v10043_v7, %v10173_v22  ;;  %v2167_v60 = vsel %vm9003_vm12, %v2162_v19, %v9009_v28  ;;  %vm2367_vm13 = vmpackc.low %vm2366_vm11, %vm10176_vm10  ;;  %v4087_v37 = vshrl.u32 %v3590_v4, 16  ;;  %v4090_v1 = vshll.u32 %v3590_v4, 16 }
 0x478   : > { %4560 = vmatmul.bf16.gmra.mxu0 %v4076_v45  ;;  %v2368_v35 = vunpack.c.l.b16 %v2167_v60  ;;  %v2369_v39 = vunpack.c.h.b16 %v2167_v60  ;;  %v2420_v59 = vsel %vm2367_vm13, %v10019_v9, 0  ;;  %v3079_v57 = vor.u32 %v3077_v18, %v10185_v47 }
 0x479   : > { %v3385_v25 = vunpack.c.l.b16 %v2420_v59  ;;  %v4089_v20 = vrot.slane %v4087_v37, 3  ;;  %v4092_v16 = vrot.slane %v4090_v1, 4  ;;  %vm10200_vm15 = vcmp.ne.s32.totalorder %v3268_v0, %v8975_v62 }
 0x47a   : > { %vm2372_vm2 = vcmp.ne.s32.totalorder %v2368_v35, %v8975_v62  ;;  %vm2373_vm4 = vcmp.ne.s32.totalorder %v2369_v39, %v8978_v5  ;;  %v3080_v9 = vsel %vm9142_vm1, %v9136_v51, %v3079_v57  ;;  %vm10216_vm3 = vcmp.ne.s32.totalorder %v3269_v41, %v8978_v5 }
 0x47b   : > { %vm2374_vm6 = vmpackc.low %vm2373_vm4, %vm2372_vm2  ;;  %v10220_v2 = vor.u32 %v4092_v16, %v4089_v20  ;;  %v3275_v40 = vunpack.c.l.b16 %v3080_v9  ;;  %v3276_v46 = vunpack.c.h.b16 %v3080_v9  ;;  %v4369_v38 = vadd.f32 %v9799_v13, %v4368_v58  ;;  %v10236_v58 = vpop.f32.mrf.mxu0 }
 0x47c   : > { %v2421_v36 = vsel %vm2374_vm6, %v10119_v52, 0  ;;  %vm3274_vm7 = vmpackc.low %vm10216_vm3, %vm10200_vm15  ;;  %v7399_v27 = vor.u32 %v7920_v32, %v7396_v14  ;;  %v4371_v23 = vadd.f32 %v9799_v13, %v4370_v56  ;;  %v8104_v53 = vpack.c.bf16 %v12411_v29, %v12410_v63 }
 0x47d   : > { %v3386_v10 = vunpack.c.l.b16 %v2421_v36  ;;  %v4094_v8 = vsel %vm3755_vm0, %v10110_v17, %v10220_v2  ;;  %vm3279_vm8 = vcmp.ne.s32.totalorder %v3275_v40, %v8975_v62  ;;  %vm3280_vm10 = vcmp.ne.s32.totalorder %v3276_v46, %v8978_v5  ;;  %v4373_v36 = vpop.f32.mrf.mxu3 }
 0x47e   : > { %4486 = vmatmul.bf16.gmra.mxu2 %v4094_v8  ;;  %vm3281_vm11 = vmpackc.low %vm3280_vm10, %vm3279_vm8  ;;  %v3327_v18 = vsel %vm3274_vm7, %v10119_v52, 0  ;;  %v4448_v13 = vadd.f32 %v4447_v12, %v4369_v38  ;;  %5251 = vmatpush.bf16.msrb.mxu1 %v7399_v27  ;;  %v4450_v19 = vadd.f32 %v4449_v11, %v4371_v23  ;;  %8119 = vst [vmem:[#allocation2 + $0x70] sm:$0xff] %v8104_v53   ;;  %v1628_v34 = vadd.s32 208, %v12375_v24  ;;  %v10261_v27 = vpop.f32.mrf.mxu2 }
 0x47f   : > { %v3402_v0 = vpack.c.b16 %v3386_v10, %v3385_v25  ;;  %v3328_v4 = vsel %vm3281_vm11, %v10127_v26, 0  ;;  %v3653_v17 = vunpack.c.l.b16 %v3327_v18  ;;  %v1629_v41 = vadd.s32 216, %v12375_v24 }
 0x480   : > { %v3654_v45 = vunpack.c.l.b16 %v3328_v4  ;;  %v4527_v60 = vadd.f32 %v10135_v6, %v4448_v13  ;;  %v4529_v37 = vadd.f32 %v10169_v21, %v4450_v19  ;;  %v1656_v1 = vand.u32 15, %v1628_v34 }
 0x481   : > { %v4078_v35 = vshrl.u32 %v3402_v0, 16  ;;  %v4081_v52 = vshll.u32 %v3402_v0, 16  ;;  %v1657_v12 = vand.u32 15, %v1629_v41  ;;  %v3081_v39 = vrot.slane %v10185_v47, 4 }
 0x482   : > { %v10245_v59 = vpack.c.b16 %v3654_v45, %v3653_v17  ;;  %v4587_v57 = vmax.f32 %v4527_v60, 0.0  ;;  %v4588_v25 = vmax.f32 %v4529_v37, 0.0  ;;  %v1713_v20 = vadd.s32 4294967295, %v1656_v1 }
 0x483   : > { %v4080_v16 = vrot.slane %v4078_v35, 3  ;;  %v4083_v7 = vrot.slane %v4081_v52, 4  ;;  %v2649_v32 = vadd.s32 1, %v1657_v12  ;;  %v3089_v24 = vsel %vm9142_vm1, %v3081_v39, %v9132_v61  ;;  %v10268_v49 = vpop.f32.mrf.mxu0 }
 0x484   : > { %v3697_v6 = vrot.slane %v10245_v59, 5  ;;  %v4615_v21 = vmin.f32 %v4587_v57, 6.0  ;;  %v4616_v14 = vmin.f32 %v4588_v25, 6.0  ;;  %vm1741_vm13 = vcmp.ge.s32.totalorder %v1713_v20, 0  ;;  %v7938_v57 = vld [vmem:[%s12213_s7 + $0xf4] sm:$0xf] }
 0x485   : > { %v10251_v56 = vor.u32 %v4083_v7, %v4080_v16  ;;  %v10253_v47 = vld [vmem:[#allocation2 + $0x70] sm:$0xf]  ;;  %vm1881_vm15 = vmpackc.low %vm1741_vm13, %vm1741_vm13  ;;  %vm2705_vm2 = vcmp.lt.s32.totalorder %v2649_v32, 16  ;;  %v3282_v9 = vunpack.c.l.b16 %v3089_v24  ;;  %v3283_v44 = vunpack.c.h.b16 %v3089_v24  ;;  %v10266_v53 = vld [vmem:[#allocation2 + $0x74] sm:$0xf] }
 0x486   : > { %v3698_v40 = vsel %vm3673_vm14, %v3695_v30, %v3697_v6  ;;  %v4643_v61 = vpack.c.bf16 %v4615_v21, %v4615_v21  ;;  %v4644_v46 = vpack.c.bf16 %v4616_v14, %v4616_v14  ;;  %v1909_v38 = vsel %vm1881_vm15, 65537, %v12351_v42  ;;  %vm2817_vm4 = vmpackc.low %vm2705_vm2, %vm2705_vm2  ;;  %v7936_v7 = vld [vmem:[%s12213_s7 + $0xe4] sm:$0xf]  ;;  %v7460_v32 = vld [vmem:[%s12213_s7 + $0xe8] sm:$0xf0]  ;;  %v4375_v21 = vpop.f32.mrf.mxu3  ;;  %v10314_v14 = vpop.f32.mrf.mxu2 }
 0x487   : > { %v4085_v23 = vsel %vm3755_vm0, %v10152_v55, %v10251_v56  ;;  %v4096_v11 = vshrl.u32 %v3698_v40, 16  ;;  %v4099_v63 = vshll.u32 %v3698_v40, 16  ;;  %v2174_v29 = vshll.u32 %v1909_v38, 16  ;;  %v7444_v16 = vld [vmem:[%s12213_s7 + $0xc8] sm:$0xf0] }
 0x488   : > { %4407 = vmatmul.bf16.gmra.mxu3 %v4085_v23  ;;  %v4695_v30 = vunpack.c.l.b16 %v4643_v61  ;;  %v4696_v10 = vunpack.c.l.b16 %v4644_v46  ;;  %v2178_v8 = vshrl.u32 %v1909_v38, 16  ;;  %v2619_v18 = vsel %vm8969_vm9, %v10253_v47, 0 }
 0x489   : > { %v4098_v13 = vrot.slane %v4096_v11, 3  ;;  %v4101_v19 = vrot.slane %v4099_v63, 4  ;;  %v2176_v34 = vrot.slane %v2174_v29, 5  ;;  %v3459_v55 = vunpack.c.l.b16 %v2619_v18  ;;  %v10330_v11 = vld [vmem:[%s12212_s6] ss:$0 sm:$0xff] }
 0x48a   : > { %v10273_v0 = vpack.c.b16 %v4696_v10, %v4695_v30  ;;  %v2180_v4 = vrot.slane %v2178_v8, 4  ;;  %v2620_v17 = vsel %vm8969_vm9, %v10266_v53, 0  ;;  %v2845_v41 = vsel %vm2817_vm4, 65537, %v12351_v42 }
 0x48b   : > { %v10279_v45 = vor.u32 %v4101_v19, %v4098_v13  ;;  %v2177_v60 = vsel %vm9003_vm12, %v9048_v43, %v2176_v34  ;;  %v3460_v37 = vunpack.c.l.b16 %v2620_v17  ;;  %v3092_v1 = vshrl.u32 %v2845_v41, 16  ;;  %v10317_v38 = vpop.f32.mrf.mxu0 }
 0x48c   : > { %v2181_v35 = vor.u32 %v2180_v4, %v2176_v34  ;;  %v2375_v52 = vunpack.c.l.b16 %v2177_v60  ;;  %v2376_v12 = vunpack.c.h.b16 %v2177_v60  ;;  %v3095_v39 = vshll.u32 %v2845_v41, 16  ;;  %5066 = vmatmul.bf16.gmra.mxu1 %v10273_v0  ;;  %v7506_v34 = vld [vmem:[%s12213_s7 + $0x140] sm:$0xf] }
 0x48d   : > { %v4103_v42 = vsel %vm3755_vm0, %v10173_v22, %v10279_v45  ;;  %v3474_v25 = vpack.c.b16 %v3460_v37, %v3459_v55  ;;  %v10294_v20 = vrot.slane %v3092_v1, 7  ;;  %vm10297_vm9 = vcmp.ne.s32.totalorder %v3282_v9, %v8975_v62  ;;  %v7949_v55 = vld [vmem:[%s12213_s7 + $0x144] sm:$0xf0] }
 0x48e   : > { %4565 = vmatmul.bf16.gmra.mxu0 %v4103_v42  ;;  %v2182_v24 = vrot.slane %v2181_v35, 4  ;;  %vm2379_vm3 = vcmp.ne.s32.totalorder %v2375_v52, %v8975_v62  ;;  %vm2380_vm6 = vcmp.ne.s32.totalorder %v2376_v12, %v8978_v5  ;;  %vm10310_vm7 = vcmp.ne.s32.totalorder %v3283_v44, %v8978_v5 }
 0x48f   : > { %vm2381_vm8 = vmpackc.low %vm2380_vm6, %vm2379_vm3  ;;  %v3592_v9 = vshrl.u32 %v3474_v25, 16  ;;  %v3595_v40 = vshll.u32 %v3474_v25, 16  ;;  %v3097_v61 = vor.u32 %v3095_v39, %v10294_v20  ;;  %v7471_v46 = vor.u32 %v7938_v57, %v7468_v54  ;;  %v7918_v39 = vld [vmem:[%s12213_s7 + $0x54] sm:$0xf]  ;;  %v7932_v25 = vld [vmem:[%s12213_s7 + $0xc4] sm:$0xf] }
 0x490   : > { %v2187_v23 = vsel %vm9003_vm12, %v2182_v24, %v9009_v28  ;;  %v2422_v44 = vsel %vm2381_vm8, %v10127_v26, 0  ;;  %vm3288_vm10 = vmpackc.low %vm10310_vm7, %vm10297_vm9  ;;  %v4374_v63 = vadd.f32 %v10330_v11, %v4373_v36  ;;  %v7463_v29 = vor.u32 %v7936_v7, %v7460_v32  ;;  %v7442_v28 = vld [vmem:[%s12213_s7 + $0xc0] sm:$0xf]  ;;  %v7933_v26 = vld [vmem:[%s12213_s7 + $0xc4] sm:$0xf0]  ;;  %v10391_v7 = vpop.f32.mrf.mxu3  ;;  %v10393_v32 = vpop.f32.mrf.mxu2 }
 0x491   : > { %v2382_v30 = vunpack.c.l.b16 %v2187_v23  ;;  %v2383_v10 = vunpack.c.h.b16 %v2187_v23  ;;  %v3387_v8 = vunpack.c.l.b16 %v2422_v44  ;;  %v3594_v33 = vrot.slane %v3592_v9, 4  ;;  %5319 = vmatpush.bf16.msra.mxu0 %v7471_v46 }
 0x492   : > { %v3597_v18 = vrot.slane %v3595_v40, 5  ;;  %v3098_v13 = vsel %vm9142_vm1, %v9136_v51, %v3097_v61  ;;  %v3329_v36 = vsel %vm3288_vm10, %v10253_v47, 0  ;;  %v4453_v19 = vadd.f32 %v10261_v27, %v4374_v63  ;;  %v7934_v51 = vld [vmem:[%s12213_s7 + $0xd4] sm:$0xf] }
 0x493   : > { %vm2386_vm12 = vcmp.ne.s32.totalorder %v2382_v30, %v8975_v62  ;;  %vm2387_vm11 = vcmp.ne.s32.totalorder %v2383_v10, %v8978_v5  ;;  %v3289_v4 = vunpack.c.l.b16 %v3098_v13  ;;  %v3290_v17 = vunpack.c.h.b16 %v3098_v13  ;;  %v10397_v40 = vpop.f32.mrf.mxu0 }
 0x494   : > { %vm2388_vm1 = vmpackc.low %vm2387_vm11, %vm2386_vm12  ;;  %v10358_v27 = vor.u32 %v3597_v18, %v3594_v33  ;;  %v3655_v41 = vunpack.c.l.b16 %v3329_v36  ;;  %v4532_v60 = vadd.f32 %v10236_v58, %v4453_v19  ;;  %v7443_v37 = vor.u32 %v7933_v26, %v7442_v28  ;;  %v7388_v58 = vld [vmem:[%s12213_s7 + $0x58] sm:$0xf0] }
 0x495   : > { %v2423_v1 = vsel %vm2388_vm1, %v10253_v47, 0  ;;  %vm10363_vm13 = vcmp.ne.s32.totalorder %v3289_v4, %v8975_v62  ;;  %vm10368_vm15 = vcmp.ne.s32.totalorder %v3290_v17, %v8978_v5  ;;  %5320 = vmatpush.bf16.msra.mxu0 %v7463_v29  ;;  %v7507_v12 = vor.u32 %v7949_v55, %v7506_v34  ;;  %v7927_v17 = vld [vmem:[%s12213_s7 + $0x94] sm:$0xf0] }
 0x496   : > { %v3388_v47 = vunpack.c.l.b16 %v2423_v1  ;;  %v3599_v57 = vsel %vm1911_vm5, %v10171_v48, %v10358_v27  ;;  %vm3295_vm2 = vmpackc.low %vm10368_vm15, %vm10363_vm13  ;;  %v4589_v54 = vmax.f32 %v4532_v60, 0.0  ;;  %5115 = vmatpush.bf16.msra.mxu3 %v7443_v37  ;;  %v7455_v42 = vor.u32 %v7934_v51, %v7452_v15  ;;  %v7931_v60 = vld [vmem:[%s12213_s7 + $0xb4] sm:$0xf0]  ;;  %v7498_v37 = vld [vmem:[%s12213_s7 + $0x130] sm:$0xf] }
 0x497   : > { %v4114_v48 = vshrl.u32 %v3599_v57, 16  ;;  %v4117_v24 = vshll.u32 %v3599_v57, 16  ;;  %v3330_v22 = vsel %vm3295_vm2, %v10266_v53, 0  ;;  %5184 = vmatpush.bf16.msra.mxu2 %v7507_v12  ;;  %v4376_v9 = vadd.f32 %v10330_v11, %v4375_v21 }
 0x498   : > { %v3403_v61 = vpack.c.b16 %v3388_v47, %v3387_v8  ;;  %v3656_v46 = vunpack.c.l.b16 %v3330_v22  ;;  %v4617_v23 = vmin.f32 %v4589_v54, 6.0  ;;  %v7391_v44 = vor.u32 %v7918_v39, %v7388_v58  ;;  %v10443_v59 = vpop.f32.mrf.mxu3 }
 0x499   : > { %v4116_v63 = vrot.slane %v4114_v48, 3  ;;  %v4119_v29 = vrot.slane %v4117_v24, 4  ;;  %5321 = vmatpush.bf16.msra.mxu0 %v7455_v42  ;;  %v4455_v30 = vadd.f32 %v10314_v14, %v4376_v9  ;;  %v7447_v10 = vor.u32 %v7932_v25, %v7444_v16  ;;  %v7930_v42 = vld [vmem:[%s12213_s7 + $0xb4] sm:$0xf]  ;;  %v7436_v24 = vld [vmem:[%s12213_s7 + $0xb8] sm:$0xf0] }
 0x49a   : > { %v4105_v33 = vshrl.u32 %v3403_v61, 16  ;;  %v4108_v28 = vshll.u32 %v3403_v61, 16  ;;  %v10400_v26 = vpack.c.b16 %v3656_v46, %v3655_v41  ;;  %5252 = vmatpush.bf16.msrb.mxu1 %v7391_v44  ;;  %v2389_v8 = vunpack.c.l.b16 %v9048_v43  ;;  %v2621_v9 = vld [vmem:[#allocation2 + $0x78] sm:$0x1] }
 0x49b   : > { %v10402_v18 = vor.u32 %v4119_v29, %v4116_v63  ;;  %v4534_v21 = vadd.f32 %v10268_v49, %v4455_v30  ;;  %v2390_v13 = vunpack.c.h.b16 %v9048_v43  ;;  %v4645_v55 = vpack.c.bf16 %v4617_v23, %v4617_v23  ;;  %v7434_v43 = vld [vmem:[%s12213_s7 + $0xb0] sm:$0xf]  ;;  %v10451_v39 = vpop.f32.mrf.mxu0  ;;  %v7426_v23 = vld [vmem:[%s12213_s7 + $0xa0] sm:$0xf] }
 0x49c   : > { %v4107_v36 = vrot.slane %v4105_v33, 3  ;;  %v4110_v19 = vrot.slane %v4108_v28, 4  ;;  %v3699_v34 = vrot.slane %v10400_v26, 5  ;;  %vm10412_vm5 = vcmp.ne.s32.totalorder %v2389_v8, %v8975_v62  ;;  %v7945_v33 = vld [vmem:[%s12213_s7 + $0x124] sm:$0xf0] }
 0x49d   : > { %v4121_v14 = vsel %vm3755_vm0, %v10220_v2, %v10402_v18  ;;  %v4590_v4 = vmax.f32 %v4534_v21, 0.0  ;;  %5322 = vmatpush.bf16.msra.mxu0 %v7447_v10  ;;  %vm10417_vm4 = vcmp.ne.s32.totalorder %v2390_v13, %v8978_v5  ;;  %v4141_v15 = vshrl.u32 %v10358_v27, 16  ;;  %v7490_v10 = vld [vmem:[%s12213_s7 + $0x120] sm:$0xf] }
 0x49e   : > { %v10424_v51 = vor.u32 %v4110_v19, %v4107_v36  ;;  %4491 = vmatmul.bf16.gmra.mxu2 %v4121_v14  ;;  %v3700_v2 = vsel %vm3673_vm14, %v3697_v6, %v3699_v34  ;;  %vm2395_vm9 = vmpackc.low %vm10417_vm4, %vm10412_vm5  ;;  %v4144_v41 = vshll.u32 %v10358_v27, 16  ;;  %v10445_v6 = vpop.f32.mrf.mxu2  ;;  %v7947_v27 = vld [vmem:[%s12213_s7 + $0x134] sm:$0xf0]  ;;  %v3099_v48 = vrot.slane %v10294_v20, 4  ;;  %v7929_v20 = vld [vmem:[%s12213_s7 + $0xa4] sm:$0xf0] }
 0x49f   : > { %v4123_v1 = vshrl.u32 %v3700_v2, 16  ;;  %v4126_v35 = vshll.u32 %v3700_v2, 16  ;;  %v4618_v52 = vmin.f32 %v4590_v4, 6.0  ;;  %v2424_v12 = vsel %vm2395_vm9, %v10266_v53, 0  ;;  %v7928_v36 = vld [vmem:[%s12213_s7 + $0xa4] sm:$0xf] }
 0x4a0   : > { %v4112_v58 = vsel %vm3755_vm0, %v10251_v56, %v10424_v51  ;;  %v3389_v47 = vunpack.c.l.b16 %v2424_v12  ;;  %v10456_v57 = vrot.slane %v4141_v15, 3  ;;  %v10458_v54 = vrot.slane %v4144_v41, 4  ;;  %v7428_v19 = vld [vmem:[%s12213_s7 + $0xa8] sm:$0xf0]  ;;  %v7418_v4 = vld [vmem:[%s12213_s7 + $0x90] sm:$0xf]  ;;  %v4383_v15 = vpop.f32.mrf.mxu3 }
 0x4a1   : > { %4412 = vmatmul.bf16.gmra.mxu3 %v4112_v58  ;;  %v4125_v53 = vrot.slane %v4123_v1, 3  ;;  %v4128_v25 = vrot.slane %v4126_v35, 4  ;;  %v4646_v16 = vpack.c.bf16 %v4618_v52, %v4618_v52  ;;  %v4697_v56 = vunpack.c.l.b16 %v4645_v55  ;;  %v7926_v35 = vld [vmem:[%s12213_s7 + $0x94] sm:$0xf]  ;;  %v7916_v58 = vld [vmem:[%s12213_s7 + $0x44] sm:$0xf] }
 0x4a2   : > { %v3404_v22 = vpack.c.b16 %v3389_v47, %v3389_v47  ;;  %v7435_v61 = vor.u32 %v7931_v60, %v7434_v43  ;;  %v7499_v46 = vor.u32 %v7947_v27, %v7498_v37  ;;  %v3296_v29 = vunpack.c.l.b16 %v3099_v48  ;;  %v7420_v27 = vld [vmem:[%s12213_s7 + $0x98] sm:$0xf0]  ;;  %v7380_v47 = vld [vmem:[%s12213_s7 + $0x48] sm:$0xf0] }
 0x4a3   : > { %v10470_v44 = vor.u32 %v4128_v25, %v4125_v53  ;;  %v4698_v63 = vunpack.c.l.b16 %v4646_v16  ;;  %v3297_v30 = vunpack.c.h.b16 %v3099_v48  ;;  %v4147_v8 = vor.u32 %v10458_v54, %v10456_v57  ;;  %v4543_v53 = vpop.f32.mrf.mxu0 }
 0x4a4   : > { %v4132_v28 = vshrl.u32 %v3404_v22, 16  ;;  %v4135_v21 = vshll.u32 %v3404_v22, 16  ;;  %5116 = vmatpush.bf16.msra.mxu3 %v7435_v61  ;;  %5185 = vmatpush.bf16.msra.mxu2 %v7499_v46  ;;  %v7439_v13 = vor.u32 %v7930_v42, %v7436_v24  ;;  %vm3300_vm3 = vcmp.ne.s32.totalorder %v3296_v29, %v8975_v62  ;;  %v7482_v62 = vld [vmem:[%s12213_s7 + $0x110] sm:$0xf]  ;;  %v7925_v42 = vld [vmem:[%s12213_s7 + $0x84] sm:$0xf0] }
 0x4a5   : > { %v4130_v55 = vsel %vm3755_vm0, %v10279_v45, %v10470_v44  ;;  %v10492_v14 = vpack.c.b16 %v4698_v63, %v4697_v56  ;;  %vm3301_vm6 = vcmp.ne.s32.totalorder %v3297_v30, %v8978_v5  ;;  %v4379_v45 = vadd.f32 %v10330_v11, %v10391_v7  ;;  %v7943_v5 = vld [vmem:[%s12213_s7 + $0x114] sm:$0xf0]  ;;  %v7941_v56 = vld [vmem:[%s12213_s7 + $0x104] sm:$0xf0]  ;;  %v7924_v61 = vld [vmem:[%s12213_s7 + $0x84] sm:$0xf] }
 0x4a6   : > { %4570 = vmatmul.bf16.gmra.mxu0 %v4130_v55  ;;  %v4134_v49 = vrot.slane %v4132_v28, 3  ;;  %v4137_v43 = vrot.slane %v4135_v21, 4  ;;  %vm3302_vm7 = vmpackc.low %vm3301_vm6, %vm3300_vm3  ;;  %v7427_v2 = vor.u32 %v7929_v20, %v7426_v23  ;;  %v4462_v41 = vpop.f32.mrf.mxu2  ;;  %v7491_v37 = vor.u32 %v7945_v33, %v7490_v10 }
 0x4a7   : > { %v3331_v60 = vsel %vm3302_vm7, %v2621_v9, 0  ;;  %5323 = vmatpush.bf16.msra.mxu0 %v7439_v13  ;;  %v7431_v1 = vor.u32 %v7928_v36, %v7428_v19  ;;  %5071 = vmatmul.bf16.gmra.mxu1 %v10492_v14  ;;  %v4458_v52 = vadd.f32 %v10393_v32, %v4379_v45  ;;  %v7419_v12 = vor.u32 %v7927_v17, %v7418_v4  ;;  %v7410_v32 = vld [vmem:[%s12213_s7 + $0x80] sm:$0xf] }
 0x4a8   : > { %v3657_v7 = vunpack.c.l.b16 %v3331_v60  ;;  %5117 = vmatpush.bf16.msra.mxu3 %v7427_v2  ;;  %5186 = vmatpush.bf16.msra.mxu2 %v7491_v37  ;;  %v7483_v57 = vor.u32 %v7943_v5, %v7482_v62  ;;  %v4381_v54 = vadd.f32 %v10330_v11, %v10443_v59  ;;  %v4138_v25 = vor.u32 %v4137_v43, %v4134_v49  ;;  %v7474_v59 = vld [vmem:[%s12213_s7 + $0x100] sm:$0xf]  ;;  %v4385_v21 = vpop.f32.mrf.mxu3 }
 0x4a9   : > { %v4148_v16 = vsel %vm3755_vm0, %v10402_v18, %v4147_v8  ;;  %v4537_v24 = vadd.f32 %v10317_v38, %v4458_v52  ;;  %v7423_v22 = vor.u32 %v7926_v35, %v7420_v27  ;;  %v7412_v38 = vld [vmem:[%s12213_s7 + $0x88] sm:$0xf0]  ;;  %v4384_v18 = vadd.f32 %v10330_v11, %v4383_v15  ;;  %v7914_v35 = vld [vmem:[%s12213_s7 + $0x34] sm:$0xf] }
 0x4aa   : > { %v3672_v48 = vpack.c.b16 %v3657_v7, %v3657_v7  ;;  %v4460_v9 = vadd.f32 %v10445_v6, %v4381_v54  ;;  %v7383_v46 = vor.u32 %v7916_v58, %v7380_v47  ;;  %v7411_v29 = vor.u32 %v7925_v42, %v7410_v32  ;;  %v7372_v7 = vld [vmem:[%s12213_s7 + $0x38] sm:$0xf0] }
 0x4ab   : > { %5324 = vmatpush.bf16.msra.mxu0 %v7431_v1  ;;  %v4591_v63 = vmax.f32 %v4537_v24, 0.0  ;;  %v7475_v20 = vor.u32 %v7941_v56, %v7474_v59  ;;  %v4139_v6 = vsel %vm3755_vm0, %v10424_v51, %v4138_v25  ;;  %v7415_v28 = vor.u32 %v7924_v61, %v7412_v38  ;;  %v4546_v2 = vpop.f32.mrf.mxu0 }
 0x4ac   : > { %v3701_v23 = vrot.slane %v3672_v48, 5  ;;  %5118 = vmatpush.bf16.msra.mxu3 %v7419_v12  ;;  %5187 = vmatpush.bf16.msra.mxu2 %v7483_v57  ;;  %v4539_v30 = vadd.f32 %v10397_v40, %v4460_v9  ;;  %v4463_v55 = vadd.f32 %v4462_v41, %v4384_v18  ;;  %v4386_v40 = vadd.f32 %v10330_v11, %v4385_v21 }
 0x4ad   : > { %5253 = vmatpush.bf16.msrb.mxu1 %v7383_v46  ;;  %v4619_v33 = vmin.f32 %v4591_v63, 6.0  ;;  %v7375_v12 = vor.u32 %v7914_v35, %v7372_v7 }
 0x4ae   : > { %4496 = vmatmul.bf16.gmra.mxu2 %v4148_v16  ;;  %v3702_v10 = vsel %vm3673_vm14, %v3699_v34, %v3701_v23  ;;  %v4464_v8 = vpop.f32.mrf.mxu2  ;;  %v4592_v19 = vmax.f32 %v4539_v30, 0.0  ;;  %v4542_v45 = vadd.f32 %v10451_v39, %v4463_v55 }
 0x4af   : > { %v4150_v13 = vshrl.u32 %v3702_v10, 16  ;;  %v4153_v36 = vshll.u32 %v3702_v10, 16  ;;  %5325 = vmatpush.bf16.msra.mxu0 %v7423_v22  ;;  %v4647_v17 = vpack.c.bf16 %v4619_v33, %v4619_v33  ;;  %v4465_v26 = vadd.f32 %v4464_v8, %v4386_v40 }
 0x4b0   : > { %5119 = vmatpush.bf16.msra.mxu3 %v7411_v29  ;;  %v4620_v49 = vmin.f32 %v4592_v19, 6.0  ;;  %5188 = vmatpush.bf16.msra.mxu2 %v7475_v20  ;;  %v4388_v37 = vpop.f32.mrf.mxu3  ;;  %v4593_v52 = vmax.f32 %v4542_v45, 0.0 }
 0x4b1   : > { %4417 = vmatmul.bf16.gmra.mxu3 %v4139_v6  ;;  %v4152_v4 = vrot.slane %v4150_v13, 3  ;;  %v4155_v51 = vrot.slane %v4153_v36, 4  ;;  %v4544_v62 = vadd.f32 %v4543_v53, %v4465_v26  ;;  %v4699_v15 = vunpack.c.l.b16 %v4647_v17  ;;  %5254 = vmatpush.bf16.msrb.mxu1 %v7375_v12  ;;  %v7364_v17 = vld [vmem:[%s12213_s7 + $0x28] sm:$0xf0] }
 0x4b2   : > { %v4648_v43 = vpack.c.bf16 %v4620_v49, %v4620_v49  ;;  %v4389_v58 = vadd.f32 %v10330_v11, %v4388_v37 }
 0x4b3   : > { %v4156_v34 = vor.u32 %v4155_v51, %v4152_v4  ;;  %5326 = vmatpush.bf16.msra.mxu0 %v7415_v28  ;;  %v4594_v60 = vmax.f32 %v4544_v62, 0.0  ;;  %v4548_v57 = vpop.f32.mrf.mxu0  ;;  %v7912_v51 = vld [vmem:[%s12213_s7 + $0x24] sm:$0xf] }
 0x4b4   : > { %v4700_v41 = vunpack.c.l.b16 %v4648_v43  ;;  %v7367_v26 = vor.u32 %v7912_v51, %v7364_v17 }
 0x4b5   : > { %v4157_v5 = vsel %vm3755_vm0, %v10470_v44, %v4156_v34  ;;  %v4622_v27 = vmin.f32 %v4594_v60, 6.0  ;;  %v4621_v44 = vmin.f32 %v4593_v52, 6.0 }
 0x4b6   : > { %4575 = vmatmul.bf16.gmra.mxu0 %v4157_v5  ;;  %v4467_v1 = vpop.f32.mrf.mxu2  ;;  %v10565_v39 = vpack.c.b16 %v4700_v41, %v4699_v15  ;;  %5255 = vmatpush.bf16.msrb.mxu1 %v7367_v26 }
 0x4b7   : > { %v4650_v47 = vpack.c.bf16 %v4622_v27, %v4622_v27  ;;  %v4649_v42 = vpack.c.bf16 %v4621_v44, %v4621_v44  ;;  %v4468_v53 = vadd.f32 %v4467_v1, %v4389_v58 }
 0x4b8   : > { %5076 = vmatmul.bf16.gmra.mxu1 %v10565_v39  ;;  %v4390_v54 = vpop.f32.mrf.mxu3 }
 0x4b9   : > { %v4391_v25 = vadd.f32 %v10330_v11, %v4390_v54  ;;  %v4702_v16 = vunpack.c.l.b16 %v4650_v47  ;;  %v4701_v24 = vunpack.c.l.b16 %v4649_v42  ;;  %v4547_v59 = vadd.f32 %v4546_v2, %v4468_v53 }
 0x4bb   : > { %v10572_v22 = vpack.c.b16 %v4702_v16, %v4701_v24  ;;  %v4595_v18 = vmax.f32 %v4547_v59, 0.0  ;;  %v7910_v16 = vld [vmem:[%s12213_s7 + $0x14] sm:$0xf] }
 0x4bd   : > { %v4623_v63 = vmin.f32 %v4595_v18, 6.0 }
 0x4be   : > { %5189 = vmatmul.bf16.vlgmr.msra.gmra.mxu2 %v10163_v3  ;;  %v4469_v32 = vpop.f32.mrf.mxu2 }
 0x4bf   : > { %v4470_v48 = vadd.f32 %v4469_v32, %v4391_v25  ;;  %v4651_v6 = vpack.c.bf16 %v4623_v63, %v4623_v63 }
 0x4c1   : > { %5120 = vmatmul.bf16.vlgmr.msra.gmra.mxu3 %v10117_v31  ;;  %v4549_v56 = vadd.f32 %v4548_v57, %v4470_v48  ;;  %v4393_v61 = vpop.f32.mrf.mxu3  ;;  %v4551_v46 = vpop.f32.mrf.mxu0  ;;  %v4703_v36 = vunpack.c.l.b16 %v4651_v6  ;;  %v7356_v48 = vld [vmem:[%s12213_s7 + $0x18] sm:$0xf0] }
 0x4c2   : > { %v4394_v29 = vadd.f32 %v10330_v11, %v4393_v61  ;;  %v7359_v24 = vor.u32 %v7910_v16, %v7356_v48  ;;  %v7532_v16 = vld [vmem:[%s12213_s7 + $0x178] sm:$0xf0] }
 0x4c3   : > { %v4596_v9 = vmax.f32 %v4549_v56, 0.0 }
 0x4c4   : > { %5256 = vmatpush.bf16.msrb.mxu1 %v7359_v24 }
 0x4c5   : > { %v4624_v23 = vmin.f32 %v4596_v9, 6.0 }
 0x4c6   : > { %5327 = vmatmul.bf16.vlgmr.msra.gmra.mxu0 %v10117_v31  ;;  %v4472_v38 = vpop.f32.mrf.mxu2 }
 0x4c7   : > { %v4652_v30 = vpack.c.bf16 %v4624_v23, %v4624_v23  ;;  %v4473_v10 = vadd.f32 %v4472_v38, %v4394_v29 }
 0x4c8   : > { %5081 = vmatmul.bf16.gmra.mxu1 %v10572_v22 }
 0x4c9   : > { %v4395_v20 = vpop.f32.mrf.mxu3  ;;  %v4704_v21 = vunpack.c.l.b16 %v4652_v30  ;;  %v4553_v13 = vpop.f32.mrf.mxu0  ;;  %v4552_v19 = vadd.f32 %v4551_v46, %v4473_v10 }
 0x4ca   : > { %v4396_v33 = vadd.f32 %v10330_v11, %v4395_v20 }
 0x4cb   : > { %v10580_v40 = vpack.c.b16 %v4704_v21, %v4703_v36  ;;  %v4597_v49 = vmax.f32 %v4552_v19, 0.0 }
 0x4cd   : > { %v4625_v2 = vmin.f32 %v4597_v49, 6.0 }
 0x4ce   : > { %5194 = vmatmul.bf16.gmra.mxu2 %v10273_v0  ;;  %v4474_v28 = vpop.f32.mrf.mxu2 }
 0x4cf   : > { %v4475_v8 = vadd.f32 %v4474_v28, %v4396_v33  ;;  %v4653_v60 = vpack.c.bf16 %v4625_v2, %v4625_v2 }
 0x4d0   : > { %v10591_v15 = vpop.f32.mrf.mxu1 }
 0x4d1   : > { %5125 = vmatmul.bf16.gmra.mxu3 %v10163_v3  ;;  %v4554_v55 = vadd.f32 %v4553_v13, %v4475_v8  ;;  %v4705_v7 = vunpack.c.l.b16 %v4653_v60 }
 0x4d3   : > { %v4598_v4 = vmax.f32 %v4554_v55, 0.0 }
 0x4d5   : > { %v4626_v34 = vmin.f32 %v4598_v4, 6.0 }
 0x4d6   : > { %5332 = vmatmul.bf16.gmra.mxu0 %v10163_v3  ;;  %v4477_v45 = vpop.f32.mrf.mxu2  ;;  %v4556_v5 = vpop.f32.mrf.mxu0 }
 0x4d7   : > { %v4654_v41 = vpack.c.bf16 %v4626_v34, %v4626_v34 }
 0x4d8   : > { %5086 = vmatmul.bf16.gmra.mxu1 %v10580_v40  ;;  %v10599_v57 = vpop.f32.mrf.mxu1 }
 0x4d9   : > { %v4706_v1 = vunpack.c.l.b16 %v4654_v41 }
 0x4da   : > { %v4398_v43 = vpop.f32.mrf.mxu3 }
 0x4db   : > { %v4399_v62 = vadd.f32 %v10330_v11, %v4398_v43  ;;  %v10596_v44 = vpack.c.b16 %v4706_v1, %v4705_v7  ;;  %v7348_v7 = vld [vmem:[%s12213_s7 + $0x8] sm:$0xf0] }
 0x4dd   : > { %v4478_v37 = vadd.f32 %v4477_v45, %v4399_v62 }
 0x4de   : > { %5199 = vmatmul.bf16.gmra.mxu2 %v10492_v14  ;;  %v4479_v27 = vpop.f32.mrf.mxu2  ;;  %v4558_v47 = vpop.f32.mrf.mxu0 }
 0x4df   : > { %v4557_v52 = vadd.f32 %v4556_v5, %v4478_v37 }
 0x4e1   : > { %5130 = vmatmul.bf16.gmra.mxu3 %v10273_v0  ;;  %v4599_v54 = vmax.f32 %v4557_v52, 0.0 }
 0x4e2   : > { %v4400_v35 = vpop.f32.mrf.mxu3 }
 0x4e3   : > { %v4401_v12 = vadd.f32 %v10330_v11, %v4400_v35  ;;  %v4627_v53 = vmin.f32 %v4599_v54, 6.0  ;;  %v10609_v56 = vpop.f32.mrf.mxu1  ;;  %v7908_v35 = vld [vmem:[%s12213_s7 + $0x4] sm:$0xf] }
 0x4e4   : > { %v7351_v52 = vor.u32 %v7908_v35, %v7348_v7 }
 0x4e5   : > { %v4480_v58 = vadd.f32 %v4479_v27, %v4401_v12  ;;  %v4655_v9 = vpack.c.bf16 %v4627_v53, %v4627_v53 }
 0x4e6   : > { %5337 = vmatmul.bf16.gmra.mxu0 %v10273_v0  ;;  %5257 = vmatpush.bf16.msrb.mxu1 %v7351_v52  ;;  %v7650_v52 = vld [vmem:[%s12215_s9 + $0xe0] sm:$0xf] }
 0x4e7   : > { %v4559_v32 = vadd.f32 %v4558_v47, %v4480_v58  ;;  %v4707_v38 = vunpack.c.l.b16 %v4655_v9 }
 0x4e8   : > { %5091 = vmatmul.bf16.gmra.mxu1 %v10596_v44 }
 0x4e9   : > { %v4600_v42 = vmax.f32 %v4559_v32, 0.0 }
 0x4ea   : > { %v4482_v46 = vpop.f32.mrf.mxu2 }
 0x4eb   : > { %v4628_v25 = vmin.f32 %v4600_v42, 6.0  ;;  %v10616_v30 = vpop.f32.mrf.mxu1 }
 0x4ed   : > { %v4656_v59 = vpack.c.bf16 %v4628_v25, %v4628_v25  ;;  %v7954_v25 = vld [vmem:[%s12213_s7 + $0x174] sm:$0xf] }
 0x4ee   : > { %5204 = vmatmul.bf16.gmra.mxu2 %v10565_v39 }
 0x4ef   : > { %v4708_v61 = vunpack.c.l.b16 %v4656_v59  ;;  %v7535_v59 = vor.u32 %v7954_v25, %v7532_v16 }
 0x4f1   : > { %5135 = vmatmul.bf16.gmra.mxu3 %v10492_v14  ;;  %v10612_v23 = vpack.c.b16 %v4708_v61, %v4707_v38 }
 0x4f2   : > { %v4484_v21 = vpop.f32.mrf.mxu2  ;;  %5388 = vmatpush.bf16.msrb.mxu3 %v7535_v59 }
 0x4f3   : > { %v10621_v8 = vpop.f32.mrf.mxu1 }
 0x4f4   : > { %v4403_v18 = vpop.f32.mrf.mxu3 }
 0x4f5   : > { %v4404_v63 = vadd.f32 %v10330_v11, %v4403_v18  ;;  %v4561_v29 = vpop.f32.mrf.mxu0 }
 0x4f6   : > { %5342 = vmatmul.bf16.gmra.mxu0 %v10492_v14 }
 0x4f7   : > { %v4483_v20 = vadd.f32 %v4482_v46, %v4404_v63 }
 0x4f8   : > { %5096 = vmatmul.bf16.gmra.mxu1 %v10612_v23 }
 0x4f9   : > { %v4562_v6 = vadd.f32 %v4561_v29, %v4483_v20  ;;  %v7594_v29 = vld [vmem:[%s12215_s9 + $0x70] sm:$0xf]  ;;  %v7971_v20 = vld [vmem:[%s12215_s9 + $0x74] sm:$0xf0] }
 0x4fb   : > { %v4601_v33 = vmax.f32 %v4562_v6, 0.0  ;;  %v10625_v49 = vpop.f32.mrf.mxu1 }
 0x4fc   : > { %v4405_v10 = vpop.f32.mrf.mxu3 }
 0x4fd   : > { %v4406_v28 = vadd.f32 %v10330_v11, %v4405_v10  ;;  %v4563_v36 = vpop.f32.mrf.mxu0  ;;  %v4629_v19 = vmin.f32 %v4601_v33, 6.0  ;;  %v7595_v10 = vor.u32 %v7971_v20, %v7594_v29 }
 0x4fe   : > { %5209 = vmatmul.bf16.gmra.mxu2 %v10572_v22 }
 0x4ff   : > { %v4485_v13 = vadd.f32 %v4484_v21, %v4406_v28  ;;  %v4657_v51 = vpack.c.bf16 %v4629_v19, %v4629_v19  ;;  %6183 = vmatpush.bf16.msrb.mxu2 %v7595_v10 }
 0x501   : > { %5140 = vmatmul.bf16.gmra.mxu3 %v10565_v39  ;;  %v4564_v55 = vadd.f32 %v4563_v36, %v4485_v13  ;;  %v4709_v34 = vunpack.c.l.b16 %v4657_v51  ;;  %v4487_v62 = vpop.f32.mrf.mxu2  ;;  %v7658_v13 = vld [vmem:[%s12215_s9 + $0xf0] sm:$0xf]  ;;  %v7987_v36 = vld [vmem:[%s12215_s9 + $0xf4] sm:$0xf0]  ;;  %v7952_v51 = vld [vmem:[%s12213_s7 + $0x164] sm:$0xf] }
 0x502   : > { %v7659_v19 = vor.u32 %v7987_v36, %v7658_v13 }
 0x503   : > { %v4602_v4 = vmax.f32 %v4564_v55, 0.0 }
 0x504   : > { %6252 = vmatpush.bf16.msra.mxu1 %v7659_v19 }
 0x505   : > { %v4630_v17 = vmin.f32 %v4602_v4, 6.0 }
 0x506   : > { %5347 = vmatmul.bf16.gmra.mxu0 %v10565_v39 }
 0x507   : > { %v4658_v26 = vpack.c.bf16 %v4630_v17, %v4630_v17  ;;  %v7524_v17 = vld [vmem:[%s12213_s7 + $0x168] sm:$0xf0] }
 0x509   : > { %v4710_v43 = vunpack.c.l.b16 %v4658_v26  ;;  %v10632_v1 = vpop.f32.mrf.mxu1  ;;  %v4489_v47 = vpop.f32.mrf.mxu2  ;;  %v7527_v26 = vor.u32 %v7952_v51, %v7524_v17  ;;  %v7578_v51 = vld [vmem:[%s12215_s9 + $0x50] sm:$0xf]  ;;  %v7967_v17 = vld [vmem:[%s12215_s9 + $0x54] sm:$0xf0] }
 0x50b   : > { %v10627_v45 = vpack.c.b16 %v4710_v43, %v4709_v34  ;;  %v4408_v2 = vpop.f32.mrf.mxu3  ;;  %v4566_v41 = vpop.f32.mrf.mxu0  ;;  %5389 = vmatpush.bf16.msrb.mxu3 %v7527_v26 }
 0x50c   : > { %v4409_v5 = vadd.f32 %v10330_v11, %v4408_v2  ;;  %v7586_v2 = vld [vmem:[%s12215_s9 + $0x60] sm:$0xf] }
 0x50d   : > { %5101 = vmatmul.bf16.gmra.mxu1 %v10627_v45 }
 0x50e   : > { %5214 = vmatmul.bf16.gmra.mxu2 %v10580_v40  ;;  %v4488_v60 = vadd.f32 %v4487_v62, %v4409_v5  ;;  %v7969_v62 = vld [vmem:[%s12215_s9 + $0x64] sm:$0xf0] }
 0x510   : > { %v4567_v37 = vadd.f32 %v4566_v41, %v4488_v60  ;;  %v7587_v41 = vor.u32 %v7969_v62, %v7586_v2 }
 0x511   : > { %5145 = vmatmul.bf16.gmra.mxu3 %v10572_v22  ;;  %v10649_v24 = vpop.f32.mrf.mxu1 }
 0x512   : > { %v4603_v27 = vmax.f32 %v4567_v37, 0.0  ;;  %6184 = vmatpush.bf16.msrb.mxu2 %v7587_v41  ;;  %v7579_v41 = vor.u32 %v7967_v17, %v7578_v51 }
 0x513   : > { %v4410_v12 = vpop.f32.mrf.mxu3  ;;  %v4568_v32 = vpop.f32.mrf.mxu0 }
 0x514   : > { %v4411_v58 = vadd.f32 %v10330_v11, %v4410_v12  ;;  %v4631_v42 = vmin.f32 %v4603_v27, 6.0  ;;  %v7985_v12 = vld [vmem:[%s12215_s9 + $0xe4] sm:$0xf0] }
 0x516   : > { %5352 = vmatmul.bf16.gmra.mxu0 %v10572_v22  ;;  %v4490_v54 = vadd.f32 %v4489_v47, %v4411_v58  ;;  %v4659_v9 = vpack.c.bf16 %v4631_v42, %v4631_v42  ;;  %v7651_v47 = vor.u32 %v7985_v12, %v7650_v52  ;;  %6185 = vmatpush.bf16.msrb.mxu2 %v7579_v41  ;;  %v7508_v52 = vld [vmem:[%s12213_s7 + $0x148] sm:$0xf0] }
 0x518   : > { %v4569_v53 = vadd.f32 %v4568_v32, %v4490_v54  ;;  %v4711_v18 = vunpack.c.l.b16 %v4659_v9  ;;  %6253 = vmatpush.bf16.msra.mxu1 %v7651_v47 }
 0x51a   : > { %v4604_v48 = vmax.f32 %v4569_v53, 0.0 }
 0x51c   : > { %v4632_v61 = vmin.f32 %v4604_v48, 6.0 }
 0x51e   : > { %v4660_v38 = vpack.c.bf16 %v4632_v61, %v4632_v61  ;;  %5219 = vmatmul.bf16.gmra.mxu2 %v10596_v44 }
 0x520   : > { %v4712_v46 = vunpack.c.l.b16 %v4660_v38 }
 0x521   : > { %5150 = vmatmul.bf16.gmra.mxu3 %v10580_v40  ;;  %v4492_v63 = vpop.f32.mrf.mxu2 }
 0x522   : > { %v10659_v6 = vpack.c.b16 %v4712_v46, %v4711_v18  ;;  %v7950_v18 = vld [vmem:[%s12213_s7 + $0x154] sm:$0xf]  ;;  %v7516_v46 = vld [vmem:[%s12213_s7 + $0x158] sm:$0xf0] }
 0x523   : > { %v4571_v60 = vpop.f32.mrf.mxu0 }
 0x524   : > { %v4413_v33 = vpop.f32.mrf.mxu3  ;;  %5106 = vmatmul.bf16.gmra.mxu1 %v10659_v6  ;;  %v10662_v28 = vpop.f32.mrf.mxu1 }
 0x525   : > { %v4414_v7 = vadd.f32 %v10330_v11, %v4413_v33 }
 0x526   : > { %5357 = vmatmul.bf16.gmra.mxu0 %v10580_v40 }
 0x527   : > { %v4493_v32 = vadd.f32 %v4492_v63, %v4414_v7  ;;  %v7519_v63 = vor.u32 %v7950_v18, %v7516_v46  ;;  %v7948_v7 = vld [vmem:[%s12213_s7 + $0x144] sm:$0xf]  ;;  %v7983_v46 = vld [vmem:[%s12215_s9 + $0xd4] sm:$0xf0] }
 0x529   : > { %v4494_v21 = vpop.f32.mrf.mxu2  ;;  %v4572_v59 = vadd.f32 %v4571_v60, %v4493_v32  ;;  %5390 = vmatpush.bf16.msrb.mxu3 %v7519_v63 }
 0x52b   : > { %v4573_v42 = vpop.f32.mrf.mxu0  ;;  %v4605_v29 = vmax.f32 %v4572_v59, 0.0 }
 0x52c   : > { %v4415_v55 = vpop.f32.mrf.mxu3  ;;  %v10671_v4 = vpop.f32.mrf.mxu1 }
 0x52d   : > { %v4416_v27 = vadd.f32 %v10330_v11, %v4415_v55  ;;  %v4633_v19 = vmin.f32 %v4605_v29, 6.0 }
 0x52e   : > { %5224 = vmatmul.bf16.gmra.mxu2 %v10612_v23 }
 0x52f   : > { %v4495_v25 = vadd.f32 %v4494_v21, %v4416_v27  ;;  %v4661_v12 = vpack.c.bf16 %v4633_v19, %v4633_v19 }
 0x531   : > { %5155 = vmatmul.bf16.gmra.mxu3 %v10596_v44  ;;  %v10681_v34 = vpop.f32.mrf.mxu2  ;;  %v4574_v61 = vadd.f32 %v4573_v42, %v4495_v25  ;;  %v7570_v42 = vld [vmem:[%s12215_s9 + $0x40] sm:$0xf] }
 0x533   : > { %v4606_v10 = vmax.f32 %v4574_v61, 0.0  ;;  %v4576_v21 = vpop.f32.mrf.mxu0 }
 0x534   : > { %v4418_v43 = vpop.f32.mrf.mxu3  ;;  %5258 = vmatmul.bf16.vlgmr.msrb.gmra.mxu1 %v10026_v50  ;;  %v10696_v50 = vld [vmem:[%s12214_s8] sm:$0x3] }
 0x535   : > { %v10691_v5 = vpop.f32.mrf.mxu1  ;;  %v10710_v54 = vperm.slane %v10696_v50, 0  ;;  %v4634_v26 = vmin.f32 %v4606_v10, 6.0  ;;  %v4419_v2 = vadd.f32 %v10330_v11, %v4418_v43  ;;  %v7511_v43 = vor.u32 %v7948_v7, %v7508_v52  ;;  %v7961_v7 = vld [vmem:[%s12215_s9 + $0x24] sm:$0xf0] }
 0x536   : > { %5362 = vmatmul.bf16.gmra.mxu0 %v10596_v44 }
 0x537   : > { %v5053_v16 = vadd.f32 %v10591_v15, %v10710_v54  ;;  %v5055_v33 = vadd.f32 %v10599_v57, %v10710_v54  ;;  %v4498_v47 = vadd.f32 %v10681_v34, %v4419_v2  ;;  %v5058_v25 = vadd.f32 %v10609_v56, %v10710_v54  ;;  %5391 = vmatpush.bf16.msrb.mxu3 %v7511_v43  ;;  %v7946_v34 = vld [vmem:[%s12213_s7 + $0x134] sm:$0xf]  ;;  %v7642_v56 = vld [vmem:[%s12215_s9 + $0xd0] sm:$0xf] }
 0x538   : > { %v7643_v10 = vor.u32 %v7983_v46, %v7642_v56  ;;  %v5060_v52 = vadd.f32 %v10616_v30, %v10710_v54  ;;  %v7942_v43 = vld [vmem:[%s12213_s7 + $0x114] sm:$0xf] }
 0x539   : > { %v4499_v37 = vpop.f32.mrf.mxu2  ;;  %v4577_v29 = vadd.f32 %v4576_v21, %v4498_v47  ;;  %v7944_v21 = vld [vmem:[%s12213_s7 + $0x124] sm:$0xf] }
 0x53a   : > { %6254 = vmatpush.bf16.msra.mxu1 %v7643_v10 }
 0x53b   : > { %v4578_v61 = vpop.f32.mrf.mxu0  ;;  %v4607_v2 = vmax.f32 %v4577_v29, 0.0  ;;  %v5063_v29 = vadd.f32 %v10621_v8, %v10710_v54 }
 0x53c   : > { %v4420_v35 = vpop.f32.mrf.mxu3 }
 0x53d   : > { %v10707_v58 = vpop.f32.mrf.mxu1  ;;  %v4421_v62 = vadd.f32 %v10330_v11, %v4420_v35  ;;  %v4662_v35 = vpack.c.bf16 %v4634_v26, %v4634_v26 }
 0x53e   : > { %5229 = vmatmul.bf16.gmra.mxu2 %v10627_v45 }
 0x53f   : > { %v4500_v32 = vadd.f32 %v4499_v37, %v4421_v62  ;;  %v7500_v37 = vld [vmem:[%s12213_s7 + $0x138] sm:$0xf0]  ;;  %v4740_v63 = vunpack.c.l.b16 %v4662_v35 }
 0x540   : > { %v7484_v35 = vld [vmem:[%s12213_s7 + $0x118] sm:$0xf0] }
 0x541   : > { %5160 = vmatmul.bf16.gmra.mxu3 %v10612_v23  ;;  %v5190_v53 = vpop.f32.mrf.mxu2 }
 0x544   : > { %v5121_v48 = vpop.f32.mrf.mxu3  ;;  %5263 = vmatmul.bf16.gmra.mxu1 %v10117_v31 }
 0x545   : > { %v5122_v9 = vadd.f32 %v5121_v48, %v5053_v16  ;;  %v10717_v38 = vpop.f32.mrf.mxu1 }
 0x546   : > { %5367 = vmatmul.bf16.gmra.mxu0 %v10612_v23 }
 0x547   : > { %v5191_v15 = vadd.f32 %v5190_v53, %v5122_v9  ;;  %v7965_v53 = vld [vmem:[%s12215_s9 + $0x44] sm:$0xf0]  ;;  %v4739_v9 = vunpack.c.l.b16 %v4661_v12 }
 0x548   : > { %v7571_v48 = vor.u32 %v7965_v53, %v7570_v42  ;;  %v4635_v42 = vmin.f32 %v4607_v2, 6.0 }
 0x549   : > { %v5457_v31 = vmax.f32 %v5191_v15, 0.0  ;;  %v5192_v20 = vpop.f32.mrf.mxu2  ;;  %v7503_v15 = vor.u32 %v7946_v34, %v7500_v37  ;;  %v10784_v41 = vpack.c.b16 %v4740_v63, %v4739_v9  ;;  %v7940_v34 = vld [vmem:[%s12213_s7 + $0x104] sm:$0xf]  ;;  %v7476_v37 = vld [vmem:[%s12213_s7 + $0x108] sm:$0xf0] }
 0x54a   : > { %6186 = vmatpush.bf16.msrb.mxu2 %v7571_v48  ;;  %v4663_v56 = vpack.c.bf16 %v4635_v42, %v4635_v42  ;;  %v7957_v63 = vld [vmem:[%s12215_s9 + $0x4] sm:$0xf0] }
 0x54b   : > { %v5505_v13 = vmin.f32 %v5457_v31, 6.0  ;;  %v4579_v31 = vadd.f32 %v4578_v61, %v4500_v32  ;;  %5392 = vmatpush.bf16.msrb.mxu3 %v7503_v15  ;;  %v7487_v32 = vor.u32 %v7942_v43, %v7484_v35  ;;  %v7538_v15 = vld [vmem:[%s12215_s9] sm:$0xf]  ;;  %v5068_v35 = vadd.f32 %v10632_v1, %v10710_v54 }
 0x54c   : > { %v5123_v36 = vpop.f32.mrf.mxu3  ;;  %v7539_v10 = vor.u32 %v7957_v63, %v7538_v15 }
 0x54d   : > { %5553 = vst [vmem:[%s8921_s12] sm:$0xff] %v5505_v13  ;;  %v5124_v55 = vadd.f32 %v5123_v36, %v5055_v33  ;;  %v10737_v57 = vpop.f32.mrf.mxu1  ;;  %v7562_v33 = vld [vmem:[%s12215_s9 + $0x30] sm:$0xf]  ;;  %v7963_v13 = vld [vmem:[%s12215_s9 + $0x34] sm:$0xf0]  ;;  %v4608_v62 = vmax.f32 %v4579_v31, 0.0 }
 0x54e   : > { %5234 = vmatmul.bf16.gmra.mxu2 %v10659_v6  ;;  %v7563_v19 = vor.u32 %v7963_v13, %v7562_v33 }
 0x54f   : > { %v5193_v60 = vadd.f32 %v5192_v20, %v5124_v55  ;;  %v7492_v55 = vld [vmem:[%s12213_s7 + $0x128] sm:$0xf0]  ;;  %v4636_v53 = vmin.f32 %v4608_v62, 6.0 }
 0x550   : > { %6187 = vmatpush.bf16.msrb.mxu2 %v7563_v19  ;;  %v7495_v26 = vor.u32 %v7944_v21, %v7492_v55 }
 0x551   : > { %v5459_v27 = vmax.f32 %v5193_v60, 0.0  ;;  %5165 = vmatmul.bf16.gmra.mxu3 %v10627_v45  ;;  %v5195_v11 = vpop.f32.mrf.mxu2  ;;  %v7554_v60 = vld [vmem:[%s12215_s9 + $0x20] sm:$0xf]  ;;  %v4664_v46 = vpack.c.bf16 %v4636_v53, %v4636_v53  ;;  %v12424_v53 = vld [vmem:[#allocation7_spill] sm:$0xff] }
 0x552   : > { %5393 = vmatpush.bf16.msrb.mxu3 %v7495_v26  ;;  %v5065_v26 = vadd.f32 %v10625_v49, %v10710_v54 }
 0x553   : > { %v5507_v16 = vmin.f32 %v5459_v27, 6.0  ;;  %v7555_v27 = vor.u32 %v7961_v7, %v7554_v60  ;;  %v4746_v19 = vunpack.c.l.b16 %v4664_v46  ;;  %v7634_v7 = vld [vmem:[%s12215_s9 + $0xc0] sm:$0xf] }
 0x554   : > { %v5126_v59 = vpop.f32.mrf.mxu3  ;;  %5268 = vmatmul.bf16.gmra.mxu1 %v10163_v3 }
 0x555   : > { %5555 = vst [vmem:[%s8921_s12 + $0x20] sm:$0xff] %v5507_v16  ;;  %v5127_v18 = vadd.f32 %v5126_v59, %v5058_v25  ;;  %v10770_v20 = vpop.f32.mrf.mxu1  ;;  %6188 = vmatpush.bf16.msrb.mxu2 %v7555_v27  ;;  %v7546_v25 = vld [vmem:[%s12215_s9 + $0x10] sm:$0xf]  ;;  %v7959_v16 = vld [vmem:[%s12215_s9 + $0x14] sm:$0xf0] }
 0x556   : > { %5372 = vmatmul.bf16.gmra.mxu0 %v10627_v45  ;;  %5394 = vmatpush.bf16.msrb.mxu3 %v7487_v32  ;;  %v7547_v59 = vor.u32 %v7959_v16, %v7546_v25  ;;  %v12425_v25 = vpack.c.bf16 %v12424_v53, %v12424_v53 }
 0x557   : > { %v5196_v36 = vadd.f32 %v5195_v11, %v5127_v18  ;;  %v7479_v18 = vor.u32 %v7940_v34, %v7476_v37 }
 0x558   : > { %v5625_v16 = vunpack.c.l.b16 %v12425_v25 }
 0x559   : > { %v5461_v51 = vmax.f32 %v5196_v36, 0.0  ;;  %v5197_v17 = vpop.f32.mrf.mxu2  ;;  %6189 = vmatpush.bf16.msrb.mxu2 %v7547_v59  ;;  %v4745_v36 = vunpack.c.l.b16 %v4663_v56  ;;  %v5070_v56 = vadd.f32 %v10649_v24, %v10710_v54 }
 0x55a   : > { %5395 = vmatpush.bf16.msrb.mxu3 %v7479_v18 }
 0x55b   : > { %v5509_v12 = vmin.f32 %v5461_v51, 6.0  ;;  %v10830_v8 = vpack.c.b16 %v4746_v19, %v4745_v36 }
 0x55c   : > { %v5128_v11 = vpop.f32.mrf.mxu3 }
 0x55d   : > { %5557 = vst [vmem:[%s8921_s12 + $0x40] sm:$0xff] %v5509_v12  ;;  %v5129_v47 = vadd.f32 %v5128_v11, %v5060_v52  ;;  %v10802_v30 = vpop.f32.mrf.mxu1  ;;  %6190 = vmatpush.bf16.msrb.mxu2 %v7539_v10  ;;  %v7981_v52 = vld [vmem:[%s12215_s9 + $0xc4] sm:$0xf0] }
 0x55e   : > { %5239 = vmatmul.bf16.gmra.mxu2 %v10784_v41  ;;  %v7635_v12 = vor.u32 %v7981_v52, %v7634_v7 }
 0x55f   : > { %v5198_v48 = vadd.f32 %v5197_v17, %v5129_v47 }
 0x560   : > { %6255 = vmatpush.bf16.msra.mxu1 %v7635_v12 }
 0x561   : > { %v5463_v9 = vmax.f32 %v5198_v48, 0.0  ;;  %5170 = vmatmul.bf16.gmra.mxu3 %v10659_v6  ;;  %v5200_v61 = vpop.f32.mrf.mxu2  ;;  %v12426_v48 = vld [vmem:[#allocation8_spill] sm:$0xff] }
 0x562   : > { %v12427_v59 = vpack.c.bf16 %v12426_v48, %v12426_v48 }
 0x563   : > { %v5511_v31 = vmin.f32 %v5463_v9, 6.0 }
 0x564   : > { %v5131_v33 = vpop.f32.mrf.mxu3  ;;  %5273 = vmatmul.bf16.gmra.mxu1 %v10273_v0  ;;  %v5626_v34 = vunpack.c.l.b16 %v12427_v59  ;;  %v5078_v59 = vadd.f32 %v10691_v5, %v10710_v54 }
 0x565   : > { %5559 = vst [vmem:[%s8921_s12 + $0x60] sm:$0xff] %v5511_v31  ;;  %v5132_v13 = vadd.f32 %v5131_v33, %v5063_v29  ;;  %v10828_v21 = vpop.f32.mrf.mxu1  ;;  %v10865_v33 = vpop.f32.mrf.mxu0 }
 0x566   : > { %5377 = vmatmul.bf16.gmra.mxu0 %v10659_v6  ;;  %v10858_v18 = vpack.c.b16 %v5626_v34, %v5625_v16 }
 0x567   : > { %v5201_v55 = vadd.f32 %v5200_v61, %v5132_v13  ;;  %v5073_v13 = vadd.f32 %v10662_v28, %v10710_v54 }
 0x569   : > { %v5465_v51 = vmax.f32 %v5201_v55, 0.0  ;;  %v5202_v17 = vpop.f32.mrf.mxu2 }
 0x56b   : > { %v5513_v2 = vmin.f32 %v5465_v51, 6.0  ;;  %v7626_v51 = vld [vmem:[%s12215_s9 + $0xb0] sm:$0xf] }
 0x56c   : > { %v5133_v62 = vpop.f32.mrf.mxu3 }
 0x56d   : > { %5561 = vst [vmem:[%s8921_s12 + $0x80] sm:$0xff] %v5513_v2  ;;  %v5134_v60 = vadd.f32 %v5133_v62, %v5065_v26  ;;  %v10842_v11 = vpop.f32.mrf.mxu1  ;;  %v12430_v2 = vld [vmem:[#allocation10_spill] sm:$0xff] }
 0x56e   : > { %5244 = vmatmul.bf16.gmra.mxu2 %v10830_v8  ;;  %v12431_v62 = vpack.c.bf16 %v12430_v2, %v12430_v2 }
 0x56f   : > { %v5203_v27 = vadd.f32 %v5202_v17, %v5134_v60  ;;  %v12428_v17 = vld [vmem:[#allocation9_spill] sm:$0xff] }
 0x570   : > { %v12429_v28 = vpack.c.bf16 %v12428_v17, %v12428_v17  ;;  %v5628_v60 = vunpack.c.l.b16 %v12431_v62  ;;  %v7977_v17 = vld [vmem:[%s12215_s9 + $0xa4] sm:$0xf0] }
 0x571   : > { %v5467_v49 = vmax.f32 %v5203_v27, 0.0  ;;  %5175 = vmatmul.bf16.gmra.mxu3 %v10784_v41  ;;  %v5205_v43 = vpop.f32.mrf.mxu2 }
 0x572   : > { %v5627_v26 = vunpack.c.l.b16 %v12429_v28 }
 0x573   : > { %v5515_v47 = vmin.f32 %v5467_v49, 6.0 }
 0x574   : > { %v5136_v32 = vpop.f32.mrf.mxu3  ;;  %5278 = vmatmul.bf16.gmra.mxu1 %v10492_v14  ;;  %v10885_v49 = vpack.c.b16 %v5628_v60, %v5627_v26 }
 0x575   : > { %5563 = vst [vmem:[%s8921_s12 + $0xa0] sm:$0xff] %v5515_v47  ;;  %v5137_v42 = vadd.f32 %v5136_v32, %v5068_v35  ;;  %v10856_v61 = vpop.f32.mrf.mxu1  ;;  %v10889_v47 = vpop.f32.mrf.mxu0 }
 0x576   : > { %5382 = vmatmul.bf16.gmra.mxu0 %v10784_v41 }
 0x577   : > { %v5206_v37 = vadd.f32 %v5205_v43, %v5137_v42  ;;  %v5075_v43 = vadd.f32 %v10671_v4, %v10710_v54 }
 0x579   : > { %v5469_v9 = vmax.f32 %v5206_v37, 0.0  ;;  %v5207_v1 = vpop.f32.mrf.mxu2 }
 0x57b   : > { %v5517_v46 = vmin.f32 %v5469_v9, 6.0 }
 0x57c   : > { %v5138_v15 = vpop.f32.mrf.mxu3 }
 0x57d   : > { %5565 = vst [vmem:[%s8921_s12 + $0xc0] sm:$0xff] %v5517_v46  ;;  %v5139_v63 = vadd.f32 %v5138_v15, %v5070_v56  ;;  %v10869_v19 = vpop.f32.mrf.mxu1  ;;  %v10900_v9 = vpop.f32.mrf.mxu0  ;;  %v12434_v15 = vld [vmem:[#allocation12_spill] sm:$0xff] }
 0x57e   : > { %6191 = vmatmul.bf16.vlgmr.msrb.gmra.mxu2 %v10858_v18 }
 0x57f   : > { %v5208_v29 = vadd.f32 %v5207_v1, %v5139_v63  ;;  %v12432_v1 = vld [vmem:[#allocation11_spill] sm:$0xff] }
 0x580   : > { %v12433_v56 = vpack.c.bf16 %v12432_v1, %v12432_v1 }
 0x581   : > { %v5471_v31 = vmax.f32 %v5208_v29, 0.0  ;;  %5396 = vmatmul.bf16.vlgmr.msrb.gmra.mxu3 %v10163_v3  ;;  %v5210_v10 = vpop.f32.mrf.mxu2  ;;  %v7979_v3 = vld [vmem:[%s12215_s9 + $0xb4] sm:$0xf0] }
 0x582   : > { %v7627_v7 = vor.u32 %v7979_v3, %v7626_v51  ;;  %v5629_v46 = vunpack.c.l.b16 %v12433_v56  ;;  %v7618_v3 = vld [vmem:[%s12215_s9 + $0xa0] sm:$0xf] }
 0x583   : > { %v5519_v36 = vmin.f32 %v5471_v31, 6.0  ;;  %v7619_v28 = vor.u32 %v7977_v17, %v7618_v3  ;;  %v12442_v17 = vld [vmem:[#allocation16_spill] sm:$0xff] }
 0x584   : > { %v5141_v24 = vpop.f32.mrf.mxu3  ;;  %5283 = vmatmul.bf16.gmra.mxu1 %v10565_v39 }
 0x585   : > { %5567 = vst [vmem:[%s8921_s12 + $0xe0] sm:$0xff] %v5519_v36  ;;  %v5142_v55 = vadd.f32 %v5141_v24, %v5073_v13  ;;  %6256 = vmatpush.bf16.msra.mxu1 %v7627_v7  ;;  %v5080_v36 = vadd.f32 %v10707_v58, %v10710_v54  ;;  %v10922_v2 = vpop.f32.mrf.mxu0  ;;  %v5083_v7 = vadd.f32 %v10717_v38, %v10710_v54 }
 0x587   : > { %v5211_v52 = vadd.f32 %v5210_v10, %v5142_v55 }
 0x589   : > { %v5473_v12 = vmax.f32 %v5211_v52, 0.0  ;;  %v5212_v27 = vpop.f32.mrf.mxu2  ;;  %6257 = vmatpush.bf16.msra.mxu1 %v7619_v28  ;;  %v12443_v28 = vpack.c.bf16 %v12442_v17, %v12442_v17 }
 0x58a   : > { %v10892_v53 = vpop.f32.mrf.mxu1 }
 0x58b   : > { %v5521_v35 = vmin.f32 %v5473_v12, 6.0 }
 0x58c   : > { %v5143_v32 = vpop.f32.mrf.mxu3 }
 0x58d   : > { %5569 = vst [vmem:[%s8921_s12 + $0x100] sm:$0xff] %v5521_v35  ;;  %v5144_v42 = vadd.f32 %v5143_v32, %v5075_v43  ;;  %v12436_v43 = vld [vmem:[#allocation13_spill] sm:$0xff]  ;;  %v10939_v38 = vpop.f32.mrf.mxu0 }
 0x58e   : > { %6196 = vmatmul.bf16.gmra.mxu2 %v10885_v49  ;;  %v12437_v35 = vpack.c.bf16 %v12436_v43, %v12436_v43  ;;  %v5090_v43 = vadd.f32 %v10802_v30, %v10710_v54  ;;  %v7722_v30 = vld [vmem:[%s12215_s9 + $0x170] sm:$0xf] }
 0x58f   : > { %v5213_v25 = vadd.f32 %v5212_v27, %v5144_v42  ;;  %v12438_v42 = vld [vmem:[#allocation14_spill] sm:$0xff] }
 0x590   : > { %v5631_v32 = vunpack.c.l.b16 %v12437_v35 }
 0x591   : > { %v5475_v16 = vmax.f32 %v5213_v25, 0.0  ;;  %5401 = vmatmul.bf16.gmra.mxu3 %v10273_v0  ;;  %v5215_v48 = vpop.f32.mrf.mxu2  ;;  %v12435_v0 = vpack.c.bf16 %v12434_v15, %v12434_v15 }
 0x592   : > { %v10908_v31 = vpop.f32.mrf.mxu1 }
 0x593   : > { %v5523_v4 = vmin.f32 %v5475_v16, 6.0  ;;  %v5630_v63 = vunpack.c.l.b16 %v12435_v0 }
 0x594   : > { %v5146_v34 = vpop.f32.mrf.mxu3  ;;  %5288 = vmatmul.bf16.gmra.mxu1 %v10572_v22 }
 0x595   : > { %5571 = vst [vmem:[%s8921_s12 + $0x120] sm:$0xff] %v5523_v4  ;;  %v5147_v37 = vadd.f32 %v5146_v34, %v5078_v59  ;;  %v10910_v13 = vpack.c.b16 %v5630_v63, %v5629_v46 }
 0x597   : > { %v5216_v29 = vadd.f32 %v5215_v48, %v5147_v37  ;;  %v5085_v37 = vadd.f32 %v10737_v57, %v10710_v54 }
 0x599   : > { %v5477_v5 = vmax.f32 %v5216_v29, 0.0  ;;  %v5217_v10 = vpop.f32.mrf.mxu2 }
 0x59b   : > { %v5525_v24 = vmin.f32 %v5477_v5, 6.0  ;;  %v5088_v5 = vadd.f32 %v10770_v20, %v10710_v54 }
 0x59c   : > { %v5148_v55 = vpop.f32.mrf.mxu3 }
 0x59d   : > { %5573 = vst [vmem:[%s8921_s12 + $0x140] sm:$0xff] %v5525_v24  ;;  %v5149_v51 = vadd.f32 %v5148_v55, %v5080_v36  ;;  %v10952_v36 = vpop.f32.mrf.mxu0  ;;  %v7610_v55 = vld [vmem:[%s12215_s9 + $0x90] sm:$0xf] }
 0x59e   : > { %6201 = vmatmul.bf16.gmra.mxu2 %v10910_v13 }
 0x59f   : > { %v5218_v26 = vadd.f32 %v5217_v10, %v5149_v51  ;;  %v12440_v51 = vld [vmem:[#allocation15_spill] sm:$0xff] }
 0x5a0   : > { %v12441_v20 = vpack.c.bf16 %v12440_v51, %v12440_v51  ;;  %v7602_v51 = vld [vmem:[%s12215_s9 + $0x80] sm:$0xf] }
 0x5a1   : > { %v5479_v58 = vmax.f32 %v5218_v26, 0.0  ;;  %5406 = vmatmul.bf16.gmra.mxu3 %v10492_v14  ;;  %v5220_v62 = vpop.f32.mrf.mxu2  ;;  %v10925_v60 = vpop.f32.mrf.mxu1  ;;  %v12439_v14 = vpack.c.bf16 %v12438_v42, %v12438_v42  ;;  %v5634_v26 = vunpack.c.l.b16 %v12443_v28 }
 0x5a2   : > { %v5633_v3 = vunpack.c.l.b16 %v12441_v20  ;;  %v7973_v20 = vld [vmem:[%s12215_s9 + $0x84] sm:$0xf0] }
 0x5a3   : > { %v5527_v52 = vmin.f32 %v5479_v58, 6.0  ;;  %v5632_v25 = vunpack.c.l.b16 %v12439_v14  ;;  %v7603_v17 = vor.u32 %v7973_v20, %v7602_v51  ;;  %v12450_v51 = vld [vmem:[#allocation20_spill] sm:$0xff] }
 0x5a4   : > { %v5151_v12 = vpop.f32.mrf.mxu3  ;;  %5293 = vmatmul.bf16.gmra.mxu1 %v10580_v40  ;;  %v12451_v20 = vpack.c.bf16 %v12450_v51, %v12450_v51 }
 0x5a5   : > { %5575 = vst [vmem:[%s8921_s12 + $0x160] sm:$0xff] %v5527_v52  ;;  %v5152_v27 = vadd.f32 %v5151_v12, %v5083_v7  ;;  %v10941_v34 = vpack.c.b16 %v5632_v25, %v5631_v32  ;;  %v10975_v14 = vpop.f32.mrf.mxu0 }
 0x5a7   : > { %v5221_v16 = vadd.f32 %v5220_v62, %v5152_v27  ;;  %v10970_v27 = vpack.c.b16 %v5634_v26, %v5633_v3 }
 0x5a9   : > { %v5481_v48 = vmax.f32 %v5221_v16, 0.0  ;;  %v5222_v59 = vpop.f32.mrf.mxu2  ;;  %v10937_v4 = vpop.f32.mrf.mxu1 }
 0x5ab   : > { %v5529_v1 = vmin.f32 %v5481_v48, 6.0 }
 0x5ac   : > { %v5153_v56 = vpop.f32.mrf.mxu3 }
 0x5ad   : > { %5577 = vst [vmem:[%s8921_s12 + $0x180] sm:$0xff] %v5529_v1  ;;  %v5154_v46 = vadd.f32 %v5153_v56, %v5085_v37  ;;  %v8003_v37 = vld [vmem:[%s12215_s9 + $0x174] sm:$0xf0]  ;;  %v5093_v1 = vadd.f32 %v10828_v21, %v10710_v54  ;;  %v11009_v28 = vpop.f32.mrf.mxu0 }
 0x5ae   : > { %6206 = vmatmul.bf16.gmra.mxu2 %v10941_v34 }
 0x5af   : > { %v5223_v15 = vadd.f32 %v5222_v59, %v5154_v46  ;;  %v7723_v46 = vor.u32 %v8003_v37, %v7722_v30  ;;  %v7997_v30 = vld [vmem:[%s12215_s9 + $0x144] sm:$0xf0] }
 0x5b1   : > { %v5483_v0 = vmax.f32 %v5223_v15, 0.0  ;;  %5411 = vmatmul.bf16.gmra.mxu3 %v10565_v39  ;;  %v5225_v63 = vpop.f32.mrf.mxu2  ;;  %v10948_v29 = vpop.f32.mrf.mxu1  ;;  %v7975_v39 = vld [vmem:[%s12215_s9 + $0x94] sm:$0xf0]  ;;  %6321 = vmatpush.bf16.msrb.mxu0 %v7723_v46 }
 0x5b2   : > { %v7611_v58 = vor.u32 %v7975_v39, %v7610_v55 }
 0x5b3   : > { %v5531_v10 = vmin.f32 %v5483_v0, 6.0  ;;  %v7714_v0 = vld [vmem:[%s12215_s9 + $0x160] sm:$0xf] }
 0x5b4   : > { %v5156_v57 = vpop.f32.mrf.mxu3  ;;  %5298 = vmatmul.bf16.gmra.mxu1 %v10596_v44 }
 0x5b5   : > { %5579 = vst [vmem:[%s8921_s12 + $0x1a0] sm:$0xff] %v5531_v10  ;;  %v5157_v24 = vadd.f32 %v5156_v57, %v5088_v5  ;;  %6258 = vmatpush.bf16.msra.mxu1 %v7611_v58  ;;  %v12444_v5 = vld [vmem:[#allocation17_spill] sm:$0xff]  ;;  %v12446_v57 = vld [vmem:[#allocation18_spill] sm:$0xff] }
 0x5b6   : > { %v12445_v10 = vpack.c.bf16 %v12444_v5, %v12444_v5 }
 0x5b7   : > { %v5226_v62 = vadd.f32 %v5225_v63, %v5157_v24  ;;  %v8001_v63 = vld [vmem:[%s12215_s9 + $0x164] sm:$0xf0]  ;;  %v12447_v24 = vpack.c.bf16 %v12446_v57, %v12446_v57  ;;  %v7786_v57 = vld [vmem:[%s12215_s9 + $0x1f0] sm:$0xf] }
 0x5b8   : > { %v5635_v21 = vunpack.c.l.b16 %v12445_v10  ;;  %v7715_v39 = vor.u32 %v8001_v63, %v7714_v0  ;;  %v7995_v0 = vld [vmem:[%s12215_s9 + $0x134] sm:$0xf0]  ;;  %v5098_v63 = vadd.f32 %v10856_v61, %v10710_v54 }
 0x5b9   : > { %v5485_v7 = vmax.f32 %v5226_v62, 0.0  ;;  %v5227_v52 = vpop.f32.mrf.mxu2  ;;  %v10968_v12 = vpop.f32.mrf.mxu1  ;;  %v5636_v55 = vunpack.c.l.b16 %v12447_v24  ;;  %6259 = vmatpush.bf16.msra.mxu1 %v7603_v17  ;;  %v8019_v24 = vld [vmem:[%s12215_s9 + $0x1f4] sm:$0xf0] }
 0x5ba   : > { %6322 = vmatpush.bf16.msrb.mxu0 %v7715_v39  ;;  %v7787_v17 = vor.u32 %v8019_v24, %v7786_v57  ;;  %v7596_v57 = vld [vmem:[%s12215_s9 + $0x78] sm:$0xf0] }
 0x5bb   : > { %v5533_v35 = vmin.f32 %v5485_v7, 6.0  ;;  %v11013_v7 = vpack.c.b16 %v5636_v55, %v5635_v21  ;;  %v12448_v55 = vld [vmem:[#allocation19_spill] sm:$0xff] }
 0x5bc   : > { %v5158_v32 = vpop.f32.mrf.mxu3  ;;  %v12449_v39 = vpack.c.bf16 %v12448_v55, %v12448_v55  ;;  %6390 = vmatpush.bf16.msra.mxu3 %v7787_v17 }
 0x5bd   : > { %5581 = vst [vmem:[%s8921_s12 + $0x1c0] sm:$0xff] %v5533_v35  ;;  %v5159_v42 = vadd.f32 %v5158_v32, %v5090_v43  ;;  %v7999_v43 = vld [vmem:[%s12215_s9 + $0x154] sm:$0xf0]  ;;  %v5095_v35 = vadd.f32 %v10842_v11, %v10710_v54 }
 0x5be   : > { %6211 = vmatmul.bf16.gmra.mxu2 %v10970_v27  ;;  %v5637_v61 = vunpack.c.l.b16 %v12449_v39 }
 0x5bf   : > { %v5228_v25 = vadd.f32 %v5227_v52, %v5159_v42  ;;  %v7706_v52 = vld [vmem:[%s12215_s9 + $0x150] sm:$0xf] }
 0x5c0   : > { %v7707_v42 = vor.u32 %v7999_v43, %v7706_v52  ;;  %v7850_v52 = vld [vmem:[%s12215_s9 + $0x270] sm:$0xf] }
 0x5c1   : > { %v5487_v16 = vmax.f32 %v5228_v25, 0.0  ;;  %5416 = vmatmul.bf16.gmra.mxu3 %v10572_v22  ;;  %v5230_v48 = vpop.f32.mrf.mxu2  ;;  %v10979_v59 = vpop.f32.mrf.mxu1 }
 0x5c2   : > { %6323 = vmatpush.bf16.msrb.mxu0 %v7707_v42 }
 0x5c3   : > { %v5535_v56 = vmin.f32 %v5487_v16, 6.0 }
 0x5c4   : > { %v5161_v15 = vpop.f32.mrf.mxu3  ;;  %5303 = vmatmul.bf16.gmra.mxu1 %v10612_v23 }
 0x5c5   : > { %5583 = vst [vmem:[%s8921_s12 + $0x1e0] sm:$0xff] %v5535_v56  ;;  %v5162_v22 = vadd.f32 %v5161_v15, %v5093_v1  ;;  %v11034_v15 = vpop.f32.mrf.mxu0 }
 0x5c7   : > { %v5231_v3 = vadd.f32 %v5230_v48, %v5162_v22  ;;  %v7698_v48 = vld [vmem:[%s12215_s9 + $0x140] sm:$0xf]  ;;  %v7690_v22 = vld [vmem:[%s12215_s9 + $0x130] sm:$0xf] }
 0x5c8   : > { %v7699_v37 = vor.u32 %v7997_v30, %v7698_v48  ;;  %v7691_v10 = vor.u32 %v7995_v0, %v7690_v22 }
 0x5c9   : > { %v5489_v26 = vmax.f32 %v5231_v3, 0.0  ;;  %v5232_v58 = vpop.f32.mrf.mxu2  ;;  %v11011_v62 = vpop.f32.mrf.mxu1  ;;  %v5638_v3 = vunpack.c.l.b16 %v12451_v20  ;;  %v5103_v20 = vadd.f32 %v10892_v53, %v10710_v54 }
 0x5ca   : > { %6324 = vmatpush.bf16.msrb.mxu0 %v7699_v37  ;;  %v7674_v37 = vld [vmem:[%s12215_s9 + $0x110] sm:$0xf] }
 0x5cb   : > { %v5537_v32 = vmin.f32 %v5489_v26, 6.0  ;;  %v7682_v26 = vld [vmem:[%s12215_s9 + $0x120] sm:$0xf]  ;;  %v11072_v30 = vpack.c.b16 %v5638_v3, %v5637_v61 }
 0x5cc   : > { %v5163_v25 = vpop.f32.mrf.mxu3 }
 0x5cd   : > { %5585 = vst [vmem:[%s8921_s12 + $0x200] sm:$0xff] %v5537_v32  ;;  %v5164_v16 = vadd.f32 %v5163_v25, %v5095_v35  ;;  %v8035_v32 = vld [vmem:[%s12215_s9 + $0x274] sm:$0xf0]  ;;  %v11082_v0 = vpop.f32.mrf.mxu0 }
 0x5ce   : > { %6216 = vmatmul.bf16.gmra.mxu2 %v11013_v7  ;;  %6325 = vmatpush.bf16.msrb.mxu0 %v7691_v10  ;;  %v7851_v42 = vor.u32 %v8035_v32, %v7850_v52  ;;  %v7666_v10 = vld [vmem:[%s12215_s9 + $0x100] sm:$0xf] }
 0x5cf   : > { %v5233_v1 = vadd.f32 %v5232_v58, %v5164_v16  ;;  %v7993_v58 = vld [vmem:[%s12215_s9 + $0x124] sm:$0xf0] }
 0x5d0   : > { %v7683_v35 = vor.u32 %v7993_v58, %v7682_v26  ;;  %6459 = vmatpush.bf16.msra.mxu2 %v7851_v42 }
 0x5d1   : > { %v5491_v11 = vmax.f32 %v5233_v1, 0.0  ;;  %5421 = vmatmul.bf16.gmra.mxu3 %v10580_v40  ;;  %v5235_v56 = vpop.f32.mrf.mxu2  ;;  %v11032_v46 = vpop.f32.mrf.mxu1  ;;  %v7991_v1 = vld [vmem:[%s12215_s9 + $0x114] sm:$0xf0] }
 0x5d2   : > { %6326 = vmatpush.bf16.msrb.mxu0 %v7683_v35  ;;  %v7675_v22 = vor.u32 %v7991_v1, %v7674_v37  ;;  %v12454_v35 = vld [vmem:[#allocation22_spill] sm:$0xff] }
 0x5d3   : > { %v5539_v5 = vmin.f32 %v5491_v11, 6.0  ;;  %v5100_v11 = vadd.f32 %v10869_v19, %v10710_v54  ;;  %v7970_v19 = vld [vmem:[%s12215_s9 + $0x74] sm:$0xf]  ;;  %v12455_v32 = vpack.c.bf16 %v12454_v35, %v12454_v35 }
 0x5d4   : > { %v5166_v40 = vpop.f32.mrf.mxu3  ;;  %5308 = vmatmul.bf16.gmra.mxu1 %v10627_v45  ;;  %v7599_v55 = vor.u32 %v7970_v19, %v7596_v57 }
 0x5d5   : > { %5587 = vst [vmem:[%s8921_s12 + $0x220] sm:$0xff] %v5539_v5  ;;  %v5167_v21 = vadd.f32 %v5166_v40, %v5098_v63  ;;  %v7989_v40 = vld [vmem:[%s12215_s9 + $0x104] sm:$0xf0]  ;;  %v11106_v58 = vpop.f32.mrf.mxu0  ;;  %v5640_v42 = vunpack.c.l.b16 %v12455_v32 }
 0x5d6   : > { %6327 = vmatpush.bf16.msrb.mxu0 %v7675_v22  ;;  %6528 = vmatpush.bf16.msrb.mxu1 %v7599_v55  ;;  %v7778_v22 = vld [vmem:[%s12215_s9 + $0x1e0] sm:$0xf]  ;;  %v5108_v55 = vadd.f32 %v10925_v60, %v10710_v54 }
 0x5d7   : > { %v5236_v43 = vadd.f32 %v5235_v56, %v5167_v21  ;;  %v7667_v21 = vor.u32 %v7989_v40, %v7666_v10 }
 0x5d9   : > { %v5493_v25 = vmax.f32 %v5236_v43, 0.0  ;;  %v5237_v16 = vpop.f32.mrf.mxu2  ;;  %v11070_v48 = vpop.f32.mrf.mxu1 }
 0x5da   : > { %6328 = vmatpush.bf16.msrb.mxu0 %v7667_v21 }
 0x5db   : > { %v5541_v56 = vmin.f32 %v5493_v25, 6.0 }
 0x5dc   : > { %v5168_v63 = vpop.f32.mrf.mxu3 }
 0x5dd   : > { %5589 = vst [vmem:[%s8921_s12 + $0x240] sm:$0xff] %v5541_v56  ;;  %v5169_v5 = vadd.f32 %v5168_v63, %v5100_v11  ;;  %6329 = vmatmul.bf16.vlgmr.msrb.gmra.mxu0 %v10910_v13  ;;  %v5105_v11 = vadd.f32 %v10908_v31, %v10710_v54  ;;  %v11128_v19 = vpop.f32.mrf.mxu0 }
 0x5de   : > { %6221 = vmatmul.bf16.gmra.mxu2 %v11072_v30 }
 0x5df   : > { %v5238_v24 = vadd.f32 %v5237_v16, %v5169_v5  ;;  %v8017_v5 = vld [vmem:[%s12215_s9 + $0x1e4] sm:$0xf0] }
 0x5e0   : > { %v7779_v40 = vor.u32 %v8017_v5, %v7778_v22  ;;  %v11159_v22 = vperm.slane %v10696_v50, 1  ;;  %v7968_v5 = vld [vmem:[%s12215_s9 + $0x64] sm:$0xf] }
 0x5e1   : > { %v5495_v39 = vmax.f32 %v5238_v24, 0.0  ;;  %5426 = vmatmul.bf16.gmra.mxu3 %v10596_v44  ;;  %v5240_v61 = vpop.f32.mrf.mxu2  ;;  %v11099_v51 = vpop.f32.mrf.mxu1  ;;  %v12452_v44 = vld [vmem:[#allocation21_spill] sm:$0xff] }
 0x5e2   : > { %v12453_v52 = vpack.c.bf16 %v12452_v44, %v12452_v44  ;;  %6391 = vmatpush.bf16.msra.mxu3 %v7779_v40  ;;  %v5260_v50 = vadd.f32 %v10948_v29, %v11159_v22 }
 0x5e3   : > { %v5543_v3 = vmin.f32 %v5495_v39, 6.0 }
 0x5e4   : > { %v5171_v17 = vpop.f32.mrf.mxu3  ;;  %5313 = vmatmul.bf16.gmra.mxu1 %v10659_v6  ;;  %v5639_v43 = vunpack.c.l.b16 %v12453_v52  ;;  %v12459_v52 = vld [vmem:[#allocation24_spill] sm:$0xff] }
 0x5e5   : > { %5591 = vst [vmem:[%s8921_s12 + $0x260] sm:$0xff] %v5543_v3  ;;  %v5172_v26 = vadd.f32 %v5171_v17, %v5103_v20  ;;  %v8033_v20 = vld [vmem:[%s12215_s9 + $0x264] sm:$0xf0] }
 0x5e6   : > { %v11116_v1 = vpack.c.b16 %v5640_v42, %v5639_v43  ;;  %v12460_v43 = vpack.c.bf16 %v12459_v52, %v12459_v52 }
 0x5e7   : > { %v5241_v53 = vadd.f32 %v5240_v61, %v5172_v26  ;;  %v7842_v61 = vld [vmem:[%s12215_s9 + $0x260] sm:$0xf]  ;;  %v12457_v26 = vld [vmem:[#allocation23_spill] sm:$0xff] }
 0x5e8   : > { %12456 = vst [vmem:[#allocation39_spill] sm:$0xff] %v11116_v1  ;;  %v7843_v17 = vor.u32 %v8033_v20, %v7842_v61  ;;  %v12458_v60 = vpack.c.bf16 %v12457_v26, %v12457_v26  ;;  %v5642_v35 = vunpack.c.l.b16 %v12460_v43  ;;  %v5329_v61 = vadd.f32 %v10865_v33, %v5260_v50  ;;  %v7770_v20 = vld [vmem:[%s12215_s9 + $0x1d0] sm:$0xf]  ;;  %v12461_v33 = vld [vmem:[#allocation25_spill] sm:$0xff] }
 0x5e9   : > { %v5497_v25 = vmax.f32 %v5241_v53, 0.0  ;;  %v5242_v16 = vpop.f32.mrf.mxu2  ;;  %v11114_v37 = vpop.f32.mrf.mxu1  ;;  %v12462_v26 = vpack.c.bf16 %v12461_v33, %v12461_v33  ;;  %v7580_v33 = vld [vmem:[%s12215_s9 + $0x58] sm:$0xf0] }
 0x5ea   : > { %v5641_v44 = vunpack.c.l.b16 %v12458_v60  ;;  %6460 = vmatpush.bf16.msra.mxu2 %v7843_v17 }
 0x5eb   : > { %v5545_v56 = vmin.f32 %v5497_v25, 6.0  ;;  %v5643_v60 = vunpack.c.l.b16 %v12462_v26 }
 0x5ec   : > { %v5173_v63 = vpop.f32.mrf.mxu3 }
 0x5ed   : > { %5593 = vst [vmem:[%s8921_s12 + $0x280] sm:$0xff] %v5545_v56  ;;  %v5174_v10 = vadd.f32 %v5173_v63, %v5105_v11  ;;  %6334 = vmatmul.bf16.gmra.mxu0 %v10941_v34  ;;  %v11154_v11 = vpack.c.b16 %v5642_v35, %v5641_v44  ;;  %v5110_v56 = vadd.f32 %v10937_v4, %v10710_v54  ;;  %v12463_v44 = vld [vmem:[#allocation26_spill] sm:$0xff] }
 0x5ee   : > { %6226 = vmatmul.bf16.gmra.mxu2 %v11116_v1  ;;  %v12464_v52 = vpack.c.bf16 %v12463_v44, %v12463_v44  ;;  %v5262_v35 = vadd.f32 %v10968_v12, %v11159_v22 }
 0x5ef   : > { %v5243_v21 = vadd.f32 %v5242_v16, %v5174_v10  ;;  %v11152_v16 = vpop.f32.mrf.mxu0  ;;  %v7588_v10 = vld [vmem:[%s12215_s9 + $0x68] sm:$0xf0] }
 0x5f0   : > { %v5644_v43 = vunpack.c.l.b16 %v12464_v52  ;;  %v8011_v52 = vld [vmem:[%s12215_s9 + $0x1b4] sm:$0xf0] }
 0x5f1   : > { %v5499_v31 = vmax.f32 %v5243_v21, 0.0  ;;  %5431 = vmatmul.bf16.gmra.mxu3 %v10612_v23  ;;  %v5245_v57 = vpop.f32.mrf.mxu2  ;;  %v11131_v24 = vpop.f32.mrf.mxu1  ;;  %v7591_v21 = vor.u32 %v7968_v5, %v7588_v10  ;;  %v5331_v5 = vadd.f32 %v10889_v47, %v5262_v35  ;;  %v7834_v10 = vld [vmem:[%s12215_s9 + $0x250] sm:$0xf] }
 0x5f3   : > { %v5547_v39 = vmin.f32 %v5499_v31, 6.0  ;;  %6529 = vmatpush.bf16.msrb.mxu1 %v7591_v21 }
 0x5f4   : > { %v5176_v3 = vpop.f32.mrf.mxu3  ;;  %6260 = vmatmul.bf16.vlgmr.msra.gmra.mxu1 %v10885_v49 }
 0x5f5   : > { %5595 = vst [vmem:[%s8921_s12 + $0x2a0] sm:$0xff] %v5547_v39  ;;  %v5177_v23 = vadd.f32 %v5176_v3, %v5108_v55  ;;  %v8015_v3 = vld [vmem:[%s12215_s9 + $0x1d4] sm:$0xf0] }
 0x5f7   : > { %v5246_v32 = vadd.f32 %v5245_v57, %v5177_v23  ;;  %v11183_v29 = vpop.f32.mrf.mxu0 }
 0x5f9   : > { %v5501_v42 = vmax.f32 %v5246_v32, 0.0  ;;  %v5247_v53 = vpop.f32.mrf.mxu2  ;;  %v11150_v25 = vpop.f32.mrf.mxu1 }
 0x5fb   : > { %v5549_v63 = vmin.f32 %v5501_v42, 6.0 }
 0x5fc   : > { %v5178_v40 = vpop.f32.mrf.mxu3 }
 0x5fd   : > { %5597 = vst [vmem:[%s8921_s12 + $0x2c0] sm:$0xff] %v5549_v63  ;;  %v5179_v31 = vadd.f32 %v5178_v40, %v5110_v56  ;;  %6339 = vmatmul.bf16.gmra.mxu0 %v10970_v27  ;;  %v11200_v63 = vpack.c.b16 %v5644_v43, %v5643_v60  ;;  %v8031_v40 = vld [vmem:[%s12215_s9 + $0x254] sm:$0xf0] }
 0x5fe   : > { %6231 = vmatmul.bf16.gmra.mxu2 %v11154_v11  ;;  %v7835_v21 = vor.u32 %v8031_v40, %v7834_v10  ;;  %v12467_v10 = vld [vmem:[#allocation28_spill] sm:$0xff] }
 0x5ff   : > { %v5248_v54 = vadd.f32 %v5247_v53, %v5179_v31  ;;  %v11210_v50 = vpop.f32.mrf.mxu0  ;;  %v12468_v40 = vpack.c.bf16 %v12467_v10, %v12467_v10 }
 0x600   : > { %6461 = vmatpush.bf16.msra.mxu2 %v7835_v21  ;;  %v7818_v21 = vld [vmem:[%s12215_s9 + $0x230] sm:$0xf] }
 0x601   : > { %v5503_v4 = vmax.f32 %v5248_v54, 0.0  ;;  %5436 = vmatmul.bf16.gmra.mxu3 %v10627_v45  ;;  %v11172_v57 = vpop.f32.mrf.mxu2  ;;  %v11174_v55 = vpop.f32.mrf.mxu1  ;;  %v7771_v45 = vor.u32 %v8015_v3, %v7770_v20  ;;  %v5265_v54 = vadd.f32 %v10979_v59, %v11159_v22  ;;  %v7826_v59 = vld [vmem:[%s12215_s9 + $0x240] sm:$0xf] }
 0x603   : > { %v5551_v39 = vmin.f32 %v5503_v4, 6.0  ;;  %6392 = vmatpush.bf16.msra.mxu3 %v7771_v45  ;;  %v7762_v4 = vld [vmem:[%s12215_s9 + $0x1c0] sm:$0xf]  ;;  %v8029_v45 = vld [vmem:[%s12215_s9 + $0x244] sm:$0xf0] }
 0x604   : > { %v5397_v17 = vpop.f32.mrf.mxu3  ;;  %6265 = vmatmul.bf16.gmra.mxu1 %v10910_v13  ;;  %v7827_v26 = vor.u32 %v8029_v45, %v7826_v59 }
 0x605   : > { %5599 = vst [vmem:[%s8921_s12 + $0x2e0] sm:$0xff] %v5551_v39  ;;  %v5398_v23 = vadd.f32 %v5397_v17, %v5329_v61  ;;  %v8013_v39 = vld [vmem:[%s12215_s9 + $0x1c4] sm:$0xf0] }
 0x606   : > { %v7763_v17 = vor.u32 %v8013_v39, %v7762_v4  ;;  %6462 = vmatpush.bf16.msra.mxu2 %v7827_v26  ;;  %v8025_v26 = vld [vmem:[%s12215_s9 + $0x224] sm:$0xf0] }
 0x607   : > { %v5458_v32 = vmax.f32 %v5398_v23, 0.0  ;;  %v5334_v23 = vadd.f32 %v10900_v9, %v5265_v54  ;;  %v7754_v9 = vld [vmem:[%s12215_s9 + $0x1b0] sm:$0xf]  ;;  %v5267_v54 = vadd.f32 %v11011_v62, %v11159_v22  ;;  %v11262_v39 = vpop.f32.mrf.mxu0 }
 0x608   : > { %6393 = vmatpush.bf16.msra.mxu3 %v7763_v17  ;;  %v7755_v35 = vor.u32 %v8011_v52, %v7754_v9  ;;  %v8009_v17 = vld [vmem:[%s12215_s9 + $0x1a4] sm:$0xf0]  ;;  %v7738_v9 = vld [vmem:[%s12215_s9 + $0x190] sm:$0xf]  ;;  %v8007_v52 = vld [vmem:[%s12215_s9 + $0x194] sm:$0xf0] }
 0x609   : > { %v5506_v42 = vmin.f32 %v5458_v32, 6.0  ;;  %v11196_v53 = vpop.f32.mrf.mxu2  ;;  %v11198_v56 = vpop.f32.mrf.mxu1  ;;  %v12465_v32 = vld [vmem:[#allocation27_spill] sm:$0xff] }
 0x60b   : > { %5554 = vst [vmem:[%s8921_s12 + $0x8] sm:$0xff] %v5506_v42  ;;  %v12466_v42 = vpack.c.bf16 %v12465_v32, %v12465_v32 }
 0x60c   : > { %v5399_v12 = vpop.f32.mrf.mxu3  ;;  %6394 = vmatpush.bf16.msra.mxu3 %v7755_v35  ;;  %v7739_v35 = vor.u32 %v8007_v52, %v7738_v9  ;;  %v12471_v9 = vld [vmem:[#allocation30_spill] sm:$0xff] }
 0x60d   : > { %v5400_v31 = vadd.f32 %v5399_v12, %v5331_v5  ;;  %6344 = vmatmul.bf16.gmra.mxu0 %v11013_v7  ;;  %v5645_v5 = vunpack.c.l.b16 %v12466_v42  ;;  %v5646_v12 = vunpack.c.l.b16 %v12468_v40  ;;  %v8023_v42 = vld [vmem:[%s12215_s9 + $0x214] sm:$0xf0]  ;;  %v12472_v52 = vpack.c.bf16 %v12471_v9, %v12471_v9 }
 0x60e   : > { %6236 = vmatmul.bf16.gmra.mxu2 %v11200_v63 }
 0x60f   : > { %v5460_v47 = vmax.f32 %v5400_v31, 0.0  ;;  %v8027_v31 = vld [vmem:[%s12215_s9 + $0x234] sm:$0xf0] }
 0x610   : > { %v7819_v4 = vor.u32 %v8027_v31, %v7818_v21  ;;  %v8005_v21 = vld [vmem:[%s12215_s9 + $0x184] sm:$0xf0] }
 0x611   : > { %v5508_v61 = vmin.f32 %v5460_v47, 6.0  ;;  %5441 = vmatmul.bf16.gmra.mxu3 %v10659_v6  ;;  %v11222_v20 = vpop.f32.mrf.mxu2  ;;  %v11224_v3 = vpop.f32.mrf.mxu1  ;;  %v7966_v6 = vld [vmem:[%s12215_s9 + $0x54] sm:$0xf] }
 0x612   : > { %v7583_v44 = vor.u32 %v7966_v6, %v7580_v33  ;;  %6463 = vmatpush.bf16.msra.mxu2 %v7819_v4  ;;  %v11274_v6 = vpack.c.b16 %v5646_v12, %v5645_v5  ;;  %v7810_v33 = vld [vmem:[%s12215_s9 + $0x220] sm:$0xf]  ;;  %v5270_v5 = vadd.f32 %v11032_v46, %v11159_v22  ;;  %v11310_v4 = vpop.f32.mrf.mxu0 }
 0x613   : > { %5556 = vst [vmem:[%s8921_s12 + $0x28] sm:$0xff] %v5508_v61  ;;  %v7746_v61 = vld [vmem:[%s12215_s9 + $0x1a0] sm:$0xf] }
 0x614   : > { %v5402_v60 = vpop.f32.mrf.mxu3  ;;  %6270 = vmatmul.bf16.gmra.mxu1 %v10941_v34  ;;  %v7747_v62 = vor.u32 %v8009_v17, %v7746_v61  ;;  %v7730_v12 = vld [vmem:[%s12215_s9 + $0x180] sm:$0xf]  ;;  %v8021_v17 = vld [vmem:[%s12215_s9 + $0x204] sm:$0xf0] }
 0x615   : > { %v5403_v43 = vadd.f32 %v5402_v60, %v5334_v23  ;;  %6530 = vmatpush.bf16.msrb.mxu1 %v7583_v44  ;;  %v5336_v60 = vadd.f32 %v10922_v2, %v5267_v54  ;;  %v7811_v44 = vor.u32 %v8025_v26, %v7810_v33  ;;  %v7802_v2 = vld [vmem:[%s12215_s9 + $0x210] sm:$0xf]  ;;  %v7731_v46 = vor.u32 %v8005_v21, %v7730_v12  ;;  %v7794_v61 = vld [vmem:[%s12215_s9 + $0x200] sm:$0xf] }
 0x616   : > { %6395 = vmatpush.bf16.msra.mxu3 %v7747_v62  ;;  %v7803_v40 = vor.u32 %v8023_v42, %v7802_v2  ;;  %v12469_v26 = vld [vmem:[#allocation29_spill] sm:$0xff] }
 0x617   : > { %v5462_v47 = vmax.f32 %v5403_v43, 0.0  ;;  %6464 = vmatpush.bf16.msra.mxu2 %v7811_v44 }
 0x619   : > { %v5510_v59 = vmin.f32 %v5462_v47, 6.0  ;;  %v11270_v45 = vpop.f32.mrf.mxu2  ;;  %v11272_v23 = vpop.f32.mrf.mxu1 }
 0x61a   : > { %6396 = vmatpush.bf16.msra.mxu3 %v7739_v35  ;;  %v11344_v12 = vpop.f32.mrf.mxu0 }
 0x61b   : > { %5558 = vst [vmem:[%s8921_s12 + $0x48] sm:$0xff] %v5510_v59  ;;  %6465 = vmatpush.bf16.msra.mxu2 %v7803_v40  ;;  %v5339_v59 = vadd.f32 %v10939_v38, %v5270_v5  ;;  %v5272_v38 = vadd.f32 %v11070_v48, %v11159_v22  ;;  %v7964_v40 = vld [vmem:[%s12215_s9 + $0x44] sm:$0xf]  ;;  %v7572_v48 = vld [vmem:[%s12215_s9 + $0x48] sm:$0xf0] }
 0x61c   : > { %v5404_v43 = vpop.f32.mrf.mxu3 }
 0x61d   : > { %v5405_v32 = vadd.f32 %v5404_v43, %v5336_v60  ;;  %6349 = vmatmul.bf16.gmra.mxu0 %v11072_v30  ;;  %v12470_v60 = vpack.c.bf16 %v12469_v26, %v12469_v26  ;;  %v5648_v43 = vunpack.c.l.b16 %v12472_v52 }
 0x61e   : > { %6241 = vmatmul.bf16.gmra.mxu2 %v11274_v6  ;;  %6397 = vmatpush.bf16.msra.mxu3 %v7731_v46 }
 0x61f   : > { %v5464_v10 = vmax.f32 %v5405_v32, 0.0  ;;  %v5647_v44 = vunpack.c.l.b16 %v12470_v60 }
 0x621   : > { %v5512_v31 = vmin.f32 %v5464_v10, 6.0  ;;  %5446 = vmatmul.bf16.gmra.mxu3 %v10784_v41  ;;  %v11306_v54 = vpop.f32.mrf.mxu2  ;;  %v11308_v47 = vpop.f32.mrf.mxu1  ;;  %v7795_v41 = vor.u32 %v8021_v17, %v7794_v61  ;;  %v11334_v5 = vpack.c.b16 %v5648_v43, %v5647_v44  ;;  %v5341_v10 = vadd.f32 %v10952_v36, %v5272_v38 }
 0x622   : > { %v5275_v61 = vadd.f32 %v11099_v51, %v11159_v22  ;;  %v11358_v60 = vpop.f32.mrf.mxu0  ;;  %v5277_v51 = vadd.f32 %v11114_v37, %v11159_v22 }
 0x623   : > { %5560 = vst [vmem:[%s8921_s12 + $0x68] sm:$0xff] %v5512_v31  ;;  %6466 = vmatpush.bf16.msra.mxu2 %v7795_v41  ;;  %v7575_v31 = vor.u32 %v7964_v40, %v7572_v48 }
 0x624   : > { %v5407_v62 = vpop.f32.mrf.mxu3  ;;  %6275 = vmatmul.bf16.gmra.mxu1 %v10970_v27 }
 0x625   : > { %v5408_v33 = vadd.f32 %v5407_v62, %v5339_v59  ;;  %6531 = vmatpush.bf16.msrb.mxu1 %v7575_v31  ;;  %v5344_v62 = vadd.f32 %v10975_v14, %v5275_v61  ;;  %v5346_v14 = vadd.f32 %v11009_v28, %v5277_v51 }
 0x627   : > { %v5466_v35 = vmax.f32 %v5408_v33, 0.0 }
 0x629   : > { %v5514_v32 = vmin.f32 %v5466_v35, 6.0  ;;  %v11330_v2 = vpop.f32.mrf.mxu2  ;;  %v11332_v42 = vpop.f32.mrf.mxu1  ;;  %v5280_v35 = vadd.f32 %v11131_v24, %v11159_v22  ;;  %v7564_v24 = vld [vmem:[%s12215_s9 + $0x38] sm:$0xf0] }
 0x62b   : > { %5562 = vst [vmem:[%s8921_s12 + $0x88] sm:$0xff] %v5514_v32  ;;  %v5349_v28 = vadd.f32 %v11034_v15, %v5280_v35 }
 0x62c   : > { %v5409_v21 = vpop.f32.mrf.mxu3 }
 0x62d   : > { %v5410_v46 = vadd.f32 %v5409_v21, %v5341_v10  ;;  %6354 = vmatmul.bf16.gmra.mxu0 %v11116_v1  ;;  %v11371_v10 = vpop.f32.mrf.mxu0  ;;  %v7962_v21 = vld [vmem:[%s12215_s9 + $0x34] sm:$0xf] }
 0x62e   : > { %6246 = vmatmul.bf16.gmra.mxu2 %v11334_v5 }
 0x62f   : > { %v5468_v36 = vmax.f32 %v5410_v46, 0.0  ;;  %v7567_v46 = vor.u32 %v7962_v21, %v7564_v24 }
 0x631   : > { %v5516_v17 = vmin.f32 %v5468_v36, 6.0  ;;  %5451 = vmatmul.bf16.gmra.mxu3 %v10830_v8  ;;  %v11350_v59 = vpop.f32.mrf.mxu2  ;;  %v11352_v41 = vpop.f32.mrf.mxu1  ;;  %6532 = vmatpush.bf16.msrb.mxu1 %v7567_v46  ;;  %v5282_v36 = vadd.f32 %v11150_v25, %v11159_v22 }
 0x633   : > { %5564 = vst [vmem:[%s8921_s12 + $0xa8] sm:$0xff] %v5516_v17  ;;  %v5351_v51 = vadd.f32 %v11082_v0, %v5282_v36  ;;  %v7556_v36 = vld [vmem:[%s12215_s9 + $0x28] sm:$0xf0] }
 0x634   : > { %v5412_v33 = vpop.f32.mrf.mxu3  ;;  %6280 = vmatmul.bf16.gmra.mxu1 %v11013_v7 }
 0x635   : > { %v5413_v26 = vadd.f32 %v5412_v33, %v5344_v62 }
 0x637   : > { %v5470_v44 = vmax.f32 %v5413_v26, 0.0  ;;  %v11394_v26 = vpop.f32.mrf.mxu0 }
 0x639   : > { %v5518_v8 = vmin.f32 %v5470_v44, 6.0  ;;  %v11362_v9 = vpop.f32.mrf.mxu2  ;;  %v11364_v52 = vpop.f32.mrf.mxu1 }
 0x63b   : > { %5566 = vst [vmem:[%s8921_s12 + $0xc8] sm:$0xff] %v5518_v8 }
 0x63c   : > { %v5414_v43 = vpop.f32.mrf.mxu3 }
 0x63d   : > { %v5415_v38 = vadd.f32 %v5414_v43, %v5346_v14  ;;  %6359 = vmatmul.bf16.gmra.mxu0 %v11154_v11  ;;  %v5285_v14 = vadd.f32 %v11174_v55, %v11159_v22 }
 0x63e   : > { %6467 = vmatmul.bf16.vlgmr.msra.gmra.mxu2 %v10970_v27 }
 0x63f   : > { %v5472_v32 = vmax.f32 %v5415_v38, 0.0  ;;  %v11408_v0 = vpop.f32.mrf.mxu0 }
 0x641   : > { %v5520_v37 = vmin.f32 %v5472_v32, 6.0  ;;  %6398 = vmatmul.bf16.vlgmr.msra.gmra.mxu3 %v10941_v34  ;;  %v11374_v40 = vpop.f32.mrf.mxu2  ;;  %v11376_v48 = vpop.f32.mrf.mxu1  ;;  %v5354_v32 = vadd.f32 %v11106_v58, %v5285_v14 }
 0x643   : > { %5568 = vst [vmem:[%s8921_s12 + $0xe8] sm:$0xff] %v5520_v37 }
 0x644   : > { %v5417_v31 = vpop.f32.mrf.mxu3  ;;  %6285 = vmatmul.bf16.gmra.mxu1 %v11072_v30 }
 0x645   : > { %v5418_v61 = vadd.f32 %v5417_v31, %v5349_v28  ;;  %v5287_v28 = vadd.f32 %v11198_v56, %v11159_v22 }
 0x647   : > { %v5474_v15 = vmax.f32 %v5418_v61, 0.0  ;;  %v5356_v58 = vadd.f32 %v11128_v19, %v5287_v28  ;;  %v7960_v61 = vld [vmem:[%s12215_s9 + $0x24] sm:$0xf]  ;;  %v5292_v28 = vadd.f32 %v11272_v23, %v11159_v22 }
 0x649   : > { %v5522_v17 = vmin.f32 %v5474_v15, 6.0  ;;  %v11390_v62 = vpop.f32.mrf.mxu2  ;;  %v11392_v33 = vpop.f32.mrf.mxu1 }
 0x64a   : > { %v11426_v15 = vpop.f32.mrf.mxu0 }
 0x64b   : > { %5570 = vst [vmem:[%s8921_s12 + $0x108] sm:$0xff] %v5522_v17  ;;  %v7559_v17 = vor.u32 %v7960_v61, %v7556_v36  ;;  %v5361_v36 = vadd.f32 %v11183_v29, %v5292_v28 }
 0x64c   : > { %v5419_v44 = vpop.f32.mrf.mxu3 }
 0x64d   : > { %v5420_v8 = vadd.f32 %v5419_v44, %v5351_v51  ;;  %6364 = vmatmul.bf16.gmra.mxu0 %v11200_v63  ;;  %6533 = vmatpush.bf16.msrb.mxu1 %v7559_v17  ;;  %v5290_v44 = vadd.f32 %v11224_v3, %v11159_v22  ;;  %v5777_v3 = vld [vmem:[%s12216_s10] sm:$0x3] }
 0x64e   : > { %6472 = vmatmul.bf16.gmra.mxu2 %v11013_v7  ;;  %v11451_v61 = vperm.slane %v5777_v3, 0 }
 0x64f   : > { %v5476_v25 = vmax.f32 %v5420_v8, 0.0 }
 0x651   : > { %v5524_v43 = vmin.f32 %v5476_v25, 6.0  ;;  %6403 = vmatmul.bf16.gmra.mxu3 %v10970_v27  ;;  %v11402_v38 = vpop.f32.mrf.mxu2  ;;  %v11404_v35 = vpop.f32.mrf.mxu1 }
 0x653   : > { %5572 = vst [vmem:[%s8921_s12 + $0x128] sm:$0xff] %v5524_v43  ;;  %v5359_v43 = vadd.f32 %v11152_v16, %v5290_v44  ;;  %v5295_v44 = vadd.f32 %v11308_v47, %v11159_v22  ;;  %v7548_v47 = vld [vmem:[%s12215_s9 + $0x18] sm:$0xf0] }
 0x654   : > { %v5422_v37 = vpop.f32.mrf.mxu3  ;;  %6290 = vmatmul.bf16.gmra.mxu1 %v11116_v1 }
 0x655   : > { %v5423_v55 = vadd.f32 %v5422_v37, %v5354_v32 }
 0x657   : > { %v5478_v21 = vmax.f32 %v5423_v55, 0.0  ;;  %v11440_v55 = vpop.f32.mrf.mxu0 }
 0x659   : > { %v5526_v24 = vmin.f32 %v5478_v21, 6.0  ;;  %v11414_v31 = vpop.f32.mrf.mxu2  ;;  %v11416_v46 = vpop.f32.mrf.mxu1 }
 0x65b   : > { %5574 = vst [vmem:[%s8921_s12 + $0x148] sm:$0xff] %v5526_v24 }
 0x65c   : > { %v5424_v56 = vpop.f32.mrf.mxu3 }
 0x65d   : > { %v5425_v51 = vadd.f32 %v5424_v56, %v5356_v58  ;;  %6369 = vmatmul.bf16.gmra.mxu0 %v11274_v6 }
 0x65e   : > { %6477 = vmatmul.bf16.gmra.mxu2 %v11072_v30 }
 0x65f   : > { %v5480_v19 = vmax.f32 %v5425_v51, 0.0  ;;  %v6193_v51 = vadd.f32 %v11172_v57, %v11451_v61  ;;  %v11458_v23 = vpop.f32.mrf.mxu0  ;;  %v7958_v57 = vld [vmem:[%s12215_s9 + $0x14] sm:$0xf] }
 0x660   : > { %v7551_v28 = vor.u32 %v7958_v57, %v7548_v47  ;;  %v12473_v47 = vld [vmem:[#allocation31_spill] sm:$0xff] }
 0x661   : > { %v5528_v8 = vmin.f32 %v5480_v19, 6.0  ;;  %6408 = vmatmul.bf16.gmra.mxu3 %v11013_v7  ;;  %v11432_v14 = vpop.f32.mrf.mxu2  ;;  %v11434_v25 = vpop.f32.mrf.mxu1 }
 0x662   : > { %6534 = vmatpush.bf16.msrb.mxu1 %v7551_v28 }
 0x663   : > { %5576 = vst [vmem:[%s8921_s12 + $0x168] sm:$0xff] %v5528_v8 }
 0x664   : > { %v5427_v32 = vpop.f32.mrf.mxu3  ;;  %6295 = vmatmul.bf16.gmra.mxu1 %v11154_v11 }
 0x665   : > { %v5428_v37 = vadd.f32 %v5427_v32, %v5359_v43 }
 0x667   : > { %v5482_v21 = vmax.f32 %v5428_v37, 0.0  ;;  %v5364_v37 = vadd.f32 %v11210_v50, %v5295_v44  ;;  %v5297_v50 = vadd.f32 %v11332_v42, %v11159_v22  ;;  %v6198_v42 = vadd.f32 %v11222_v20, %v11451_v61 }
 0x669   : > { %v5530_v24 = vmin.f32 %v5482_v21, 6.0  ;;  %v11447_v58 = vpop.f32.mrf.mxu2  ;;  %v11449_v16 = vpop.f32.mrf.mxu1 }
 0x66b   : > { %5578 = vst [vmem:[%s8921_s12 + $0x188] sm:$0xff] %v5530_v24 }
 0x66c   : > { %v5429_v56 = vpop.f32.mrf.mxu3 }
 0x66d   : > { %v5430_v17 = vadd.f32 %v5429_v56, %v5361_v36  ;;  %6374 = vmatmul.bf16.gmra.mxu0 %v11334_v5  ;;  %v6195_v36 = vadd.f32 %v11196_v53, %v11451_v61  ;;  %v11481_v56 = vpop.f32.mrf.mxu0  ;;  %v5300_v53 = vadd.f32 %v11352_v41, %v11159_v22 }
 0x66e   : > { %6482 = vmatmul.bf16.gmra.mxu2 %v11116_v1 }
 0x66f   : > { %v5484_v19 = vmax.f32 %v5430_v17, 0.0 }
 0x671   : > { %v5532_v8 = vmin.f32 %v5484_v19, 6.0  ;;  %6413 = vmatmul.bf16.gmra.mxu3 %v11072_v30  ;;  %v11463_v43 = vpop.f32.mrf.mxu2  ;;  %v6261_v32 = vpop.f32.mrf.mxu1 }
 0x672   : > { %v11465_v29 = vadd.f32 %v6261_v32, %v6193_v51 }
 0x673   : > { %5580 = vst [vmem:[%s8921_s12 + $0x1a8] sm:$0xff] %v5532_v8  ;;  %v5366_v8 = vadd.f32 %v11262_v39, %v5297_v50 }
 0x674   : > { %v5432_v3 = vpop.f32.mrf.mxu3  ;;  %6300 = vmatmul.bf16.gmra.mxu1 %v11200_v63 }
 0x675   : > { %v5433_v21 = vadd.f32 %v5432_v3, %v5364_v37  ;;  %v12474_v3 = vpack.c.bf16 %v12473_v47, %v12473_v47 }
 0x677   : > { %v5486_v24 = vmax.f32 %v5433_v21, 0.0  ;;  %v5675_v28 = vunpack.c.l.b16 %v12474_v3  ;;  %v12475_v21 = vld [vmem:[#allocation32_spill] sm:$0xff]  ;;  %v7984_v3 = vld [vmem:[%s12215_s9 + $0xe4] sm:$0xf] }
 0x679   : > { %v5534_v17 = vmin.f32 %v5486_v24, 6.0  ;;  %v11483_v51 = vpop.f32.mrf.mxu2  ;;  %v6263_v44 = vpop.f32.mrf.mxu1  ;;  %v12476_v24 = vpack.c.bf16 %v12475_v21, %v12475_v21 }
 0x67a   : > { %v11485_v19 = vadd.f32 %v6263_v44, %v6195_v36  ;;  %v11505_v44 = vpop.f32.mrf.mxu0 }
 0x67b   : > { %5582 = vst [vmem:[%s8921_s12 + $0x1c8] sm:$0xff] %v5534_v17  ;;  %v5676_v39 = vunpack.c.l.b16 %v12476_v24  ;;  %v6200_v24 = vadd.f32 %v11270_v45, %v11451_v61  ;;  %v7956_v45 = vld [vmem:[%s12215_s9 + $0x4] sm:$0xf] }
 0x67c   : > { %v5434_v32 = vpop.f32.mrf.mxu3 }
 0x67d   : > { %v5435_v37 = vadd.f32 %v5434_v32, %v5366_v8  ;;  %v11507_v41 = vpack.c.b16 %v5676_v39, %v5675_v28  ;;  %v7986_v8 = vld [vmem:[%s12215_s9 + $0xf4] sm:$0xf]  ;;  %v7660_v32 = vld [vmem:[%s12215_s9 + $0xf8] sm:$0xf0]  ;;  %v7652_v28 = vld [vmem:[%s12215_s9 + $0xe8] sm:$0xf0] }
 0x67e   : > { %6487 = vmatmul.bf16.gmra.mxu2 %v11154_v11  ;;  %v7655_v21 = vor.u32 %v7984_v3, %v7652_v28 }
 0x67f   : > { %v5488_v57 = vmax.f32 %v5435_v37, 0.0  ;;  %v5369_v37 = vadd.f32 %v11310_v4, %v5300_v53  ;;  %6379 = vmatmul.bf16.gmra.mxu0 %v11507_v41  ;;  %v5302_v4 = vadd.f32 %v11364_v52, %v11159_v22  ;;  %v7644_v52 = vld [vmem:[%s12215_s9 + $0xd8] sm:$0xf0] }
 0x681   : > { %v5536_v50 = vmin.f32 %v5488_v57, 6.0  ;;  %6418 = vmatmul.bf16.gmra.mxu3 %v11116_v1  ;;  %v11501_v36 = vpop.f32.mrf.mxu2  ;;  %v6266_v20 = vpop.f32.mrf.mxu1  ;;  %v7663_v57 = vor.u32 %v7986_v8, %v7660_v32  ;;  %v7982_v32 = vld [vmem:[%s12215_s9 + $0xd4] sm:$0xf] }
 0x682   : > { %v11503_v17 = vadd.f32 %v6266_v20, %v6198_v42  ;;  %v11547_v3 = vpop.f32.mrf.mxu0 }
 0x683   : > { %5584 = vst [vmem:[%s8921_s12 + $0x1e8] sm:$0xff] %v5536_v50  ;;  %6597 = vmatpush.bf16.msra.mxu0 %v7663_v57  ;;  %v7540_v57 = vld [vmem:[%s12215_s9 + $0x8] sm:$0xf0] }
 0x684   : > { %v5437_v47 = vpop.f32.mrf.mxu3  ;;  %6305 = vmatmul.bf16.gmra.mxu1 %v11274_v6  ;;  %v7543_v28 = vor.u32 %v7956_v45, %v7540_v57 }
 0x685   : > { %v5438_v42 = vadd.f32 %v5437_v47, %v5369_v37  ;;  %v5371_v37 = vadd.f32 %v11344_v12, %v5302_v4  ;;  %v7647_v47 = vor.u32 %v7982_v32, %v7644_v52  ;;  %v7980_v12 = vld [vmem:[%s12215_s9 + $0xc4] sm:$0xf]  ;;  %v7636_v4 = vld [vmem:[%s12215_s9 + $0xc8] sm:$0xf0] }
 0x686   : > { %6535 = vmatpush.bf16.msrb.mxu1 %v7543_v28  ;;  %v12477_v32 = vld [vmem:[#allocation33_spill] sm:$0xff] }
 0x687   : > { %v5490_v53 = vmax.f32 %v5438_v42, 0.0  ;;  %6598 = vmatpush.bf16.msra.mxu0 %v7655_v21  ;;  %v6203_v21 = vadd.f32 %v11306_v54, %v11451_v61  ;;  %v12478_v54 = vpack.c.bf16 %v12477_v32, %v12477_v32 }
 0x689   : > { %v5538_v39 = vmin.f32 %v5490_v53, 6.0  ;;  %v11529_v50 = vpop.f32.mrf.mxu2  ;;  %v6268_v20 = vpop.f32.mrf.mxu1  ;;  %v5681_v52 = vunpack.c.l.b16 %v12478_v54 }
 0x68a   : > { %v11531_v8 = vadd.f32 %v6268_v20, %v6200_v24  ;;  %v5305_v24 = vadd.f32 %v11376_v48, %v11159_v22  ;;  %v7639_v20 = vor.u32 %v7980_v12, %v7636_v4  ;;  %v7628_v12 = vld [vmem:[%s12215_s9 + $0xb8] sm:$0xf0] }
 0x68b   : > { %5586 = vst [vmem:[%s8921_s12 + $0x208] sm:$0xff] %v5538_v39  ;;  %6599 = vmatpush.bf16.msra.mxu0 %v7647_v47 }
 0x68c   : > { %v5439_v42 = vpop.f32.mrf.mxu3  ;;  %v5374_v4 = vadd.f32 %v11358_v60, %v5305_v24  ;;  %v7976_v60 = vld [vmem:[%s12215_s9 + $0xa4] sm:$0xf]  ;;  %v7620_v24 = vld [vmem:[%s12215_s9 + $0xa8] sm:$0xf0] }
 0x68d   : > { %v5440_v53 = vadd.f32 %v5439_v42, %v5371_v37  ;;  %v12479_v37 = vld [vmem:[#allocation34_spill] sm:$0xff] }
 0x68e   : > { %6492 = vmatmul.bf16.gmra.mxu2 %v11200_v63  ;;  %v12480_v45 = vpack.c.bf16 %v12479_v37, %v12479_v37  ;;  %v11589_v37 = vpop.f32.mrf.mxu0 }
 0x68f   : > { %v5492_v39 = vmax.f32 %v5440_v53, 0.0  ;;  %6600 = vmatpush.bf16.msra.mxu0 %v7639_v20  ;;  %v7978_v53 = vld [vmem:[%s12215_s9 + $0xb4] sm:$0xf] }
 0x690   : > { %v5682_v57 = vunpack.c.l.b16 %v12480_v45  ;;  %v8002_v20 = vld [vmem:[%s12215_s9 + $0x174] sm:$0xf]  ;;  %v5307_v45 = vadd.f32 %v11392_v33, %v11159_v22  ;;  %v7612_v33 = vld [vmem:[%s12215_s9 + $0x98] sm:$0xf0] }
 0x691   : > { %v5540_v47 = vmin.f32 %v5492_v39, 6.0  ;;  %6423 = vmatmul.bf16.gmra.mxu3 %v11154_v11  ;;  %v11567_v42 = vpop.f32.mrf.mxu2  ;;  %v6271_v28 = vpop.f32.mrf.mxu1  ;;  %v7631_v39 = vor.u32 %v7978_v53, %v7628_v12 }
 0x692   : > { %v11569_v1 = vadd.f32 %v6271_v28, %v6203_v21  ;;  %v11571_v48 = vpack.c.b16 %v5682_v57, %v5681_v52  ;;  %v7724_v21 = vld [vmem:[%s12215_s9 + $0x178] sm:$0xf0]  ;;  %v6205_v28 = vadd.f32 %v11330_v2, %v11451_v61  ;;  %v8018_v2 = vld [vmem:[%s12215_s9 + $0x1f4] sm:$0xf] }
 0x693   : > { %5588 = vst [vmem:[%s8921_s12 + $0x228] sm:$0xff] %v5540_v47  ;;  %v7727_v54 = vor.u32 %v8002_v20, %v7724_v21  ;;  %6601 = vmatpush.bf16.msra.mxu0 %v7631_v39  ;;  %v7623_v47 = vor.u32 %v7976_v60, %v7620_v24  ;;  %v7974_v20 = vld [vmem:[%s12215_s9 + $0x94] sm:$0xf]  ;;  %v5376_v21 = vadd.f32 %v11371_v10, %v5307_v45  ;;  %v7972_v10 = vld [vmem:[%s12215_s9 + $0x84] sm:$0xf] }
 0x694   : > { %v5442_v32 = vpop.f32.mrf.mxu3  ;;  %6310 = vmatmul.bf16.gmra.mxu1 %v11334_v5  ;;  %6384 = vmatmul.bf16.gmra.mxu0 %v11571_v48  ;;  %v7604_v45 = vld [vmem:[%s12215_s9 + $0x88] sm:$0xf0] }
 0x695   : > { %v5443_v52 = vadd.f32 %v5442_v32, %v5374_v4  ;;  %6666 = vmatpush.bf16.msrb.mxu3 %v7727_v54  ;;  %v7788_v32 = vld [vmem:[%s12215_s9 + $0x1f8] sm:$0xf0]  ;;  %v7615_v54 = vor.u32 %v7974_v20, %v7612_v33 }
 0x696   : > { %v7791_v60 = vor.u32 %v8018_v2, %v7788_v32  ;;  %v7852_v32 = vld [vmem:[%s12215_s9 + $0x278] sm:$0xf0] }
 0x697   : > { %v5494_v57 = vmax.f32 %v5443_v52, 0.0  ;;  %6602 = vmatpush.bf16.msra.mxu0 %v7623_v47  ;;  %v5310_v47 = vadd.f32 %v11404_v35, %v11159_v22  ;;  %v8034_v35 = vld [vmem:[%s12215_s9 + $0x274] sm:$0xf] }
 0x698   : > { %6735 = vmatpush.bf16.msrb.mxu2 %v7791_v60 }
 0x699   : > { %v5542_v53 = vmin.f32 %v5494_v57, 6.0  ;;  %v11601_v12 = vpop.f32.mrf.mxu2  ;;  %v6273_v4 = vpop.f32.mrf.mxu1  ;;  %v6208_v57 = vadd.f32 %v11350_v59, %v11451_v61  ;;  %v5379_v2 = vadd.f32 %v11394_v26, %v5310_v47  ;;  %v5312_v26 = vadd.f32 %v11416_v46, %v11159_v22  ;;  %v8000_v46 = vld [vmem:[%s12215_s9 + $0x164] sm:$0xf] }
 0x69a   : > { %v11603_v39 = vadd.f32 %v6273_v4, %v6205_v28  ;;  %v11630_v4 = vpop.f32.mrf.mxu0 }
 0x69b   : > { %5590 = vst [vmem:[%s8921_s12 + $0x248] sm:$0xff] %v5542_v53  ;;  %6603 = vmatpush.bf16.msra.mxu0 %v7615_v54  ;;  %v7607_v53 = vor.u32 %v7972_v10, %v7604_v45 }
 0x69c   : > { %v5444_v52 = vpop.f32.mrf.mxu3 }
 0x69d   : > { %v5445_v24 = vadd.f32 %v5444_v52, %v5376_v21  ;;  %v7855_v52 = vor.u32 %v8034_v35, %v7852_v32  ;;  %v8016_v35 = vld [vmem:[%s12215_s9 + $0x1e4] sm:$0xf]  ;;  %v6213_v32 = vadd.f32 %v11374_v40, %v11451_v61 }
 0x69e   : > { %6497 = vmatmul.bf16.gmra.mxu2 %v11274_v6 }
 0x69f   : > { %v5496_v28 = vmax.f32 %v5445_v24, 0.0  ;;  %6604 = vmatpush.bf16.msra.mxu0 %v7607_v53  ;;  %6804 = vmatpush.bf16.msra.mxu1 %v7855_v52  ;;  %v5315_v52 = vadd.f32 %v11434_v25, %v11159_v22 }
 0x6a1   : > { %v5544_v20 = vmin.f32 %v5496_v28, 6.0  ;;  %6428 = vmatmul.bf16.gmra.mxu3 %v11200_v63  ;;  %v11633_v59 = vpop.f32.mrf.mxu2  ;;  %v6276_v33 = vpop.f32.mrf.mxu1 }
 0x6a2   : > { %v11635_v21 = vadd.f32 %v6276_v33, %v6208_v57  ;;  %v6210_v57 = vadd.f32 %v11362_v9, %v11451_v61  ;;  %v11653_v28 = vpop.f32.mrf.mxu0  ;;  %v7716_v9 = vld [vmem:[%s12215_s9 + $0x168] sm:$0xf0] }
 0x6a3   : > { %5592 = vst [vmem:[%s8921_s12 + $0x268] sm:$0xff] %v5544_v20  ;;  %v5381_v20 = vadd.f32 %v11408_v0, %v5312_v26  ;;  %v7719_v0 = vor.u32 %v8000_v46, %v7716_v9  ;;  %v7844_v46 = vld [vmem:[%s12215_s9 + $0x268] sm:$0xf0] }
 0x6a4   : > { %v5447_v54 = vpop.f32.mrf.mxu3  ;;  %6315 = vmatmul.bf16.gmra.mxu1 %v11507_v41  ;;  %6605 = vmatmul.bf16.vlgmr.msra.gmra.mxu0 %v10885_v49 }
 0x6a5   : > { %v5448_v60 = vadd.f32 %v5447_v54, %v5379_v2  ;;  %v7780_v54 = vld [vmem:[%s12215_s9 + $0x1e8] sm:$0xf0]  ;;  %6667 = vmatpush.bf16.msrb.mxu3 %v7719_v0 }
 0x6a6   : > { %v7783_v26 = vor.u32 %v8016_v35, %v7780_v54 }
 0x6a7   : > { %v5498_v24 = vmax.f32 %v5448_v60, 0.0 }
 0x6a8   : > { %6736 = vmatpush.bf16.msrb.mxu2 %v7783_v26 }
 0x6a9   : > { %v5546_v10 = vmin.f32 %v5498_v24, 6.0  ;;  %v11651_v45 = vpop.f32.mrf.mxu2  ;;  %v6278_v47 = vpop.f32.mrf.mxu1 }
 0x6aa   : > { %v11655_v53 = vadd.f32 %v6278_v47, %v6210_v57  ;;  %v5384_v47 = vadd.f32 %v11426_v15, %v5315_v52  ;;  %v5317_v15 = vadd.f32 %v11449_v16, %v11159_v22  ;;  %v6218_v22 = vadd.f32 %v11402_v38, %v11451_v61 }
 0x6ab   : > { %5594 = vst [vmem:[%s8921_s12 + $0x288] sm:$0xff] %v5546_v10 }
 0x6ac   : > { %v5449_v33 = vpop.f32.mrf.mxu3 }
 0x6ad   : > { %v5450_v2 = vadd.f32 %v5449_v33, %v5381_v20  ;;  %v11683_v33 = vpop.f32.mrf.mxu0 }
 0x6ae   : > { %6502 = vmatmul.bf16.gmra.mxu2 %v11334_v5 }
 0x6af   : > { %v5500_v60 = vmax.f32 %v5450_v2, 0.0  ;;  %v8032_v2 = vld [vmem:[%s12215_s9 + $0x264] sm:$0xf] }
 0x6b0   : > { %v7847_v9 = vor.u32 %v8032_v2, %v7844_v46  ;;  %v7998_v46 = vld [vmem:[%s12215_s9 + $0x154] sm:$0xf] }
 0x6b1   : > { %v5548_v24 = vmin.f32 %v5500_v60, 6.0  ;;  %6433 = vmatmul.bf16.gmra.mxu3 %v11274_v6  ;;  %v11677_v57 = vpop.f32.mrf.mxu2  ;;  %v6281_v10 = vpop.f32.mrf.mxu1  ;;  %v5386_v60 = vadd.f32 %v11440_v55, %v5317_v15  ;;  %v6331_v55 = vadd.f32 %v11458_v23, %v11465_v29  ;;  %v8014_v15 = vld [vmem:[%s12215_s9 + $0x1d4] sm:$0xf] }
 0x6b2   : > { %v11679_v40 = vadd.f32 %v6281_v10, %v6213_v32  ;;  %v6215_v32 = vadd.f32 %v11390_v62, %v11451_v61  ;;  %6805 = vmatpush.bf16.msra.mxu1 %v7847_v9  ;;  %v7708_v9 = vld [vmem:[%s12215_s9 + $0x158] sm:$0xf0] }
 0x6b3   : > { %5596 = vst [vmem:[%s8921_s12 + $0x2a8] sm:$0xff] %v5548_v24  ;;  %v7711_v23 = vor.u32 %v7998_v46, %v7708_v9 }
 0x6b4   : > { %v5452_v20 = vpop.f32.mrf.mxu3  ;;  %6536 = vmatmul.bf16.vlgmr.msrb.gmra.mxu1 %v10858_v18  ;;  %6610 = vmatmul.bf16.gmra.mxu0 %v10910_v13 }
 0x6b5   : > { %v5453_v25 = vadd.f32 %v5452_v20, %v5384_v47  ;;  %v11705_v16 = vpop.f32.mrf.mxu0  ;;  %6668 = vmatpush.bf16.msrb.mxu3 %v7711_v23 }
 0x6b7   : > { %v5502_v35 = vmax.f32 %v5453_v25, 0.0 }
 0x6b9   : > { %v5550_v18 = vmin.f32 %v5502_v35, 6.0  ;;  %v11697_v0 = vpop.f32.mrf.mxu2  ;;  %v6283_v54 = vpop.f32.mrf.mxu1 }
 0x6ba   : > { %v11699_v52 = vadd.f32 %v6283_v54, %v6215_v32  ;;  %v6220_v32 = vadd.f32 %v11414_v31, %v11451_v61  ;;  %v8030_v31 = vld [vmem:[%s12215_s9 + $0x254] sm:$0xf] }
 0x6bb   : > { %5598 = vst [vmem:[%s8921_s12 + $0x2c8] sm:$0xff] %v5550_v18 }
 0x6bc   : > { %v5454_v26 = vpop.f32.mrf.mxu3 }
 0x6bd   : > { %v5455_v24 = vadd.f32 %v5454_v26, %v5386_v60  ;;  %v11730_v18 = vpop.f32.mrf.mxu0 }
 0x6be   : > { %6507 = vmatmul.bf16.gmra.mxu2 %v11507_v41 }
 0x6bf   : > { %v5504_v62 = vmax.f32 %v5455_v24, 0.0 }
 0x6c1   : > { %v5552_v10 = vmin.f32 %v5504_v62, 6.0  ;;  %6438 = vmatmul.bf16.gmra.mxu3 %v11334_v5  ;;  %v6468_v47 = vpop.f32.mrf.mxu2  ;;  %v6286_v20 = vpop.f32.mrf.mxu1 }
 0x6c2   : > { %v11709_v25 = vadd.f32 %v6286_v20, %v6218_v22  ;;  %v6333_v22 = vadd.f32 %v11481_v56, %v11485_v19  ;;  %v7836_v20 = vld [vmem:[%s12215_s9 + $0x258] sm:$0xf0]  ;;  %v7996_v56 = vld [vmem:[%s12215_s9 + $0x144] sm:$0xf]  ;;  %v7700_v19 = vld [vmem:[%s12215_s9 + $0x148] sm:$0xf0] }
 0x6c3   : > { %5600 = vst [vmem:[%s8921_s12 + $0x2e8] sm:$0xff] %v5552_v10 }
 0x6c4   : > { %v6399_v2 = vpop.f32.mrf.mxu3  ;;  %6541 = vmatmul.bf16.gmra.mxu1 %v10885_v49  ;;  %6615 = vmatmul.bf16.gmra.mxu0 %v10941_v34  ;;  %v7772_v49 = vld [vmem:[%s12215_s9 + $0x1d8] sm:$0xf0] }
 0x6c5   : > { %v6400_v38 = vadd.f32 %v6399_v2, %v6331_v55  ;;  %v7775_v35 = vor.u32 %v8014_v15, %v7772_v49  ;;  %v6223_v55 = vadd.f32 %v11432_v14, %v11451_v61  ;;  %v7839_v2 = vor.u32 %v8030_v31, %v7836_v20  ;;  %v11753_v23 = vpop.f32.mrf.mxu0  ;;  %v12481_v31 = vld [vmem:[#allocation35_spill] sm:$0xff] }
 0x6c6   : > { %v7703_v14 = vor.u32 %v7996_v56, %v7700_v19  ;;  %v12482_v20 = vpack.c.bf16 %v12481_v31, %v12481_v31  ;;  %v7990_v31 = vld [vmem:[%s12215_s9 + $0x114] sm:$0xf] }
 0x6c7   : > { %v6469_v29 = vadd.f32 %v6468_v47, %v6400_v38  ;;  %6737 = vmatpush.bf16.msrb.mxu2 %v7775_v35  ;;  %6806 = vmatpush.bf16.msra.mxu1 %v7839_v2  ;;  %v7764_v35 = vld [vmem:[%s12215_s9 + $0x1c8] sm:$0xf0]  ;;  %v12483_v2 = vld [vmem:[#allocation36_spill] sm:$0xff] }
 0x6c8   : > { %6669 = vmatpush.bf16.msrb.mxu3 %v7703_v14  ;;  %v7992_v14 = vld [vmem:[%s12215_s9 + $0x124] sm:$0xf] }
 0x6c9   : > { %v6873_v54 = vmax.f32 %v6469_v29, 0.0  ;;  %v6470_v60 = vpop.f32.mrf.mxu2  ;;  %v6288_v26 = vpop.f32.mrf.mxu1  ;;  %v8012_v29 = vld [vmem:[%s12215_s9 + $0x1c4] sm:$0xf] }
 0x6ca   : > { %v11732_v24 = vadd.f32 %v6288_v26, %v6220_v32  ;;  %v6336_v32 = vadd.f32 %v11505_v44, %v11503_v17  ;;  %v8010_v44 = vld [vmem:[%s12215_s9 + $0x1b4] sm:$0xf] }
 0x6cb   : > { %v6921_v62 = vmin.f32 %v6873_v54, 6.0 }
 0x6cc   : > { %v6401_v10 = vpop.f32.mrf.mxu3 }
 0x6cd   : > { %6969 = vst [vmem:[%s8921_s12 + $0x10] sm:$0xff] %v6921_v62  ;;  %v6402_v47 = vadd.f32 %v6401_v10, %v6333_v22  ;;  %v7994_v22 = vld [vmem:[%s12215_s9 + $0x134] sm:$0xf]  ;;  %v7692_v62 = vld [vmem:[%s12215_s9 + $0x138] sm:$0xf0] }
 0x6ce   : > { %6512 = vmatmul.bf16.gmra.mxu2 %v11571_v48  ;;  %v7695_v17 = vor.u32 %v7994_v22, %v7692_v62  ;;  %v7748_v22 = vld [vmem:[%s12215_s9 + $0x1a8] sm:$0xf0]  ;;  %v6338_v62 = vadd.f32 %v11547_v3, %v11531_v8  ;;  %v8006_v8 = vld [vmem:[%s12215_s9 + $0x194] sm:$0xf]  ;;  %v7740_v3 = vld [vmem:[%s12215_s9 + $0x198] sm:$0xf0] }
 0x6cf   : > { %v6471_v38 = vadd.f32 %v6470_v60, %v6402_v47  ;;  %v7767_v60 = vor.u32 %v8012_v29, %v7764_v35  ;;  %v7756_v47 = vld [vmem:[%s12215_s9 + $0x1b8] sm:$0xf0]  ;;  %v7684_v29 = vld [vmem:[%s12215_s9 + $0x128] sm:$0xf0] }
 0x6d0   : > { %v7759_v19 = vor.u32 %v8010_v44, %v7756_v47  ;;  %6670 = vmatpush.bf16.msrb.mxu3 %v7695_v17  ;;  %v11806_v44 = vpop.f32.mrf.mxu0 }
 0x6d1   : > { %v6875_v46 = vmax.f32 %v6471_v38, 0.0  ;;  %6443 = vmatmul.bf16.gmra.mxu3 %v11507_v41  ;;  %v6473_v9 = vpop.f32.mrf.mxu2  ;;  %v6291_v15 = vpop.f32.mrf.mxu1  ;;  %6738 = vmatpush.bf16.msrb.mxu2 %v7767_v60  ;;  %v12484_v38 = vpack.c.bf16 %v12483_v2, %v12483_v2  ;;  %v7687_v60 = vor.u32 %v7992_v14, %v7684_v29 }
 0x6d2   : > { %v11755_v49 = vadd.f32 %v6291_v15, %v6223_v55  ;;  %v5687_v55 = vunpack.c.l.b16 %v12482_v20  ;;  %v6225_v15 = vadd.f32 %v11447_v58, %v11451_v61  ;;  %v8008_v58 = vld [vmem:[%s12215_s9 + $0x1a4] sm:$0xf]  ;;  %v7676_v20 = vld [vmem:[%s12215_s9 + $0x118] sm:$0xf0] }
 0x6d3   : > { %v6923_v54 = vmin.f32 %v6875_v46, 6.0  ;;  %v5688_v56 = vunpack.c.l.b16 %v12484_v38  ;;  %v7751_v17 = vor.u32 %v8008_v58, %v7748_v22  ;;  %v7679_v2 = vor.u32 %v7990_v31, %v7676_v20  ;;  %v7828_v31 = vld [vmem:[%s12215_s9 + $0x248] sm:$0xf0] }
 0x6d4   : > { %v6404_v26 = vpop.f32.mrf.mxu3  ;;  %6546 = vmatmul.bf16.gmra.mxu1 %v10910_v13  ;;  %6620 = vmatmul.bf16.gmra.mxu0 %v10970_v27  ;;  %v6228_v38 = vadd.f32 %v11463_v43, %v11451_v61  ;;  %v6341_v58 = vadd.f32 %v11589_v37, %v11569_v1  ;;  %v12485_v37 = vld [vmem:[#allocation37_spill] sm:$0xff] }
 0x6d5   : > { %6971 = vst [vmem:[%s8921_s12 + $0x30] sm:$0xff] %v6923_v54  ;;  %v6405_v10 = vadd.f32 %v6404_v26, %v6336_v32  ;;  %6739 = vmatpush.bf16.msrb.mxu2 %v7759_v19  ;;  %6671 = vmatpush.bf16.msrb.mxu3 %v7687_v60  ;;  %v7732_v60 = vld [vmem:[%s12215_s9 + $0x188] sm:$0xf0]  ;;  %v12486_v20 = vpack.c.bf16 %v12485_v37, %v12485_v37 }
 0x6d7   : > { %v6474_v46 = vadd.f32 %v6473_v9, %v6405_v10  ;;  %v11796_v9 = vpack.c.b16 %v5688_v56, %v5687_v55  ;;  %v7743_v56 = vor.u32 %v8006_v8, %v7740_v3 }
 0x6d8   : > { %v11850_v1 = vpop.f32.mrf.mxu0 }
 0x6d9   : > { %v6877_v35 = vmax.f32 %v6474_v46, 0.0  ;;  %v6475_v32 = vpop.f32.mrf.mxu2  ;;  %v6293_v54 = vpop.f32.mrf.mxu1  ;;  %6740 = vmatpush.bf16.msrb.mxu2 %v7751_v17  ;;  %6672 = vmatpush.bf16.msrb.mxu3 %v7679_v2  ;;  %v7988_v46 = vld [vmem:[%s12215_s9 + $0x104] sm:$0xf]  ;;  %v12487_v2 = vld [vmem:[#allocation38_spill] sm:$0xff] }
 0x6da   : > { %v11794_v26 = vadd.f32 %v6293_v54, %v6225_v15  ;;  %v7668_v15 = vld [vmem:[%s12215_s9 + $0x108] sm:$0xf0]  ;;  %v12488_v8 = vpack.c.bf16 %v12487_v2, %v12487_v2 }
 0x6db   : > { %v6925_v10 = vmin.f32 %v6877_v35, 6.0  ;;  %v7671_v43 = vor.u32 %v7988_v46, %v7668_v15 }
 0x6dc   : > { %v6406_v47 = vpop.f32.mrf.mxu3  ;;  %v5694_v3 = vunpack.c.l.b16 %v12488_v8 }
 0x6dd   : > { %6973 = vst [vmem:[%s8921_s12 + $0x50] sm:$0xff] %v6925_v10  ;;  %v6407_v55 = vadd.f32 %v6406_v47, %v6338_v62  ;;  %6741 = vmatpush.bf16.msrb.mxu2 %v7743_v56  ;;  %6673 = vmatpush.bf16.msrb.mxu3 %v7671_v43  ;;  %v8028_v47 = vld [vmem:[%s12215_s9 + $0x244] sm:$0xf] }
 0x6de   : > { %6517 = vmatmul.bf16.gmra.mxu2 %v11796_v9 }
 0x6df   : > { %v6476_v19 = vadd.f32 %v6475_v32, %v6407_v55  ;;  %v8004_v32 = vld [vmem:[%s12215_s9 + $0x184] sm:$0xf]  ;;  %v5693_v55 = vunpack.c.l.b16 %v12486_v20 }
 0x6e0   : > { %v7735_v62 = vor.u32 %v8004_v32, %v7732_v60  ;;  %v6343_v32 = vadd.f32 %v11630_v4, %v11603_v39  ;;  %v6346_v39 = vadd.f32 %v11653_v28, %v11635_v21  ;;  %v6348_v21 = vadd.f32 %v11683_v33, %v11655_v53 }
 0x6e1   : > { %v6879_v14 = vmax.f32 %v6476_v19, 0.0  ;;  %6448 = vmatmul.bf16.gmra.mxu3 %v11571_v48  ;;  %v6478_v29 = vpop.f32.mrf.mxu2  ;;  %v6296_v35 = vpop.f32.mrf.mxu1  ;;  %v6230_v19 = vadd.f32 %v11483_v51, %v11451_v61  ;;  %v11862_v43 = vpack.c.b16 %v5694_v3, %v5693_v55  ;;  %v6235_v55 = vadd.f32 %v11529_v50, %v11451_v61  ;;  %v7820_v50 = vld [vmem:[%s12215_s9 + $0x238] sm:$0xf0] }
 0x6e2   : > { %v11831_v54 = vadd.f32 %v6296_v35, %v6228_v38  ;;  %6742 = vmatpush.bf16.msrb.mxu2 %v7735_v62  ;;  %v7831_v38 = vor.u32 %v8028_v47, %v7828_v31  ;;  %v11870_v62 = vpop.f32.mrf.mxu0 }
 0x6e3   : > { %v6927_v22 = vmin.f32 %v6879_v14, 6.0 }
 0x6e4   : > { %v6409_v10 = vpop.f32.mrf.mxu3  ;;  %6551 = vmatmul.bf16.gmra.mxu1 %v10941_v34  ;;  %6625 = vmatmul.bf16.gmra.mxu0 %v11013_v7 }
 0x6e5   : > { %6975 = vst [vmem:[%s8921_s12 + $0x70] sm:$0xff] %v6927_v22  ;;  %v6410_v17 = vadd.f32 %v6409_v10, %v6341_v58  ;;  %6807 = vmatpush.bf16.msra.mxu1 %v7831_v38 }
 0x6e7   : > { %v6479_v56 = vadd.f32 %v6478_v29, %v6410_v17  ;;  %v6233_v29 = vadd.f32 %v11501_v36, %v11451_v61 }
 0x6e9   : > { %v6881_v46 = vmax.f32 %v6479_v56, 0.0  ;;  %v6480_v15 = vpop.f32.mrf.mxu2  ;;  %v6298_v14 = vpop.f32.mrf.mxu1 }
 0x6ea   : > { %v11860_v35 = vadd.f32 %v6298_v14, %v6230_v19  ;;  %v11882_v38 = vpop.f32.mrf.mxu0  ;;  %v6238_v14 = vadd.f32 %v11567_v42, %v11451_v61 }
 0x6eb   : > { %v6929_v60 = vmin.f32 %v6881_v46, 6.0 }
 0x6ec   : > { %v6411_v58 = vpop.f32.mrf.mxu3 }
 0x6ed   : > { %6977 = vst [vmem:[%s8921_s12 + $0x90] sm:$0xff] %v6929_v60  ;;  %v6412_v22 = vadd.f32 %v6411_v58, %v6343_v32 }
 0x6ee   : > { %6522 = vmatmul.bf16.gmra.mxu2 %v11862_v43 }
 0x6ef   : > { %v6481_v51 = vadd.f32 %v6480_v15, %v6412_v22  ;;  %v8026_v15 = vld [vmem:[%s12215_s9 + $0x234] sm:$0xf] }
 0x6f0   : > { %v7823_v32 = vor.u32 %v8026_v15, %v7820_v50  ;;  %v7812_v50 = vld [vmem:[%s12215_s9 + $0x228] sm:$0xf0] }
 0x6f1   : > { %v6883_v10 = vmax.f32 %v6481_v51, 0.0  ;;  %6453 = vmatmul.bf16.gmra.mxu3 %v11796_v9  ;;  %v6483_v17 = vpop.f32.mrf.mxu2  ;;  %v6301_v47 = vpop.f32.mrf.mxu1 }
 0x6f2   : > { %v11873_v31 = vadd.f32 %v6301_v47, %v6233_v29  ;;  %6808 = vmatpush.bf16.msra.mxu1 %v7823_v32  ;;  %v6351_v29 = vadd.f32 %v11705_v16, %v11679_v40  ;;  %v6353_v40 = vadd.f32 %v11730_v18, %v11699_v52  ;;  %v6356_v52 = vadd.f32 %v11753_v23, %v11709_v25 }
 0x6f3   : > { %v6931_v4 = vmin.f32 %v6883_v10, 6.0  ;;  %v11903_v10 = vpop.f32.mrf.mxu0  ;;  %v6245_v25 = vadd.f32 %v11651_v45, %v11451_v61 }
 0x6f4   : > { %v6414_v37 = vpop.f32.mrf.mxu3  ;;  %6556 = vmatmul.bf16.gmra.mxu1 %v10970_v27  ;;  %6630 = vmatmul.bf16.gmra.mxu0 %v11072_v30 }
 0x6f5   : > { %6979 = vst [vmem:[%s8921_s12 + $0xb0] sm:$0xff] %v6931_v4  ;;  %v6415_v36 = vadd.f32 %v6414_v37, %v6346_v39 }
 0x6f7   : > { %v6484_v20 = vadd.f32 %v6483_v17, %v6415_v36  ;;  %v12489_v17 = vld [vmem:[#allocation39_spill] sm:$0xff] }
 0x6f9   : > { %v6885_v2 = vmax.f32 %v6484_v20, 0.0  ;;  %v6485_v8 = vpop.f32.mrf.mxu2  ;;  %v6303_v3 = vpop.f32.mrf.mxu1 }
 0x6fa   : > { %v11884_v56 = vadd.f32 %v6303_v3, %v6235_v55 }
 0x6fb   : > { %v6933_v28 = vmin.f32 %v6885_v2, 6.0  ;;  %v11917_v3 = vpop.f32.mrf.mxu0 }
 0x6fc   : > { %v6416_v19 = vpop.f32.mrf.mxu3 }
 0x6fd   : > { %6981 = vst [vmem:[%s8921_s12 + $0xd0] sm:$0xff] %v6933_v28  ;;  %v6417_v46 = vadd.f32 %v6416_v19, %v6348_v21 }
 0x6fe   : > { %6743 = vmatmul.bf16.vlgmr.msrb.gmra.mxu2 %v10941_v34 }
 0x6ff   : > { %v6486_v53 = vadd.f32 %v6485_v8, %v6417_v46  ;;  %v6243_v8 = vadd.f32 %v11633_v59, %v11451_v61 }
 0x701   : > { %v6887_v33 = vmax.f32 %v6486_v53, 0.0  ;;  %6674 = vmatmul.bf16.vlgmr.msrb.gmra.mxu3 %v10910_v13  ;;  %v6488_v60 = vpop.f32.mrf.mxu2  ;;  %v6306_v58 = vpop.f32.mrf.mxu1  ;;  %v6240_v13 = vadd.f32 %v11601_v12, %v11451_v61 }
 0x702   : > { %v11899_v22 = vadd.f32 %v6306_v58, %v6238_v14 }
 0x703   : > { %v6935_v51 = vmin.f32 %v6887_v33, 6.0  ;;  %v11936_v23 = vpop.f32.mrf.mxu0 }
 0x704   : > { %v6419_v42 = vpop.f32.mrf.mxu3  ;;  %6561 = vmatmul.bf16.gmra.mxu1 %v11013_v7  ;;  %6635 = vmatmul.bf16.gmra.mxu0 %v12489_v17 }
 0x705   : > { %6983 = vst [vmem:[%s8921_s12 + $0xf0] sm:$0xff] %v6935_v51  ;;  %v6420_v47 = vadd.f32 %v6419_v42, %v6351_v29  ;;  %v6358_v29 = vadd.f32 %v11806_v44, %v11732_v24  ;;  %v6361_v24 = vadd.f32 %v11850_v1, %v11755_v49  ;;  %v6363_v49 = vadd.f32 %v11870_v62, %v11794_v26 }
 0x707   : > { %v6489_v39 = vadd.f32 %v6488_v60, %v6420_v47 }
 0x709   : > { %v6889_v4 = vmax.f32 %v6489_v39, 0.0  ;;  %v6490_v37 = vpop.f32.mrf.mxu2  ;;  %v6308_v36 = vpop.f32.mrf.mxu1  ;;  %v6248_v39 = vadd.f32 %v11677_v57, %v11451_v61 }
 0x70a   : > { %v11910_v20 = vadd.f32 %v6308_v36, %v6240_v13 }
 0x70b   : > { %v6937_v16 = vmin.f32 %v6889_v4, 6.0  ;;  %v11947_v36 = vpop.f32.mrf.mxu0 }
 0x70c   : > { %v6421_v55 = vpop.f32.mrf.mxu3 }
 0x70d   : > { %6985 = vst [vmem:[%s8921_s12 + $0x110] sm:$0xff] %v6937_v16  ;;  %v6422_v2 = vadd.f32 %v6421_v55, %v6353_v40 }
 0x70e   : > { %6748 = vmatmul.bf16.gmra.mxu2 %v10970_v27 }
 0x70f   : > { %v6491_v12 = vadd.f32 %v6490_v37, %v6422_v2  ;;  %v6250_v2 = vadd.f32 %v11697_v0, %v11451_v61  ;;  %v7804_v61 = vld [vmem:[%s12215_s9 + $0x218] sm:$0xf0] }
 0x711   : > { %v6891_v21 = vmax.f32 %v6491_v12, 0.0  ;;  %6679 = vmatmul.bf16.gmra.mxu3 %v10941_v34  ;;  %v6493_v28 = vpop.f32.mrf.mxu2  ;;  %v6311_v19 = vpop.f32.mrf.mxu1  ;;  %v8024_v34 = vld [vmem:[%s12215_s9 + $0x224] sm:$0xf] }
 0x712   : > { %v11921_v46 = vadd.f32 %v6311_v19, %v6243_v8  ;;  %v7815_v14 = vor.u32 %v8024_v34, %v7812_v50  ;;  %v6366_v50 = vadd.f32 %v11882_v38, %v11831_v54 }
 0x713   : > { %v6939_v18 = vmin.f32 %v6891_v21, 6.0  ;;  %v11962_v19 = vpop.f32.mrf.mxu0 }
 0x714   : > { %v6424_v15 = vpop.f32.mrf.mxu3  ;;  %6566 = vmatmul.bf16.gmra.mxu1 %v11072_v30  ;;  %6640 = vmatmul.bf16.gmra.mxu0 %v11154_v11 }
 0x715   : > { %6987 = vst [vmem:[%s8921_s12 + $0x130] sm:$0xff] %v6939_v18  ;;  %v6425_v59 = vadd.f32 %v6424_v15, %v6356_v52  ;;  %6809 = vmatpush.bf16.msra.mxu1 %v7815_v14  ;;  %v8022_v15 = vld [vmem:[%s12215_s9 + $0x214] sm:$0xf] }
 0x716   : > { %v7807_v0 = vor.u32 %v8022_v15, %v7804_v61 }
 0x717   : > { %v6494_v32 = vadd.f32 %v6493_v28, %v6425_v59 }
 0x719   : > { %v6893_v53 = vmax.f32 %v6494_v32, 0.0  ;;  %v6495_v33 = vpop.f32.mrf.mxu2  ;;  %v6313_v60 = vpop.f32.mrf.mxu1  ;;  %6810 = vmatpush.bf16.msra.mxu1 %v7807_v0 }
 0x71a   : > { %v11938_v58 = vadd.f32 %v6313_v60, %v6245_v25 }
 0x71b   : > { %v6941_v51 = vmin.f32 %v6893_v53, 6.0  ;;  %v11980_v53 = vpop.f32.mrf.mxu0 }
 0x71c   : > { %v6426_v42 = vpop.f32.mrf.mxu3 }
 0x71d   : > { %6989 = vst [vmem:[%s8921_s12 + $0x150] sm:$0xff] %v6941_v51  ;;  %v6427_v47 = vadd.f32 %v6426_v42, %v6358_v29  ;;  %v6368_v42 = vadd.f32 %v11903_v10, %v11860_v35 }
 0x71e   : > { %6753 = vmatmul.bf16.gmra.mxu2 %v11013_v7 }
 0x71f   : > { %v6496_v45 = vadd.f32 %v6495_v33, %v6427_v47 }
 0x721   : > { %v6895_v13 = vmax.f32 %v6496_v45, 0.0  ;;  %6684 = vmatmul.bf16.gmra.mxu3 %v10970_v27  ;;  %v6498_v4 = vpop.f32.mrf.mxu2  ;;  %v6316_v37 = vpop.f32.mrf.mxu1 }
 0x722   : > { %v11949_v40 = vadd.f32 %v6316_v37, %v6248_v39 }
 0x723   : > { %v6943_v44 = vmin.f32 %v6895_v13, 6.0  ;;  %v11988_v45 = vpop.f32.mrf.mxu0 }
 0x724   : > { %v6429_v16 = vpop.f32.mrf.mxu3  ;;  %6571 = vmatmul.bf16.gmra.mxu1 %v12489_v17  ;;  %6645 = vmatmul.bf16.gmra.mxu0 %v11200_v63 }
 0x725   : > { %6991 = vst [vmem:[%s8921_s12 + $0x170] sm:$0xff] %v6943_v44  ;;  %v6430_v57 = vadd.f32 %v6429_v16, %v6361_v24  ;;  %v6371_v24 = vadd.f32 %v11917_v3, %v11873_v31  ;;  %v8020_v16 = vld [vmem:[%s12215_s9 + $0x204] sm:$0xf] }
 0x727   : > { %v6499_v55 = vadd.f32 %v6498_v4, %v6430_v57  ;;  %v7796_v57 = vld [vmem:[%s12215_s9 + $0x208] sm:$0xf0] }
 0x729   : > { %v6897_v8 = vmax.f32 %v6499_v55, 0.0  ;;  %v6500_v12 = vpop.f32.mrf.mxu2  ;;  %v6318_v21 = vpop.f32.mrf.mxu1  ;;  %v7799_v55 = vor.u32 %v8020_v16, %v7796_v57 }
 0x72a   : > { %v11958_v28 = vadd.f32 %v6318_v21, %v6250_v2  ;;  %v6373_v21 = vadd.f32 %v11936_v23, %v11884_v56 }
 0x72b   : > { %v6945_v1 = vmin.f32 %v6897_v8, 6.0  ;;  %6811 = vmatpush.bf16.msra.mxu1 %v7799_v55 }
 0x72c   : > { %v6431_v52 = vpop.f32.mrf.mxu3 }
 0x72d   : > { %6993 = vst [vmem:[%s8921_s12 + $0x190] sm:$0xff] %v6945_v1  ;;  %v6432_v18 = vadd.f32 %v6431_v52, %v6363_v49 }
 0x72e   : > { %6758 = vmatmul.bf16.gmra.mxu2 %v11072_v30 }
 0x72f   : > { %v6501_v59 = vadd.f32 %v6500_v12, %v6432_v18  ;;  %v6385_v12 = vpop.f32.mrf.mxu0 }
 0x731   : > { %v6899_v26 = vmax.f32 %v6501_v59, 0.0  ;;  %6689 = vmatmul.bf16.gmra.mxu3 %v11013_v7  ;;  %v6503_v62 = vpop.f32.mrf.mxu2  ;;  %v11973_v34 = vpop.f32.mrf.mxu1  ;;  %v6376_v59 = vadd.f32 %v11947_v36, %v11899_v22 }
 0x733   : > { %v6947_v14 = vmin.f32 %v6899_v26, 6.0 }
 0x734   : > { %v6434_v32 = vpop.f32.mrf.mxu3  ;;  %6576 = vmatmul.bf16.gmra.mxu1 %v11154_v11  ;;  %6650 = vmatmul.bf16.gmra.mxu0 %v11274_v6 }
 0x735   : > { %6995 = vst [vmem:[%s8921_s12 + $0x1b0] sm:$0xff] %v6947_v14  ;;  %v6435_v25 = vadd.f32 %v6434_v32, %v6366_v50 }
 0x737   : > { %v6504_v33 = vadd.f32 %v6503_v62, %v6435_v25  ;;  %v6387_v56 = vpop.f32.mrf.mxu0 }
 0x739   : > { %v6901_v60 = vmax.f32 %v6504_v33, 0.0  ;;  %v6505_v29 = vpop.f32.mrf.mxu2  ;;  %v11982_v51 = vpop.f32.mrf.mxu1  ;;  %v6378_v33 = vadd.f32 %v11962_v19, %v11910_v20 }
 0x73b   : > { %v6949_v47 = vmin.f32 %v6901_v60, 6.0 }
 0x73c   : > { %v6436_v54 = vpop.f32.mrf.mxu3 }
 0x73d   : > { %6997 = vst [vmem:[%s8921_s12 + $0x1d0] sm:$0xff] %v6949_v47  ;;  %v6437_v38 = vadd.f32 %v6436_v54, %v6368_v42 }
 0x73e   : > { %6763 = vmatmul.bf16.gmra.mxu2 %v12489_v17 }
 0x73f   : > { %v6506_v39 = vadd.f32 %v6505_v29, %v6437_v38  ;;  %v6381_v38 = vadd.f32 %v11980_v53, %v11921_v46 }
 0x741   : > { %v6903_v13 = vmax.f32 %v6506_v39, 0.0  ;;  %6694 = vmatmul.bf16.gmra.mxu3 %v11072_v30  ;;  %v6508_v4 = vpop.f32.mrf.mxu2  ;;  %v11991_v37 = vpop.f32.mrf.mxu1 }
 0x743   : > { %v6951_v35 = vmin.f32 %v6903_v13, 6.0 }
 0x744   : > { %v6439_v10 = vpop.f32.mrf.mxu3  ;;  %6581 = vmatmul.bf16.gmra.mxu1 %v11200_v63  ;;  %6655 = vmatmul.bf16.gmra.mxu0 %v11334_v5 }
 0x745   : > { %6999 = vst [vmem:[%s8921_s12 + $0x1f0] sm:$0xff] %v6951_v35  ;;  %v6440_v44 = vadd.f32 %v6439_v10, %v6371_v24  ;;  %v6383_v10 = vadd.f32 %v11988_v45, %v11938_v58 }
 0x747   : > { %v6509_v2 = vadd.f32 %v6508_v4, %v6440_v44 }
 0x749   : > { %v6905_v31 = vmax.f32 %v6509_v2, 0.0  ;;  %v6510_v3 = vpop.f32.mrf.mxu2  ;;  %v12004_v8 = vpop.f32.mrf.mxu1 }
 0x74b   : > { %v6953_v49 = vmin.f32 %v6905_v31, 6.0  ;;  %v6386_v31 = vadd.f32 %v6385_v12, %v11949_v40 }
 0x74c   : > { %v6441_v1 = vpop.f32.mrf.mxu3 }
 0x74d   : > { %7001 = vst [vmem:[%s8921_s12 + $0x210] sm:$0xff] %v6953_v49  ;;  %v6442_v52 = vadd.f32 %v6441_v1, %v6373_v21 }
 0x74e   : > { %6768 = vmatmul.bf16.gmra.mxu2 %v11154_v11 }
 0x74f   : > { %v6511_v18 = vadd.f32 %v6510_v3, %v6442_v52  ;;  %v6388_v52 = vadd.f32 %v6387_v56, %v11958_v28 }
 0x751   : > { %v6907_v15 = vmax.f32 %v6511_v18, 0.0  ;;  %6699 = vmatmul.bf16.gmra.mxu3 %v12489_v17  ;;  %v6513_v61 = vpop.f32.mrf.mxu2  ;;  %v12011_v0 = vpop.f32.mrf.mxu1 }
 0x753   : > { %v6955_v26 = vmin.f32 %v6907_v15, 6.0 }
 0x754   : > { %v6444_v23 = vpop.f32.mrf.mxu3  ;;  %6586 = vmatmul.bf16.gmra.mxu1 %v11274_v6  ;;  %6660 = vmatmul.bf16.gmra.mxu0 %v11507_v41 }
 0x755   : > { %7003 = vst [vmem:[%s8921_s12 + $0x230] sm:$0xff] %v6955_v26  ;;  %v6445_v62 = vadd.f32 %v6444_v23, %v6376_v59 }
 0x757   : > { %v6514_v50 = vadd.f32 %v6513_v61, %v6445_v62 }
 0x759   : > { %v6909_v14 = vmax.f32 %v6514_v50, 0.0  ;;  %v6515_v32 = vpop.f32.mrf.mxu2  ;;  %v12018_v25 = vpop.f32.mrf.mxu1 }
 0x75b   : > { %v6957_v60 = vmin.f32 %v6909_v14, 6.0 }
 0x75c   : > { %v6446_v22 = vpop.f32.mrf.mxu3 }
 0x75d   : > { %7005 = vst [vmem:[%s8921_s12 + $0x250] sm:$0xff] %v6957_v60  ;;  %v6447_v36 = vadd.f32 %v6446_v22, %v6378_v33 }
 0x75e   : > { %6773 = vmatmul.bf16.gmra.mxu2 %v11200_v63 }
 0x75f   : > { %v6516_v29 = vadd.f32 %v6515_v32, %v6447_v36 }
 0x761   : > { %v6911_v42 = vmax.f32 %v6516_v29, 0.0  ;;  %6704 = vmatmul.bf16.gmra.mxu3 %v11154_v11  ;;  %v6518_v47 = vpop.f32.mrf.mxu2  ;;  %v12025_v54 = vpop.f32.mrf.mxu1 }
 0x763   : > { %v6959_v39 = vmin.f32 %v6911_v42, 6.0 }
 0x764   : > { %v6449_v13 = vpop.f32.mrf.mxu3  ;;  %6591 = vmatmul.bf16.gmra.mxu1 %v11334_v5 }
 0x765   : > { %7007 = vst [vmem:[%s8921_s12 + $0x270] sm:$0xff] %v6959_v39  ;;  %v6450_v20 = vadd.f32 %v6449_v13, %v6381_v38 }
 0x767   : > { %v6519_v19 = vadd.f32 %v6518_v47, %v6450_v20 }
 0x769   : > { %v6913_v4 = vmax.f32 %v6519_v19, 0.0  ;;  %v6520_v24 = vpop.f32.mrf.mxu2  ;;  %v12031_v35 = vpop.f32.mrf.mxu1 }
 0x76b   : > { %v6961_v44 = vmin.f32 %v6913_v4, 6.0 }
 0x76c   : > { %v6451_v16 = vpop.f32.mrf.mxu3 }
 0x76d   : > { %7009 = vst [vmem:[%s8921_s12 + $0x290] sm:$0xff] %v6961_v44  ;;  %v6452_v57 = vadd.f32 %v6451_v16, %v6383_v10 }
 0x76e   : > { %6778 = vmatmul.bf16.gmra.mxu2 %v11274_v6 }
 0x76f   : > { %v6521_v46 = vadd.f32 %v6520_v24, %v6452_v57 }
 0x771   : > { %v6915_v53 = vmax.f32 %v6521_v46, 0.0  ;;  %6709 = vmatmul.bf16.gmra.mxu3 %v11200_v63  ;;  %v12038_v55 = vpop.f32.mrf.mxu1  ;;  %v6523_v2 = vpop.f32.mrf.mxu2 }
 0x773   : > { %v6963_v3 = vmin.f32 %v6915_v53, 6.0 }
 0x774   : > { %v6454_v21 = vpop.f32.mrf.mxu3  ;;  %6812 = vmatmul.bf16.vlgmr.msra.gmra.mxu1 %v10970_v27 }
 0x775   : > { %7011 = vst [vmem:[%s8921_s12 + $0x2b0] sm:$0xff] %v6963_v3  ;;  %v6455_v58 = vadd.f32 %v6454_v21, %v6386_v31 }
 0x777   : > { %v6524_v45 = vadd.f32 %v6523_v2, %v6455_v58 }
 0x779   : > { %v6917_v49 = vmax.f32 %v6524_v45, 0.0  ;;  %v12043_v1 = vpop.f32.mrf.mxu1  ;;  %v6525_v61 = vpop.f32.mrf.mxu2 }
 0x77b   : > { %v6965_v18 = vmin.f32 %v6917_v49, 6.0 }
 0x77c   : > { %v6456_v15 = vpop.f32.mrf.mxu3 }
 0x77d   : > { %7013 = vst [vmem:[%s8921_s12 + $0x2d0] sm:$0xff] %v6965_v18  ;;  %v6457_v59 = vadd.f32 %v6456_v15, %v6388_v52 }
 0x77e   : > { %6783 = vmatmul.bf16.gmra.mxu2 %v11334_v5 }
 0x77f   : > { %v6526_v40 = vadd.f32 %v6525_v61, %v6457_v59 }
 0x781   : > { %v6919_v12 = vmax.f32 %v6526_v40, 0.0  ;;  %6714 = vmatmul.bf16.gmra.mxu3 %v11274_v6  ;;  %v12049_v27 = vpop.f32.mrf.mxu1  ;;  %v6744_v33 = vpop.f32.mrf.mxu2 }
 0x783   : > { %v6967_v26 = vmin.f32 %v6919_v12, 6.0 }
 0x784   : > { %6817 = vmatmul.bf16.gmra.mxu1 %v11013_v7  ;;  %v6675_v32 = vpop.f32.mrf.mxu3 }
 0x785   : > { %7015 = vst [vmem:[%s8921_s12 + $0x2f0] sm:$0xff] %v6967_v26 }
 0x789   : > { %v12053_v23 = vpop.f32.mrf.mxu1  ;;  %v6746_v36 = vpop.f32.mrf.mxu2 }
 0x78e   : > { %6788 = vmatmul.bf16.gmra.mxu2 %v11507_v41 }
 0x791   : > { %6719 = vmatmul.bf16.gmra.mxu3 %v11334_v5  ;;  %v12057_v28 = vpop.f32.mrf.mxu1  ;;  %v6749_v39 = vpop.f32.mrf.mxu2 }
 0x794   : > { %6822 = vmatmul.bf16.gmra.mxu1 %v11072_v30  ;;  %v6606_v30 = vpop.f32.mrf.mxu0 }
 0x799   : > { %v12060_v56 = vpop.f32.mrf.mxu1  ;;  %v6751_v19 = vpop.f32.mrf.mxu2 }
 0x79c   : > { %v6608_v22 = vpop.f32.mrf.mxu0 }
 0x79e   : > { %6793 = vmatmul.bf16.gmra.mxu2 %v11571_v48 }
 0x7a1   : > { %6724 = vmatmul.bf16.gmra.mxu3 %v11507_v41  ;;  %v12064_v62 = vpop.f32.mrf.mxu1  ;;  %v6754_v16 = vpop.f32.mrf.mxu2 }
 0x7a4   : > { %6827 = vmatmul.bf16.gmra.mxu1 %v12489_v17  ;;  %v6677_v17 = vpop.f32.mrf.mxu3  ;;  %v6611_v42 = vpop.f32.mrf.mxu0 }
 0x7a9   : > { %v12067_v7 = vpop.f32.mrf.mxu1  ;;  %v6756_v58 = vpop.f32.mrf.mxu2 }
 0x7ac   : > { %v6680_v47 = vpop.f32.mrf.mxu3 }
 0x7ae   : > { %6798 = vmatmul.bf16.gmra.mxu2 %v11796_v9 }
 0x7b1   : > { %6729 = vmatmul.bf16.gmra.mxu3 %v11571_v48  ;;  %v12071_v50 = vpop.f32.mrf.mxu1 }
 0x7b4   : > { %6832 = vmatmul.bf16.gmra.mxu1 %v11154_v11  ;;  %v6613_v11 = vpop.f32.mrf.mxu0  ;;  %v6682_v13 = vpop.f32.mrf.mxu3 }
 0x7b9   : > { %v12074_v14 = vpop.f32.mrf.mxu1 }
 0x7bc   : > { %v6616_v4 = vpop.f32.mrf.mxu0  ;;  %v6685_v44 = vpop.f32.mrf.mxu3 }
 0x7c1   : > { %v12076_v60 = vpop.f32.mrf.mxu1 }
 0x7c4   : > { %6837 = vmatmul.bf16.gmra.mxu1 %v11200_v63  ;;  %v8172_v63 = vld [vmem:[%s12216_s10] sm:$0x3]  ;;  %v6618_v53 = vpop.f32.mrf.mxu0  ;;  %v6687_v31 = vpop.f32.mrf.mxu3 }
 0x7c5   : > { %v12091_v10 = vperm.slane %v8172_v63, 1 }
 0x7c7   : > { %v6540_v3 = vadd.f32 %v11982_v51, %v12091_v10  ;;  %v6543_v15 = vadd.f32 %v11991_v37, %v12091_v10 }
 0x7c9   : > { %v12079_v29 = vpop.f32.mrf.mxu1  ;;  %v6609_v49 = vadd.f32 %v6608_v22, %v6540_v3  ;;  %v6612_v51 = vadd.f32 %v6611_v42, %v6543_v15  ;;  %v6545_v22 = vadd.f32 %v12004_v8, %v12091_v10 }
 0x7cc   : > { %v6690_v59 = vpop.f32.mrf.mxu3 }
 0x7d1   : > { %v12081_v38 = vpop.f32.mrf.mxu1 }
 0x7d4   : > { %6842 = vmatmul.bf16.gmra.mxu1 %v11274_v6  ;;  %v6538_v6 = vadd.f32 %v11973_v34, %v12091_v10  ;;  %v6621_v34 = vpop.f32.mrf.mxu0 }
 0x7d6   : > { %v6607_v46 = vadd.f32 %v6606_v30, %v6538_v6  ;;  %v6759_v30 = vpop.f32.mrf.mxu2  ;;  %v6692_v6 = vpop.f32.mrf.mxu3 }
 0x7d8   : > { %v6676_v2 = vadd.f32 %v6675_v32, %v6607_v46  ;;  %v6681_v32 = vadd.f32 %v6680_v47, %v6612_v51  ;;  %v6614_v46 = vadd.f32 %v6613_v11, %v6545_v22  ;;  %v6548_v47 = vadd.f32 %v12011_v0, %v12091_v10 }
 0x7d9   : > { %v12084_v20 = vpop.f32.mrf.mxu1 }
 0x7da   : > { %v6745_v21 = vadd.f32 %v6744_v33, %v6676_v2  ;;  %v6750_v63 = vadd.f32 %v6749_v39, %v6681_v32  ;;  %v6617_v39 = vadd.f32 %v6616_v4, %v6548_v47 }
 0x7de   : > { %v6761_v42 = vpop.f32.mrf.mxu2 }
 0x7e1   : > { %v12086_v24 = vpop.f32.mrf.mxu1 }
 0x7e4   : > { %6847 = vmatmul.bf16.gmra.mxu1 %v11334_v5  ;;  %v6678_v5 = vadd.f32 %v6677_v17, %v6609_v49  ;;  %v6623_v17 = vpop.f32.mrf.mxu0 }
 0x7e6   : > { %v6747_v40 = vadd.f32 %v6746_v36, %v6678_v5  ;;  %v6683_v36 = vadd.f32 %v6682_v13, %v6614_v46  ;;  %v6695_v5 = vpop.f32.mrf.mxu3  ;;  %v6550_v13 = vadd.f32 %v12018_v25, %v12091_v10  ;;  %v6764_v15 = vpop.f32.mrf.mxu2 }
 0x7e8   : > { %v6752_v8 = vadd.f32 %v6751_v19, %v6683_v36  ;;  %v6619_v0 = vadd.f32 %v6618_v53, %v6550_v13 }
 0x7e9   : > { %v12096_v57 = vpop.f32.mrf.mxu1 }
 0x7ea   : > { %v6688_v51 = vadd.f32 %v6687_v31, %v6619_v0  ;;  %v6555_v31 = vadd.f32 %v12031_v35, %v12091_v10 }
 0x7ec   : > { %v6757_v25 = vadd.f32 %v6756_v58, %v6688_v51 }
 0x7ee   : > { %v6697_v4 = vpop.f32.mrf.mxu3 }
 0x7f1   : > { %v6813_v45 = vpop.f32.mrf.mxu1 }
 0x7f2   : > { %v6814_v52 = vadd.f32 %v6813_v45, %v6745_v21  ;;  %v6626_v45 = vpop.f32.mrf.mxu0 }
 0x7f4   : > { %v6874_v18 = vmax.f32 %v6814_v52, 0.0  ;;  %6852 = vmatmul.bf16.gmra.mxu1 %v11507_v41 }
 0x7f6   : > { %v6922_v61 = vmin.f32 %v6874_v18, 6.0  ;;  %v6686_v18 = vadd.f32 %v6685_v44, %v6617_v39  ;;  %v6553_v44 = vadd.f32 %v12025_v54, %v12091_v10  ;;  %v6700_v46 = vpop.f32.mrf.mxu3  ;;  %v6624_v54 = vadd.f32 %v6623_v17, %v6555_v31 }
 0x7f8   : > { %6970 = vst [vmem:[%s8921_s12 + $0x18] sm:$0xff] %v6922_v61  ;;  %v6755_v61 = vadd.f32 %v6754_v16, %v6686_v18  ;;  %v6622_v16 = vadd.f32 %v6621_v34, %v6553_v44  ;;  %v6693_v47 = vadd.f32 %v6692_v6, %v6624_v54  ;;  %v6558_v34 = vadd.f32 %v12038_v55, %v12091_v10 }
 0x7f9   : > { %v6815_v12 = vpop.f32.mrf.mxu1  ;;  %v6560_v6 = vadd.f32 %v12043_v1, %v12091_v10 }
 0x7fa   : > { %v6816_v26 = vadd.f32 %v6815_v12, %v6747_v40  ;;  %v6628_v19 = vpop.f32.mrf.mxu0  ;;  %v6762_v35 = vadd.f32 %v6761_v42, %v6693_v47 }
 0x7fc   : > { %v6876_v33 = vmax.f32 %v6816_v26, 0.0 }
 0x7fe   : > { %v6924_v41 = vmin.f32 %v6876_v33, 6.0  ;;  %v6766_v33 = vpop.f32.mrf.mxu2 }
 0x800   : > { %6972 = vst [vmem:[%s8921_s12 + $0x38] sm:$0xff] %v6924_v41 }
 0x801   : > { %v6818_v37 = vpop.f32.mrf.mxu1 }
 0x802   : > { %v6819_v2 = vadd.f32 %v6818_v37, %v6750_v63  ;;  %v6691_v63 = vadd.f32 %v6690_v59, %v6622_v16  ;;  %v6631_v37 = vpop.f32.mrf.mxu0 }
 0x804   : > { %v6878_v3 = vmax.f32 %v6819_v2, 0.0  ;;  %6857 = vmatmul.bf16.gmra.mxu1 %v11571_v48  ;;  %v6760_v2 = vadd.f32 %v6759_v30, %v6691_v63  ;;  %v6627_v30 = vadd.f32 %v6626_v45, %v6558_v34  ;;  %v6563_v45 = vadd.f32 %v12049_v27, %v12091_v10 }
 0x806   : > { %v6926_v21 = vmin.f32 %v6878_v3, 6.0  ;;  %v6769_v58 = vpop.f32.mrf.mxu2  ;;  %v6696_v18 = vadd.f32 %v6695_v5, %v6627_v30  ;;  %v6632_v1 = vadd.f32 %v6631_v37, %v6563_v45  ;;  %v6568_v37 = vadd.f32 %v12057_v28, %v12091_v10 }
 0x808   : > { %6974 = vst [vmem:[%s8921_s12 + $0x58] sm:$0xff] %v6926_v21  ;;  %v6765_v13 = vadd.f32 %v6764_v15, %v6696_v18 }
 0x809   : > { %v6820_v49 = vpop.f32.mrf.mxu1 }
 0x80a   : > { %v6821_v52 = vadd.f32 %v6820_v49, %v6752_v8  ;;  %v6633_v8 = vpop.f32.mrf.mxu0  ;;  %v6702_v49 = vpop.f32.mrf.mxu3 }
 0x80c   : > { %v6880_v11 = vmax.f32 %v6821_v52, 0.0 }
 0x80e   : > { %v6928_v48 = vmin.f32 %v6880_v11, 6.0  ;;  %v6771_v11 = vpop.f32.mrf.mxu2 }
 0x810   : > { %6976 = vst [vmem:[%s8921_s12 + $0x78] sm:$0xff] %v6928_v48 }
 0x811   : > { %v6823_v40 = vpop.f32.mrf.mxu1 }
 0x812   : > { %v6824_v12 = vadd.f32 %v6823_v40, %v6755_v61  ;;  %v6636_v48 = vpop.f32.mrf.mxu0  ;;  %v6629_v61 = vadd.f32 %v6628_v19, %v6560_v6  ;;  %v6705_v42 = vpop.f32.mrf.mxu3  ;;  %v6565_v19 = vadd.f32 %v12053_v23, %v12091_v10  ;;  %v6573_v6 = vadd.f32 %v12064_v62, %v12091_v10 }
 0x813   : > { %v6637_v23 = vadd.f32 %v6636_v48, %v6568_v37 }
 0x814   : > { %v6882_v26 = vmax.f32 %v6824_v12, 0.0  ;;  %6862 = vmatmul.bf16.gmra.mxu1 %v11796_v9  ;;  %v6698_v0 = vadd.f32 %v6697_v4, %v6629_v61 }
 0x816   : > { %v6930_v32 = vmin.f32 %v6882_v26, 6.0  ;;  %v6774_v51 = vpop.f32.mrf.mxu2  ;;  %v6767_v26 = vadd.f32 %v6766_v33, %v6698_v0 }
 0x818   : > { %6978 = vst [vmem:[%s8921_s12 + $0x98] sm:$0xff] %v6930_v32 }
 0x819   : > { %v6825_v22 = vpop.f32.mrf.mxu1 }
 0x81a   : > { %v6826_v41 = vadd.f32 %v6825_v22, %v6757_v25  ;;  %v6638_v15 = vpop.f32.mrf.mxu0  ;;  %v6701_v25 = vadd.f32 %v6700_v46, %v6632_v1  ;;  %v6707_v16 = vpop.f32.mrf.mxu3 }
 0x81c   : > { %v6884_v53 = vmax.f32 %v6826_v41, 0.0  ;;  %v6770_v41 = vadd.f32 %v6769_v58, %v6701_v25 }
 0x81e   : > { %v6932_v9 = vmin.f32 %v6884_v53, 6.0  ;;  %v6776_v63 = vpop.f32.mrf.mxu2  ;;  %v6634_v53 = vadd.f32 %v6633_v8, %v6565_v19 }
 0x820   : > { %6980 = vst [vmem:[%s8921_s12 + $0xb8] sm:$0xff] %v6932_v9  ;;  %v6703_v33 = vadd.f32 %v6702_v49, %v6634_v53 }
 0x821   : > { %v6828_v36 = vpop.f32.mrf.mxu1 }
 0x822   : > { %v6829_v3 = vadd.f32 %v6828_v36, %v6760_v2  ;;  %v6641_v2 = vpop.f32.mrf.mxu0  ;;  %v6710_v36 = vpop.f32.mrf.mxu3  ;;  %v6772_v54 = vadd.f32 %v6771_v11, %v6703_v33  ;;  %v6580_v33 = vadd.f32 %v12074_v14, %v12091_v10 }
 0x824   : > { %v6886_v21 = vmax.f32 %v6829_v3, 0.0  ;;  %6867 = vmatmul.bf16.gmra.mxu1 %v11862_v43 }
 0x826   : > { %v6934_v59 = vmin.f32 %v6886_v21, 6.0  ;;  %v6779_v58 = vpop.f32.mrf.mxu2  ;;  %v6706_v21 = vadd.f32 %v6705_v42, %v6637_v23 }
 0x828   : > { %6982 = vst [vmem:[%s8921_s12 + $0xd8] sm:$0xff] %v6934_v59  ;;  %v6570_v59 = vadd.f32 %v12060_v56, %v12091_v10  ;;  %v6775_v49 = vadd.f32 %v6774_v51, %v6706_v21 }
 0x829   : > { %v6830_v39 = vpop.f32.mrf.mxu1 }
 0x82a   : > { %v6831_v52 = vadd.f32 %v6830_v39, %v6762_v35  ;;  %v6643_v35 = vpop.f32.mrf.mxu0  ;;  %v6712_v39 = vpop.f32.mrf.mxu3  ;;  %v6639_v30 = vadd.f32 %v6638_v15, %v6570_v59 }
 0x82c   : > { %v6888_v17 = vmax.f32 %v6831_v52, 0.0  ;;  %v6708_v18 = vadd.f32 %v6707_v16, %v6639_v30  ;;  %v6585_v30 = vadd.f32 %v12079_v29, %v12091_v10 }
 0x82e   : > { %v6936_v43 = vmin.f32 %v6888_v17, 6.0  ;;  %v6781_v11 = vpop.f32.mrf.mxu2 }
 0x830   : > { %6984 = vst [vmem:[%s8921_s12 + $0xf8] sm:$0xff] %v6936_v43 }
 0x831   : > { %v6833_v55 = vpop.f32.mrf.mxu1 }
 0x832   : > { %v6834_v40 = vadd.f32 %v6833_v55, %v6765_v13  ;;  %v6777_v13 = vadd.f32 %v6776_v63, %v6708_v18  ;;  %v6646_v48 = vpop.f32.mrf.mxu0  ;;  %v6642_v55 = vadd.f32 %v6641_v2, %v6573_v6 }
 0x834   : > { %v6890_v12 = vmax.f32 %v6834_v40, 0.0  ;;  %v6715_v40 = vpop.f32.mrf.mxu3  ;;  %v6711_v42 = vadd.f32 %v6710_v36, %v6642_v55 }
 0x836   : > { %v6938_v5 = vmin.f32 %v6890_v12, 6.0  ;;  %v6575_v12 = vadd.f32 %v12067_v7, %v12091_v10  ;;  %v6780_v51 = vadd.f32 %v6779_v58, %v6711_v42 }
 0x838   : > { %6986 = vst [vmem:[%s8921_s12 + $0x118] sm:$0xff] %v6938_v5  ;;  %v6784_v5 = vpop.f32.mrf.mxu2  ;;  %v6644_v62 = vadd.f32 %v6643_v35, %v6575_v12 }
 0x839   : > { %v6835_v44 = vpop.f32.mrf.mxu1 }
 0x83a   : > { %v6836_v32 = vadd.f32 %v6835_v44, %v6767_v26  ;;  %v6648_v1 = vpop.f32.mrf.mxu0 }
 0x83c   : > { %v6892_v22 = vmax.f32 %v6836_v32, 0.0  ;;  %v6713_v32 = vadd.f32 %v6712_v39, %v6644_v62  ;;  %v6717_v25 = vpop.f32.mrf.mxu3 }
 0x83e   : > { %v6940_v4 = vmin.f32 %v6892_v22, 6.0  ;;  %v6578_v22 = vadd.f32 %v12071_v50, %v12091_v10  ;;  %v6782_v19 = vadd.f32 %v6781_v11, %v6713_v32  ;;  %v6649_v50 = vadd.f32 %v6648_v1, %v6580_v33 }
 0x840   : > { %6988 = vst [vmem:[%s8921_s12 + $0x138] sm:$0xff] %v6940_v4  ;;  %v6786_v4 = vpop.f32.mrf.mxu2 }
 0x841   : > { %v6838_v27 = vpop.f32.mrf.mxu1 }
 0x842   : > { %v6839_v31 = vadd.f32 %v6838_v27, %v6770_v41  ;;  %v6647_v41 = vadd.f32 %v6646_v48, %v6578_v22 }
 0x844   : > { %v6894_v9 = vmax.f32 %v6839_v31, 0.0  ;;  %v6716_v27 = vadd.f32 %v6715_v40, %v6647_v41  ;;  %v6651_v31 = vpop.f32.mrf.mxu0  ;;  %v6720_v2 = vpop.f32.mrf.mxu3 }
 0x846   : > { %v6942_v46 = vmin.f32 %v6894_v9, 6.0  ;;  %v6785_v37 = vadd.f32 %v6784_v5, %v6716_v27 }
 0x848   : > { %6990 = vst [vmem:[%s8921_s12 + $0x158] sm:$0xff] %v6942_v46 }
 0x849   : > { %v6840_v3 = vpop.f32.mrf.mxu1 }
 0x84a   : > { %v6841_v47 = vadd.f32 %v6840_v3, %v6772_v54  ;;  %v6789_v54 = vpop.f32.mrf.mxu2  ;;  %v6718_v3 = vadd.f32 %v6717_v25, %v6649_v50 }
 0x84c   : > { %v6896_v34 = vmax.f32 %v6841_v47, 0.0  ;;  %v6583_v47 = vadd.f32 %v12076_v60, %v12091_v10  ;;  %v6653_v21 = vpop.f32.mrf.mxu0  ;;  %v6722_v59 = vpop.f32.mrf.mxu3 }
 0x84d   : > { %v6654_v11 = vadd.f32 %v6653_v21, %v6585_v30 }
 0x84e   : > { %v6944_v8 = vmin.f32 %v6896_v34, 6.0  ;;  %v6787_v34 = vadd.f32 %v6786_v4, %v6718_v3 }
 0x850   : > { %6992 = vst [vmem:[%s8921_s12 + $0x178] sm:$0xff] %v6944_v8  ;;  %v6652_v8 = vadd.f32 %v6651_v31, %v6583_v47 }
 0x851   : > { %v6843_v28 = vpop.f32.mrf.mxu1 }
 0x852   : > { %v6844_v52 = vadd.f32 %v6843_v28, %v6775_v49  ;;  %v6721_v49 = vadd.f32 %v6720_v2, %v6652_v8  ;;  %v6791_v28 = vpop.f32.mrf.mxu2 }
 0x854   : > { %v6898_v17 = vmax.f32 %v6844_v52, 0.0  ;;  %v6790_v18 = vadd.f32 %v6789_v54, %v6721_v49 }
 0x856   : > { %v6946_v43 = vmin.f32 %v6898_v17, 6.0  ;;  %v6656_v17 = vpop.f32.mrf.mxu0 }
 0x858   : > { %6994 = vst [vmem:[%s8921_s12 + $0x198] sm:$0xff] %v6946_v43  ;;  %v6725_v43 = vpop.f32.mrf.mxu3 }
 0x859   : > { %v6845_v56 = vpop.f32.mrf.mxu1 }
 0x85a   : > { %v6846_v61 = vadd.f32 %v6845_v56, %v6777_v13  ;;  %v6723_v13 = vadd.f32 %v6722_v59, %v6654_v11  ;;  %v6588_v56 = vadd.f32 %v12081_v38, %v12091_v10 }
 0x85c   : > { %v6900_v0 = vmax.f32 %v6846_v61, 0.0  ;;  %v6794_v61 = vpop.f32.mrf.mxu2  ;;  %v6792_v40 = vadd.f32 %v6791_v28, %v6723_v13  ;;  %v6657_v29 = vadd.f32 %v6656_v17, %v6588_v56 }
 0x85e   : > { %v6948_v45 = vmin.f32 %v6900_v0, 6.0  ;;  %v6658_v12 = vpop.f32.mrf.mxu0 }
 0x860   : > { %6996 = vst [vmem:[%s8921_s12 + $0x1b8] sm:$0xff] %v6948_v45  ;;  %v6726_v45 = vadd.f32 %v6725_v43, %v6657_v29 }
 0x861   : > { %v6848_v26 = vpop.f32.mrf.mxu1 }
 0x862   : > { %v6849_v44 = vadd.f32 %v6848_v26, %v6780_v51  ;;  %v6727_v51 = vpop.f32.mrf.mxu3  ;;  %v6590_v26 = vadd.f32 %v12084_v20, %v12091_v10 }
 0x864   : > { %v6902_v15 = vmax.f32 %v6849_v44, 0.0  ;;  %v6795_v44 = vadd.f32 %v6794_v61, %v6726_v45  ;;  %v6796_v1 = vpop.f32.mrf.mxu2  ;;  %v6659_v32 = vadd.f32 %v6658_v12, %v6590_v26 }
 0x866   : > { %v6950_v16 = vmin.f32 %v6902_v15, 6.0  ;;  %v6728_v25 = vadd.f32 %v6727_v51, %v6659_v32 }
 0x868   : > { %6998 = vst [vmem:[%s8921_s12 + $0x1d8] sm:$0xff] %v6950_v16  ;;  %v6661_v16 = vpop.f32.mrf.mxu0  ;;  %v6797_v41 = vadd.f32 %v6796_v1, %v6728_v25 }
 0x869   : > { %v6850_v7 = vpop.f32.mrf.mxu1 }
 0x86a   : > { %v6851_v63 = vadd.f32 %v6850_v7, %v6782_v19  ;;  %v6593_v19 = vadd.f32 %v12086_v24, %v12091_v10  ;;  %v6730_v7 = vpop.f32.mrf.mxu3 }
 0x86c   : > { %v6904_v53 = vmax.f32 %v6851_v63, 0.0  ;;  %v6662_v20 = vadd.f32 %v6661_v16, %v6593_v19 }
 0x86e   : > { %v6952_v9 = vmin.f32 %v6904_v53, 6.0  ;;  %v6799_v53 = vpop.f32.mrf.mxu2  ;;  %v6731_v31 = vadd.f32 %v6730_v7, %v6662_v20 }
 0x870   : > { %7000 = vst [vmem:[%s8921_s12 + $0x1f8] sm:$0xff] %v6952_v9  ;;  %v6595_v9 = vadd.f32 %v12096_v57, %v12091_v10 }
 0x871   : > { %v6853_v46 = vpop.f32.mrf.mxu1 }
 0x872   : > { %v6854_v36 = vadd.f32 %v6853_v46, %v6785_v37  ;;  %v6663_v37 = vpop.f32.mrf.mxu0  ;;  %v6800_v46 = vadd.f32 %v6799_v53, %v6731_v31  ;;  %v6732_v24 = vpop.f32.mrf.mxu3 }
 0x874   : > { %v6906_v23 = vmax.f32 %v6854_v36, 0.0  ;;  %v6664_v36 = vadd.f32 %v6663_v37, %v6595_v9 }
 0x876   : > { %v6954_v58 = vmin.f32 %v6906_v23, 6.0  ;;  %v6733_v3 = vadd.f32 %v6732_v24, %v6664_v36  ;;  %v6801_v47 = vpop.f32.mrf.mxu2 }
 0x878   : > { %7002 = vst [vmem:[%s8921_s12 + $0x218] sm:$0xff] %v6954_v58  ;;  %v6802_v21 = vadd.f32 %v6801_v47, %v6733_v3 }
 0x879   : > { %v6855_v14 = vpop.f32.mrf.mxu1 }
 0x87a   : > { %v6856_v35 = vadd.f32 %v6855_v14, %v6787_v34 }
 0x87c   : > { %v6908_v39 = vmax.f32 %v6856_v35, 0.0 }
 0x87e   : > { %v6956_v52 = vmin.f32 %v6908_v39, 6.0 }
 0x880   : > { %7004 = vst [vmem:[%s8921_s12 + $0x238] sm:$0xff] %v6956_v52 }
 0x881   : > { %v6858_v60 = vpop.f32.mrf.mxu1 }
 0x882   : > { %v6859_v6 = vadd.f32 %v6858_v60, %v6790_v18 }
 0x884   : > { %v6910_v48 = vmax.f32 %v6859_v6, 0.0 }
 0x886   : > { %v6958_v55 = vmin.f32 %v6910_v48, 6.0 }
 0x888   : > { %7006 = vst [vmem:[%s8921_s12 + $0x258] sm:$0xff] %v6958_v55 }
 0x889   : > { %v6860_v42 = vpop.f32.mrf.mxu1 }
 0x88a   : > { %v6861_v0 = vadd.f32 %v6860_v42, %v6792_v40 }
 0x88c   : > { %v6912_v5 = vmax.f32 %v6861_v0, 0.0 }
 0x88e   : > { %v6960_v62 = vmin.f32 %v6912_v5, 6.0 }
 0x890   : > { %7008 = vst [vmem:[%s8921_s12 + $0x278] sm:$0xff] %v6960_v62 }
 0x891   : > { %v6863_v38 = vpop.f32.mrf.mxu1 }
 0x892   : > { %v6864_v15 = vadd.f32 %v6863_v38, %v6795_v44 }
 0x894   : > { %v6914_v22 = vmax.f32 %v6864_v15, 0.0 }
 0x896   : > { %v6962_v4 = vmin.f32 %v6914_v22, 6.0 }
 0x898   : > { %7010 = vst [vmem:[%s8921_s12 + $0x298] sm:$0xff] %v6962_v4 }
 0x899   : > { %v6865_v63 = vpop.f32.mrf.mxu1 }
 0x89a   : > { %v6866_v27 = vadd.f32 %v6865_v63, %v6797_v41 }
 0x89c   : > { %v6916_v33 = vmax.f32 %v6866_v27, 0.0 }
 0x89e   : > { %v6964_v2 = vmin.f32 %v6916_v33, 6.0 }
 0x8a0   : > { %7012 = vst [vmem:[%s8921_s12 + $0x2b8] sm:$0xff] %v6964_v2 }
 0x8a1   : > { %v6868_v50 = vpop.f32.mrf.mxu1 }
 0x8a2   : > { %v6869_v54 = vadd.f32 %v6868_v50, %v6800_v46 }
 0x8a4   : > { %v6918_v23 = vmax.f32 %v6869_v54, 0.0 }
 0x8a6   : > { %v6966_v58 = vmin.f32 %v6918_v23, 6.0 }
 0x8a8   : > { %7014 = vst [vmem:[%s8921_s12 + $0x2d8] sm:$0xff] %v6966_v58 }
 0x8a9   : > { %v6870_v10 = vpop.f32.mrf.mxu1 }
 0x8aa   : > { %v6871_v57 = vadd.f32 %v6870_v10, %v6802_v21 }
 0x8ac   : > { %v6920_v34 = vmax.f32 %v6871_v57, 0.0 }
 0x8ae   : > { %v6968_v59 = vmin.f32 %v6920_v34, 6.0 }
 0x8b0   : > { %7016 = vst [vmem:[%s8921_s12 + $0x2f8] sm:$0xff] %v6968_v59 }
 0x8b1   : > { %8200 = shalt.err (!%p8197_p4)
}
 0x8b2   : > { %s8241_s12 = smov 512   ;;  %s8242_s30 = smov 32  }
 0x8b3   : > { %8123 = dma.vmem_to_hbm [thread:$0]  (%p8341_p5), %s7031_s16, 12288, %s7033_s22, %s7018_s21, %s8241_s12, %s8241_s12, %s8242_s30  }
 0x8b4 PF: > { %p8129_p7 = scmp.ge.s32.totalorder %s8235_s20, 2  ;;  %s7047_s13 = sand.u32 1, %s8223_s17  }
 0x8b5   : > { %s7048_s14 = scalar_lea.sflag [#allocation4], %s7047_s13 }
 0x8b6   : > { %p8126_p8 = pnand %p8129_p7, %p8345_p6 }
 0x8b8   : > { %p8127_p9 = pneg %p8126_p8 }
 0x8ba   : > { %8218 = dma.done.wait (%p8127_p9), %s7048_s14, 12288  }
 0x8bb   : > { %8220 = vsyncadd (%p8127_p9), %s7048_s14, 4294955008  ;;  %p21_p10 = scmp.ge.s32.totalorder %s8328_s23, 4   ;;  %s12491_s17 = smov %s8227_s18 }
 0x8bc   : > { %s12492_s18 = smov %s8231_s19  ;;  %s12493_s19 = smov %s8339_s26 }
 0x8bd   : > { %s12494_s20 = smov %s8328_s23  ;;  %23 = sbr.rel (!%p21_p10) target bundleno = 5 (0x5), region = 103 }
 0x8c2   :  { %7054 = vsyncpa [#allocation4], 1 }
 0x8c3   :  { %7056 = vsyncpa [#allocation4 + $0x1], 1 }

</bundles_post_ra>
